<compile_context>
chip_gen: v5e
topology: v5e:2x2
jax: 0.10.0
libtpu: 0.0.40
codegen_flags: <defaults>
</compile_context>

<pallas_src>
import functools

import jax
import jax.numpy as jnp
from jax import lax
from jax.experimental import pallas as pl
from jax.experimental.pallas import tpu as pltpu

_LANE = 128


def _round_up(x, m):
    return ((x + m - 1) // m) * m


def _vmem_limit_bytes():
    # ~75% of physical VMEM, capped at 96 MiB (v5e/v6e: 96 MiB, v7x: 48 MiB).
    try:
        cap = pltpu.get_tpu_info().vmem_capacity_bytes
    except Exception:
        cap = 64 * 1024 * 1024
    return int(max(32 * 1024 * 1024, min(cap * 3 // 4, 96 * 1024 * 1024)))


# ----------------------------------------------------------------------------
# Tap-packed convolution kernel (conv == ONE matmul with K = taps * Cin)
# ----------------------------------------------------------------------------

def _conv_tap_kernel(x_ref, w_ref, o_ref, *scratch, row0s, m_rows, cin):
    """One image x one 128-wide output-channel tile.

    x_ref : (1, Lp, Cin)    bf16 flattened (phase-major) padded input
    w_ref : (T*Cin, TN)     bf16 tap-packed weights for this tile
    o_ref : (1, m_rows, TN) bf16/f32 output tile
    scratch (only when T>1): (m_rows, T*Cin) bf16 staging tile
    """
    n_taps = len(row0s)
    if n_taps == 1:
        r0 = row0s[0]
        o_ref[0] = jnp.dot(
            x_ref[0, r0:r0 + m_rows, :], w_ref[...],
            preferred_element_type=jnp.float32).astype(o_ref.dtype)
    else:
        stage_ref, = scratch
        # Pack taps into the contraction dim: T static unit-stride copies,
        # then a single K = T*Cin MXU matmul (no per-tap accumulator RMW).
        for t, r0 in enumerate(row0s):
            stage_ref[:, t * cin:(t + 1) * cin] = x_ref[0, r0:r0 + m_rows, :]
        o_ref[0] = jnp.dot(
            stage_ref[...], w_ref[...],
            preferred_element_type=jnp.float32).astype(o_ref.dtype)


def conv2d_mxu(x, w, *, stride=1, padding=0, out_dtype=jnp.bfloat16):
    """Bias-free NHWC convolution on the MXU with lane-dense padded channels.

    x: (B, H, W, Cx) with Cx >= w.shape[1]; extra input channels are ignored
       (weights zero-padded on Cin), so callers keep conv/GN outputs padded
       to a multiple of 128 lanes.
    w: (Cout, Cin, kh, kw) PyTorch OIHW weights.
    Returns (B, Ho, Wo, Cout_p), Cout_p = Cout rounded up to 128; the padded
    output channels are exactly zero.
    """
    Cout, Cin, kh, kw = w.shape
    Cx = x.shape[-1]
    assert Cin <= Cx
    x = x.astype(jnp.bfloat16)
    s = stride

    if kh == 1 and kw == 1 and s > 1:
        # strided 1x1 conv == subsample, then stride-1 1x1 conv (no waste).
        # TODO(synk): subsample on the VMEM-resident block instead of in HBM.
        x = x[:, ::s, ::s, :]
        s = 1

    if padding:
        x = jnp.pad(x, ((0, 0), (padding, padding), (padding, padding), (0, 0)))
    B, Hp, Wp, _ = x.shape
    Ho = (Hp - kh) // s + 1
    Wo = (Wp - kw) // s + 1

    if s == 1:
        Hq, Wq = Hp, Wp
        x_flat = x.reshape(B, Hp * Wp, Cx)

        def row0(dy, dx):
            return dy * Wq + dx
    else:
        # phase (space-to-depth) decomposition: every tap of the strided conv
        # becomes a contiguous row band of the phase-major flattened tensor.
        Hq, Wq = -(-Hp // s), -(-Wp // s)
        x = jnp.pad(x, ((0, 0), (0, Hq * s - Hp), (0, Wq * s - Wp), (0, 0)))
        x = x.reshape(B, Hq, s, Wq, s, Cx).transpose(0, 2, 4, 1, 3, 5)
        x_flat = x.reshape(B, s * s * Hq * Wq, Cx)

        def row0(dy, dx):
            ry, qy = dy % s, dy // s
            rx, qx = dx % s, dx // s
            return ((ry * s + rx) * Hq + qy) * Wq + qx

    taps = [(dy, dx) for dy in range(kh) for dx in range(kw)]
    row0s = tuple(row0(dy, dx) for dy, dx in taps)
    T = len(taps)
    M2 = Ho * Wq                          # output rows incl. (Wq - Wo) junk cols
    need = max(row0s) + M2
    if need > x_flat.shape[1]:            # small zero tail so slices stay in-bounds
        x_flat = jnp.pad(x_flat, ((0, 0), (0, need - x_flat.shape[1]), (0, 0)))
    Lp = x_flat.shape[1]

    # Lane-dense output tiling: always pad Cout to a multiple of 128.
    Cout_p = _round_up(Cout, _LANE)
    TN = _LANE
    nN = Cout_p // TN

    # Tap-packed weights: (kh,kw,Cin,Cout) -> (T*Cx, Cout_p) with zero padding
    # on both the input-channel dim (to Cx) and the output-channel dim.
    wt = jnp.transpose(w, (2, 3, 1, 0)).astype(jnp.bfloat16)
    wt = jnp.pad(wt, ((0, 0), (0, 0), (0, Cx - Cin), (0, Cout_p - Cout)))
    wt = wt.reshape(T * Cx, Cout_p)

    if T > 1:
        assert Cx % _LANE == 0, "tap staging needs lane-aligned input channels"
        scratch_shapes = [pltpu.VMEM((M2, T * Cx), jnp.bfloat16)]
    else:
        scratch_shapes = []

    out_itemsize = jnp.dtype(out_dtype).itemsize
    cost = pl.CostEstimate(
        flops=2 * B * M2 * T * Cx * Cout_p,
        transcendentals=0,
        bytes_accessed=(x_flat.size * 2 + wt.size * 2
                        + B * M2 * Cout_p * out_itemsize),
    )

    out = pl.pallas_call(
        functools.partial(_conv_tap_kernel, row0s=row0s, m_rows=M2, cin=Cx),
        out_shape=jax.ShapeDtypeStruct((B, M2, Cout_p), out_dtype),
        grid_spec=pltpu.PrefetchScalarGridSpec(
            num_scalar_prefetch=0,
            grid=(B, nN),
            in_specs=[
                pl.BlockSpec((1, Lp, Cx), lambda b, n: (b, 0, 0)),
                pl.BlockSpec((T * Cx, TN), lambda b, n: (0, n)),
            ],
            out_specs=pl.BlockSpec((1, M2, TN), lambda b, n: (b, 0, n)),
            scratch_shapes=scratch_shapes,
        ),
        compiler_params=pltpu.CompilerParams(
            dimension_semantics=("parallel", "parallel"),
            vmem_limit_bytes=_vmem_limit_bytes(),
        ),
        cost_estimate=cost,
    )(x_flat, wt)

    out = out.reshape(B, Ho, Wq, Cout_p)
    if Wq != Wo:
        out = out[:, :, :Wo, :]
    return out


# ----------------------------------------------------------------------------
# Fused GroupNorm (+ReLU) (+residual add) kernel, padded-channel aware
# ----------------------------------------------------------------------------

def _groupnorm_kernel(x_ref, g_ref, b_ref, m_ref, mt_ref, *rest,
                      eps, inv_n, relu, has_res):
    if has_res:
        r_ref, o_ref = rest
    else:
        (o_ref,) = rest

    x = x_ref[0].astype(jnp.float32)                        # (HW, Cp)
    # Per-group mean via per-channel sums + tiny membership matmuls (padded
    # channels have zero membership rows/cols, so they never pollute stats).
    s1 = jnp.sum(x, axis=0, keepdims=True)                  # (1, Cp)
    g1 = jnp.dot(jnp.dot(s1, m_ref[...], preferred_element_type=jnp.float32),
                 mt_ref[...], preferred_element_type=jnp.float32)
    mean = g1 * inv_n
    xc = x - mean
    # Centered two-pass variance (avoids E[x^2]-E[x]^2 cancellation).
    s2 = jnp.sum(xc * xc, axis=0, keepdims=True)
    g2 = jnp.dot(jnp.dot(s2, m_ref[...], preferred_element_type=jnp.float32),
                 mt_ref[...], preferred_element_type=jnp.float32)
    var = g2 * inv_n
    scale = lax.rsqrt(var + eps) * g_ref[...]               # padded gamma == 0
    y = xc * scale + b_ref[...]
    if has_res:
        y = y + r_ref[0].astype(jnp.float32)
    if relu:
        y = jnp.maximum(y, 0.0)
    o_ref[0] = y.astype(o_ref.dtype)


def groupnorm(x, gamma, beta, *, groups=8, eps=1e-5, relu=False,
              residual=None, c_real=None, out_dtype=jnp.bfloat16):
    """GroupNorm(groups, c_real) + optional residual add + optional ReLU.

    x: (B, H, W, Cp) with Cp >= c_real; channels >= c_real are lane padding:
    they are excluded from the group statistics and written as 0 so the
    padded layout can flow straight into the next conv.  Stats are computed
    per (sample, group) over H*W*(c_real/groups), matching torch GroupNorm.
    """
    B, H, W, Cp = x.shape
    if c_real is None:
        c_real = Cp
    assert c_real % groups == 0 and c_real <= Cp
    Cg = c_real // groups
    HW = H * W

    x2 = x.reshape(B, HW, Cp)
    g2 = jnp.pad(gamma.astype(jnp.float32), (0, Cp - c_real)).reshape(1, Cp)
    b2 = jnp.pad(beta.astype(jnp.float32), (0, Cp - c_real)).reshape(1, Cp)
    ch = jnp.arange(Cp, dtype=jnp.int32)
    memb = ((ch[:, None] // Cg == jnp.arange(groups, dtype=jnp.int32)[None, :])
            & (ch[:, None] < c_real)).astype(jnp.float32)    # (Cp, G)
    membT = memb.T                                            # (G, Cp)

    args = [x2, g2, b2, memb, membT]
    in_specs = [
        pl.BlockSpec((1, HW, Cp), lambda b: (b, 0, 0)),
        pl.BlockSpec((1, Cp), lambda b: (0, 0)),
        pl.BlockSpec((1, Cp), lambda b: (0, 0)),
        pl.BlockSpec((Cp, groups), lambda b: (0, 0)),
        pl.BlockSpec((groups, Cp), lambda b: (0, 0)),
    ]
    has_res = residual is not None
    if has_res:
        assert residual.shape == x.shape
        args.append(residual.reshape(B, HW, Cp))
        in_specs.append(pl.BlockSpec((1, HW, Cp), lambda b: (b, 0, 0)))

    out = pl.pallas_call(
        functools.partial(_groupnorm_kernel, eps=eps, inv_n=1.0 / (HW * Cg),
                          relu=relu, has_res=has_res),
        out_shape=jax.ShapeDtypeStruct((B, HW, Cp), out_dtype),
        grid_spec=pltpu.PrefetchScalarGridSpec(
            num_scalar_prefetch=0,
            grid=(B,),
            in_specs=in_specs,
            out_specs=pl.BlockSpec((1, HW, Cp), lambda b: (b, 0, 0)),
        ),
        compiler_params=pltpu.CompilerParams(
            dimension_semantics=("parallel",),
            vmem_limit_bytes=_vmem_limit_bytes(),
        ),
    )(*args)
    return out.reshape(B, H, W, Cp)


# ----------------------------------------------------------------------------
# Bottleneck forward (NCHW boundary, NHWC + bf16 + lane-padded C internally)
# ----------------------------------------------------------------------------

def bottleneck_forward(x_nchw, params):
    stride = params['stride']
    x = jnp.transpose(x_nchw, (0, 2, 3, 1)).astype(jnp.bfloat16)   # NHWC bf16
    planes = params['conv1_w'].shape[0]
    out_c = params['conv3_w'].shape[0]                              # planes*4

    out = conv2d_mxu(x, params['conv1_w'])                          # bf16, C pad 128
    out = groupnorm(out, params['gn1_g'], params['gn1_b'], c_real=planes,
                    relu=True, out_dtype=jnp.bfloat16)
    out = conv2d_mxu(out, params['conv2_w'], stride=stride, padding=1)
    out = groupnorm(out, params['gn2_g'], params['gn2_b'], c_real=planes,
                    relu=True, out_dtype=jnp.bfloat16)
    out = conv2d_mxu(out, params['conv3_w'])

    if params['has_ds']:
        res = conv2d_mxu(x, params['ds_w'], stride=stride)
        res = groupnorm(res, params['ds_g'], params['ds_b'], c_real=out_c,
                        out_dtype=jnp.bfloat16)          # bf16 halves gn3 read
    else:
        res = x                                           # identity residual (bf16)

    out_cp = out.shape[-1]
    if res.shape[-1] != out_cp:
        res = jnp.pad(res, ((0, 0), (0, 0), (0, 0), (0, out_cp - res.shape[-1])))

    # gn3 + residual add + ReLU fused in one kernel (block output in f32)
    out = groupnorm(out, params['gn3_g'], params['gn3_b'], c_real=out_c,
                    relu=True, residual=res, out_dtype=jnp.float32)
    if out_cp != out_c:
        out = out[..., :out_c]
    return jnp.transpose(out, (0, 3, 1, 2))


# ----------------------------------------------------------------------------
# Deterministic synthetic parameters + pure-JAX reference
# ----------------------------------------------------------------------------

def make_bottleneck_params(key, inplanes, planes, stride):
    expansion = 4
    has_ds = (stride != 1) or (inplanes != planes * expansion)
    ks = jax.random.split(key, 16)

    def conv_w(k, o, i, kh, kw):
        fan = i * kh * kw
        return jax.random.normal(k, (o, i, kh, kw), jnp.float32) * (2.0 / fan) ** 0.5

    def gn_gb(k, c):
        k1, k2 = jax.random.split(k)
        return (1.0 + 0.05 * jax.random.normal(k1, (c,), jnp.float32),
                0.05 * jax.random.normal(k2, (c,), jnp.float32))

    p = {'stride': stride, 'has_ds': has_ds}
    p['conv1_w'] = conv_w(ks[0], planes, inplanes, 1, 1)
    p['gn1_g'], p['gn1_b'] = gn_gb(ks[1], planes)
    p['conv2_w'] = conv_w(ks[2], planes, planes, 3, 3)
    p['gn2_g'], p['gn2_b'] = gn_gb(ks[3], planes)
    p['conv3_w'] = conv_w(ks[4], planes * expansion, planes, 1, 1)
    p['gn3_g'], p['gn3_b'] = gn_gb(ks[5], planes * expansion)
    if has_ds:
        p['ds_w'] = conv_w(ks[6], planes * expansion, inplanes, 1, 1)
        p['ds_g'], p['ds_b'] = gn_gb(ks[7], planes * expansion)
    return p


def bottleneck_ref(x_nchw, p, groups=8, eps=1e-5):
    """Pure-JAX reference with the same bf16-input / f32-accumulation policy."""
    def conv(h, w, s=1, pad=0):
        return lax.conv_general_dilated(
            h.astype(jnp.bfloat16),
            jnp.transpose(w, (2, 3, 1, 0)).astype(jnp.bfloat16),
            window_strides=(s, s), padding=[(pad, pad), (pad, pad)],
            dimension_numbers=('NHWC', 'HWIO', 'NHWC'),
            preferred_element_type=jnp.float32)

    def gn(h, g, b):
        B, H, W, C = h.shape
        hr = h.astype(jnp.float32).reshape(B, H * W, groups, C // groups)
        m = hr.mean(axis=(1, 3), keepdims=True)
        v = hr.var(axis=(1, 3), keepdims=True)
        y = (hr - m) * lax.rsqrt(v + eps)
        return y.reshape(B, H, W, C) * g.reshape(1, 1, 1, C) + b.reshape(1, 1, 1, C)

    s = p['stride']
    x = jnp.transpose(x_nchw, (0, 2, 3, 1)).astype(jnp.bfloat16)
    out = conv(x, p['conv1_w'])
    out = jnp.maximum(gn(out, p['gn1_g'], p['gn1_b']), 0.0).astype(jnp.bfloat16)
    out = conv(out, p['conv2_w'], s=s, pad=1)
    out = jnp.maximum(gn(out, p['gn2_g'], p['gn2_b']), 0.0).astype(jnp.bfloat16)
    out = conv(out, p['conv3_w'])
    out = gn(out, p['gn3_g'], p['gn3_b'])
    if p['has_ds']:
        res = conv(x, p['ds_w'], s=s)
        res = gn(res, p['ds_g'], p['ds_b'])
    else:
        res = x.astype(jnp.float32)
    out = jnp.maximum(out + res, 0.0)
    return jnp.transpose(out, (0, 3, 1, 2))


# ----------------------------------------------------------------------------

if __name__ == "__main__":
    root = jax.random.PRNGKey(0)
    k_x1, k_p1, k_x2, k_p2 = jax.random.split(root, 4)

    # Case 1: module defaults (stride=1, downsample=None -> identity residual)
    inplanes1, planes1 = 128, 32
    p1 = make_bottleneck_params(k_p1, inplanes1, planes1, stride=1)
    x1 = jax.random.normal(k_x1, (2, inplanes1, 16, 16), jnp.float32)
    f1 = jax.jit(functools.partial(bottleneck_forward, params=p1))
    o1 = jax.block_until_ready(f1(x1))
    r1 = bottleneck_ref(x1, p1)
    assert o1.shape == (2, planes1 * 4, 16, 16), o1.shape
    assert bool(jnp.all(jnp.isfinite(o1)))
    assert bool(jnp.allclose(o1, r1, atol=4e-2, rtol=4e-2)), \
        float(jnp.max(jnp.abs(o1 - r1)))

    # Case 2: stride=2 with 1x1-conv + GroupNorm downsample branch
    inplanes2, planes2 = 64, 32
    p2 = make_bottleneck_params(k_p2, inplanes2, planes2, stride=2)
    x2 = jax.random.normal(k_x2, (2, inplanes2, 16, 16), jnp.float32)
    f2 = jax.jit(functools.partial(bottleneck_forward, params=p2))
    o2 = jax.block_until_ready(f2(x2))
    r2 = bottleneck_ref(x2, p2)
    assert o2.shape == (2, planes2 * 4, 8, 8), o2.shape
    assert bool(jnp.all(jnp.isfinite(o2)))
    assert bool(jnp.allclose(o2, r2, atol=4e-2, rtol=4e-2)), \
        float(jnp.max(jnp.abs(o2 - r2)))

    print("KERNEL_OK")
</pallas_src>

<mosaic_0001>
module attributes {stable_mosaic.version = 11 : i64} {
  func.func @_groupnorm_kernel(%arg0: i32, %arg1: memref<1x256x128xbf16, #tpu.memory_space<vmem>>, %arg2: memref<1x128xf32, #tpu.memory_space<vmem>>, %arg3: memref<1x128xf32, #tpu.memory_space<vmem>>, %arg4: memref<128x8xf32, #tpu.memory_space<vmem>>, %arg5: memref<8x128xf32, #tpu.memory_space<vmem>>, %arg6: memref<1x256x128xbf16, #tpu.memory_space<vmem>>) attributes {dimension_semantics = [#tpu.dimension_semantics<parallel>], iteration_bounds = array<i64: 2>, scalar_prefetch = 0 : i64, scratch_operands = 0 : i64, tpu.core_type = #tpu.core_type<tc>, window_params = [{transform_indices = @transform_0, window_bounds = array<i64: 1, 256, 128>}, {pipeline_mode = #tpu.pipeline_mode<synchronous>, transform_indices = @transform_1, window_bounds = array<i64: 1, 128>}, {pipeline_mode = #tpu.pipeline_mode<synchronous>, transform_indices = @transform_2, window_bounds = array<i64: 1, 128>}, {pipeline_mode = #tpu.pipeline_mode<synchronous>, transform_indices = @transform_3, window_bounds = array<i64: 128, 8>}, {pipeline_mode = #tpu.pipeline_mode<synchronous>, transform_indices = @transform_4, window_bounds = array<i64: 8, 128>}, {transform_indices = @transform_5, window_bounds = array<i64: 1, 256, 128>}]} {
    %c0 = arith.constant 0 : index
    %c0_0 = arith.constant 0 : index
    %c0_1 = arith.constant 0 : index
    %0 = vector.load %arg1[%c0, %c0_0, %c0_1] : memref<1x256x128xbf16, #tpu.memory_space<vmem>>, vector<1x256x128xbf16>
    %1 = vector.shape_cast %0 : vector<1x256x128xbf16> to vector<256x128xbf16>
    %2 = arith.extf %1 : vector<256x128xbf16> to vector<256x128xf32>
    %cst = arith.constant dense<0.000000e+00> : vector<128xf32>
    %3 = vector.multi_reduction <add>, %2, %cst [0] : vector<256x128xf32> to vector<128xf32>
    %4 = vector.shape_cast %3 : vector<128xf32> to vector<1x128xf32>
    %c0_2 = arith.constant 0 : index
    %c0_3 = arith.constant 0 : index
    %5 = vector.load %arg4[%c0_2, %c0_3] : memref<128x8xf32, #tpu.memory_space<vmem>>, vector<128x8xf32>
    %cst_4 = arith.constant dense<0.000000e+00> : vector<1x8xf32>
    %6 = tpu.matmul %4, %5, %cst_4 {dimension_numbers = #tpu.dot_dimension_numbers<[1], [0], [0], [1], [0, 0, 1, 1], [], []>} : vector<1x128xf32>, vector<128x8xf32>, vector<1x8xf32> -> vector<1x8xf32>
    %c0_5 = arith.constant 0 : index
    %c0_6 = arith.constant 0 : index
    %7 = vector.load %arg5[%c0_5, %c0_6] : memref<8x128xf32, #tpu.memory_space<vmem>>, vector<8x128xf32>
    %cst_7 = arith.constant dense<0.000000e+00> : vector<1x128xf32>
    %8 = tpu.matmul %6, %7, %cst_7 {dimension_numbers = #tpu.dot_dimension_numbers<[1], [0], [0], [1], [0, 0, 1, 1], [], []>} : vector<1x8xf32>, vector<8x128xf32>, vector<1x128xf32> -> vector<1x128xf32>
    %cst_8 = arith.constant 9.765625E-4 : f32
    %9 = vector.broadcast %cst_8 : f32 to vector<1x128xf32>
    %10 = arith.mulf %8, %9 : vector<1x128xf32>
    %11 = vector.broadcast %10 : vector<1x128xf32> to vector<256x128xf32>
    %12 = arith.subf %2, %11 : vector<256x128xf32>
    %13 = arith.mulf %12, %12 : vector<256x128xf32>
    %cst_9 = arith.constant dense<0.000000e+00> : vector<128xf32>
    %14 = vector.multi_reduction <add>, %13, %cst_9 [0] : vector<256x128xf32> to vector<128xf32>
    %15 = vector.shape_cast %14 : vector<128xf32> to vector<1x128xf32>
    %c0_10 = arith.constant 0 : index
    %c0_11 = arith.constant 0 : index
    %16 = vector.load %arg4[%c0_10, %c0_11] : memref<128x8xf32, #tpu.memory_space<vmem>>, vector<128x8xf32>
    %cst_12 = arith.constant dense<0.000000e+00> : vector<1x8xf32>
    %17 = tpu.matmul %15, %16, %cst_12 {dimension_numbers = #tpu.dot_dimension_numbers<[1], [0], [0], [1], [0, 0, 1, 1], [], []>} : vector<1x128xf32>, vector<128x8xf32>, vector<1x8xf32> -> vector<1x8xf32>
    %c0_13 = arith.constant 0 : index
    %c0_14 = arith.constant 0 : index
    %18 = vector.load %arg5[%c0_13, %c0_14] : memref<8x128xf32, #tpu.memory_space<vmem>>, vector<8x128xf32>
    %cst_15 = arith.constant dense<0.000000e+00> : vector<1x128xf32>
    %19 = tpu.matmul %17, %18, %cst_15 {dimension_numbers = #tpu.dot_dimension_numbers<[1], [0], [0], [1], [0, 0, 1, 1], [], []>} : vector<1x8xf32>, vector<8x128xf32>, vector<1x128xf32> -> vector<1x128xf32>
    %cst_16 = arith.constant 9.765625E-4 : f32
    %20 = vector.broadcast %cst_16 : f32 to vector<1x128xf32>
    %21 = arith.mulf %19, %20 : vector<1x128xf32>
    %cst_17 = arith.constant 9.99999974E-6 : f32
    %22 = vector.broadcast %cst_17 : f32 to vector<1x128xf32>
    %23 = arith.addf %21, %22 : vector<1x128xf32>
    %24 = math.rsqrt %23 : vector<1x128xf32>
    %c0_18 = arith.constant 0 : index
    %c0_19 = arith.constant 0 : index
    %25 = vector.load %arg2[%c0_18, %c0_19] : memref<1x128xf32, #tpu.memory_space<vmem>>, vector<1x128xf32>
    %26 = arith.mulf %24, %25 : vector<1x128xf32>
    %27 = vector.broadcast %26 : vector<1x128xf32> to vector<256x128xf32>
    %28 = arith.mulf %12, %27 : vector<256x128xf32>
    %c0_20 = arith.constant 0 : index
    %c0_21 = arith.constant 0 : index
    %29 = vector.load %arg3[%c0_20, %c0_21] : memref<1x128xf32, #tpu.memory_space<vmem>>, vector<1x128xf32>
    %30 = vector.broadcast %29 : vector<1x128xf32> to vector<256x128xf32>
    %31 = arith.addf %28, %30 : vector<256x128xf32>
    %cst_22 = arith.constant 0.000000e+00 : f32
    %32 = vector.broadcast %cst_22 : f32 to vector<256x128xf32>
    %33 = arith.maximumf %31, %32 : vector<256x128xf32>
    %34 = arith.truncf %33 : vector<256x128xf32> to vector<256x128xbf16>
    %c0_23 = arith.constant 0 : index
    %c0_24 = arith.constant 0 : index
    %c0_25 = arith.constant 0 : index
    %35 = vector.load %arg6[%c0_23, %c0_24, %c0_25] : memref<1x256x128xbf16, #tpu.memory_space<vmem>>, vector<1x256x128xbf16>
    %36 = vector.shape_cast %35 : vector<1x256x128xbf16> to vector<256x128xbf16>
    %37 = vector.shape_cast %34 : vector<256x128xbf16> to vector<1x256x128xbf16>
    tpu.vector_store %arg6[%c0_23, %c0_24, %c0_25], %37 {strides = array<i32>} : memref<1x256x128xbf16, #tpu.memory_space<vmem>>, vector<1x256x128xbf16>,
    return
  }
  func.func @transform_0(%arg0: i32) -> (i32, i32, i32) {
    %c0_i32 = arith.constant 0 : i32
    %c0_i32_0 = arith.constant 0 : i32
    %c0_i32_1 = arith.constant 0 : i32
    return %arg0, %c0_i32, %c0_i32_0 : i32, i32, i32
  }
  func.func @transform_1(%arg0: i32) -> (i32, i32) {
    %c0_i32 = arith.constant 0 : i32
    %c0_i32_0 = arith.constant 0 : i32
    %c0_i32_1 = arith.constant 0 : i32
    return %c0_i32, %c0_i32_0 : i32, i32
  }
  func.func @transform_2(%arg0: i32) -> (i32, i32) {
    %c0_i32 = arith.constant 0 : i32
    %c0_i32_0 = arith.constant 0 : i32
    %c0_i32_1 = arith.constant 0 : i32
    return %c0_i32, %c0_i32_0 : i32, i32
  }
  func.func @transform_3(%arg0: i32) -> (i32, i32) {
    %c0_i32 = arith.constant 0 : i32
    %c0_i32_0 = arith.constant 0 : i32
    %c0_i32_1 = arith.constant 0 : i32
    return %c0_i32, %c0_i32_0 : i32, i32
  }
  func.func @transform_4(%arg0: i32) -> (i32, i32) {
    %c0_i32 = arith.constant 0 : i32
    %c0_i32_0 = arith.constant 0 : i32
    %c0_i32_1 = arith.constant 0 : i32
    return %c0_i32, %c0_i32_0 : i32, i32
  }
  func.func @transform_5(%arg0: i32) -> (i32, i32, i32) {
    %c0_i32 = arith.constant 0 : i32
    %c0_i32_0 = arith.constant 0 : i32
    %c0_i32_1 = arith.constant 0 : i32
    return %arg0, %c0_i32, %c0_i32_0 : i32, i32, i32
  }
}

module attributes {stable_mosaic.version = 11 : i64} {
  func.func @_conv_tap_kernel(%arg0: i32, %arg1: i32, %arg2: memref<1x256x128xbf16, #tpu.memory_space<vmem>>, %arg3: memref<128x128xbf16, #tpu.memory_space<vmem>>, %arg4: memref<1x256x128xbf16, #tpu.memory_space<vmem>>) attributes {dimension_semantics = [#tpu.dimension_semantics<parallel>, #tpu.dimension_semantics<parallel>], iteration_bounds = array<i64: 2, 1>, scalar_prefetch = 0 : i64, scratch_operands = 0 : i64, tpu.core_type = #tpu.core_type<tc>, window_params = [{transform_indices = @transform_0, window_bounds = array<i64: 1, 256, 128>}, {transform_indices = @transform_1, window_bounds = array<i64: 128, 128>}, {transform_indices = @transform_2, window_bounds = array<i64: 1, 256, 128>}]} {
    %c0 = arith.constant 0 : index
    %c0_0 = arith.constant 0 : index
    %c0_1 = arith.constant 0 : index
    %0 = vector.load %arg2[%c0, %c0_0, %c0_1] : memref<1x256x128xbf16, #tpu.memory_space<vmem>>, vector<1x256x128xbf16>
    %1 = vector.shape_cast %0 : vector<1x256x128xbf16> to vector<256x128xbf16>
    %c0_2 = arith.constant 0 : index
    %c0_3 = arith.constant 0 : index
    %2 = vector.load %arg3[%c0_2, %c0_3] : memref<128x128xbf16, #tpu.memory_space<vmem>>, vector<128x128xbf16>
    %cst = arith.constant dense<0.000000e+00> : vector<256x128xf32>
    %3 = tpu.matmul %1, %2, %cst {dimension_numbers = #tpu.dot_dimension_numbers<[1], [0], [0], [1], [0, 0, 1, 1], [], []>} : vector<256x128xbf16>, vector<128x128xbf16>, vector<256x128xf32> -> vector<256x128xf32>
    %4 = arith.truncf %3 : vector<256x128xf32> to vector<256x128xbf16>
    %c0_4 = arith.constant 0 : index
    %c0_5 = arith.constant 0 : index
    %c0_6 = arith.constant 0 : index
    %5 = vector.load %arg4[%c0_4, %c0_5, %c0_6] : memref<1x256x128xbf16, #tpu.memory_space<vmem>>, vector<1x256x128xbf16>
    %6 = vector.shape_cast %5 : vector<1x256x128xbf16> to vector<256x128xbf16>
    %7 = vector.shape_cast %4 : vector<256x128xbf16> to vector<1x256x128xbf16>
    tpu.vector_store %arg4[%c0_4, %c0_5, %c0_6], %7 {strides = array<i32>} : memref<1x256x128xbf16, #tpu.memory_space<vmem>>, vector<1x256x128xbf16>,
    return
  }
  func.func @transform_0(%arg0: i32, %arg1: i32) -> (i32, i32, i32) {
    %c0_i32 = arith.constant 0 : i32
    %c0_i32_0 = arith.constant 0 : i32
    %c0_i32_1 = arith.constant 0 : i32
    return %arg0, %c0_i32, %c0_i32_0 : i32, i32, i32
  }
  func.func @transform_1(%arg0: i32, %arg1: i32) -> (i32, i32) {
    %c0_i32 = arith.constant 0 : i32
    %c0_i32_0 = arith.constant 0 : i32
    return %c0_i32, %arg1 : i32, i32
  }
  func.func @transform_2(%arg0: i32, %arg1: i32) -> (i32, i32, i32) {
    %c0_i32 = arith.constant 0 : i32
    %c0_i32_0 = arith.constant 0 : i32
    return %arg0, %c0_i32, %arg1 : i32, i32, i32
  }
}

module attributes {stable_mosaic.version = 11 : i64} {
  func.func @_conv_tap_kernel(%arg0: i32, %arg1: i32, %arg2: memref<1x326x128xbf16, #tpu.memory_space<vmem>>, %arg3: memref<1152x128xbf16, #tpu.memory_space<vmem>>, %arg4: memref<1x288x128xbf16, #tpu.memory_space<vmem>>, %arg5: memref<288x1152xbf16, #tpu.memory_space<vmem>>) attributes {dimension_semantics = [#tpu.dimension_semantics<parallel>, #tpu.dimension_semantics<parallel>], iteration_bounds = array<i64: 2, 1>, scalar_prefetch = 0 : i64, scratch_operands = 1 : i64, tpu.core_type = #tpu.core_type<tc>, window_params = [{transform_indices = @transform_0, window_bounds = array<i64: 1, 326, 128>}, {transform_indices = @transform_1, window_bounds = array<i64: 1152, 128>}, {transform_indices = @transform_2, window_bounds = array<i64: 1, 288, 128>}]} {
    %c0 = arith.constant 0 : index
    %c0_0 = arith.constant 0 : index
    %c0_1 = arith.constant 0 : index
    %0 = vector.load %arg2[%c0, %c0_0, %c0_1] : memref<1x326x128xbf16, #tpu.memory_space<vmem>>, vector<1x288x128xbf16>
    %1 = vector.shape_cast %0 : vector<1x288x128xbf16> to vector<288x128xbf16>
    %c0_2 = arith.constant 0 : index
    %c0_3 = arith.constant 0 : index
    %2 = vector.load %arg5[%c0_2, %c0_3] : memref<288x1152xbf16, #tpu.memory_space<vmem>>, vector<288x128xbf16>
    tpu.vector_store %arg5[%c0_2, %c0_3], %1 {strides = array<i32>} : memref<288x1152xbf16, #tpu.memory_space<vmem>>, vector<288x128xbf16>,
    %c0_4 = arith.constant 0 : index
    %c1 = arith.constant 1 : index
    %c0_5 = arith.constant 0 : index
    %3 = vector.load %arg2[%c0_4, %c1, %c0_5] : memref<1x326x128xbf16, #tpu.memory_space<vmem>>, vector<1x288x128xbf16>
    %4 = vector.shape_cast %3 : vector<1x288x128xbf16> to vector<288x128xbf16>
    %c0_6 = arith.constant 0 : index
    %c128 = arith.constant 128 : index
    %5 = vector.load %arg5[%c0_6, %c128] : memref<288x1152xbf16, #tpu.memory_space<vmem>>, vector<288x128xbf16>
    tpu.vector_store %arg5[%c0_6, %c128], %4 {strides = array<i32>} : memref<288x1152xbf16, #tpu.memory_space<vmem>>, vector<288x128xbf16>,
    %c0_7 = arith.constant 0 : index
    %c2 = arith.constant 2 : index
    %c0_8 = arith.constant 0 : index
    %6 = vector.load %arg2[%c0_7, %c2, %c0_8] : memref<1x326x128xbf16, #tpu.memory_space<vmem>>, vector<1x288x128xbf16>
    %7 = vector.shape_cast %6 : vector<1x288x128xbf16> to vector<288x128xbf16>
    %c0_9 = arith.constant 0 : index
    %c256 = arith.constant 256 : index
    %8 = vector.load %arg5[%c0_9, %c256] : memref<288x1152xbf16, #tpu.memory_space<vmem>>, vector<288x128xbf16>
    tpu.vector_store %arg5[%c0_9, %c256], %7 {strides = array<i32>} : memref<288x1152xbf16, #tpu.memory_space<vmem>>, vector<288x128xbf16>,
    %c0_10 = arith.constant 0 : index
    %c18 = arith.constant 18 : index
    %c0_11 = arith.constant 0 : index
    %9 = vector.load %arg2[%c0_10, %c18, %c0_11] : memref<1x326x128xbf16, #tpu.memory_space<vmem>>, vector<1x288x128xbf16>
    %10 = vector.shape_cast %9 : vector<1x288x128xbf16> to vector<288x128xbf16>
    %c0_12 = arith.constant 0 : index
    %c384 = arith.constant 384 : index
    %11 = vector.load %arg5[%c0_12, %c384] : memref<288x1152xbf16, #tpu.memory_space<vmem>>, vector<288x128xbf16>
    tpu.vector_store %arg5[%c0_12, %c384], %10 {strides = array<i32>} : memref<288x1152xbf16, #tpu.memory_space<vmem>>, vector<288x128xbf16>,
    %c0_13 = arith.constant 0 : index
    %c19 = arith.constant 19 : index
    %c0_14 = arith.constant 0 : index
    %12 = vector.load %arg2[%c0_13, %c19, %c0_14] : memref<1x326x128xbf16, #tpu.memory_space<vmem>>, vector<1x288x128xbf16>
    %13 = vector.shape_cast %12 : vector<1x288x128xbf16> to vector<288x128xbf16>
    %c0_15 = arith.constant 0 : index
    %c512 = arith.constant 512 : index
    %14 = vector.load %arg5[%c0_15, %c512] : memref<288x1152xbf16, #tpu.memory_space<vmem>>, vector<288x128xbf16>
    tpu.vector_store %arg5[%c0_15, %c512], %13 {strides = array<i32>} : memref<288x1152xbf16, #tpu.memory_space<vmem>>, vector<288x128xbf16>,
    %c0_16 = arith.constant 0 : index
    %c20 = arith.constant 20 : index
    %c0_17 = arith.constant 0 : index
    %15 = vector.load %arg2[%c0_16, %c20, %c0_17] : memref<1x326x128xbf16, #tpu.memory_space<vmem>>, vector<1x288x128xbf16>
    %16 = vector.shape_cast %15 : vector<1x288x128xbf16> to vector<288x128xbf16>
    %c0_18 = arith.constant 0 : index
    %c640 = arith.constant 640 : index
    %17 = vector.load %arg5[%c0_18, %c640] : memref<288x1152xbf16, #tpu.memory_space<vmem>>, vector<288x128xbf16>
    tpu.vector_store %arg5[%c0_18, %c640], %16 {strides = array<i32>} : memref<288x1152xbf16, #tpu.memory_space<vmem>>, vector<288x128xbf16>,
    %c0_19 = arith.constant 0 : index
    %c36 = arith.constant 36 : index
    %c0_20 = arith.constant 0 : index
    %18 = vector.load %arg2[%c0_19, %c36, %c0_20] : memref<1x326x128xbf16, #tpu.memory_space<vmem>>, vector<1x288x128xbf16>
    %19 = vector.shape_cast %18 : vector<1x288x128xbf16> to vector<288x128xbf16>
    %c0_21 = arith.constant 0 : index
    %c768 = arith.constant 768 : index
    %20 = vector.load %arg5[%c0_21, %c768] : memref<288x1152xbf16, #tpu.memory_space<vmem>>, vector<288x128xbf16>
    tpu.vector_store %arg5[%c0_21, %c768], %19 {strides = array<i32>} : memref<288x1152xbf16, #tpu.memory_space<vmem>>, vector<288x128xbf16>,
    %c0_22 = arith.constant 0 : index
    %c37 = arith.constant 37 : index
    %c0_23 = arith.constant 0 : index
    %21 = vector.load %arg2[%c0_22, %c37, %c0_23] : memref<1x326x128xbf16, #tpu.memory_space<vmem>>, vector<1x288x128xbf16>
    %22 = vector.shape_cast %21 : vector<1x288x128xbf16> to vector<288x128xbf16>
    %c0_24 = arith.constant 0 : index
    %c896 = arith.constant 896 : index
    %23 = vector.load %arg5[%c0_24, %c896] : memref<288x1152xbf16, #tpu.memory_space<vmem>>, vector<288x128xbf16>
    tpu.vector_store %arg5[%c0_24, %c896], %22 {strides = array<i32>} : memref<288x1152xbf16, #tpu.memory_space<vmem>>, vector<288x128xbf16>,
    %c0_25 = arith.constant 0 : index
    %c38 = arith.constant 38 : index
    %c0_26 = arith.constant 0 : index
    %24 = vector.load %arg2[%c0_25, %c38, %c0_26] : memref<1x326x128xbf16, #tpu.memory_space<vmem>>, vector<1x288x128xbf16>
    %25 = vector.shape_cast %24 : vector<1x288x128xbf16> to vector<288x128xbf16>
    %c0_27 = arith.constant 0 : index
    %c1024 = arith.constant 1024 : index
    %26 = vector.load %arg5[%c0_27, %c1024] : memref<288x1152xbf16, #tpu.memory_space<vmem>>, vector<288x128xbf16>
    tpu.vector_store %arg5[%c0_27, %c1024], %25 {strides = array<i32>} : memref<288x1152xbf16, #tpu.memory_space<vmem>>, vector<288x128xbf16>,
    %c0_28 = arith.constant 0 : index
    %c0_29 = arith.constant 0 : index
    %27 = vector.load %arg5[%c0_28, %c0_29] : memref<288x1152xbf16, #tpu.memory_space<vmem>>, vector<288x1152xbf16>
    %c0_30 = arith.constant 0 : index
    %c0_31 = arith.constant 0 : index
    %28 = vector.load %arg3[%c0_30, %c0_31] : memref<1152x128xbf16, #tpu.memory_space<vmem>>, vector<1152x128xbf16>
    %cst = arith.constant dense<0.000000e+00> : vector<288x128xf32>
    %29 = tpu.matmul %27, %28, %cst {dimension_numbers = #tpu.dot_dimension_numbers<[1], [0], [0], [1], [0, 0, 1, 1], [], []>} : vector<288x1152xbf16>, vector<1152x128xbf16>, vector<288x128xf32> -> vector<288x128xf32>
    %30 = arith.truncf %29 : vector<288x128xf32> to vector<288x128xbf16>
    %c0_32 = arith.constant 0 : index
    %c0_33 = arith.constant 0 : index
    %c0_34 = arith.constant 0 : index
    %31 = vector.load %arg4[%c0_32, %c0_33, %c0_34] : memref<1x288x128xbf16, #tpu.memory_space<vmem>>, vector<1x288x128xbf16>
    %32 = vector.shape_cast %31 : vector<1x288x128xbf16> to vector<288x128xbf16>
    %33 = vector.shape_cast %30 : vector<288x128xbf16> to vector<1x288x128xbf16>
    tpu.vector_store %arg4[%c0_32, %c0_33, %c0_34], %33 {strides = array<i32>} : memref<1x288x128xbf16, #tpu.memory_space<vmem>>, vector<1x288x128xbf16>,
    return
  }
  func.func @transform_0(%arg0: i32, %arg1: i32) -> (i32, i32, i32) {
    %c0_i32 = arith.constant 0 : i32
    %c0_i32_0 = arith.constant 0 : i32
    %c0_i32_1 = arith.constant 0 : i32
    return %arg0, %c0_i32, %c0_i32_0 : i32, i32, i32
  }
  func.func @transform_1(%arg0: i32, %arg1: i32) -> (i32, i32) {
    %c0_i32 = arith.constant 0 : i32
    %c0_i32_0 = arith.constant 0 : i32
    return %c0_i32, %arg1 : i32, i32
  }
  func.func @transform_2(%arg0: i32, %arg1: i32) -> (i32, i32, i32) {
    %c0_i32 = arith.constant 0 : i32
    %c0_i32_0 = arith.constant 0 : i32
    return %arg0, %c0_i32, %arg1 : i32, i32, i32
  }
}

module attributes {stable_mosaic.version = 11 : i64} {
  func.func @_groupnorm_kernel(%arg0: i32, %arg1: memref<1x256x128xbf16, #tpu.memory_space<vmem>>, %arg2: memref<1x128xf32, #tpu.memory_space<vmem>>, %arg3: memref<1x128xf32, #tpu.memory_space<vmem>>, %arg4: memref<128x8xf32, #tpu.memory_space<vmem>>, %arg5: memref<8x128xf32, #tpu.memory_space<vmem>>, %arg6: memref<1x256x128xbf16, #tpu.memory_space<vmem>>, %arg7: memref<1x256x128xf32, #tpu.memory_space<vmem>>) attributes {dimension_semantics = [#tpu.dimension_semantics<parallel>], iteration_bounds = array<i64: 2>, scalar_prefetch = 0 : i64, scratch_operands = 0 : i64, tpu.core_type = #tpu.core_type<tc>, window_params = [{transform_indices = @transform_0, window_bounds = array<i64: 1, 256, 128>}, {pipeline_mode = #tpu.pipeline_mode<synchronous>, transform_indices = @transform_1, window_bounds = array<i64: 1, 128>}, {pipeline_mode = #tpu.pipeline_mode<synchronous>, transform_indices = @transform_2, window_bounds = array<i64: 1, 128>}, {pipeline_mode = #tpu.pipeline_mode<synchronous>, transform_indices = @transform_3, window_bounds = array<i64: 128, 8>}, {pipeline_mode = #tpu.pipeline_mode<synchronous>, transform_indices = @transform_4, window_bounds = array<i64: 8, 128>}, {transform_indices = @transform_5, window_bounds = array<i64: 1, 256, 128>}, {transform_indices = @transform_6, window_bounds = array<i64: 1, 256, 128>}]} {
    %c0 = arith.constant 0 : index
    %c0_0 = arith.constant 0 : index
    %c0_1 = arith.constant 0 : index
    %0 = vector.load %arg1[%c0, %c0_0, %c0_1] : memref<1x256x128xbf16, #tpu.memory_space<vmem>>, vector<1x256x128xbf16>
    %1 = vector.shape_cast %0 : vector<1x256x128xbf16> to vector<256x128xbf16>
    %2 = arith.extf %1 : vector<256x128xbf16> to vector<256x128xf32>
    %cst = arith.constant dense<0.000000e+00> : vector<128xf32>
    %3 = vector.multi_reduction <add>, %2, %cst [0] : vector<256x128xf32> to vector<128xf32>
    %4 = vector.shape_cast %3 : vector<128xf32> to vector<1x128xf32>
    %c0_2 = arith.constant 0 : index
    %c0_3 = arith.constant 0 : index
    %5 = vector.load %arg4[%c0_2, %c0_3] : memref<128x8xf32, #tpu.memory_space<vmem>>, vector<128x8xf32>
    %cst_4 = arith.constant dense<0.000000e+00> : vector<1x8xf32>
    %6 = tpu.matmul %4, %5, %cst_4 {dimension_numbers = #tpu.dot_dimension_numbers<[1], [0], [0], [1], [0, 0, 1, 1], [], []>} : vector<1x128xf32>, vector<128x8xf32>, vector<1x8xf32> -> vector<1x8xf32>
    %c0_5 = arith.constant 0 : index
    %c0_6 = arith.constant 0 : index
    %7 = vector.load %arg5[%c0_5, %c0_6] : memref<8x128xf32, #tpu.memory_space<vmem>>, vector<8x128xf32>
    %cst_7 = arith.constant dense<0.000000e+00> : vector<1x128xf32>
    %8 = tpu.matmul %6, %7, %cst_7 {dimension_numbers = #tpu.dot_dimension_numbers<[1], [0], [0], [1], [0, 0, 1, 1], [], []>} : vector<1x8xf32>, vector<8x128xf32>, vector<1x128xf32> -> vector<1x128xf32>
    %cst_8 = arith.constant 2.44140625E-4 : f32
    %9 = vector.broadcast %cst_8 : f32 to vector<1x128xf32>
    %10 = arith.mulf %8, %9 : vector<1x128xf32>
    %11 = vector.broadcast %10 : vector<1x128xf32> to vector<256x128xf32>
    %12 = arith.subf %2, %11 : vector<256x128xf32>
    %13 = arith.mulf %12, %12 : vector<256x128xf32>
    %cst_9 = arith.constant dense<0.000000e+00> : vector<128xf32>
    %14 = vector.multi_reduction <add>, %13, %cst_9 [0] : vector<256x128xf32> to vector<128xf32>
    %15 = vector.shape_cast %14 : vector<128xf32> to vector<1x128xf32>
    %c0_10 = arith.constant 0 : index
    %c0_11 = arith.constant 0 : index
    %16 = vector.load %arg4[%c0_10, %c0_11] : memref<128x8xf32, #tpu.memory_space<vmem>>, vector<128x8xf32>
    %cst_12 = arith.constant dense<0.000000e+00> : vector<1x8xf32>
    %17 = tpu.matmul %15, %16, %cst_12 {dimension_numbers = #tpu.dot_dimension_numbers<[1], [0], [0], [1], [0, 0, 1, 1], [], []>} : vector<1x128xf32>, vector<128x8xf32>, vector<1x8xf32> -> vector<1x8xf32>
    %c0_13 = arith.constant 0 : index
    %c0_14 = arith.constant 0 : index
    %18 = vector.load %arg5[%c0_13, %c0_14] : memref<8x128xf32, #tpu.memory_space<vmem>>, vector<8x128xf32>
    %cst_15 = arith.constant dense<0.000000e+00> : vector<1x128xf32>
    %19 = tpu.matmul %17, %18, %cst_15 {dimension_numbers = #tpu.dot_dimension_numbers<[1], [0], [0], [1], [0, 0, 1, 1], [], []>} : vector<1x8xf32>, vector<8x128xf32>, vector<1x128xf32> -> vector<1x128xf32>
    %cst_16 = arith.constant 2.44140625E-4 : f32
    %20 = vector.broadcast %cst_16 : f32 to vector<1x128xf32>
    %21 = arith.mulf %19, %20 : vector<1x128xf32>
    %cst_17 = arith.constant 9.99999974E-6 : f32
    %22 = vector.broadcast %cst_17 : f32 to vector<1x128xf32>
    %23 = arith.addf %21, %22 : vector<1x128xf32>
    %24 = math.rsqrt %23 : vector<1x128xf32>
    %c0_18 = arith.constant 0 : index
    %c0_19 = arith.constant 0 : index
    %25 = vector.load %arg2[%c0_18, %c0_19] : memref<1x128xf32, #tpu.memory_space<vmem>>, vector<1x128xf32>
    %26 = arith.mulf %24, %25 : vector<1x128xf32>
    %27 = vector.broadcast %26 : vector<1x128xf32> to vector<256x128xf32>
    %28 = arith.mulf %12, %27 : vector<256x128xf32>
    %c0_20 = arith.constant 0 : index
    %c0_21 = arith.constant 0 : index
    %29 = vector.load %arg3[%c0_20, %c0_21] : memref<1x128xf32, #tpu.memory_space<vmem>>, vector<1x128xf32>
    %30 = vector.broadcast %29 : vector<1x128xf32> to vector<256x128xf32>
    %31 = arith.addf %28, %30 : vector<256x128xf32>
    %c0_22 = arith.constant 0 : index
    %c0_23 = arith.constant 0 : index
    %c0_24 = arith.constant 0 : index
    %32 = vector.load %arg6[%c0_22, %c0_23, %c0_24] : memref<1x256x128xbf16, #tpu.memory_space<vmem>>, vector<1x256x128xbf16>
    %33 = vector.shape_cast %32 : vector<1x256x128xbf16> to vector<256x128xbf16>
    %34 = arith.extf %33 : vector<256x128xbf16> to vector<256x128xf32>
    %35 = arith.addf %31, %34 : vector<256x128xf32>
    %cst_25 = arith.constant 0.000000e+00 : f32
    %36 = vector.broadcast %cst_25 : f32 to vector<256x128xf32>
    %37 = arith.maximumf %35, %36 : vector<256x128xf32>
    %c0_26 = arith.constant 0 : index
    %c0_27 = arith.constant 0 : index
    %c0_28 = arith.constant 0 : index
    %38 = vector.load %arg7[%c0_26, %c0_27, %c0_28] : memref<1x256x128xf32, #tpu.memory_space<vmem>>, vector<1x256x128xf32>
    %39 = vector.shape_cast %38 : vector<1x256x128xf32> to vector<256x128xf32>
    %40 = vector.shape_cast %37 : vector<256x128xf32> to vector<1x256x128xf32>
    tpu.vector_store %arg7[%c0_26, %c0_27, %c0_28], %40 {strides = array<i32>} : memref<1x256x128xf32, #tpu.memory_space<vmem>>, vector<1x256x128xf32>,
    return
  }
  func.func @transform_0(%arg0: i32) -> (i32, i32, i32) {
    %c0_i32 = arith.constant 0 : i32
    %c0_i32_0 = arith.constant 0 : i32
    %c0_i32_1 = arith.constant 0 : i32
    return %arg0, %c0_i32, %c0_i32_0 : i32, i32, i32
  }
  func.func @transform_1(%arg0: i32) -> (i32, i32) {
    %c0_i32 = arith.constant 0 : i32
    %c0_i32_0 = arith.constant 0 : i32
    %c0_i32_1 = arith.constant 0 : i32
    return %c0_i32, %c0_i32_0 : i32, i32
  }
  func.func @transform_2(%arg0: i32) -> (i32, i32) {
    %c0_i32 = arith.constant 0 : i32
    %c0_i32_0 = arith.constant 0 : i32
    %c0_i32_1 = arith.constant 0 : i32
    return %c0_i32, %c0_i32_0 : i32, i32
  }
  func.func @transform_3(%arg0: i32) -> (i32, i32) {
    %c0_i32 = arith.constant 0 : i32
    %c0_i32_0 = arith.constant 0 : i32
    %c0_i32_1 = arith.constant 0 : i32
    return %c0_i32, %c0_i32_0 : i32, i32
  }
  func.func @transform_4(%arg0: i32) -> (i32, i32) {
    %c0_i32 = arith.constant 0 : i32
    %c0_i32_0 = arith.constant 0 : i32
    %c0_i32_1 = arith.constant 0 : i32
    return %c0_i32, %c0_i32_0 : i32, i32
  }
  func.func @transform_5(%arg0: i32) -> (i32, i32, i32) {
    %c0_i32 = arith.constant 0 : i32
    %c0_i32_0 = arith.constant 0 : i32
    %c0_i32_1 = arith.constant 0 : i32
    return %arg0, %c0_i32, %c0_i32_0 : i32, i32, i32
  }
  func.func @transform_6(%arg0: i32) -> (i32, i32, i32) {
    %c0_i32 = arith.constant 0 : i32
    %c0_i32_0 = arith.constant 0 : i32
    %c0_i32_1 = arith.constant 0 : i32
    return %arg0, %c0_i32, %c0_i32_0 : i32, i32, i32
  }
}

</mosaic_0001>

<bundles_post_ra>
// kernel: bottleneck_forward.6
= control target key start
LH: loop header
LB: loop body
LE: loop exit
PB: predicated region body
PF: predicated region fallthrough
CT: control target
= control target key end

     0   :  { %s935_s9 = smov 0   ;;  %s937_s10 = smov 0   ;;  %s1039_s0 = inlined_call_operand.vmem [shape: bf16[2,256,128], index: 0, kind: input, shape index: {}]   ;;  %s1040_s1 = inlined_call_operand.vmem [shape: bf16[128,128], index: 1, kind: input, shape index: {}]   ;;  %s1041_s2 = inlined_call_operand.vmem [shape: bf16[2,256,128], index: 2, kind: output, shape index: {}]  }
   0x1   :  { %s939_s11 = smov 0  }
   0x2 LB: > { %s24_s12 = sadd.s32 1, %s914_s10  ;;  %p624_p0 = scmp.ge.s32.totalorder %s918_s11, 1  ;;  %s918_s11 = sphi %s939_s11, %s12_s11   ;;  %s914_s10 = sphi %s937_s10, %s1043_s10   ;;  %s910_s9 = sphi %s935_s9, %s1042_s9  }
   0x3   : > { %p26_p1 = scmp.ge.s32.totalorder %s24_s12, 2  ;;  %p135_p2 = scmp.lt.s32.totalorder %s918_s11, 3 }
   0x5   : > { %s1045_s12 = smov (%p26_p1, %s24_s12), 0  ;;  %p136_p3 = pnand %p624_p0, %p135_p2 }
   0x6   : > { %p164_p4 = scmp.lt.s32.totalorder (!%p136_p3), %s910_s9, 1 }
   0x7   : > { %139 = sbr.rel (%p136_p3) target bundleno = 237 (0xed), region = 28 }
   0xc   : > { %v752_v0 = vld [vmem:[%s1040_s1 + $0x38] sm:$0xff]  ;;  %v751_v1 = vld [vmem:[%s1040_s1 + $0x30] sm:$0xff]  ;;  %v750_v2 = vld [vmem:[%s1040_s1 + $0x28] sm:$0xff]  ;;  %s1047_s9 = smov (!%p164_p4, %s910_s9), 1 }
   0xd   : > { %373 = vmatpush.bf16.msra.mxu0 %v752_v0  ;;  %848 = vmatpush.bf16.msra.mxu1 %v752_v0  ;;  %v749_v3 = vld [vmem:[%s1040_s1 + $0x20] sm:$0xff]  ;;  %v748_v4 = vld [vmem:[%s1040_s1 + $0x18] sm:$0xff]  ;;  %v747_v5 = vld [vmem:[%s1040_s1 + $0x10] sm:$0xff]  ;;  %s727_s27 = sshll.u32 %s1047_s9, 7 }
   0xe   : > { %849 = vmatpush.bf16.msra.mxu2 %v752_v0  ;;  %850 = vmatpush.bf16.msra.mxu3 %v752_v0  ;;  %v746_v6 = vld [vmem:[%s1040_s1 + $0x8] sm:$0xff]  ;;  %v745_v7 = vld [vmem:[%s1040_s1] sm:$0xff]  ;;  %s989_s4 = scalar_lea.vmem %s1039_s0, %s727_s27  ;;  %s1012_s7 = scalar_lea.vmem %s1041_s2, %s727_s27 }
   0xf   : > { %v729_v8 = vld [vmem:[%s989_s4] sm:$0xff]  ;;  %v730_v12 = vld [vmem:[%s989_s4 + $0x8] sm:$0xff]  ;;  %v731_v16 = vld [vmem:[%s989_s4 + $0x10] sm:$0xff] }
  0x10   : > { %v733_v9 = vld [vmem:[%s989_s4 + $0x20] sm:$0xff]  ;;  %v734_v13 = vld [vmem:[%s989_s4 + $0x28] sm:$0xff]  ;;  %v735_v17 = vld [vmem:[%s989_s4 + $0x30] sm:$0xff] }
  0x11   : > { %374 = vmatpush.bf16.msra.mxu0 %v751_v1  ;;  %851 = vmatpush.bf16.msra.mxu1 %v751_v1  ;;  %v737_v10 = vld [vmem:[%s989_s4 + $0x40] sm:$0xff]  ;;  %v738_v14 = vld [vmem:[%s989_s4 + $0x48] sm:$0xff]  ;;  %v739_v18 = vld [vmem:[%s989_s4 + $0x50] sm:$0xff] }
  0x12   : > { %852 = vmatpush.bf16.msra.mxu2 %v751_v1  ;;  %853 = vmatpush.bf16.msra.mxu3 %v751_v1  ;;  %v741_v11 = vld [vmem:[%s989_s4 + $0x60] sm:$0xff]  ;;  %v742_v15 = vld [vmem:[%s989_s4 + $0x68] sm:$0xff]  ;;  %v743_v19 = vld [vmem:[%s989_s4 + $0x70] sm:$0xff] }
  0x13   : > { %v732_v20 = vld [vmem:[%s989_s4 + $0x18] sm:$0xff] }
  0x14   : > { %v736_v21 = vld [vmem:[%s989_s4 + $0x38] sm:$0xff] }
  0x15   : > { %375 = vmatpush.bf16.msra.mxu0 %v750_v2  ;;  %854 = vmatpush.bf16.msra.mxu1 %v750_v2  ;;  %v740_v22 = vld [vmem:[%s989_s4 + $0x58] sm:$0xff] }
  0x16   : > { %855 = vmatpush.bf16.msra.mxu2 %v750_v2  ;;  %856 = vmatpush.bf16.msra.mxu3 %v750_v2  ;;  %v744_v23 = vld [vmem:[%s989_s4 + $0x78] sm:$0xff] }
  0x19   : > { %376 = vmatpush.bf16.msra.mxu0 %v749_v3  ;;  %857 = vmatpush.bf16.msra.mxu1 %v749_v3 }
  0x1a   : > { %858 = vmatpush.bf16.msra.mxu2 %v749_v3  ;;  %859 = vmatpush.bf16.msra.mxu3 %v749_v3 }
  0x1d   : > { %377 = vmatpush.bf16.msra.mxu0 %v748_v4  ;;  %860 = vmatpush.bf16.msra.mxu1 %v748_v4 }
  0x1e   : > { %861 = vmatpush.bf16.msra.mxu2 %v748_v4  ;;  %862 = vmatpush.bf16.msra.mxu3 %v748_v4 }
  0x21   : > { %378 = vmatpush.bf16.msra.mxu0 %v747_v5  ;;  %863 = vmatpush.bf16.msra.mxu1 %v747_v5 }
  0x22   : > { %864 = vmatpush.bf16.msra.mxu2 %v747_v5  ;;  %865 = vmatpush.bf16.msra.mxu3 %v747_v5 }
  0x25   : > { %379 = vmatpush.bf16.msra.mxu0 %v746_v6  ;;  %866 = vmatpush.bf16.msra.mxu1 %v746_v6 }
  0x26   : > { %867 = vmatpush.bf16.msra.mxu2 %v746_v6  ;;  %868 = vmatpush.bf16.msra.mxu3 %v746_v6 }
  0x29   : > { %380 = vmatpush.bf16.msra.mxu0 %v745_v7  ;;  %869 = vmatpush.bf16.msra.mxu1 %v745_v7 }
  0x2a   : > { %870 = vmatpush.bf16.msra.mxu2 %v745_v7  ;;  %871 = vmatpush.bf16.msra.mxu3 %v745_v7 }
  0x2c   : > { %381 = vmatmul.bf16.vlgmr.msra.gmra.mxu0 %v729_v8  ;;  %401 = vmatmul.bf16.vlgmr.msra.gmra.mxu1 %v733_v9 }
  0x2d   : > { %421 = vmatmul.bf16.vlgmr.msra.gmra.mxu2 %v737_v10  ;;  %441 = vmatmul.bf16.vlgmr.msra.gmra.mxu3 %v741_v11 }
  0x3c   : > { %386 = vmatmul.bf16.gmra.mxu0 %v730_v12  ;;  %406 = vmatmul.bf16.gmra.mxu1 %v734_v13 }
  0x3d   : > { %426 = vmatmul.bf16.gmra.mxu2 %v738_v14  ;;  %446 = vmatmul.bf16.gmra.mxu3 %v742_v15 }
  0x4c   : > { %391 = vmatmul.bf16.gmra.mxu0 %v731_v16  ;;  %411 = vmatmul.bf16.gmra.mxu1 %v735_v17 }
  0x4d   : > { %431 = vmatmul.bf16.gmra.mxu2 %v739_v18  ;;  %451 = vmatmul.bf16.gmra.mxu3 %v743_v19 }
  0x5c   : > { %396 = vmatmul.bf16.gmra.mxu0 %v732_v20  ;;  %416 = vmatmul.bf16.gmra.mxu1 %v736_v21 }
  0x5d   : > { %436 = vmatmul.bf16.gmra.mxu2 %v740_v22  ;;  %456 = vmatmul.bf16.gmra.mxu3 %v744_v23 }
  0xa9   : > { %v382_v24 = vpop.f32.mrf.mxu0  ;;  %v402_v25 = vpop.f32.mrf.mxu1 }
  0xb0   : > { %v422_v26 = vpop.f32.mrf.mxu2  ;;  %v442_v27 = vpop.f32.mrf.mxu3 }
  0xb1   : > { %v384_v28 = vpop.f32.mrf.mxu0  ;;  %v404_v29 = vpop.f32.mrf.mxu1 }
  0xb2   : > { %v756_v30 = vpack.c.bf16 %v384_v28, %v382_v24  ;;  %v776_v31 = vpack.c.bf16 %v404_v29, %v402_v25 }
  0xb4   : > { %757 = vst [vmem:[%s1012_s7] sm:$0xff] %v756_v30  }
  0xb5   : > { %836 = vst [vmem:[%s1012_s7 + $0x20] sm:$0xff] %v776_v31  }
  0xb8   : > { %v424_v32 = vpop.f32.mrf.mxu2  ;;  %v444_v33 = vpop.f32.mrf.mxu3 }
  0xb9   : > { %v796_v34 = vpack.c.bf16 %v424_v32, %v422_v26  ;;  %v816_v35 = vpack.c.bf16 %v444_v33, %v442_v27  ;;  %v387_v36 = vpop.f32.mrf.mxu0  ;;  %v407_v37 = vpop.f32.mrf.mxu1 }
  0xbb   : > { %840 = vst [vmem:[%s1012_s7 + $0x40] sm:$0xff] %v796_v34  }
  0xbc   : > { %844 = vst [vmem:[%s1012_s7 + $0x60] sm:$0xff] %v816_v35  }
  0xc0   : > { %v427_v38 = vpop.f32.mrf.mxu2  ;;  %v447_v39 = vpop.f32.mrf.mxu3 }
  0xc1   : > { %v389_v40 = vpop.f32.mrf.mxu0  ;;  %v409_v41 = vpop.f32.mrf.mxu1 }
  0xc2   : > { %v761_v42 = vpack.c.bf16 %v389_v40, %v387_v36  ;;  %v781_v43 = vpack.c.bf16 %v409_v41, %v407_v37 }
  0xc4   : > { %833 = vst [vmem:[%s1012_s7 + $0x8] sm:$0xff] %v761_v42  }
  0xc5   : > { %837 = vst [vmem:[%s1012_s7 + $0x28] sm:$0xff] %v781_v43  }
  0xc8   : > { %v429_v44 = vpop.f32.mrf.mxu2  ;;  %v449_v45 = vpop.f32.mrf.mxu3 }
  0xc9   : > { %v801_v46 = vpack.c.bf16 %v429_v44, %v427_v38  ;;  %v821_v47 = vpack.c.bf16 %v449_v45, %v447_v39  ;;  %v392_v48 = vpop.f32.mrf.mxu0  ;;  %v412_v49 = vpop.f32.mrf.mxu1 }
  0xcb   : > { %841 = vst [vmem:[%s1012_s7 + $0x48] sm:$0xff] %v801_v46  }
  0xcc   : > { %845 = vst [vmem:[%s1012_s7 + $0x68] sm:$0xff] %v821_v47  }
  0xd0   : > { %v432_v50 = vpop.f32.mrf.mxu2  ;;  %v452_v51 = vpop.f32.mrf.mxu3 }
  0xd1   : > { %v394_v52 = vpop.f32.mrf.mxu0  ;;  %v414_v53 = vpop.f32.mrf.mxu1 }
  0xd2   : > { %v766_v54 = vpack.c.bf16 %v394_v52, %v392_v48  ;;  %v786_v55 = vpack.c.bf16 %v414_v53, %v412_v49 }
  0xd4   : > { %834 = vst [vmem:[%s1012_s7 + $0x10] sm:$0xff] %v766_v54  }
  0xd5   : > { %838 = vst [vmem:[%s1012_s7 + $0x30] sm:$0xff] %v786_v55  }
  0xd8   : > { %v434_v56 = vpop.f32.mrf.mxu2  ;;  %v454_v57 = vpop.f32.mrf.mxu3 }
  0xd9   : > { %v806_v58 = vpack.c.bf16 %v434_v56, %v432_v50  ;;  %v826_v59 = vpack.c.bf16 %v454_v57, %v452_v51  ;;  %v397_v60 = vpop.f32.mrf.mxu0  ;;  %v417_v61 = vpop.f32.mrf.mxu1 }
  0xdb   : > { %842 = vst [vmem:[%s1012_s7 + $0x50] sm:$0xff] %v806_v58  }
  0xdc   : > { %846 = vst [vmem:[%s1012_s7 + $0x70] sm:$0xff] %v826_v59  }
  0xe0   : > { %v437_v62 = vpop.f32.mrf.mxu2  ;;  %v457_v63 = vpop.f32.mrf.mxu3 }
  0xe1   : > { %v399_v0 = vpop.f32.mrf.mxu0  ;;  %v419_v1 = vpop.f32.mrf.mxu1 }
  0xe2   : > { %v771_v2 = vpack.c.bf16 %v399_v0, %v397_v60  ;;  %v791_v3 = vpack.c.bf16 %v419_v1, %v417_v61 }
  0xe4   : > { %835 = vst [vmem:[%s1012_s7 + $0x18] sm:$0xff] %v771_v2  }
  0xe5   : > { %839 = vst [vmem:[%s1012_s7 + $0x38] sm:$0xff] %v791_v3  }
  0xe8   : > { %v439_v4 = vpop.f32.mrf.mxu2  ;;  %v459_v5 = vpop.f32.mrf.mxu3 }
  0xe9   : > { %v811_v6 = vpack.c.bf16 %v439_v4, %v437_v62  ;;  %v831_v7 = vpack.c.bf16 %v459_v5, %v457_v63 }
  0xeb   : > { %843 = vst [vmem:[%s1012_s7 + $0x58] sm:$0xff] %v811_v6  }
  0xec   : > { %847 = vst [vmem:[%s1012_s7 + $0x78] sm:$0xff] %v831_v7  }
  0xed PF: > { %s12_s11 = sadd.s32 1, %s918_s11   ;;  %s1042_s9 = smov %s914_s10 }
  0xee   : > { %p9_p5 = scmp.ge.s32.totalorder %s12_s11, 4   ;;  %s1043_s10 = smov %s1045_s12 }
  0xf0   :  { %11 = sbr.rel (!%p9_p5) target bundleno = 2 (0x2), region = 61 }

// kernel: bottleneck_forward.7
= control target key start
LH: loop header
LB: loop body
LE: loop exit
PB: predicated region body
PF: predicated region fallthrough
CT: control target
= control target key end

     0   :  { %s1005_s18 = smov 0   ;;  %s1547_s0 = inlined_call_operand.vmem [shape: bf16[2,256,128], index: 0, kind: input, shape index: {}]   ;;  %s1548_s1 = inlined_call_operand.vmem [shape: f32[1,128], index: 1, kind: input, shape index: {}]   ;;  %s1549_s2 = inlined_call_operand.vmem [shape: f32[1,128], index: 2, kind: input, shape index: {}]   ;;  %s1550_s3 = inlined_call_operand.vmem [shape: f32[128,8], index: 3, kind: input, shape index: {}]   ;;  %s1551_s4 = inlined_call_operand.vmem [shape: f32[8,128], index: 4, kind: input, shape index: {}]   ;;  %s1552_s5 = inlined_call_operand.vmem [shape: bf16[2,256,128], index: 5, kind: output, shape index: {}]  }
   0x1 LB: > { %s767_s19 = sadd.s32 4294967295, %s973_s18   ;;  %p771_p0 = scmp.ge.s32.totalorder %s973_s18, 1  ;;  %s973_s18 = sphi %s1005_s18, %s15_s18  }
   0x2   : > { %p187_p1 = scmp.lt.s32.totalorder %s973_s18, 3 }
   0x4   : > { %p188_p2 = pnand %p771_p0, %p187_p1 }
   0x5   : > { %p215_p3 = scmp.lt.s32.totalorder (!%p188_p2), %s767_s19, 1 }
   0x6   : > { %191 = sbr.rel (%p188_p2) target bundleno = 751 (0x2ef), region = 40 }
   0xb   : > { %v341_v0 = vld [vmem:[%s1550_s3 + $0x78] sm:$0xff]  ;;  %v340_v1 = vld [vmem:[%s1550_s3 + $0x70] sm:$0xff]  ;;  %v339_v2 = vld [vmem:[%s1550_s3 + $0x68] sm:$0xff]  ;;  %s1554_s19 = smov (!%p215_p3, %s767_s19), 1  ;;  %vm363_vm0 = vcmask 64512  }
   0xc   : > { %342 = vmatpush.msra.mxu0 %v341_v0  ;;  %490 = vmatpush.msra.mxu2 %v341_v0  ;;  %v338_v3 = vld [vmem:[%s1550_s3 + $0x60] sm:$0xff]  ;;  %s780_s28 = sshll.u32 %s1554_s19, 7  ;;  %v337_v4 = vld [vmem:[%s1550_s3 + $0x58] sm:$0xff]  ;;  %v336_v5 = vld [vmem:[%s1550_s3 + $0x50] sm:$0xff] }
   0xd   : > { %s1033_s6 = scalar_lea.vmem %s1547_s0, %s780_s28  ;;  %v335_v7 = vld [vmem:[%s1550_s3 + $0x48] sm:$0xff]  ;;  %v334_v11 = vld [vmem:[%s1550_s3 + $0x40] sm:$0xff]  ;;  %v333_v13 = vld [vmem:[%s1550_s3 + $0x38] sm:$0xff]  ;;  %s1519_s17 = scalar_lea.vmem %s1552_s5, %s780_s28 }
   0xe   : > { %343 = vmatpush.msra.mxu0 %v340_v1  ;;  %491 = vmatpush.msra.mxu2 %v340_v1  ;;  %v1042_v6 = vld [vmem:[%s1033_s6] sm:$0xff]   ;;  %v1048_v8 = vld [vmem:[%s1033_s6 + $0x8] sm:$0xff]   ;;  %v1060_v14 = vld [vmem:[%s1033_s6 + $0x10] sm:$0xff]  }
   0xf   : > { %v784_v9 = vunpack.c.l.bf16 %v1042_v6  ;;  %v785_v10 = vunpack.c.h.bf16 %v1042_v6  ;;  %v788_v12 = vunpack.c.l.bf16 %v1048_v8  ;;  %v789_v15 = vunpack.c.h.bf16 %v1048_v8  ;;  %v332_v17 = vld [vmem:[%s1550_s3 + $0x30] sm:$0xff]  ;;  %v331_v20 = vld [vmem:[%s1550_s3 + $0x28] sm:$0xff]  ;;  %v1077_v21 = vld [vmem:[%s1033_s6 + $0x18] sm:$0xff]  }
  0x10   : > { %344 = vmatpush.msra.mxu0 %v339_v2  ;;  %492 = vmatpush.msra.mxu2 %v339_v2  ;;  %v792_v18 = vunpack.c.l.bf16 %v1060_v14  ;;  %v793_v22 = vunpack.c.h.bf16 %v1060_v14  ;;  %v330_v24 = vld [vmem:[%s1550_s3 + $0x20] sm:$0xff]  ;;  %v796_v25 = vunpack.c.l.bf16 %v1077_v21  ;;  %v329_v27 = vld [vmem:[%s1550_s3 + $0x18] sm:$0xff]  ;;  %v797_v29 = vunpack.c.h.bf16 %v1077_v21  ;;  %v328_v31 = vld [vmem:[%s1550_s3 + $0x10] sm:$0xff] }
  0x11   : > { %v289_v16 = vadd.f32 %v785_v10, %v784_v9  ;;  %v1092_v28 = vld [vmem:[%s1033_s6 + $0x20] sm:$0xff]   ;;  %v327_v34 = vld [vmem:[%s1550_s3 + $0x8] sm:$0xff]  ;;  %v1119_v41 = vld [vmem:[%s1033_s6 + $0x30] sm:$0xff]  }
  0x12   : > { %345 = vmatpush.msra.mxu0 %v338_v3  ;;  %493 = vmatpush.msra.mxu2 %v338_v3  ;;  %v800_v32 = vunpack.c.l.bf16 %v1092_v28  ;;  %v1107_v35 = vld [vmem:[%s1033_s6 + $0x28] sm:$0xff]   ;;  %v801_v36 = vunpack.c.h.bf16 %v1092_v28  ;;  %v326_v38 = vld [vmem:[%s1550_s3] sm:$0xff]  ;;  %v808_v44 = vunpack.c.l.bf16 %v1119_v41  ;;  %v1128_v46 = vld [vmem:[%s1033_s6 + $0x38] sm:$0xff]   ;;  %v809_v47 = vunpack.c.h.bf16 %v1119_v41 }
  0x13   : > { %v290_v19 = vadd.f32 %v788_v12, %v289_v16  ;;  %v804_v39 = vunpack.c.l.bf16 %v1107_v35  ;;  %v805_v42 = vunpack.c.h.bf16 %v1107_v35  ;;  %v812_v49 = vunpack.c.l.bf16 %v1128_v46  ;;  %v1137_v51 = vld [vmem:[%s1033_s6 + $0x40] sm:$0xff]   ;;  %v1146_v56 = vld [vmem:[%s1033_s6 + $0x48] sm:$0xff]   ;;  %v1155_v61 = vld [vmem:[%s1033_s6 + $0x50] sm:$0xff]  }
  0x14   : > { %346 = vmatpush.msra.mxu0 %v337_v4  ;;  %494 = vmatpush.msra.mxu2 %v337_v4  ;;  %v813_v52 = vunpack.c.h.bf16 %v1128_v46  ;;  %v816_v54 = vunpack.c.l.bf16 %v1137_v51  ;;  %v817_v57 = vunpack.c.h.bf16 %v1137_v51  ;;  %v820_v59 = vunpack.c.l.bf16 %v1146_v56  ;;  %v1164_v2 = vld [vmem:[%s1033_s6 + $0x58] sm:$0xff]  }
  0x15   : > { %v291_v23 = vadd.f32 %v789_v15, %v290_v19  ;;  %v821_v62 = vunpack.c.h.bf16 %v1146_v56  ;;  %v824_v0 = vunpack.c.l.bf16 %v1155_v61  ;;  %v825_v3 = vunpack.c.h.bf16 %v1155_v61 }
  0x16   : > { %347 = vmatpush.msra.mxu0 %v336_v5  ;;  %495 = vmatpush.msra.mxu2 %v336_v5  ;;  %v828_v5 = vunpack.c.l.bf16 %v1164_v2 }
  0x17   : > { %v292_v26 = vadd.f32 %v792_v18, %v291_v23 }
  0x18   : > { %348 = vmatpush.msra.mxu0 %v335_v7  ;;  %496 = vmatpush.msra.mxu2 %v335_v7 }
  0x19   : > { %v293_v30 = vadd.f32 %v793_v22, %v292_v26 }
  0x1a   : > { %349 = vmatpush.msra.mxu0 %v334_v11  ;;  %497 = vmatpush.msra.mxu2 %v334_v11  ;;  %v1173_v11 = vld [vmem:[%s1033_s6 + $0x60] sm:$0xff]  }
  0x1b   : > { %v294_v33 = vadd.f32 %v796_v25, %v293_v30  ;;  %v833_v23 = vunpack.c.h.bf16 %v1173_v11  ;;  %v1191_v30 = vld [vmem:[%s1033_s6 + $0x70] sm:$0xff]  }
  0x1c   : > { %350 = vmatpush.msra.mxu0 %v333_v13  ;;  %498 = vmatpush.msra.mxu2 %v333_v13  ;;  %v829_v13 = vunpack.c.h.bf16 %v1164_v2 }
  0x1d   : > { %v295_v37 = vadd.f32 %v797_v29, %v294_v33 }
  0x1e   : > { %351 = vmatpush.msra.mxu0 %v332_v17  ;;  %499 = vmatpush.msra.mxu2 %v332_v17  ;;  %v832_v17 = vunpack.c.l.bf16 %v1173_v11 }
  0x1f   : > { %v296_v40 = vadd.f32 %v800_v32, %v295_v37 }
  0x20   : > { %352 = vmatpush.msra.mxu0 %v331_v20  ;;  %500 = vmatpush.msra.mxu2 %v331_v20  ;;  %v1182_v20 = vld [vmem:[%s1033_s6 + $0x68] sm:$0xff]  }
  0x21   : > { %v297_v43 = vadd.f32 %v801_v36, %v296_v40  ;;  %v836_v26 = vunpack.c.l.bf16 %v1182_v20  ;;  %v841_v40 = vunpack.c.h.bf16 %v1191_v30 }
  0x22   : > { %353 = vmatpush.msra.mxu0 %v330_v24  ;;  %501 = vmatpush.msra.mxu2 %v330_v24 }
  0x23   : > { %v298_v45 = vadd.f32 %v804_v39, %v297_v43 }
  0x24   : > { %354 = vmatpush.msra.mxu0 %v329_v27  ;;  %502 = vmatpush.msra.mxu2 %v329_v27 }
  0x25   : > { %v299_v48 = vadd.f32 %v805_v42, %v298_v45 }
  0x26   : > { %355 = vmatpush.msra.mxu0 %v328_v31  ;;  %503 = vmatpush.msra.mxu2 %v328_v31  ;;  %v837_v31 = vunpack.c.h.bf16 %v1182_v20 }
  0x27   : > { %v300_v50 = vadd.f32 %v808_v44, %v299_v48 }
  0x28   : > { %356 = vmatpush.msra.mxu0 %v327_v34  ;;  %504 = vmatpush.msra.mxu2 %v327_v34  ;;  %v840_v34 = vunpack.c.l.bf16 %v1191_v30 }
  0x29   : > { %v301_v53 = vadd.f32 %v809_v47, %v300_v50 }
  0x2a   : > { %357 = vmatpush.msra.mxu0 %v326_v38  ;;  %505 = vmatpush.msra.mxu2 %v326_v38  ;;  %v1200_v38 = vld [vmem:[%s1033_s6 + $0x78] sm:$0xff]  }
  0x2b   : > { %v302_v55 = vadd.f32 %v812_v49, %v301_v53  ;;  %v844_v45 = vunpack.c.l.bf16 %v1200_v38  ;;  %v845_v50 = vunpack.c.h.bf16 %v1200_v38 }
  0x2d   : > { %v303_v58 = vadd.f32 %v813_v52, %v302_v55 }
  0x2f   : > { %v304_v60 = vadd.f32 %v816_v54, %v303_v58 }
  0x31   : > { %v305_v63 = vadd.f32 %v817_v57, %v304_v60 }
  0x33   : > { %v306_v1 = vadd.f32 %v820_v59, %v305_v63 }
  0x35   : > { %v307_v4 = vadd.f32 %v821_v62, %v306_v1 }
  0x37   : > { %v308_v7 = vadd.f32 %v824_v0, %v307_v4 }
  0x39   : > { %v309_v16 = vadd.f32 %v825_v3, %v308_v7 }
  0x3b   : > { %v310_v19 = vadd.f32 %v828_v5, %v309_v16 }
  0x3d   : > { %v311_v24 = vadd.f32 %v829_v13, %v310_v19  ;;  %v362_v19 = vld [vmem:[%s1551_s4] sm:$0xff] }
  0x3e   : > { %382 = vmatpush.msra.mxu1 %v362_v19  ;;  %528 = vmatpush.msra.mxu3 %v362_v19 }
  0x3f   : > { %v312_v27 = vadd.f32 %v832_v17, %v311_v24 }
  0x41   : > { %v313_v33 = vadd.f32 %v833_v23, %v312_v27 }
  0x43   : > { %v314_v37 = vadd.f32 %v836_v26, %v313_v33 }
  0x45   : > { %v315_v43 = vadd.f32 %v837_v31, %v314_v37 }
  0x47   : > { %v316_v48 = vadd.f32 %v840_v34, %v315_v43 }
  0x49   : > { %v317_v53 = vadd.f32 %v841_v40, %v316_v48 }
  0x4b   : > { %v318_v55 = vadd.f32 %v844_v45, %v317_v53 }
  0x4d   : > { %v319_v58 = vadd.f32 %v845_v50, %v318_v55 }
  0x4f   : > { %v320_v60 = vrot.slane %v319_v58, 4 }
  0x51   : > { %v321_v63 = vadd.f32 %v320_v60, %v319_v58 }
  0x53   : > { %v322_v1 = vrot.slane %v321_v63, 2 }
  0x55   : > { %v323_v4 = vadd.f32 %v322_v1, %v321_v63 }
  0x57   : > { %v324_v7 = vrot.slane %v323_v4, 1 }
  0x59   : > { %v325_v16 = vadd.f32 %v324_v7, %v323_v4 }
  0x5b   : > { %358 = vmatmul.f32.vlgmr.msra.gmra.mxu0 %v325_v16 }
  0xd8   : > { %v359_v24 = vpop.f32.mrf.mxu0 }
  0xd9   : > { %776 = vmatmul.msk.f32.vlgmr.msra.gmra.mxu1 %vm363_vm0, %v359_v24 }
 0x156   : > { %v384_v27 = vpop.f32.mrf.mxu1 }
 0x157   : > { %v387_v33 = vmul.f32 0.0009765625, %v384_v27 }
 0x159   : > { %v1219_v37 = vperm.slane %v387_v33, 0 }
 0x15b   : > { %v1224_v43 = vsub.f32 %v784_v9, %v1219_v37  ;;  %v1229_v48 = vsub.f32 %v785_v10, %v1219_v37  ;;  %v1234_v53 = vsub.f32 %v788_v12, %v1219_v37  ;;  %v1243_v9 = vsub.f32 %v789_v15, %v1219_v37 }
 0x15c   : > { %v1248_v6 = vsub.f32 %v792_v18, %v1219_v37  ;;  %v1255_v60 = vsub.f32 %v793_v22, %v1219_v37  ;;  %v1262_v15 = vsub.f32 %v796_v25, %v1219_v37  ;;  %v1269_v4 = vsub.f32 %v797_v29, %v1219_v37 }
 0x15d   : > { %v421_v55 = vmul.f32 %v1224_v43, %v1224_v43  ;;  %v422_v58 = vmul.f32 %v1229_v48, %v1229_v48  ;;  %v423_v10 = vmul.f32 %v1234_v53, %v1234_v53  ;;  %v424_v63 = vmul.f32 %v1243_v9, %v1243_v9 }
 0x15e   : > { %v425_v18 = vmul.f32 %v1248_v6, %v1248_v6  ;;  %v426_v14 = vmul.f32 %v1255_v60, %v1255_v60  ;;  %v1276_v7 = vsub.f32 %v800_v32, %v1219_v37  ;;  %v427_v25 = vmul.f32 %v1262_v15, %v1262_v15 }
 0x15f   : > { %v453_v12 = vadd.f32 %v422_v58, %v421_v55  ;;  %v1283_v19 = vsub.f32 %v801_v36, %v1219_v37  ;;  %v428_v21 = vmul.f32 %v1269_v4, %v1269_v4  ;;  %v1290_v24 = vsub.f32 %v804_v39, %v1219_v37 }
 0x160   : > { %v429_v32 = vmul.f32 %v1276_v7, %v1276_v7  ;;  %v1297_v33 = vsub.f32 %v805_v42, %v1219_v37  ;;  %v1304_v55 = vsub.f32 %v808_v44, %v1219_v37 }
 0x161   : > { %v454_v8 = vadd.f32 %v453_v12, %v423_v10  ;;  %v430_v28 = vmul.f32 %v1283_v19, %v1283_v19  ;;  %v431_v39 = vmul.f32 %v1290_v24, %v1290_v24  ;;  %v1311_v10 = vsub.f32 %v809_v47, %v1219_v37 }
 0x162   : > { %v432_v35 = vmul.f32 %v1297_v33, %v1297_v33  ;;  %v1318_v12 = vsub.f32 %v812_v49, %v1219_v37  ;;  %v433_v44 = vmul.f32 %v1304_v55, %v1304_v55 }
 0x163   : > { %v455_v1 = vadd.f32 %v454_v8, %v424_v63  ;;  %v1325_v8 = vsub.f32 %v813_v52, %v1219_v37  ;;  %v434_v41 = vmul.f32 %v1311_v10, %v1311_v10 }
 0x164   : > { %v435_v49 = vmul.f32 %v1318_v12, %v1318_v12 }
 0x165   : > { %v456_v22 = vadd.f32 %v455_v1, %v425_v18  ;;  %v1332_v18 = vsub.f32 %v816_v54, %v1219_v37  ;;  %v436_v46 = vmul.f32 %v1325_v8, %v1325_v8 }
 0x167   : > { %v457_v16 = vadd.f32 %v456_v22, %v426_v14  ;;  %v1339_v14 = vsub.f32 %v817_v57, %v1219_v37  ;;  %v1346_v22 = vsub.f32 %v820_v59, %v1219_v37  ;;  %v437_v54 = vmul.f32 %v1332_v18, %v1332_v18 }
 0x169   : > { %v458_v29 = vadd.f32 %v457_v16, %v427_v25  ;;  %v1353_v16 = vsub.f32 %v821_v62, %v1219_v37  ;;  %v438_v51 = vmul.f32 %v1339_v14, %v1339_v14  ;;  %v439_v59 = vmul.f32 %v1346_v22, %v1346_v22 }
 0x16b   : > { %v459_v27 = vadd.f32 %v458_v29, %v428_v21  ;;  %v1360_v21 = vsub.f32 %v824_v0, %v1219_v37  ;;  %v440_v56 = vmul.f32 %v1353_v16, %v1353_v16 }
 0x16d   : > { %v460_v36 = vadd.f32 %v459_v27, %v429_v32  ;;  %v1367_v32 = vsub.f32 %v825_v3, %v1219_v37  ;;  %v1374_v27 = vsub.f32 %v828_v5, %v1219_v37  ;;  %v441_v0 = vmul.f32 %v1360_v21, %v1360_v21 }
 0x16f   : > { %v461_v58 = vadd.f32 %v460_v36, %v430_v28  ;;  %v1381_v36 = vsub.f32 %v829_v13, %v1219_v37  ;;  %v442_v61 = vmul.f32 %v1367_v32, %v1367_v32  ;;  %v443_v5 = vmul.f32 %v1374_v27, %v1374_v27 }
 0x171   : > { %v462_v42 = vadd.f32 %v461_v58, %v431_v39  ;;  %v1388_v39 = vsub.f32 %v832_v17, %v1219_v37  ;;  %v444_v2 = vmul.f32 %v1381_v36, %v1381_v36 }
 0x173   : > { %v463_v63 = vadd.f32 %v462_v42, %v432_v35  ;;  %v1395_v35 = vsub.f32 %v833_v23, %v1219_v37  ;;  %v1402_v42 = vsub.f32 %v836_v26, %v1219_v37  ;;  %v445_v17 = vmul.f32 %v1388_v39, %v1388_v39 }
 0x175   : > { %v464_v47 = vadd.f32 %v463_v63, %v433_v44  ;;  %v1409_v63 = vsub.f32 %v837_v31, %v1219_v37  ;;  %v446_v11 = vmul.f32 %v1395_v35, %v1395_v35  ;;  %v447_v26 = vmul.f32 %v1402_v42, %v1402_v42 }
 0x177   : > { %v465_v1 = vadd.f32 %v464_v47, %v434_v41  ;;  %v1416_v41 = vsub.f32 %v840_v34, %v1219_v37  ;;  %v448_v20 = vmul.f32 %v1409_v63, %v1409_v63 }
 0x179   : > { %v466_v52 = vadd.f32 %v465_v1, %v435_v49  ;;  %v1423_v49 = vsub.f32 %v841_v40, %v1219_v37  ;;  %v1430_v1 = vsub.f32 %v844_v45, %v1219_v37  ;;  %v449_v34 = vmul.f32 %v1416_v41, %v1416_v41 }
 0x17b   : > { %v467_v25 = vadd.f32 %v466_v52, %v436_v46  ;;  %v1437_v52 = vsub.f32 %v845_v50, %v1219_v37  ;;  %v450_v30 = vmul.f32 %v1423_v49, %v1423_v49 }
 0x17d   : > { %v468_v57 = vadd.f32 %v467_v25, %v437_v54  ;;  %v451_v54 = vmul.f32 %v1430_v1, %v1430_v1  ;;  %v452_v45 = vmul.f32 %v1437_v52, %v1437_v52 }
 0x17f   : > { %v469_v29 = vadd.f32 %v468_v57, %v438_v51 }
 0x181   : > { %v470_v62 = vadd.f32 %v469_v29, %v439_v59 }
 0x183   : > { %v471_v28 = vadd.f32 %v470_v62, %v440_v56 }
 0x185   : > { %v472_v3 = vadd.f32 %v471_v28, %v441_v0 }
 0x187   : > { %v473_v58 = vadd.f32 %v472_v3, %v442_v61 }
 0x189   : > { %v474_v13 = vadd.f32 %v473_v58, %v443_v5 }
 0x18b   : > { %v475_v44 = vadd.f32 %v474_v13, %v444_v2 }
 0x18d   : > { %v476_v23 = vadd.f32 %v475_v44, %v445_v17 }
 0x18f   : > { %v477_v47 = vadd.f32 %v476_v23, %v446_v11  ;;  %v545_v11 = vld [vmem:[%s1548_s1] sm:$0x1] }
 0x191   : > { %v478_v31 = vadd.f32 %v477_v47, %v447_v26 }
 0x193   : > { %v479_v46 = vadd.f32 %v478_v31, %v448_v20 }
 0x195   : > { %v480_v40 = vadd.f32 %v479_v46, %v449_v34 }
 0x197   : > { %v481_v25 = vadd.f32 %v480_v40, %v450_v30 }
 0x199   : > { %v482_v51 = vadd.f32 %v481_v25, %v451_v54 }
 0x19b   : > { %v483_v57 = vadd.f32 %v482_v51, %v452_v45 }
 0x19d   : > { %v484_v59 = vrot.slane %v483_v57, 4 }
 0x19f   : > { %v485_v29 = vadd.f32 %v484_v59, %v483_v57 }
 0x1a1   : > { %v486_v56 = vrot.slane %v485_v29, 2 }
 0x1a3   : > { %v487_v62 = vadd.f32 %v486_v56, %v485_v29 }
 0x1a5   : > { %v488_v38 = vrot.slane %v487_v62, 1 }
 0x1a7   : > { %v489_v50 = vadd.f32 %v488_v38, %v487_v62 }
 0x1a9   : > { %506 = vmatmul.f32.vlgmr.msra.gmra.mxu2 %v489_v50 }
 0x22c   : > { %v507_v37 = vpop.f32.mrf.mxu2 }
 0x22d   : > { %777 = vmatmul.msk.f32.vlgmr.msra.gmra.mxu3 %vm363_vm0, %v507_v37 }
 0x2b0   : > { %v530_v0 = vpop.f32.mrf.mxu3 }
 0x2b1   : > { %v533_v28 = vmul.f32 0.0009765625, %v530_v0 }
 0x2b3   : > { %v534_v61 = vadd.f32 1e-05, %v533_v28 }
 0x2b5   : > { %965 = vrsqrt.f32 %v534_v61  ;;  %vm541_vm2 = vweird.f32 %v534_v61 }
 0x2bb   : > { %v966_v3 = vpop.eup %965 }
 0x2bc   : > { %v536_v5 = vmul.f32 %v966_v3, %v534_v61  ;;  %vm542_vm1 = vweird.f32 %v966_v3 }
 0x2bd   : > { %vm543_vm3 = vmor %vm541_vm2, %vm542_vm1 }
 0x2be   : > { %v537_v58 = vmul.f32 %v966_v3, %v536_v5 }
 0x2c0   : > { %v538_v2 = vmul.f32 0.5, %v537_v58 }
 0x2c2   : > { %v539_v13 = vsub.f32 1.5, %v538_v2 }
 0x2c4   : > { %v540_v17 = vmul.f32 %v966_v3, %v539_v13 }
 0x2c6   : > { %v544_v44 = vsel %vm543_vm3, %v966_v3, %v540_v17 }
 0x2c7   : > { %v546_v23 = vmul.f32 %v545_v11, %v544_v44 }
 0x2c9   : > { %v547_v26 = vperm.slane %v546_v23, 0 }
 0x2cb   : > { %v548_v47 = vmul.f32 %v547_v26, %v1224_v43  ;;  %v549_v20 = vmul.f32 %v547_v26, %v1229_v48  ;;  %v550_v31 = vmul.f32 %v547_v26, %v1234_v53  ;;  %v551_v34 = vmul.f32 %v547_v26, %v1243_v9 }
 0x2cc   : > { %v552_v46 = vmul.f32 %v547_v26, %v1248_v6  ;;  %v553_v30 = vmul.f32 %v547_v26, %v1255_v60  ;;  %v554_v40 = vmul.f32 %v547_v26, %v1262_v15  ;;  %v555_v54 = vmul.f32 %v547_v26, %v1269_v4 }
 0x2cd   : > { %v556_v25 = vmul.f32 %v547_v26, %v1276_v7  ;;  %v557_v45 = vmul.f32 %v547_v26, %v1283_v19  ;;  %v558_v43 = vmul.f32 %v547_v26, %v1290_v24  ;;  %v559_v48 = vmul.f32 %v547_v26, %v1297_v33  ;;  %v1472_v24 = vld [vmem:[%s1549_s2] ss:$0 sm:$0xff] }
 0x2ce   : > { %v560_v53 = vmul.f32 %v547_v26, %v1304_v55  ;;  %v561_v9 = vmul.f32 %v547_v26, %v1311_v10  ;;  %v562_v6 = vmul.f32 %v547_v26, %v1318_v12  ;;  %v563_v60 = vmul.f32 %v547_v26, %v1325_v8 }
 0x2cf   : > { %v564_v15 = vmul.f32 %v547_v26, %v1332_v18  ;;  %v565_v4 = vmul.f32 %v547_v26, %v1339_v14  ;;  %v566_v7 = vmul.f32 %v547_v26, %v1346_v22  ;;  %v567_v19 = vmul.f32 %v547_v26, %v1353_v16 }
 0x2d0   : > { %v568_v33 = vmul.f32 %v547_v26, %v1360_v21  ;;  %v569_v55 = vmul.f32 %v547_v26, %v1367_v32  ;;  %v570_v10 = vmul.f32 %v547_v26, %v1374_v27  ;;  %v571_v12 = vmul.f32 %v547_v26, %v1381_v36 }
 0x2d1   : > { %v572_v8 = vmul.f32 %v547_v26, %v1388_v39  ;;  %v573_v18 = vmul.f32 %v547_v26, %v1395_v35  ;;  %v574_v14 = vmul.f32 %v547_v26, %v1402_v42  ;;  %v575_v22 = vmul.f32 %v547_v26, %v1409_v63 }
 0x2d2   : > { %v576_v16 = vmul.f32 %v547_v26, %v1416_v41  ;;  %v577_v51 = vmul.f32 %v547_v26, %v1423_v49  ;;  %v578_v21 = vmul.f32 %v547_v26, %v1430_v1  ;;  %v1486_v32 = vmul.f32 %v547_v26, %v1437_v52 }
 0x2d3   : > { %v584_v27 = vadd.f32 %v1472_v24, %v548_v47  ;;  %v585_v36 = vadd.f32 %v1472_v24, %v549_v20  ;;  %v586_v39 = vadd.f32 %v1472_v24, %v550_v31  ;;  %v587_v35 = vadd.f32 %v1472_v24, %v551_v34 }
 0x2d4   : > { %v588_v42 = vadd.f32 %v1472_v24, %v552_v46  ;;  %v589_v63 = vadd.f32 %v1472_v24, %v553_v30  ;;  %v590_v41 = vadd.f32 %v1472_v24, %v554_v40  ;;  %v591_v49 = vadd.f32 %v1472_v24, %v555_v54 }
 0x2d5   : > { %v592_v1 = vadd.f32 %v1472_v24, %v556_v25  ;;  %v593_v52 = vadd.f32 %v1472_v24, %v557_v45  ;;  %v594_v57 = vadd.f32 %v1472_v24, %v558_v43  ;;  %v595_v59 = vadd.f32 %v1472_v24, %v559_v48 }
 0x2d6   : > { %v596_v29 = vadd.f32 %v1472_v24, %v560_v53  ;;  %v597_v56 = vadd.f32 %v1472_v24, %v561_v9  ;;  %v598_v62 = vadd.f32 %v1472_v24, %v562_v6  ;;  %v599_v38 = vadd.f32 %v1472_v24, %v563_v60 }
 0x2d7   : > { %v600_v50 = vadd.f32 %v1472_v24, %v564_v15  ;;  %v601_v37 = vadd.f32 %v1472_v24, %v565_v4  ;;  %v602_v0 = vadd.f32 %v1472_v24, %v566_v7  ;;  %v603_v28 = vadd.f32 %v1472_v24, %v567_v19 }
 0x2d8   : > { %v604_v61 = vadd.f32 %v1472_v24, %v568_v33  ;;  %v605_v3 = vadd.f32 %v1472_v24, %v569_v55  ;;  %v616_v5 = vmax.f32 %v584_v27, 0.0  ;;  %v617_v58 = vmax.f32 %v585_v36, 0.0 }
 0x2d9   : > { %v618_v2 = vmax.f32 %v586_v39, 0.0  ;;  %v619_v13 = vmax.f32 %v587_v35, 0.0  ;;  %v620_v17 = vmax.f32 %v588_v42, 0.0  ;;  %v621_v44 = vmax.f32 %v589_v63, 0.0 }
 0x2da   : > { %v606_v11 = vadd.f32 %v1472_v24, %v570_v10  ;;  %v607_v23 = vadd.f32 %v1472_v24, %v571_v12  ;;  %v622_v26 = vmax.f32 %v590_v41, 0.0  ;;  %v623_v47 = vmax.f32 %v591_v49, 0.0 }
 0x2db   : > { %v608_v20 = vadd.f32 %v1472_v24, %v572_v8  ;;  %v609_v31 = vadd.f32 %v1472_v24, %v573_v18  ;;  %v624_v34 = vmax.f32 %v592_v1, 0.0  ;;  %v625_v46 = vmax.f32 %v593_v52, 0.0 }
 0x2dc   : > { %v610_v30 = vadd.f32 %v1472_v24, %v574_v14  ;;  %v626_v40 = vmax.f32 %v594_v57, 0.0  ;;  %v627_v54 = vmax.f32 %v595_v59, 0.0  ;;  %v628_v25 = vmax.f32 %v596_v29, 0.0 }
 0x2dd   : > { %v629_v45 = vmax.f32 %v597_v56, 0.0  ;;  %v849_v43 = vpack.c.bf16 %v617_v58, %v616_v5  ;;  %v854_v48 = vpack.c.bf16 %v619_v13, %v618_v2  ;;  %v859_v53 = vpack.c.bf16 %v621_v44, %v620_v17 }
 0x2de   : > { %v611_v9 = vadd.f32 %v1472_v24, %v575_v22  ;;  %v630_v6 = vmax.f32 %v598_v62, 0.0  ;;  %v631_v60 = vmax.f32 %v599_v38, 0.0  ;;  %v864_v15 = vpack.c.bf16 %v623_v47, %v622_v26 }
 0x2df   : > { %v612_v4 = vadd.f32 %v1472_v24, %v576_v16  ;;  %v632_v7 = vmax.f32 %v600_v50, 0.0  ;;  %v633_v19 = vmax.f32 %v601_v37, 0.0  ;;  %850 = vst [vmem:[%s1519_s17] sm:$0xff] %v849_v43   ;;  %v869_v33 = vpack.c.bf16 %v625_v46, %v624_v34 }
 0x2e0   : > { %v613_v55 = vadd.f32 %v1472_v24, %v577_v51  ;;  %v634_v10 = vmax.f32 %v602_v0, 0.0  ;;  %v635_v12 = vmax.f32 %v603_v28, 0.0  ;;  %941 = vst [vmem:[%s1519_s17 + $0x8] sm:$0xff] %v854_v48   ;;  %v874_v8 = vpack.c.bf16 %v627_v54, %v626_v40 }
 0x2e1   : > { %v614_v18 = vadd.f32 %v1472_v24, %v578_v21  ;;  %v636_v14 = vmax.f32 %v604_v61, 0.0  ;;  %v637_v22 = vmax.f32 %v605_v3, 0.0  ;;  %942 = vst [vmem:[%s1519_s17 + $0x10] sm:$0xff] %v859_v53   ;;  %v879_v27 = vpack.c.bf16 %v629_v45, %v628_v25 }
 0x2e2   : > { %v615_v16 = vadd.f32 %v1472_v24, %v1486_v32  ;;  %v638_v36 = vmax.f32 %v606_v11, 0.0  ;;  %v639_v39 = vmax.f32 %v607_v23, 0.0  ;;  %943 = vst [vmem:[%s1519_s17 + $0x18] sm:$0xff] %v864_v15   ;;  %v884_v51 = vpack.c.bf16 %v631_v60, %v630_v6 }
 0x2e3   : > { %v640_v35 = vmax.f32 %v608_v20, 0.0  ;;  %v641_v42 = vmax.f32 %v609_v31, 0.0  ;;  %944 = vst [vmem:[%s1519_s17 + $0x20] sm:$0xff] %v869_v33   ;;  %v889_v21 = vpack.c.bf16 %v633_v19, %v632_v7  ;;  %v642_v63 = vmax.f32 %v610_v30, 0.0 }
 0x2e4   : > { %v643_v41 = vmax.f32 %v611_v9, 0.0  ;;  %945 = vst [vmem:[%s1519_s17 + $0x28] sm:$0xff] %v874_v8   ;;  %v894_v49 = vpack.c.bf16 %v635_v12, %v634_v10  ;;  %v644_v1 = vmax.f32 %v612_v4, 0.0  ;;  %v645_v24 = vmax.f32 %v613_v55, 0.0 }
 0x2e5   : > { %946 = vst [vmem:[%s1519_s17 + $0x30] sm:$0xff] %v879_v27   ;;  %v899_v32 = vpack.c.bf16 %v637_v22, %v636_v14  ;;  %v646_v52 = vmax.f32 %v614_v18, 0.0  ;;  %v647_v57 = vmax.f32 %v615_v16, 0.0  ;;  %v904_v59 = vpack.c.bf16 %v639_v39, %v638_v36 }
 0x2e6   : > { %947 = vst [vmem:[%s1519_s17 + $0x38] sm:$0xff] %v884_v51   ;;  %v909_v29 = vpack.c.bf16 %v641_v42, %v640_v35  ;;  %v914_v56 = vpack.c.bf16 %v643_v41, %v642_v63  ;;  %v919_v62 = vpack.c.bf16 %v645_v24, %v644_v1 }
 0x2e7   : > { %948 = vst [vmem:[%s1519_s17 + $0x40] sm:$0xff] %v889_v21   ;;  %v924_v38 = vpack.c.bf16 %v647_v57, %v646_v52 }
 0x2e8   : > { %949 = vst [vmem:[%s1519_s17 + $0x48] sm:$0xff] %v894_v49  }
 0x2e9   : > { %950 = vst [vmem:[%s1519_s17 + $0x50] sm:$0xff] %v899_v32  }
 0x2ea   : > { %951 = vst [vmem:[%s1519_s17 + $0x58] sm:$0xff] %v904_v59  }
 0x2eb   : > { %952 = vst [vmem:[%s1519_s17 + $0x60] sm:$0xff] %v909_v29  }
 0x2ec   : > { %953 = vst [vmem:[%s1519_s17 + $0x68] sm:$0xff] %v914_v56  }
 0x2ed   : > { %954 = vst [vmem:[%s1519_s17 + $0x70] sm:$0xff] %v919_v62  }
 0x2ee   : > { %955 = vst [vmem:[%s1519_s17 + $0x78] sm:$0xff] %v924_v38  }
 0x2ef PF: > { %s15_s18 = sadd.s32 1, %s973_s18  }
 0x2f0   : > { %p12_p4 = scmp.ge.s32.totalorder %s15_s18, 4  }
 0x2f2   :  { %14 = sbr.rel (!%p12_p4) target bundleno = 1 (0x1), region = 70 }

// kernel: bottleneck_forward.11
= control target key start
LH: loop header
LB: loop body
LE: loop exit
PB: predicated region body
PF: predicated region fallthrough
CT: control target
= control target key end

     0   :  { %11 = vsyncpa [#allocation3], 0  ;;  %s2018_s0 = inlined_call_operand.vmem [shape: bf16[2,256,128], index: 0, kind: input, shape index: {}]   ;;  %s2019_s1 = inlined_call_operand.vmem [shape: f32[1,128], index: 1, kind: input, shape index: {}]   ;;  %s2020_s2 = inlined_call_operand.vmem [shape: f32[1,128], index: 2, kind: input, shape index: {}]   ;;  %s2021_s3 = inlined_call_operand.vmem [shape: f32[128,8], index: 3, kind: input, shape index: {}]   ;;  %s2022_s4 = inlined_call_operand.vmem [shape: f32[8,128], index: 4, kind: input, shape index: {}]   ;;  %s2023_s5 = inlined_call_operand.vmem [shape: bf16[2,256,128], index: 5, kind: input, shape index: {}]   ;;  %s2024_s6 = inlined_call_operand.hbm [shape: f32[2,256,128], index: 6, kind: output, shape index: {}]  }
   0x1   :  { %13 = vsyncpa [#allocation3 + $0x1], 0  ;;  %s1233_s21 = smov 0   ;;  %s1235_s22 = smov 0  }
   0x2   :  { %s1237_s23 = smov 0   ;;  %s1239_s24 = smov 0  }
   0x3 LB: > { %s1254_s25 = sadd.s32 4294967295, %s1194_s24   ;;  %s911_s26 = sadd.s32 4294967294, %s1194_s24   ;;  %s1194_s24 = sphi %s1239_s24, %s2050_s24   ;;  %s1190_s23 = sphi %s1237_s23, %s2049_s23   ;;  %s1186_s22 = sphi %s1235_s22, %s2048_s22   ;;  %s1182_s21 = sphi %s1233_s21, %s2047_s21  }
   0x4   : > { %s1258_s27 = sadd.s32 1, %s1194_s24   ;;  %s162_s28 = sadd.s32 1, %s1190_s23 }
   0x5   : > { %s159_s29 = ssub.s32 %s1194_s24, %s1258_s27  ;;  %p172_p0 = scmp.ne.s32.totalorder %s1190_s23, %s1186_s22 }
   0x6   : > { %p160_p1 = scmp.eq.s32.totalorder %s159_s29, 0  ;;  %p173_p2 = scmp.eq.s32.totalorder %s1254_s25, 1 }
   0x7   : > { %p178_p3 = scmp.ne.s32.totalorder %s1186_s22, %s1182_s21  ;;  %p179_p4 = scmp.eq.s32.totalorder %s911_s26, 1 }
   0x8   : > { %s1269_s30 = scalar_select %p160_p1, %s1190_s23, %s162_s28  }
   0x9   : > { %p1271_p5 = por %p173_p2, %p172_p0  ;;  %p1275_p6 = por %p179_p4, %p178_p3 }
   0xa   : > { %p914_p7 = scmp.ge.s32.totalorder %s1194_s24, 1  ;;  %p225_p8 = scmp.lt.s32.totalorder %s1194_s24, 3 }
   0xc   : > { %p226_p9 = pnand %p914_p7, %p225_p8 }
   0xd   : > { %p260_p10 = scmp.lt.s32.totalorder (!%p226_p9), %s1254_s25, 1  ;;  %s257_s13 = sand.u32 (!%p226_p9), 1, %s1186_s22  }
   0xe   : > { %229 = sbr.rel (%p226_p9) target bundleno = 772 (0x304), region = 44  ;;  %s915_s14 = sshll.u32 (!%p226_p9), %s257_s13, 8 }
   0xf   : > { %s1861_s16 = scalar_lea.vmem (!%p226_p9), [#allocation2], %s915_s14  ;;  %s929_s17 = sshll.u32 (!%p226_p9), %s1254_s25, 8 }
  0x10   : > { %s822_s29 = scalar_lea.sflag (!%p226_p9), [#allocation3], %s257_s13 }
  0x13   : > { %v386_v0 = vld [vmem:[%s2021_s3 + $0x78] sm:$0xff]  ;;  %v385_v1 = vld [vmem:[%s2021_s3 + $0x70] sm:$0xff]  ;;  %v384_v2 = vld [vmem:[%s2021_s3 + $0x68] sm:$0xff]  ;;  %s1292_s15 = scalar_select %p260_p10, %s1254_s25, 1  ;;  %vm408_vm0 = vcmask 64512  }
  0x14   : > { %387 = vmatpush.msra.mxu0 %v386_v0  ;;  %535 = vmatpush.msra.mxu2 %v386_v0  ;;  %v383_v3 = vld [vmem:[%s2021_s3 + $0x60] sm:$0xff]  ;;  %v382_v4 = vld [vmem:[%s2021_s3 + $0x58] sm:$0xff]  ;;  %v381_v5 = vld [vmem:[%s2021_s3 + $0x50] sm:$0xff]  ;;  %s834_s25 = sshll.u32 %s1861_s16, 4  ;;  %s835_s25 = int_to_ptr.vmem [resolvable:$true] %s834_s25 }
  0x15   : > { %s927_s18 = sshll.u32 %s1292_s15, 7  ;;  %v380_v7 = vld [vmem:[%s2021_s3 + $0x48] sm:$0xff]  ;;  %v379_v11 = vld [vmem:[%s2021_s3 + $0x40] sm:$0xff]  ;;  %v378_v13 = vld [vmem:[%s2021_s3 + $0x38] sm:$0xff]  ;;  %s1152_s15 = scalar_lea.hbm %s2024_s6, 512 }
  0x16   : > { %388 = vmatpush.msra.mxu0 %v385_v1  ;;  %536 = vmatpush.msra.mxu2 %v385_v1  ;;  %s1303_s26 = scalar_lea.vmem %s2018_s0, %s927_s18  ;;  %v377_v17 = vld [vmem:[%s2021_s3 + $0x30] sm:$0xff]  ;;  %v376_v20 = vld [vmem:[%s2021_s3 + $0x28] sm:$0xff]  ;;  %v375_v24 = vld [vmem:[%s2021_s3 + $0x20] sm:$0xff]  ;;  %s1724_s12 = scalar_lea.vmem %s2023_s5, %s927_s18 }
  0x17   : > { %v1312_v6 = vld [vmem:[%s1303_s26] sm:$0xff]   ;;  %v1318_v8 = vld [vmem:[%s1303_s26 + $0x8] sm:$0xff]   ;;  %v1330_v14 = vld [vmem:[%s1303_s26 + $0x10] sm:$0xff]  }
  0x18   : > { %389 = vmatpush.msra.mxu0 %v384_v2  ;;  %537 = vmatpush.msra.mxu2 %v384_v2  ;;  %v932_v9 = vunpack.c.l.bf16 %v1312_v6  ;;  %v933_v10 = vunpack.c.h.bf16 %v1312_v6  ;;  %v936_v12 = vunpack.c.l.bf16 %v1318_v8  ;;  %v937_v15 = vunpack.c.h.bf16 %v1318_v8  ;;  %v1347_v21 = vld [vmem:[%s1303_s26 + $0x18] sm:$0xff]   ;;  %v1362_v28 = vld [vmem:[%s1303_s26 + $0x20] sm:$0xff]   ;;  %v373_v31 = vld [vmem:[%s2021_s3 + $0x10] sm:$0xff] }
  0x19   : > { %v940_v18 = vunpack.c.l.bf16 %v1330_v14  ;;  %v941_v22 = vunpack.c.h.bf16 %v1330_v14  ;;  %v944_v25 = vunpack.c.l.bf16 %v1347_v21  ;;  %v374_v27 = vld [vmem:[%s2021_s3 + $0x18] sm:$0xff]  ;;  %v945_v29 = vunpack.c.h.bf16 %v1347_v21  ;;  %v372_v34 = vld [vmem:[%s2021_s3 + $0x8] sm:$0xff]  ;;  %v371_v38 = vld [vmem:[%s2021_s3] sm:$0xff] }
  0x1a   : > { %390 = vmatpush.msra.mxu0 %v383_v3  ;;  %538 = vmatpush.msra.mxu2 %v383_v3  ;;  %v334_v16 = vadd.f32 %v933_v10, %v932_v9  ;;  %v948_v32 = vunpack.c.l.bf16 %v1362_v28  ;;  %v1377_v35 = vld [vmem:[%s1303_s26 + $0x28] sm:$0xff]   ;;  %v949_v36 = vunpack.c.h.bf16 %v1362_v28  ;;  %v1389_v41 = vld [vmem:[%s1303_s26 + $0x30] sm:$0xff]   ;;  %v1398_v46 = vld [vmem:[%s1303_s26 + $0x38] sm:$0xff]  }
  0x1b   : > { %v952_v39 = vunpack.c.l.bf16 %v1377_v35  ;;  %v953_v42 = vunpack.c.h.bf16 %v1377_v35  ;;  %v956_v44 = vunpack.c.l.bf16 %v1389_v41  ;;  %v957_v47 = vunpack.c.h.bf16 %v1389_v41  ;;  %v1407_v51 = vld [vmem:[%s1303_s26 + $0x40] sm:$0xff]   ;;  %v1416_v56 = vld [vmem:[%s1303_s26 + $0x48] sm:$0xff]   ;;  %v1425_v61 = vld [vmem:[%s1303_s26 + $0x50] sm:$0xff]  }
  0x1c   : > { %391 = vmatpush.msra.mxu0 %v382_v4  ;;  %539 = vmatpush.msra.mxu2 %v382_v4  ;;  %v335_v19 = vadd.f32 %v936_v12, %v334_v16  ;;  %v960_v49 = vunpack.c.l.bf16 %v1398_v46  ;;  %v961_v52 = vunpack.c.h.bf16 %v1398_v46  ;;  %v964_v54 = vunpack.c.l.bf16 %v1407_v51  ;;  %v1434_v2 = vld [vmem:[%s1303_s26 + $0x58] sm:$0xff]  }
  0x1d   : > { %v965_v57 = vunpack.c.h.bf16 %v1407_v51  ;;  %v968_v59 = vunpack.c.l.bf16 %v1416_v56  ;;  %v969_v62 = vunpack.c.h.bf16 %v1416_v56  ;;  %v972_v0 = vunpack.c.l.bf16 %v1425_v61 }
  0x1e   : > { %392 = vmatpush.msra.mxu0 %v381_v5  ;;  %540 = vmatpush.msra.mxu2 %v381_v5  ;;  %v336_v23 = vadd.f32 %v937_v15, %v335_v19  ;;  %v973_v3 = vunpack.c.h.bf16 %v1425_v61  ;;  %v976_v5 = vunpack.c.l.bf16 %v1434_v2 }
  0x20   : > { %393 = vmatpush.msra.mxu0 %v380_v7  ;;  %541 = vmatpush.msra.mxu2 %v380_v7  ;;  %v337_v26 = vadd.f32 %v940_v18, %v336_v23 }
  0x22   : > { %394 = vmatpush.msra.mxu0 %v379_v11  ;;  %542 = vmatpush.msra.mxu2 %v379_v11  ;;  %v338_v30 = vadd.f32 %v941_v22, %v337_v26  ;;  %v1443_v11 = vld [vmem:[%s1303_s26 + $0x60] sm:$0xff]  }
  0x23   : > { %v981_v23 = vunpack.c.h.bf16 %v1443_v11 }
  0x24   : > { %395 = vmatpush.msra.mxu0 %v378_v13  ;;  %543 = vmatpush.msra.mxu2 %v378_v13  ;;  %v339_v33 = vadd.f32 %v944_v25, %v338_v30  ;;  %v977_v13 = vunpack.c.h.bf16 %v1434_v2  ;;  %v1461_v30 = vld [vmem:[%s1303_s26 + $0x70] sm:$0xff]  }
  0x26   : > { %396 = vmatpush.msra.mxu0 %v377_v17  ;;  %544 = vmatpush.msra.mxu2 %v377_v17  ;;  %v340_v37 = vadd.f32 %v945_v29, %v339_v33  ;;  %v980_v17 = vunpack.c.l.bf16 %v1443_v11 }
  0x28   : > { %397 = vmatpush.msra.mxu0 %v376_v20  ;;  %545 = vmatpush.msra.mxu2 %v376_v20  ;;  %v341_v40 = vadd.f32 %v948_v32, %v340_v37  ;;  %v1452_v20 = vld [vmem:[%s1303_s26 + $0x68] sm:$0xff]  }
  0x29   : > { %v984_v26 = vunpack.c.l.bf16 %v1452_v20 }
  0x2a   : > { %398 = vmatpush.msra.mxu0 %v375_v24  ;;  %546 = vmatpush.msra.mxu2 %v375_v24  ;;  %v342_v43 = vadd.f32 %v949_v36, %v341_v40  ;;  %v989_v40 = vunpack.c.h.bf16 %v1461_v30 }
  0x2c   : > { %399 = vmatpush.msra.mxu0 %v374_v27  ;;  %547 = vmatpush.msra.mxu2 %v374_v27  ;;  %v343_v45 = vadd.f32 %v952_v39, %v342_v43 }
  0x2e   : > { %400 = vmatpush.msra.mxu0 %v373_v31  ;;  %548 = vmatpush.msra.mxu2 %v373_v31  ;;  %v344_v48 = vadd.f32 %v953_v42, %v343_v45  ;;  %v985_v31 = vunpack.c.h.bf16 %v1452_v20 }
  0x30   : > { %401 = vmatpush.msra.mxu0 %v372_v34  ;;  %549 = vmatpush.msra.mxu2 %v372_v34  ;;  %v345_v50 = vadd.f32 %v956_v44, %v344_v48  ;;  %v988_v34 = vunpack.c.l.bf16 %v1461_v30 }
  0x32   : > { %402 = vmatpush.msra.mxu0 %v371_v38  ;;  %550 = vmatpush.msra.mxu2 %v371_v38  ;;  %v346_v53 = vadd.f32 %v957_v47, %v345_v50  ;;  %v1470_v38 = vld [vmem:[%s1303_s26 + $0x78] sm:$0xff]   ;;  %s833_s26 = scalar_lea.hbm %s2024_s6, %s929_s17 }
  0x33   : > { %v992_v45 = vunpack.c.l.bf16 %v1470_v38  ;;  %v993_v50 = vunpack.c.h.bf16 %v1470_v38  ;;  %s836_s28 = sshll.u32 %s833_s26, 4  ;;  %s837_s28 = int_to_ptr.hbm [resolvable:$true] %s836_s28 }
  0x34   : > { %v347_v55 = vadd.f32 %v960_v49, %v346_v53  ;;  %s1146_s9 = sshra.s32 %s837_s28, 4  ;;  %s1147_s9 = int_to_ptr.hbm [resolvable:$true] %s1146_s9 }
  0x35   : > { %s1148_s10 = scalar_lea.hbm %s1147_s9, 256  ;;  %p1153_p0 = scmp.lt.s32.totalorder %s1147_s9, %s2024_s6 }
  0x36   : > { %v348_v58 = vadd.f32 %v961_v52, %v347_v55  ;;  %p1149_p11 = scmp.ne.s32.totalorder %s1147_s9, %s1148_s10  ;;  %p1154_p1 = scmp.lt.s32.totalorder %s1152_s15, %s1148_s10 }
  0x38   : > { %v349_v60 = vadd.f32 %v964_v54, %v348_v58  ;;  %p1150_p12 = pnand %p1149_p11, %p1271_p5  ;;  %p1155_p2 = por %p1154_p1, %p1153_p0 }
  0x3a   : > { %v350_v63 = vadd.f32 %v965_v57, %v349_v60  ;;  %p1151_p13 = pneg %p1150_p12 }
  0x3c   : > { %v351_v1 = vadd.f32 %v968_v59, %v350_v63  ;;  %p1156_p3 = pnand %p1155_p2, %p1151_p13 }
  0x3e   : > { %v352_v4 = vadd.f32 %v969_v62, %v351_v1 }
  0x40   : > { %v353_v7 = vadd.f32 %v972_v0, %v352_v4 }
  0x42   : > { %v354_v16 = vadd.f32 %v973_v3, %v353_v7 }
  0x44   : > { %v355_v19 = vadd.f32 %v976_v5, %v354_v16 }
  0x46   : > { %v356_v24 = vadd.f32 %v977_v13, %v355_v19  ;;  %v407_v19 = vld [vmem:[%s2022_s4] sm:$0xff] }
  0x47   : > { %427 = vmatpush.msra.mxu1 %v407_v19  ;;  %573 = vmatpush.msra.mxu3 %v407_v19 }
  0x48   : > { %v357_v27 = vadd.f32 %v980_v17, %v356_v24 }
  0x4a   : > { %v358_v33 = vadd.f32 %v981_v23, %v357_v27 }
  0x4c   : > { %v359_v37 = vadd.f32 %v984_v26, %v358_v33 }
  0x4e   : > { %v360_v43 = vadd.f32 %v985_v31, %v359_v37 }
  0x50   : > { %v361_v48 = vadd.f32 %v988_v34, %v360_v43 }
  0x52   : > { %v362_v53 = vadd.f32 %v989_v40, %v361_v48 }
  0x54   : > { %v363_v55 = vadd.f32 %v992_v45, %v362_v53 }
  0x56   : > { %v364_v58 = vadd.f32 %v993_v50, %v363_v55 }
  0x58   : > { %v365_v60 = vrot.slane %v364_v58, 4 }
  0x5a   : > { %v366_v63 = vadd.f32 %v365_v60, %v364_v58 }
  0x5c   : > { %v367_v1 = vrot.slane %v366_v63, 2 }
  0x5e   : > { %v368_v4 = vadd.f32 %v367_v1, %v366_v63 }
  0x60   : > { %v369_v7 = vrot.slane %v368_v4, 1 }
  0x62   : > { %v370_v16 = vadd.f32 %v369_v7, %v368_v4 }
  0x64   : > { %403 = vmatmul.f32.vlgmr.msra.gmra.mxu0 %v370_v16 }
  0xe1   : > { %v404_v24 = vpop.f32.mrf.mxu0 }
  0xe2   : > { %920 = vmatmul.msk.f32.vlgmr.msra.gmra.mxu1 %vm408_vm0, %v404_v24 }
 0x15f   : > { %v429_v27 = vpop.f32.mrf.mxu1 }
 0x160   : > { %v432_v33 = vmul.f32 0.00024414063, %v429_v27 }
 0x162   : > { %v1489_v37 = vperm.slane %v432_v33, 0 }
 0x164   : > { %v1494_v43 = vsub.f32 %v932_v9, %v1489_v37  ;;  %v1499_v48 = vsub.f32 %v933_v10, %v1489_v37  ;;  %v1504_v53 = vsub.f32 %v936_v12, %v1489_v37  ;;  %v1513_v9 = vsub.f32 %v937_v15, %v1489_v37 }
 0x165   : > { %v1518_v6 = vsub.f32 %v940_v18, %v1489_v37  ;;  %v1525_v60 = vsub.f32 %v941_v22, %v1489_v37  ;;  %v1532_v15 = vsub.f32 %v944_v25, %v1489_v37  ;;  %v1539_v4 = vsub.f32 %v945_v29, %v1489_v37 }
 0x166   : > { %v466_v55 = vmul.f32 %v1494_v43, %v1494_v43  ;;  %v467_v58 = vmul.f32 %v1499_v48, %v1499_v48  ;;  %v468_v10 = vmul.f32 %v1504_v53, %v1504_v53  ;;  %v469_v63 = vmul.f32 %v1513_v9, %v1513_v9 }
 0x167   : > { %v470_v18 = vmul.f32 %v1518_v6, %v1518_v6  ;;  %v471_v14 = vmul.f32 %v1525_v60, %v1525_v60  ;;  %v1546_v7 = vsub.f32 %v948_v32, %v1489_v37  ;;  %v472_v25 = vmul.f32 %v1532_v15, %v1532_v15 }
 0x168   : > { %v498_v12 = vadd.f32 %v467_v58, %v466_v55  ;;  %v1553_v19 = vsub.f32 %v949_v36, %v1489_v37  ;;  %v473_v21 = vmul.f32 %v1539_v4, %v1539_v4  ;;  %v1560_v24 = vsub.f32 %v952_v39, %v1489_v37 }
 0x169   : > { %v474_v32 = vmul.f32 %v1546_v7, %v1546_v7  ;;  %v1567_v33 = vsub.f32 %v953_v42, %v1489_v37  ;;  %v1574_v55 = vsub.f32 %v956_v44, %v1489_v37 }
 0x16a   : > { %v499_v8 = vadd.f32 %v498_v12, %v468_v10  ;;  %v475_v28 = vmul.f32 %v1553_v19, %v1553_v19  ;;  %v476_v39 = vmul.f32 %v1560_v24, %v1560_v24  ;;  %v1581_v10 = vsub.f32 %v957_v47, %v1489_v37 }
 0x16b   : > { %v477_v35 = vmul.f32 %v1567_v33, %v1567_v33  ;;  %v1588_v12 = vsub.f32 %v960_v49, %v1489_v37  ;;  %v478_v44 = vmul.f32 %v1574_v55, %v1574_v55 }
 0x16c   : > { %v500_v1 = vadd.f32 %v499_v8, %v469_v63  ;;  %v1595_v8 = vsub.f32 %v961_v52, %v1489_v37  ;;  %v479_v41 = vmul.f32 %v1581_v10, %v1581_v10 }
 0x16d   : > { %v480_v49 = vmul.f32 %v1588_v12, %v1588_v12 }
 0x16e   : > { %v501_v22 = vadd.f32 %v500_v1, %v470_v18  ;;  %v1602_v18 = vsub.f32 %v964_v54, %v1489_v37  ;;  %v481_v46 = vmul.f32 %v1595_v8, %v1595_v8 }
 0x170   : > { %v502_v16 = vadd.f32 %v501_v22, %v471_v14  ;;  %v1609_v14 = vsub.f32 %v965_v57, %v1489_v37  ;;  %v1616_v22 = vsub.f32 %v968_v59, %v1489_v37  ;;  %v482_v54 = vmul.f32 %v1602_v18, %v1602_v18 }
 0x172   : > { %v503_v29 = vadd.f32 %v502_v16, %v472_v25  ;;  %v1623_v16 = vsub.f32 %v969_v62, %v1489_v37  ;;  %v483_v51 = vmul.f32 %v1609_v14, %v1609_v14  ;;  %v484_v59 = vmul.f32 %v1616_v22, %v1616_v22 }
 0x174   : > { %v504_v27 = vadd.f32 %v503_v29, %v473_v21  ;;  %v1630_v21 = vsub.f32 %v972_v0, %v1489_v37  ;;  %v485_v56 = vmul.f32 %v1623_v16, %v1623_v16 }
 0x176   : > { %v505_v36 = vadd.f32 %v504_v27, %v474_v32  ;;  %v1637_v32 = vsub.f32 %v973_v3, %v1489_v37  ;;  %v1644_v27 = vsub.f32 %v976_v5, %v1489_v37  ;;  %v486_v0 = vmul.f32 %v1630_v21, %v1630_v21 }
 0x178   : > { %v506_v58 = vadd.f32 %v505_v36, %v475_v28  ;;  %v1651_v36 = vsub.f32 %v977_v13, %v1489_v37  ;;  %v487_v61 = vmul.f32 %v1637_v32, %v1637_v32  ;;  %v488_v5 = vmul.f32 %v1644_v27, %v1644_v27 }
 0x17a   : > { %v507_v42 = vadd.f32 %v506_v58, %v476_v39  ;;  %v1658_v39 = vsub.f32 %v980_v17, %v1489_v37  ;;  %v489_v2 = vmul.f32 %v1651_v36, %v1651_v36 }
 0x17c   : > { %v508_v63 = vadd.f32 %v507_v42, %v477_v35  ;;  %v1665_v35 = vsub.f32 %v981_v23, %v1489_v37  ;;  %v1672_v42 = vsub.f32 %v984_v26, %v1489_v37  ;;  %v490_v17 = vmul.f32 %v1658_v39, %v1658_v39 }
 0x17e   : > { %v509_v47 = vadd.f32 %v508_v63, %v478_v44  ;;  %v1679_v63 = vsub.f32 %v985_v31, %v1489_v37  ;;  %v491_v11 = vmul.f32 %v1665_v35, %v1665_v35  ;;  %v492_v26 = vmul.f32 %v1672_v42, %v1672_v42 }
 0x180   : > { %v510_v1 = vadd.f32 %v509_v47, %v479_v41  ;;  %v1686_v41 = vsub.f32 %v988_v34, %v1489_v37  ;;  %v493_v20 = vmul.f32 %v1679_v63, %v1679_v63 }
 0x182   : > { %v511_v52 = vadd.f32 %v510_v1, %v480_v49  ;;  %v1693_v49 = vsub.f32 %v989_v40, %v1489_v37  ;;  %v1700_v1 = vsub.f32 %v992_v45, %v1489_v37  ;;  %v494_v34 = vmul.f32 %v1686_v41, %v1686_v41 }
 0x184   : > { %v512_v25 = vadd.f32 %v511_v52, %v481_v46  ;;  %v1707_v52 = vsub.f32 %v993_v50, %v1489_v37  ;;  %v495_v30 = vmul.f32 %v1693_v49, %v1693_v49 }
 0x186   : > { %v513_v57 = vadd.f32 %v512_v25, %v482_v54  ;;  %v496_v54 = vmul.f32 %v1700_v1, %v1700_v1  ;;  %v497_v45 = vmul.f32 %v1707_v52, %v1707_v52 }
 0x188   : > { %v514_v29 = vadd.f32 %v513_v57, %v483_v51 }
 0x18a   : > { %v515_v62 = vadd.f32 %v514_v29, %v484_v59 }
 0x18c   : > { %v516_v28 = vadd.f32 %v515_v62, %v485_v56 }
 0x18e   : > { %v517_v3 = vadd.f32 %v516_v28, %v486_v0 }
 0x190   : > { %v518_v58 = vadd.f32 %v517_v3, %v487_v61 }
 0x192   : > { %v519_v13 = vadd.f32 %v518_v58, %v488_v5 }
 0x194   : > { %v520_v44 = vadd.f32 %v519_v13, %v489_v2 }
 0x196   : > { %v521_v23 = vadd.f32 %v520_v44, %v490_v17 }
 0x198   : > { %v522_v47 = vadd.f32 %v521_v23, %v491_v11  ;;  %v590_v11 = vld [vmem:[%s2019_s1] sm:$0x1] }
 0x19a   : > { %v523_v31 = vadd.f32 %v522_v47, %v492_v26  ;;  %v1727_v26 = vld [vmem:[%s1724_s12] sm:$0xff]   ;;  %v1730_v47 = vld [vmem:[%s1724_s12 + $0x8] sm:$0xff]  }
 0x19c   : > { %v524_v46 = vadd.f32 %v523_v31, %v493_v20  ;;  %v1733_v20 = vld [vmem:[%s1724_s12 + $0x10] sm:$0xff]   ;;  %v1736_v31 = vld [vmem:[%s1724_s12 + $0x18] sm:$0xff]  }
 0x19e   : > { %v525_v40 = vadd.f32 %v524_v46, %v494_v34  ;;  %v1739_v34 = vld [vmem:[%s1724_s12 + $0x20] sm:$0xff]   ;;  %v1742_v46 = vld [vmem:[%s1724_s12 + $0x28] sm:$0xff]  }
 0x1a0   : > { %v526_v25 = vadd.f32 %v525_v40, %v495_v30  ;;  %v996_v40 = vunpack.c.l.bf16 %v1727_v26 }
 0x1a2   : > { %v527_v51 = vadd.f32 %v526_v25, %v496_v54  ;;  %v997_v54 = vunpack.c.h.bf16 %v1727_v26  ;;  %v1000_v25 = vunpack.c.l.bf16 %v1730_v47 }
 0x1a4   : > { %v528_v57 = vadd.f32 %v527_v51, %v497_v45  ;;  %v1001_v45 = vunpack.c.h.bf16 %v1730_v47  ;;  %v1751_v51 = vld [vmem:[%s1724_s12 + $0x30] sm:$0xff]   ;;  %v1807_v47 = vld [vmem:[%s1724_s12 + $0x68] sm:$0xff]  }
 0x1a6   : > { %v529_v59 = vrot.slane %v528_v57, 4 }
 0x1a8   : > { %v530_v29 = vadd.f32 %v529_v59, %v528_v57  ;;  %v1004_v57 = vunpack.c.l.bf16 %v1733_v20  ;;  %v1005_v59 = vunpack.c.h.bf16 %v1733_v20 }
 0x1aa   : > { %v531_v56 = vrot.slane %v530_v29, 2 }
 0x1ac   : > { %v532_v62 = vadd.f32 %v531_v56, %v530_v29  ;;  %v1008_v29 = vunpack.c.l.bf16 %v1736_v31 }
 0x1ae   : > { %v533_v38 = vrot.slane %v532_v62, 1 }
 0x1b0   : > { %v534_v50 = vadd.f32 %v533_v38, %v532_v62  ;;  %v1758_v62 = vld [vmem:[%s1724_s12 + $0x38] sm:$0xff]  }
 0x1b2   : > { %551 = vmatmul.f32.vlgmr.msra.gmra.mxu2 %v534_v50 }
 0x235   : > { %v552_v37 = vpop.f32.mrf.mxu2 }
 0x236   : > { %921 = vmatmul.msk.f32.vlgmr.msra.gmra.mxu3 %vm408_vm0, %v552_v37 }
 0x2b9   : > { %v575_v0 = vpop.f32.mrf.mxu3 }
 0x2ba   : > { %v578_v28 = vmul.f32 0.00024414063, %v575_v0  ;;  %v1802_v0 = vld [vmem:[%s1724_s12 + $0x60] sm:$0xff]  }
 0x2bc   : > { %v579_v61 = vadd.f32 1e-05, %v578_v28  ;;  %v1765_v28 = vld [vmem:[%s1724_s12 + $0x40] sm:$0xff]  }
 0x2be   : > { %1130 = vrsqrt.f32 %v579_v61  ;;  %vm586_vm2 = vweird.f32 %v579_v61 }
 0x2c4   : > { %v1131_v3 = vpop.eup %1130 }
 0x2c5   : > { %v581_v5 = vmul.f32 %v1131_v3, %v579_v61  ;;  %vm587_vm1 = vweird.f32 %v1131_v3  ;;  %v1768_v61 = vld [vmem:[%s1724_s12 + $0x48] sm:$0xff]  }
 0x2c6   : > { %vm588_vm3 = vmor %vm586_vm2, %vm587_vm1 }
 0x2c7   : > { %v582_v58 = vmul.f32 %v1131_v3, %v581_v5  ;;  %v1794_v5 = vld [vmem:[%s1724_s12 + $0x58] sm:$0xff]  }
 0x2c9   : > { %v583_v2 = vmul.f32 0.5, %v582_v58  ;;  %v1777_v58 = vld [vmem:[%s1724_s12 + $0x50] sm:$0xff]  }
 0x2cb   : > { %v584_v13 = vsub.f32 1.5, %v583_v2 }
 0x2cd   : > { %v585_v17 = vmul.f32 %v1131_v3, %v584_v13 }
 0x2cf   : > { %v589_v44 = vsel %vm588_vm3, %v1131_v3, %v585_v17  ;;  %v1773_v3 = vld [vmem:[%s2020_s2] ss:$0 sm:$0xff] }
 0x2d0   : > { %v591_v23 = vmul.f32 %v590_v11, %v589_v44 }
 0x2d2   : > { %v1744_v30 = vperm.slane %v591_v23, 0 }
 0x2d4   : > { %v593_v2 = vmul.f32 %v1744_v30, %v1494_v43  ;;  %v594_v13 = vmul.f32 %v1744_v30, %v1499_v48  ;;  %v595_v17 = vmul.f32 %v1744_v30, %v1504_v53  ;;  %v596_v26 = vmul.f32 %v1744_v30, %v1513_v9 }
 0x2d5   : > { %v597_v53 = vmul.f32 %v1744_v30, %v1518_v6  ;;  %v598_v9 = vmul.f32 %v1744_v30, %v1525_v60  ;;  %v599_v48 = vmul.f32 %v1744_v30, %v1532_v15  ;;  %v600_v60 = vmul.f32 %v1744_v30, %v1539_v4 }
 0x2d6   : > { %v629_v43 = vadd.f32 %v1773_v3, %v593_v2  ;;  %v630_v6 = vadd.f32 %v1773_v3, %v594_v13  ;;  %v631_v44 = vadd.f32 %v1773_v3, %v595_v17  ;;  %v632_v37 = vadd.f32 %v1773_v3, %v596_v26 }
 0x2d7   : > { %v601_v2 = vmul.f32 %v1744_v30, %v1546_v7  ;;  %v633_v13 = vadd.f32 %v1773_v3, %v597_v53  ;;  %v602_v23 = vmul.f32 %v1744_v30, %v1553_v19  ;;  %v603_v11 = vmul.f32 %v1744_v30, %v1560_v24 }
 0x2d8   : > { %v634_v4 = vadd.f32 %v1773_v3, %v598_v9  ;;  %v635_v26 = vadd.f32 %v1773_v3, %v599_v48  ;;  %v725_v15 = vadd.f32 %v996_v40, %v629_v43  ;;  %v726_v50 = vadd.f32 %v997_v54, %v630_v6 }
 0x2d9   : > { %v727_v38 = vadd.f32 %v1000_v25, %v631_v44  ;;  %v1049_v7 = vunpack.c.h.bf16 %v1807_v47  ;;  %v604_v53 = vmul.f32 %v1744_v30, %v1567_v33  ;;  %v636_v17 = vadd.f32 %v1773_v3, %v600_v60 }
 0x2da   : > { %v728_v19 = vadd.f32 %v1001_v45, %v632_v37  ;;  %v605_v24 = vmul.f32 %v1744_v30, %v1574_v55  ;;  %v606_v9 = vmul.f32 %v1744_v30, %v1581_v10  ;;  %v637_v56 = vadd.f32 %v1773_v3, %v601_v2 }
 0x2db   : > { %v729_v48 = vadd.f32 %v1004_v57, %v633_v13  ;;  %v607_v40 = vmul.f32 %v1744_v30, %v1588_v12  ;;  %v638_v54 = vadd.f32 %v1773_v3, %v602_v23  ;;  %v639_v25 = vadd.f32 %v1773_v3, %v603_v11 }
 0x2dc   : > { %v730_v33 = vadd.f32 %v1005_v59, %v634_v4  ;;  %v731_v45 = vadd.f32 %v1008_v29, %v635_v26  ;;  %v757_v55 = vmax.f32 %v725_v15, 0.0  ;;  %v758_v37 = vmax.f32 %v726_v50, 0.0 }
 0x2dd   : > { %v759_v44 = vmax.f32 %v727_v38, 0.0  ;;  %v608_v10 = vmul.f32 %v1744_v30, %v1595_v8  ;;  %v640_v57 = vadd.f32 %v1773_v3, %v604_v53  ;;  %v2027_v12 = vunpack.c.h.bf16 %v1736_v31 }
 0x2de   : > { %v760_v23 = vmax.f32 %v728_v19, 0.0  ;;  %v609_v11 = vmul.f32 %v1744_v30, %v1602_v18  ;;  %v641_v20 = vadd.f32 %v1773_v3, %v605_v24  ;;  %v2028_v59 = vunpack.c.l.bf16 %v1739_v34  ;;  %789 = vst [vmem:[%s1861_s16] sm:$0xff] %v757_v55 }
 0x2df   : > { %v732_v43 = vadd.f32 %v2027_v12, %v636_v17  ;;  %v761_v6 = vmax.f32 %v729_v48, 0.0  ;;  %v610_v8 = vmul.f32 %v1744_v30, %v1609_v14  ;;  %v642_v31 = vadd.f32 %v1773_v3, %v606_v9  ;;  %790 = vst [vmem:[%s1861_s16 + $0x8] sm:$0xff] %v758_v37 }
 0x2e0   : > { %v733_v29 = vadd.f32 %v2028_v59, %v637_v56  ;;  %v2029_v18 = vunpack.c.h.bf16 %v1739_v34  ;;  %v762_v50 = vmax.f32 %v730_v33, 0.0  ;;  %v611_v56 = vmul.f32 %v1744_v30, %v1616_v22  ;;  %791 = vst [vmem:[%s1861_s16 + $0x10] sm:$0xff] %v759_v44 }
 0x2e1   : > { %v643_v60 = vadd.f32 %v1773_v3, %v607_v40  ;;  %v2030_v15 = vunpack.c.l.bf16 %v1742_v46  ;;  %v763_v13 = vmax.f32 %v731_v45, 0.0  ;;  %v612_v14 = vmul.f32 %v1744_v30, %v1623_v16  ;;  %792 = vst [vmem:[%s1861_s16 + $0x18] sm:$0xff] %v760_v23 }
 0x2e2   : > { %v734_v38 = vadd.f32 %v2029_v18, %v638_v54  ;;  %v644_v34 = vadd.f32 %v1773_v3, %v608_v10  ;;  %v2031_v17 = vunpack.c.h.bf16 %v1742_v46  ;;  %v764_v26 = vmax.f32 %v732_v43, 0.0  ;;  %793 = vst [vmem:[%s1861_s16 + $0x20] sm:$0xff] %v761_v6 }
 0x2e3   : > { %v735_v2 = vadd.f32 %v2030_v15, %v639_v25  ;;  %v613_v22 = vmul.f32 %v1744_v30, %v1630_v21  ;;  %v645_v53 = vadd.f32 %v1773_v3, %v609_v11  ;;  %v2032_v19 = vunpack.c.l.bf16 %v1751_v51  ;;  %794 = vst [vmem:[%s1861_s16 + $0x28] sm:$0xff] %v762_v50 }
 0x2e4   : > { %v736_v4 = vadd.f32 %v2031_v17, %v640_v57  ;;  %v765_v9 = vmax.f32 %v733_v29, 0.0  ;;  %v614_v16 = vmul.f32 %v1744_v30, %v1637_v32  ;;  %v646_v46 = vadd.f32 %v1773_v3, %v610_v8  ;;  %795 = vst [vmem:[%s1861_s16 + $0x30] sm:$0xff] %v763_v13 }
 0x2e5   : > { %v737_v24 = vadd.f32 %v2032_v19, %v641_v20  ;;  %v2033_v48 = vunpack.c.h.bf16 %v1751_v51  ;;  %v766_v54 = vmax.f32 %v734_v38, 0.0  ;;  %v615_v21 = vmul.f32 %v1744_v30, %v1644_v27  ;;  %796 = vst [vmem:[%s1861_s16 + $0x38] sm:$0xff] %v764_v26 }
 0x2e6   : > { %v647_v25 = vadd.f32 %v1773_v3, %v611_v56  ;;  %v2034_v33 = vunpack.c.l.bf16 %v1758_v62  ;;  %v767_v55 = vmax.f32 %v735_v2, 0.0  ;;  %v616_v32 = vmul.f32 %v1744_v30, %v1651_v36  ;;  %797 = vst [vmem:[%s1861_s16 + $0x40] sm:$0xff] %v765_v9 }
 0x2e7   : > { %v738_v40 = vadd.f32 %v2033_v48, %v642_v31  ;;  %v648_v51 = vadd.f32 %v1773_v3, %v612_v14  ;;  %v2035_v37 = vunpack.c.h.bf16 %v1758_v62  ;;  %v768_v10 = vmax.f32 %v736_v4, 0.0  ;;  %798 = vst [vmem:[%s1861_s16 + $0x48] sm:$0xff] %v766_v54 }
 0x2e8   : > { %v739_v45 = vadd.f32 %v2034_v33, %v643_v60  ;;  %v617_v27 = vmul.f32 %v1744_v30, %v1658_v39  ;;  %v649_v57 = vadd.f32 %v1773_v3, %v613_v22  ;;  %v2036_v12 = vunpack.c.l.bf16 %v1765_v28  ;;  %799 = vst [vmem:[%s1861_s16 + $0x50] sm:$0xff] %v767_v55 }
 0x2e9   : > { %v740_v44 = vadd.f32 %v2035_v37, %v644_v34  ;;  %v769_v23 = vmax.f32 %v737_v24, 0.0  ;;  %v618_v36 = vmul.f32 %v1744_v30, %v1665_v35  ;;  %v650_v62 = vadd.f32 %v1773_v3, %v614_v16  ;;  %800 = vst [vmem:[%s1861_s16 + $0x58] sm:$0xff] %v768_v10 }
 0x2ea   : > { %v741_v43 = vadd.f32 %v2036_v12, %v645_v53  ;;  %v2037_v11 = vunpack.c.h.bf16 %v1765_v28  ;;  %v770_v59 = vmax.f32 %v738_v40, 0.0  ;;  %v619_v39 = vmul.f32 %v1744_v30, %v1672_v42 }
 0x2eb   : > { %v651_v29 = vadd.f32 %v1773_v3, %v615_v21  ;;  %v2038_v6 = vunpack.c.l.bf16 %v1768_v61  ;;  %v771_v31 = vmax.f32 %v739_v45, 0.0  ;;  %v620_v35 = vmul.f32 %v1744_v30, %v1679_v63  ;;  %801 = vst [vmem:[%s1861_s16 + $0x60] sm:$0xff] %v769_v23  ;;  %v1086_v63 = vld [vmem:[%s1724_s12 + $0x70] sm:$0xff]  }
 0x2ec   : > { %v742_v20 = vadd.f32 %v2037_v11, %v646_v46  ;;  %v652_v28 = vadd.f32 %v1773_v3, %v616_v32  ;;  %v2039_v18 = vunpack.c.h.bf16 %v1768_v61  ;;  %v772_v50 = vmax.f32 %v740_v44, 0.0  ;;  %802 = vst [vmem:[%s1861_s16 + $0x68] sm:$0xff] %v770_v59 }
 0x2ed   : > { %v743_v8 = vadd.f32 %v2038_v6, %v647_v25  ;;  %v621_v42 = vmul.f32 %v1744_v30, %v1686_v41  ;;  %v653_v56 = vadd.f32 %v1773_v3, %v617_v27  ;;  %v2040_v60 = vunpack.c.l.bf16 %v1777_v58  ;;  %803 = vst [vmem:[%s1861_s16 + $0x70] sm:$0xff] %v771_v31 }
 0x2ee   : > { %v744_v38 = vadd.f32 %v2039_v18, %v648_v51  ;;  %v773_v2 = vmax.f32 %v741_v43, 0.0  ;;  %v622_v61 = vmul.f32 %v1744_v30, %v1693_v49  ;;  %v654_v13 = vadd.f32 %v1773_v3, %v618_v36  ;;  %v1087_v49 = vld [vmem:[%s1724_s12 + $0x78] sm:$0xff]   ;;  %804 = vst [vmem:[%s1861_s16 + $0x78] sm:$0xff] %v772_v50 }
 0x2ef   : > { %v745_v15 = vadd.f32 %v2040_v60, %v649_v57  ;;  %v2041_v14 = vunpack.c.h.bf16 %v1777_v58  ;;  %v774_v17 = vmax.f32 %v742_v20, 0.0  ;;  %v623_v41 = vmul.f32 %v1744_v30, %v1700_v1 }
 0x2f0   : > { %v655_v4 = vadd.f32 %v1773_v3, %v619_v39  ;;  %v2042_v26 = vunpack.c.l.bf16 %v1794_v5  ;;  %v775_v53 = vmax.f32 %v743_v8, 0.0  ;;  %v624_v19 = vmul.f32 %v1744_v30, %v1707_v52  ;;  %805 = vst [vmem:[%s1861_s16 + $0x80] sm:$0xff] %v773_v2 }
 0x2f1   : > { %v746_v34 = vadd.f32 %v2041_v14, %v650_v62  ;;  %v656_v58 = vadd.f32 %v1773_v3, %v620_v35  ;;  %v2043_v24 = vunpack.c.h.bf16 %v1794_v5  ;;  %v776_v16 = vmax.f32 %v744_v38, 0.0  ;;  %806 = vst [vmem:[%s1861_s16 + $0x88] sm:$0xff] %v774_v17 }
 0x2f2   : > { %v747_v22 = vadd.f32 %v2042_v26, %v651_v29  ;;  %v1052_v1 = vunpack.c.l.bf16 %v1086_v63  ;;  %v657_v46 = vadd.f32 %v1773_v3, %v621_v42  ;;  %v2044_v48 = vunpack.c.l.bf16 %v1802_v0  ;;  %807 = vst [vmem:[%s1861_s16 + $0x90] sm:$0xff] %v775_v53 }
 0x2f3   : > { %v748_v9 = vadd.f32 %v2043_v24, %v652_v28  ;;  %v777_v54 = vmax.f32 %v745_v15, 0.0  ;;  %v1053_v21 = vunpack.c.h.bf16 %v1086_v63  ;;  %v658_v52 = vadd.f32 %v1773_v3, %v622_v61  ;;  %808 = vst [vmem:[%s1861_s16 + $0x98] sm:$0xff] %v776_v16 }
 0x2f4   : > { %v749_v40 = vadd.f32 %v2044_v48, %v653_v56  ;;  %v2045_v30 = vunpack.c.h.bf16 %v1802_v0  ;;  %v778_v25 = vmax.f32 %v746_v34, 0.0  ;;  %v1056_v33 = vunpack.c.l.bf16 %v1087_v49 }
 0x2f5   : > { %v659_v45 = vadd.f32 %v1773_v3, %v623_v41  ;;  %v2046_v55 = vunpack.c.l.bf16 %v1807_v47  ;;  %v779_v51 = vmax.f32 %v747_v22, 0.0  ;;  %v1057_v37 = vunpack.c.h.bf16 %v1087_v49  ;;  %809 = vst [vmem:[%s1861_s16 + $0xa0] sm:$0xff] %v777_v54 }
 0x2f6   : > { %v750_v5 = vadd.f32 %v2045_v30, %v654_v13  ;;  %v660_v44 = vadd.f32 %v1773_v3, %v624_v19  ;;  %v752_v0 = vadd.f32 %v1049_v7, %v656_v58  ;;  %v780_v10 = vmax.f32 %v748_v9, 0.0  ;;  %810 = vst [vmem:[%s1861_s16 + $0xa8] sm:$0xff] %v778_v25 }
 0x2f7   : > { %v751_v32 = vadd.f32 %v2046_v55, %v655_v4  ;;  %v753_v27 = vadd.f32 %v1052_v1, %v657_v46  ;;  %v781_v57 = vmax.f32 %v749_v40, 0.0  ;;  %v754_v12 = vadd.f32 %v1053_v21, %v658_v52  ;;  %811 = vst [vmem:[%s1861_s16 + $0xb0] sm:$0xff] %v779_v51 }
 0x2f8   : > { %v782_v43 = vmax.f32 %v750_v5, 0.0  ;;  %v755_v23 = vadd.f32 %v1056_v33, %v659_v45  ;;  %v756_v47 = vadd.f32 %v1057_v37, %v660_v44  ;;  %v784_v7 = vmax.f32 %v752_v0, 0.0  ;;  %812 = vst [vmem:[%s1861_s16 + $0xb8] sm:$0xff] %v780_v10 }
 0x2f9   : > { %v783_v3 = vmax.f32 %v751_v32, 0.0  ;;  %v785_v36 = vmax.f32 %v753_v27, 0.0  ;;  %813 = vst [vmem:[%s1861_s16 + $0xc0] sm:$0xff] %v781_v57  ;;  %v786_v62 = vmax.f32 %v754_v12, 0.0 }
 0x2fa   : > { %814 = vst [vmem:[%s1861_s16 + $0xc8] sm:$0xff] %v782_v43  ;;  %v787_v11 = vmax.f32 %v755_v23, 0.0  ;;  %v788_v20 = vmax.f32 %v756_v47, 0.0 }
 0x2fb   : > { %815 = vst [vmem:[%s1861_s16 + $0xd0] sm:$0xff] %v783_v3 }
 0x2fc   : > { %816 = vst [vmem:[%s1861_s16 + $0xd8] sm:$0xff] %v784_v7 }
 0x2fd   : > { %817 = vst [vmem:[%s1861_s16 + $0xe0] sm:$0xff] %v785_v36 }
 0x2fe   : > { %818 = vst [vmem:[%s1861_s16 + $0xe8] sm:$0xff] %v786_v62 }
 0x2ff   : > { %819 = vst [vmem:[%s1861_s16 + $0xf0] sm:$0xff] %v787_v11 }
 0x300   : > { %820 = vst [vmem:[%s1861_s16 + $0xf8] sm:$0xff] %v788_v20 }
 0x301   : > { %1159 = shalt.err (!%p1156_p3)
}
 0x302   : > { %s1196_s13 = smov 128   ;;  %s1197_s16 = smov 8  }
 0x303   : > { %1088 = dma.vmem_to_hbm [thread:$0]  (%p1271_p5), %s835_s25, 4096, %s837_s28, %s822_s29, %s1196_s13, %s1196_s13, %s1197_s16  }
 0x304 PF: > { %p1094_p4 = scmp.ge.s32.totalorder %s1194_s24, 2  ;;  %s851_s17 = sand.u32 1, %s1182_s21  }
 0x305   : > { %s852_s19 = scalar_lea.sflag [#allocation3], %s851_s17 }
 0x306   : > { %p1091_p7 = pnand %p1094_p4, %p1275_p6 }
 0x308   : > { %p1092_p8 = pneg %p1091_p7 }
 0x30a   : > { %1177 = dma.done.wait (%p1092_p8), %s852_s19, 4096  }
 0x30b   : > { %1179 = vsyncadd (%p1092_p8), %s852_s19, 4294963200  ;;  %p16_p9 = scmp.ge.s32.totalorder %s1258_s27, 4   ;;  %s2047_s21 = smov %s1186_s22 }
 0x30c   : > { %s2048_s22 = smov %s1190_s23  ;;  %s2049_s23 = smov %s1269_s30 }
 0x30d   : > { %s2050_s24 = smov %s1258_s27  ;;  %18 = sbr.rel (!%p16_p9) target bundleno = 3 (0x3), region = 82 }
 0x312   :  { %858 = vsyncpa [#allocation3], 1 }
 0x313   :  { %860 = vsyncpa [#allocation3 + $0x1], 1 }

// kernel: bottleneck_forward.8
= control target key start
LH: loop header
LB: loop body
LE: loop exit
PB: predicated region body
PF: predicated region fallthrough
CT: control target
= control target key end

     0   :  { %s6994_s9 = smov 0   ;;  %s6996_s10 = smov 0   ;;  %s9521_s0 = inlined_call_operand.vmem [shape: bf16[2,326,128], index: 0, kind: input, shape index: {}]   ;;  %s9522_s1 = inlined_call_operand.vmem [shape: bf16[1152,128], index: 1, kind: input, shape index: {}]   ;;  %s9523_s2 = inlined_call_operand.vmem [shape: bf16[2,288,128], index: 2, kind: output, shape index: {}]  }
   0x1   :  { %s6998_s11 = smov 0  }
   0x2 LB: > { %s24_s12 = sadd.s32 1, %s6973_s10  ;;  %p5618_p0 = scmp.ge.s32.totalorder %s6977_s11, 1  ;;  %s6977_s11 = sphi %s6998_s11, %s12_s11   ;;  %s6973_s10 = sphi %s6996_s10, %s9663_s10   ;;  %s6969_s9 = sphi %s6994_s9, %s9662_s9  }
   0x3   : > { %p26_p1 = scmp.ge.s32.totalorder %s24_s12, 2  ;;  %p135_p2 = scmp.lt.s32.totalorder %s6977_s11, 3 }
   0x5   : > { %s9665_s12 = smov (%p26_p1, %s24_s12), 0  ;;  %p136_p3 = pnand %p5618_p0, %p135_p2 }
   0x7   : > { %139 = sbr.rel (%p136_p3) target bundleno = 833 (0x341), region = 28 }
   0xc   : > { %v6733_v0 = vld [vmem:[%s9522_s1 + $0x38] sm:$0xff]  ;;  %p164_p4 = scmp.lt.s32.totalorder %s6969_s9, 1  ;;  %v6732_v1 = vld [vmem:[%s9522_s1 + $0x30] sm:$0xff]  ;;  %v6731_v2 = vld [vmem:[%s9522_s1 + $0x28] sm:$0xff]  ;;  %vm803_vm0 = vcmask 1042432   ;;  %vm804_vm1 = vcmask 1046532  }
   0xd   : > { %6905 = vmatpush.bf16.msra.mxu1 %v6733_v0  ;;  %6906 = vmatpush.bf16.msra.mxu2 %v6733_v0  ;;  %v6730_v8 = vld [vmem:[%s9522_s1 + $0x20] sm:$0xff]  ;;  %v6729_v13 = vld [vmem:[%s9522_s1 + $0x18] sm:$0xff]  ;;  %v6728_v18 = vld [vmem:[%s9522_s1 + $0x10] sm:$0xff]  ;;  %vm290_vm3 = vsmask.f32 3328  ;;  %vm1796_vm12 = vcmask 1041408  }
   0xe   : > { %s9667_s9 = smov (!%p164_p4, %s6969_s9), 1  ;;  %4557 = vmatpush.bf16.msra.mxu0 %v6733_v0  ;;  %6907 = vmatpush.bf16.msra.mxu3 %v6733_v0  ;;  %v6727_v21 = vld [vmem:[%s9522_s1 + $0x8] sm:$0xff]  ;;  %v6726_v24 = vld [vmem:[%s9522_s1] sm:$0xff]  ;;  %v6749_v29 = vld [vmem:[%s9522_s1 + $0xb8] sm:$0xff]  ;;  %vm291_vm4 = vsmask.f32 7440 }
   0xf   : > { %s6929_s17 = smul.u32 164, %s9667_s9  ;;  %v6741_v35 = vld [vmem:[%s9522_s1 + $0x78] sm:$0xff]  ;;  %v6748_v42 = vld [vmem:[%s9522_s1 + $0xb0] sm:$0xff]  ;;  %v6747_v49 = vld [vmem:[%s9522_s1 + $0xa8] sm:$0xff]  ;;  %vm1279_vm6 = vsmask.f32 2304 }
  0x10   : > { %v6765_v36 = vld [vmem:[%s9522_s1 + $0x138] sm:$0xff]  ;;  %v6740_v43 = vld [vmem:[%s9522_s1 + $0x70] sm:$0xff]  ;;  %v6739_v50 = vld [vmem:[%s9522_s1 + $0x68] sm:$0xff]  ;;  %vm1280_vm7 = vsmask.f32 6416  ;;  %vm1797_vm13 = vcmask 1045508  }
  0x11   : > { %6908 = vmatpush.bf16.msra.mxu1 %v6732_v1  ;;  %6909 = vmatpush.bf16.msra.mxu2 %v6732_v1  ;;  %s7027_s22 = scalar_lea.vmem %s9521_s0, %s6929_s17  ;;  %v6764_v44 = vld [vmem:[%s9522_s1 + $0x130] sm:$0xff]  ;;  %v6757_v48 = vld [vmem:[%s9522_s1 + $0xf8] sm:$0xff]  ;;  %v6763_v51 = vld [vmem:[%s9522_s1 + $0x128] sm:$0xff]  ;;  %vm2272_vm9 = vsmask.f32 1280  ;;  %vm2789_vm15 = vcmask 1040384  }
  0x12   : > { %4558 = vmatpush.bf16.msra.mxu0 %v6732_v1  ;;  %6910 = vmatpush.bf16.msra.mxu3 %v6732_v1  ;;  %v191_v3 = vld [vmem:[%s7027_s22 + $0x28] sm:$0xf]  ;;  %v192_v4 = vld [vmem:[%s7027_s22 + $0x2c] sm:$0xf]  ;;  %v201_v5 = vld [vmem:[%s7027_s22 + $0x50] sm:$0xf] }
  0x13   : > { %227 = vst [vmem:[#allocation2 + $0x168] sm:$0xf] %v191_v3  ;;  %v202_v6 = vld [vmem:[%s7027_s22 + $0x54] sm:$0xf]  ;;  %v181_v7 = vld [vmem:[%s7027_s22] sm:$0xf]  ;;  %vm7160_vm2 = vmor %vm803_vm0, %vm804_vm1 }
  0x14   : > { %228 = vst [vmem:[#allocation2 + $0x18c] sm:$0xf] %v192_v4  ;;  %v182_v9 = vld [vmem:[%s7027_s22 + $0x4] sm:$0xf]  ;;  %v193_v10 = vld [vmem:[%s7027_s22 + $0x30] sm:$0xf]  ;;  %vm7205_vm5 = vmor %vm290_vm3, %vm291_vm4 }
  0x15   : > { %6911 = vmatpush.bf16.msra.mxu1 %v6731_v2  ;;  %6912 = vmatpush.bf16.msra.mxu2 %v6731_v2  ;;  %237 = vst [vmem:[#allocation2 + $0x2d0] sm:$0xf] %v201_v5  ;;  %v194_v11 = vld [vmem:[%s7027_s22 + $0x34] sm:$0xf]  ;;  %v203_v12 = vld [vmem:[%s7027_s22 + $0x58] sm:$0xf]  ;;  %vm7247_vm8 = vmor %vm1279_vm6, %vm1280_vm7 }
  0x16   : > { %4559 = vmatpush.bf16.msra.mxu0 %v6731_v2  ;;  %238 = vst [vmem:[#allocation2 + $0x2f4] sm:$0xf] %v202_v6  ;;  %6913 = vmatpush.bf16.msra.mxu3 %v6731_v2  ;;  %v204_v14 = vld [vmem:[%s7027_s22 + $0x5c] sm:$0xf]  ;;  %v183_v15 = vld [vmem:[%s7027_s22 + $0x8] sm:$0xf]  ;;  %vm8402_vm14 = vmor %vm1796_vm12, %vm1797_vm13 }
  0x17   : > { %217 = vst [vmem:[#allocation2] sm:$0xf] %v181_v7  ;;  %v184_v16 = vld [vmem:[%s7027_s22 + $0xc] sm:$0xf]  ;;  %v211_v17 = vld [vmem:[%s7027_s22 + $0x78] sm:$0xf] }
  0x18   : > { %218 = vst [vmem:[#allocation2 + $0x24] sm:$0xf] %v182_v9  ;;  %v212_v19 = vld [vmem:[%s7027_s22 + $0x7c] sm:$0xf]  ;;  %v195_v20 = vld [vmem:[%s7027_s22 + $0x38] sm:$0xf] }
  0x19   : > { %6914 = vmatpush.bf16.msra.mxu1 %v6730_v8  ;;  %6915 = vmatpush.bf16.msra.mxu2 %v6730_v8  ;;  %229 = vst [vmem:[#allocation2 + $0x1b0] sm:$0xf] %v193_v10  ;;  %v196_v22 = vld [vmem:[%s7027_s22 + $0x3c] sm:$0xf]  ;;  %v205_v23 = vld [vmem:[%s7027_s22 + $0x60] sm:$0xf] }
  0x1a   : > { %4560 = vmatpush.bf16.msra.mxu0 %v6730_v8  ;;  %6916 = vmatpush.bf16.msra.mxu3 %v6730_v8  ;;  %230 = vst [vmem:[#allocation2 + $0x1d4] sm:$0xf] %v194_v11  ;;  %v5808_v25 = vld [vmem:[#allocation2 + $0x168] sm:$0xf]  ;;  %v206_v27 = vld [vmem:[%s7027_s22 + $0x64] sm:$0xf] }
  0x1b   : > { %239 = vst [vmem:[#allocation2 + $0x318] sm:$0xf] %v203_v12  ;;  %v6613_v26 = vld [vmem:[#allocation2 + $0x188] sm:$0xf0]  ;;  %v185_v30 = vld [vmem:[%s7027_s22 + $0x10] sm:$0xf] }
  0x1c   : > { %240 = vst [vmem:[#allocation2 + $0x33c] sm:$0xf] %v204_v14  ;;  %v5988_v28 = vld [vmem:[#allocation2 + $0x2d0] sm:$0xf]  ;;  %v186_v32 = vld [vmem:[%s7027_s22 + $0x14] sm:$0xf]  ;;  %v5809_v37 = vor.u32 %v6613_v26, %v5808_v25 }
  0x1d   : > { %6917 = vmatpush.bf16.msra.mxu1 %v6729_v13  ;;  %6918 = vmatpush.bf16.msra.mxu2 %v6729_v13  ;;  %219 = vst [vmem:[#allocation2 + $0x48] sm:$0xf] %v183_v15  ;;  %v6658_v31 = vld [vmem:[#allocation2 + $0x2f0] sm:$0xf0]  ;;  %v213_v45 = vld [vmem:[%s7027_s22 + $0x80] sm:$0xf] }
  0x1e   : > { %4561 = vmatpush.bf16.msra.mxu0 %v6729_v13  ;;  %6919 = vmatpush.bf16.msra.mxu3 %v6729_v13  ;;  %220 = vst [vmem:[#allocation2 + $0x6c] sm:$0xf] %v184_v16  ;;  %v5628_v33 = vld [vmem:[#allocation2] sm:$0xf]  ;;  %v5989_v38 = vor.u32 %v6658_v31, %v5988_v28  ;;  %v214_v46 = vld [vmem:[%s7027_s22 + $0x84] sm:$0xf] }
  0x1f   : > { %247 = vst [vmem:[#allocation2 + $0x438] sm:$0xf] %v211_v17  ;;  %v6568_v34 = vld [vmem:[#allocation2 + $0x20] sm:$0xf0]  ;;  %v197_v52 = vld [vmem:[%s7027_s22 + $0x40] sm:$0xf] }
  0x20   : > { %248 = vst [vmem:[#allocation2 + $0x45c] sm:$0xf] %v212_v19  ;;  %v5629_v39 = vor.u32 %v6568_v34, %v5628_v33  ;;  %v6756_v53 = vld [vmem:[%s9522_s1 + $0xf0] sm:$0xff]  ;;  %v198_v54 = vld [vmem:[%s7027_s22 + $0x44] sm:$0xf]  ;;  %v6755_v2 = vld [vmem:[%s9522_s1 + $0xe8] sm:$0xff] }
  0x21   : > { %6920 = vmatpush.bf16.msra.mxu1 %v6728_v18  ;;  %6921 = vmatpush.bf16.msra.mxu2 %v6728_v18  ;;  %231 = vst [vmem:[#allocation2 + $0x1f8] sm:$0xf] %v195_v20  ;;  %v207_v55 = vld [vmem:[%s7027_s22 + $0x68] sm:$0xf]  ;;  %v208_v56 = vld [vmem:[%s7027_s22 + $0x6c] sm:$0xf] }
  0x22   : > { %4562 = vmatpush.bf16.msra.mxu0 %v6728_v18  ;;  %6922 = vmatpush.bf16.msra.mxu3 %v6728_v18  ;;  %232 = vst [vmem:[#allocation2 + $0x21c] sm:$0xf] %v196_v22  ;;  %v6746_v57 = vld [vmem:[%s9522_s1 + $0xa0] sm:$0xff]  ;;  %v5844_v58 = vld [vmem:[#allocation2 + $0x1b0] sm:$0xf]  ;;  %v6745_v5 = vld [vmem:[%s9522_s1 + $0x98] sm:$0xff] }
  0x23   : > { %241 = vst [vmem:[#allocation2 + $0x360] sm:$0xf] %v205_v23  ;;  %v6622_v59 = vld [vmem:[#allocation2 + $0x1d0] sm:$0xf0]  ;;  %v6738_v60 = vld [vmem:[%s9522_s1 + $0x60] sm:$0xff]  ;;  %v6737_v6 = vld [vmem:[%s9522_s1 + $0x58] sm:$0xff] }
  0x24   : > { %242 = vst [vmem:[#allocation2 + $0x384] sm:$0xf] %v206_v27  ;;  %v6762_v61 = vld [vmem:[%s9522_s1 + $0x120] sm:$0xff]  ;;  %v187_v62 = vld [vmem:[%s7027_s22 + $0x18] sm:$0xf]  ;;  %v5845_v7 = vor.u32 %v6622_v59, %v5844_v58  ;;  %v6744_v15 = vld [vmem:[%s9522_s1 + $0x90] sm:$0xff] }
  0x25   : > { %6923 = vmatpush.bf16.msra.mxu1 %v6727_v21  ;;  %6924 = vmatpush.bf16.msra.mxu2 %v6727_v21  ;;  %221 = vst [vmem:[#allocation2 + $0x90] sm:$0xf] %v185_v30  ;;  %v6024_v63 = vld [vmem:[#allocation2 + $0x318] sm:$0xf]  ;;  %v188_v0 = vld [vmem:[%s7027_s22 + $0x1c] sm:$0xf] }
  0x26   : > { %4563 = vmatpush.bf16.msra.mxu0 %v6727_v21  ;;  %6925 = vmatpush.bf16.msra.mxu3 %v6727_v21  ;;  %222 = vst [vmem:[#allocation2 + $0xb4] sm:$0xf] %v186_v32  ;;  %v6168_v40 = vld [vmem:[#allocation2 + $0x438] sm:$0xf]  ;;  %v6667_v1 = vld [vmem:[#allocation2 + $0x338] sm:$0xf0] }
  0x27   : > { %v6703_v41 = vld [vmem:[#allocation2 + $0x458] sm:$0xf0]  ;;  %249 = vst [vmem:[#allocation2 + $0x480] sm:$0xf] %v213_v45  ;;  %v5664_v3 = vld [vmem:[#allocation2 + $0x48] sm:$0xf]  ;;  %v6025_v8 = vor.u32 %v6667_v1, %v6024_v63 }
  0x28   : > { %v6169_v47 = vor.u32 %v6703_v41, %v6168_v40  ;;  %250 = vst [vmem:[#allocation2 + $0x4a4] sm:$0xf] %v214_v46  ;;  %v6577_v4 = vld [vmem:[#allocation2 + $0x68] sm:$0xf0]  ;;  %v215_v12 = vld [vmem:[%s7027_s22 + $0x88] sm:$0xf] }
  0x29   : > { %6926 = vmatpush.bf16.msra.mxu1 %v6726_v24  ;;  %6927 = vmatpush.bf16.msra.mxu2 %v6726_v24  ;;  %233 = vst [vmem:[#allocation2 + $0x240] sm:$0xf] %v197_v52  ;;  %v5665_v9 = vor.u32 %v6577_v4, %v5664_v3  ;;  %v216_v13 = vld [vmem:[%s7027_s22 + $0x8c] sm:$0xf]  ;;  %v6761_v16 = vld [vmem:[%s9522_s1 + $0x118] sm:$0xff]  ;;  %v6754_v17 = vld [vmem:[%s9522_s1 + $0xe0] sm:$0xff] }
  0x2a   : > { %4564 = vmatpush.bf16.msra.mxu0 %v6726_v24  ;;  %6928 = vmatpush.bf16.msra.mxu3 %v6726_v24  ;;  %234 = vst [vmem:[#allocation2 + $0x264] sm:$0xf] %v198_v54  ;;  %v6736_v18 = vld [vmem:[%s9522_s1 + $0x50] sm:$0xff]  ;;  %v6743_v19 = vld [vmem:[%s9522_s1 + $0x88] sm:$0xff]  ;;  %v6753_v22 = vld [vmem:[%s9522_s1 + $0xd8] sm:$0xff]  ;;  %vm2790_vm0 = vcmask 1044484  }
  0x2b   : > { %243 = vst [vmem:[#allocation2 + $0x3a8] sm:$0xf] %v207_v55  ;;  %v6760_v20 = vld [vmem:[%s9522_s1 + $0x110] sm:$0xff]  ;;  %v199_v21 = vld [vmem:[%s7027_s22 + $0x48] sm:$0xf]  ;;  %v6742_v58 = vld [vmem:[%s9522_s1 + $0x80] sm:$0xff] }
  0x2c   : > { %4590 = vmatmul.bf16.vlgmr.msra.gmra.mxu1 %v5809_v37  ;;  %4615 = vmatmul.bf16.vlgmr.msra.gmra.mxu2 %v5989_v38  ;;  %244 = vst [vmem:[#allocation2 + $0x3cc] sm:$0xf] %v208_v56  ;;  %v200_v23 = vld [vmem:[%s7027_s22 + $0x4c] sm:$0xf]  ;;  %v209_v24 = vld [vmem:[%s7027_s22 + $0x70] sm:$0xf]  ;;  %vm8434_vm1 = vmor %vm2789_vm15, %vm2790_vm0 }
  0x2d   : > { %4755 = vmatpush.bf16.msrb.mxu2 %v6749_v29  ;;  %4656 = vmatpush.bf16.msrb.mxu1 %v6741_v35  ;;  %223 = vst [vmem:[#allocation2 + $0xd8] sm:$0xf] %v187_v62  ;;  %v210_v25 = vld [vmem:[%s7027_s22 + $0x74] sm:$0xf]  ;;  %v5880_v26 = vld [vmem:[#allocation2 + $0x1f8] sm:$0xf] }
  0x2e   : > { %4953 = vmatpush.bf16.msrb.mxu0 %v6765_v36  ;;  %4640 = vmatmul.bf16.vlgmr.msra.gmra.mxu3 %v6169_v47  ;;  %224 = vst [vmem:[#allocation2 + $0xfc] sm:$0xf] %v188_v0  ;;  %v6204_v10 = vld [vmem:[#allocation2 + $0x480] sm:$0xf]  ;;  %v6631_v27 = vld [vmem:[#allocation2 + $0x218] sm:$0xf0] }
  0x2f   : > { %4565 = vmatmul.bf16.vlgmr.msra.gmra.mxu0 %v5629_v39  ;;  %4854 = vmatpush.bf16.msrb.mxu3 %v6757_v48  ;;  %v6712_v11 = vld [vmem:[#allocation2 + $0x4a0] sm:$0xf0]  ;;  %251 = vst [vmem:[#allocation2 + $0x4c8] sm:$0xf] %v215_v12  ;;  %v189_v28 = vld [vmem:[%s7027_s22 + $0x20] sm:$0xf]  ;;  %v5881_v37 = vor.u32 %v6631_v27, %v5880_v26 }
  0x30   : > { %v6205_v14 = vor.u32 %v6712_v11, %v6204_v10  ;;  %252 = vst [vmem:[#allocation2 + $0x4ec] sm:$0xf] %v216_v13  ;;  %v6060_v29 = vld [vmem:[#allocation2 + $0x360] sm:$0xf]  ;;  %v190_v30 = vld [vmem:[%s7027_s22 + $0x24] sm:$0xf] }
  0x31   : > { %4756 = vmatpush.bf16.msrb.mxu2 %v6748_v42  ;;  %4657 = vmatpush.bf16.msrb.mxu1 %v6740_v43  ;;  %235 = vst [vmem:[#allocation2 + $0x288] sm:$0xf] %v199_v21  ;;  %v6676_v31 = vld [vmem:[#allocation2 + $0x380] sm:$0xf0]  ;;  %v6752_v32 = vld [vmem:[%s9522_s1 + $0xd0] sm:$0xff]  ;;  %v6735_v54 = vld [vmem:[%s9522_s1 + $0x48] sm:$0xff] }
  0x32   : > { %4954 = vmatpush.bf16.msrb.mxu0 %v6764_v44  ;;  %236 = vst [vmem:[#allocation2 + $0x2ac] sm:$0xf] %v200_v23  ;;  %v5700_v33 = vld [vmem:[#allocation2 + $0x90] sm:$0xf]  ;;  %v6586_v34 = vld [vmem:[#allocation2 + $0xb0] sm:$0xf0]  ;;  %v6061_v38 = vor.u32 %v6676_v31, %v6060_v29 }
  0x33   : > { %4855 = vmatpush.bf16.msrb.mxu3 %v6756_v53  ;;  %245 = vst [vmem:[#allocation2 + $0x3f0] sm:$0xf] %v209_v24  ;;  %v988_v35 = vld [vmem:[%s7027_s22 + $0xc] sm:$0xf]  ;;  %v987_v40 = vld [vmem:[%s7027_s22 + $0x8] sm:$0xe]  ;;  %v5701_v42 = vor.u32 %v6586_v34, %v5700_v33 }
  0x34   : > { %246 = vst [vmem:[#allocation2 + $0x414] sm:$0xf] %v210_v25  ;;  %v1063_v36 = vrot.slane %v988_v35, 5  ;;  %v7158_v41 = vld [vmem:[%s7027_s22 + $0x10] sm:$0xf]  ;;  %v5622_v44 = vrot.slane %v987_v40, 9 }
  0x35   : > { %4757 = vmatpush.bf16.msrb.mxu2 %v6747_v49  ;;  %4658 = vmatpush.bf16.msrb.mxu1 %v6739_v50  ;;  %225 = vst [vmem:[#allocation2 + $0x120] sm:$0xf] %v189_v28  ;;  %v1066_v47 = vrot.slane %v7158_v41, 5  ;;  %v253_v48 = vld [vmem:[%s7027_s22] sm:$0xf]  ;;  %v6759_v59 = vld [vmem:[%s9522_s1 + $0x108] sm:$0xff] }
  0x36   : > { %4955 = vmatpush.bf16.msrb.mxu0 %v6763_v51  ;;  %226 = vst [vmem:[#allocation2 + $0x144] sm:$0xf] %v190_v30  ;;  %v6240_v39 = vld [vmem:[#allocation2 + $0x4c8] sm:$0xf]  ;;  %v1065_v46 = vrot.slane %v1063_v36, 4  ;;  %v1064_v49 = vsel %vm7160_vm2, %v5622_v44, %v1063_v36  ;;  %v294_v51 = vshrl.u32 %v253_v48, 16 }
  0x37   : > { %4856 = vmatpush.bf16.msrb.mxu3 %v6755_v2  ;;  %v6721_v43 = vld [vmem:[#allocation2 + $0x4e8] sm:$0xf0]  ;;  %v254_v50 = vld [vmem:[%s7027_s22 + $0x4] sm:$0xf]  ;;  %v297_v52 = vshll.u32 %v253_v48, 16  ;;  %v6781_v41 = vld [vmem:[%s9522_s1 + $0x1b8] sm:$0xff] }
  0x38   : > { %v6241_v53 = vor.u32 %v6721_v43, %v6240_v39  ;;  %v1067_v55 = vsel %vm7160_vm2, %v1065_v46, %v1066_v47  ;;  %1206 = vst [vmem:[#allocation2 + $0xc] sm:$0xf] %v1064_v49  ;;  %v303_v56 = vshll.u32 %v254_v50, 16  ;;  %v6734_v62 = vld [vmem:[%s9522_s1 + $0x40] sm:$0xff]  ;;  %v7192_v0 = vld [vmem:[%s7027_s22 + $0x8] sm:$0xf] }
  0x39   : > { %4758 = vmatpush.bf16.msrb.mxu2 %v6746_v57  ;;  %4659 = vmatpush.bf16.msrb.mxu1 %v6738_v60  ;;  %v6751_v57 = vld [vmem:[%s9522_s1 + $0xc8] sm:$0xff]  ;;  %1207 = vst [vmem:[#allocation2 + $0x30] sm:$0xf] %v1067_v55  ;;  %v296_v60 = vrot.slane %v294_v51, 4  ;;  %v299_v63 = vrot.slane %v297_v52, 5  ;;  %v307_v2 = vshrl.u32 %v254_v50, 16 }
  0x3a   : > { %4956 = vmatpush.bf16.msrb.mxu0 %v6762_v61  ;;  %v6750_v61 = vld [vmem:[%s9522_s1 + $0xc0] sm:$0xff]  ;;  %v305_v1 = vrot.slane %v303_v56, 5  ;;  %v6096_v10 = vld [vmem:[#allocation2 + $0x3a8] sm:$0xf]  ;;  %v6685_v11 = vld [vmem:[#allocation2 + $0x3c8] sm:$0xf0] }
  0x3b   : > { %4857 = vmatpush.bf16.msrb.mxu3 %v6754_v17  ;;  %v7194_v3 = vld [vmem:[#allocation2 + $0x240] sm:$0xf]  ;;  %v7196_v4 = vld [vmem:[#allocation2 + $0x260] sm:$0xf0]  ;;  %v309_v13 = vrot.slane %v307_v2, 4  ;;  %v6097_v35 = vor.u32 %v6685_v11, %v6096_v10  ;;  %v6797_v10 = vld [vmem:[%s9522_s1 + $0x238] sm:$0xff] }
  0x3c   : > { %4595 = vmatmul.bf16.gmra.mxu1 %v5845_v7  ;;  %4620 = vmatmul.bf16.gmra.mxu2 %v6025_v8  ;;  %v313_v7 = vshll.u32 %v7192_v0, 16  ;;  %v729_v8 = vld [vmem:[%s7027_s22] sm:$0xe]  ;;  %v5736_v21 = vld [vmem:[#allocation2 + $0xd8] sm:$0xf]  ;;  %s6930_s23 = smul.u32 144, %s9667_s9 }
  0x3d   : > { %4759 = vmatpush.bf16.msrb.mxu2 %v6745_v5  ;;  %4660 = vmatpush.bf16.msrb.mxu1 %v6737_v6  ;;  %v6758_v5 = vld [vmem:[%s9522_s1 + $0x100] sm:$0xff]  ;;  %v300_v6 = vor.u32 %v299_v63, %v296_v60  ;;  %v310_v24 = vor.u32 %v309_v13, %v305_v1  ;;  %v1243_v27 = vld [vmem:[%s7027_s22 + $0xc] sm:$0xf]  ;;  %v1244_v31 = vld [vmem:[%s7027_s22 + $0x10] sm:$0xf] }
  0x3e   : > { %4957 = vmatpush.bf16.msrb.mxu0 %v6761_v16  ;;  %4645 = vmatmul.bf16.gmra.mxu3 %v6205_v14  ;;  %v7210_v14 = vld [vmem:[%s7027_s22 + $0x8] sm:$0xf]  ;;  %v1292_v39 = vshrl.u32 %v1243_v27, 16  ;;  %v1295_v40 = vshll.u32 %v1243_v27, 16  ;;  %v990_v43 = vld [vmem:[%s7027_s22 + $0x14] sm:$0xf]  ;;  %s9133_s25 = scalar_lea.vmem %s9523_s2, %s6930_s23 }
  0x3f   : > { %4570 = vmatmul.bf16.gmra.mxu0 %v5665_v9  ;;  %4858 = vmatpush.bf16.msrb.mxu3 %v6753_v22  ;;  %v730_v9 = vld [vmem:[%s7027_s22 + $0x4] sm:$0xf]  ;;  %v301_v17 = vrot.slane %v300_v6, 4  ;;  %v6595_v22 = vld [vmem:[#allocation2 + $0xf8] sm:$0xf0]  ;;  %v311_v33 = vrot.slane %v310_v24, 4 }
  0x40   : > { %v808_v16 = vrot.slane %v730_v9, 5  ;;  %v7216_v23 = vld [vmem:[#allocation2 + $0xc] sm:$0xf]  ;;  %v7221_v29 = vld [vmem:[#allocation2 + $0x2c] sm:$0xf0]  ;;  %v5737_v44 = vor.u32 %v6595_v22, %v5736_v21  ;;  %v1305_v49 = vshll.u32 %v1244_v31, 16 }
  0x41   : > { %4760 = vmatpush.bf16.msrb.mxu2 %v6744_v15  ;;  %4661 = vmatpush.bf16.msrb.mxu1 %v6736_v18  ;;  %v5621_v15 = vrot.slane %v729_v8, 9  ;;  %v7212_v18 = vrot.slane %v313_v7, 5  ;;  %v306_v30 = vsel %vm7205_vm5, %v301_v17, %v305_v1  ;;  %v5641_v46 = vor.u32 %v7216_v23, %v7221_v29  ;;  %v7239_v50 = vld [vmem:[%s7027_s22 + $0x18] sm:$0xf]  ;;  %v256_v55 = vld [vmem:[%s7027_s22 + $0xc] sm:$0xf] }
  0x42   : > { %4958 = vmatpush.bf16.msrb.mxu0 %v6760_v20  ;;  %v1242_v20 = vld [vmem:[%s7027_s22 + $0x8] sm:$0xe]  ;;  %v810_v26 = vrot.slane %v808_v16, 4  ;;  %693 = vst [vmem:[#allocation2 + $0x4] sm:$0xf] %v306_v30  ;;  %v1294_v51 = vrot.slane %v1292_v39, 5 }
  0x43   : > { %4859 = vmatpush.bf16.msrb.mxu3 %v6752_v32  ;;  %v809_v25 = vsel %vm7160_vm2, %v5621_v15, %v808_v16  ;;  %v1283_v28 = vshrl.u32 %v1242_v20, 16  ;;  %v5917_v32 = vor.u32 %v7196_v4, %v7194_v3  ;;  %v1297_v52 = vrot.slane %v1295_v40, 6  ;;  %v6773_v6 = vld [vmem:[%s9522_s1 + $0x178] sm:$0xff]  ;;  %v7275_v11 = vld [vmem:[%s7027_s22 + $0x10] sm:$0xf] }
  0x44   : > { %951 = vst [vmem:[#allocation2 + $0x8] sm:$0xf] %v809_v25  ;;  %v323_v63 = vshll.u32 %v256_v55, 16  ;;  %v327_v1 = vshrl.u32 %v256_v55, 16  ;;  %v1245_v21 = vld [vmem:[%s7027_s22 + $0x14] sm:$0xf] }
  0x45   : > { %4761 = vmatpush.bf16.msrb.mxu2 %v6743_v19  ;;  %4662 = vmatpush.bf16.msrb.mxu1 %v6735_v54  ;;  %v811_v19 = vrot.slane %v7210_v14, 5  ;;  %v1285_v36 = vrot.slane %v1283_v28, 5  ;;  %v1068_v54 = vrot.slane %v1066_v47, 4  ;;  %v732_v22 = vld [vmem:[%s7027_s22 + $0xc] sm:$0xf]  ;;  %v1312_v30 = vshrl.u32 %v1245_v21, 16 }
  0x46   : > { %4959 = vmatpush.bf16.msrb.mxu0 %v6759_v59  ;;  %v1072_v59 = vrot.slane %v7239_v50, 5  ;;  %v325_v13 = vrot.slane %v323_v63, 5  ;;  %v329_v17 = vrot.slane %v327_v1, 4  ;;  %v7289_v27 = vld [vmem:[%s7027_s22 + $0x10] sm:$0xf] }
  0x47   : > { %4860 = vmatpush.bf16.msrb.mxu3 %v6751_v57  ;;  %v812_v34 = vsel %vm7160_vm2, %v810_v26, %v811_v19  ;;  %v1307_v57 = vrot.slane %v1305_v49, 6  ;;  %v813_v23 = vrot.slane %v811_v19, 4  ;;  %v817_v28 = vrot.slane %v7289_v27, 5  ;;  %v1246_v29 = vld [vmem:[%s7027_s22 + $0x18] sm:$0xf] }
  0x48   : > { %952 = vst [vmem:[#allocation2 + $0x2c] sm:$0xf] %v812_v34  ;;  %v330_v25 = vor.u32 %v329_v17, %v325_v13  ;;  %v6694_v34 = vld [vmem:[#allocation2 + $0x410] sm:$0xf0]  ;;  %v1314_v40 = vrot.slane %v1312_v30, 5 }
  0x49   : > { %4762 = vmatpush.bf16.msrb.mxu2 %v6742_v58  ;;  %4663 = vmatpush.bf16.msrb.mxu1 %v6734_v62  ;;  %v1069_v58 = vrot.slane %v990_v43, 5  ;;  %v317_v62 = vshrl.u32 %v7192_v0, 16  ;;  %v6789_v0 = vld [vmem:[%s9522_s1 + $0x1f8] sm:$0xff]  ;;  %v6604_v49 = vld [vmem:[#allocation2 + $0x140] sm:$0xf0] }
  0x4a   : > { %4960 = vmatpush.bf16.msrb.mxu0 %v6758_v5  ;;  %v331_v19 = vrot.slane %v330_v25, 4  ;;  %v992_v55 = vld [vmem:[%s7027_s22 + $0x1c] sm:$0xf]  ;;  %v819_v25 = vrot.slane %v817_v28, 4  ;;  %v1248_v30 = vld [vmem:[%s7027_s22 + $0x20] sm:$0xf] }
  0x4b   : > { %4861 = vmatpush.bf16.msrb.mxu3 %v6750_v61  ;;  %v1298_v61 = vor.u32 %v1297_v52, %v1294_v51  ;;  %v1070_v3 = vsel %vm7160_vm2, %v1068_v54, %v1069_v58  ;;  %v1071_v4 = vrot.slane %v1069_v58, 4  ;;  %v319_v7 = vrot.slane %v317_v62, 4  ;;  %v7310_v62 = vld [vmem:[%s7027_s22 + $0x20] sm:$0xf]  ;;  %v1247_v17 = vld [vmem:[%s7027_s22 + $0x1c] sm:$0xf] }
  0x4c   : > { %4600 = vmatmul.bf16.gmra.mxu1 %v5881_v37  ;;  %4625 = vmatmul.bf16.gmra.mxu2 %v6061_v38  ;;  %v1286_v37 = vshll.u32 %v1242_v20, 16  ;;  %v316_v38 = vsel %vm7205_vm5, %v311_v33, %v7212_v18  ;;  %1208 = vst [vmem:[#allocation2 + $0x54] sm:$0xf] %v1070_v3  ;;  %v333_v20 = vshll.u32 %v7275_v11, 16  ;;  %v6132_v33 = vld [vmem:[#allocation2 + $0x3f0] sm:$0xf] }
  0x4d   : > { %694 = vst [vmem:[#allocation2 + $0x28] sm:$0xf] %v316_v38  ;;  %v1300_v5 = vrot.slane %v1298_v61, 4  ;;  %5151 = vmatpush.bf16.msra.mxu2 %v6781_v41  ;;  %v1073_v9 = vsel %vm7160_vm2, %v1071_v4, %v1072_v59  ;;  %5052 = vmatpush.bf16.msra.mxu1 %v6773_v6  ;;  %v320_v16 = vor.u32 %v319_v7, %v7212_v18  ;;  %v814_v18 = vrot.slane %v732_v22, 5  ;;  %v258_v4 = vld [vmem:[%s7027_s22 + $0x14] sm:$0xf] }
  0x4e   : > { %4650 = vmatmul.bf16.gmra.mxu3 %v6241_v53  ;;  %v1288_v48 = vrot.slane %v1286_v37, 6  ;;  %5349 = vmatpush.bf16.msra.mxu0 %v6797_v10  ;;  %1209 = vst [vmem:[#allocation2 + $0x78] sm:$0xf] %v1073_v9  ;;  %v7286_v26 = vrot.slane %v333_v20, 5  ;;  %v5772_v37 = vld [vmem:[#allocation2 + $0x120] sm:$0xf] }
  0x4f   : > { %4575 = vmatmul.bf16.gmra.mxu0 %v5701_v42  ;;  %v1302_v42 = vshrl.u32 %v1244_v31, 16  ;;  %5250 = vmatpush.bf16.msra.mxu3 %v6789_v0  ;;  %v321_v24 = vrot.slane %v320_v16, 4  ;;  %v5952_v31 = vld [vmem:[#allocation2 + $0x288] sm:$0xf]  ;;  %v815_v38 = vsel %vm7160_vm2, %v813_v23, %v814_v18  ;;  %v816_v39 = vrot.slane %v814_v18, 4 }
  0x50   : > { %v1289_v56 = vor.u32 %v1288_v48, %v1285_v36  ;;  %v1322_v36 = vshrl.u32 %v1246_v29, 16  ;;  %v336_v43 = vsel %vm7205_vm5, %v331_v19, %v7286_v26  ;;  %953 = vst [vmem:[#allocation2 + $0x50] sm:$0xf] %v815_v38  ;;  %v1075_v63 = vrot.slane %v992_v55, 5  ;;  %v734_v23 = vld [vmem:[%s7027_s22 + $0x14] sm:$0xf] }
  0x51   : > { %v1304_v53 = vrot.slane %v1302_v42, 5  ;;  %v326_v14 = vsel %vm7205_vm5, %v321_v24, %v325_v13  ;;  %v1325_v42 = vshll.u32 %v1246_v29, 16  ;;  %696 = vst [vmem:[#allocation2 + $0x70] sm:$0xf] %v336_v43  ;;  %v818_v51 = vsel %vm7160_vm2, %v816_v39, %v817_v28  ;;  %v7335_v24 = vld [vmem:[%s7027_s22 + $0x18] sm:$0xf] }
  0x52   : > { %v1290_v47 = vrot.slane %v1289_v56, 4  ;;  %695 = vst [vmem:[#allocation2 + $0x4c] sm:$0xf] %v326_v14  ;;  %v1324_v48 = vrot.slane %v1322_v36, 5  ;;  %v5773_v1 = vor.u32 %v6604_v49, %v5772_v37  ;;  %v1074_v3 = vrot.slane %v1072_v59, 4 }
  0x53   : > { %v7255_v2 = vor.u32 %v1307_v57, %v1304_v53  ;;  %v1327_v52 = vrot.slane %v1325_v42, 6  ;;  %v337_v53 = vshrl.u32 %v7275_v11, 16  ;;  %954 = vst [vmem:[#allocation2 + $0x74] sm:$0xf] %v818_v51  ;;  %v6133_v57 = vor.u32 %v6694_v34, %v6132_v33  ;;  %v6574_v58 = vld [vmem:[#allocation2 + $0x54] sm:$0xf] }
  0x54   : > { %v1299_v8 = vsel %vm7247_vm8, %v1290_v47, %v1298_v61  ;;  %v1078_v0 = vrot.slane %v7310_v62, 5  ;;  %v343_v6 = vshll.u32 %v258_v4, 16  ;;  %v347_v7 = vshrl.u32 %v258_v4, 16  ;;  %v7328_v11 = vld [vmem:[%s7027_s22 + $0x18] sm:$0xf] }
  0x55   : > { %v1309_v15 = vsel %vm7247_vm8, %v1300_v5, %v7255_v2  ;;  %1686 = vst [vmem:[#allocation2 + $0x10] sm:$0xf] %v1299_v8  ;;  %v7307_v61 = vor.u32 %v1327_v52, %v1324_v48  ;;  %v5674_v41 = vld [vmem:[#allocation2 + $0x74] sm:$0xf0]  ;;  %v1077_v5 = vrot.slane %v1075_v63, 4  ;;  %v1076_v9 = vsel %vm7160_vm2, %v1074_v3, %v1075_v63 }
  0x56   : > { %1687 = vst [vmem:[#allocation2 + $0x34] sm:$0xf] %v1309_v15  ;;  %v339_v10 = vrot.slane %v337_v53, 4  ;;  %v5677_v50 = vor.u32 %v6574_v58, %v5674_v41  ;;  %v345_v15 = vrot.slane %v343_v6, 5  ;;  %v349_v16 = vrot.slane %v347_v7, 4 }
  0x57   : > { %v1079_v59 = vsel %vm7160_vm2, %v1077_v5, %v1078_v0  ;;  %1210 = vst [vmem:[#allocation2 + $0x9c] sm:$0xf] %v1076_v9  ;;  %v353_v20 = vshll.u32 %v7328_v11, 16  ;;  %v820_v29 = vrot.slane %v734_v23, 5  ;;  %v1335_v34 = vshll.u32 %v1247_v17, 16 }
  0x58   : > { %v340_v13 = vor.u32 %v339_v10, %v7286_v26  ;;  %1211 = vst [vmem:[#allocation2 + $0xc0] sm:$0xf] %v1079_v59  ;;  %v350_v22 = vor.u32 %v349_v16, %v345_v15  ;;  %v823_v26 = vrot.slane %v7335_v24, 5  ;;  %v1342_v28 = vshrl.u32 %v1248_v30, 16  ;;  %v5630_v36 = vld [vmem:[#allocation2 + $0x24] sm:$0xf0] }
  0x59   : > { %v7339_v18 = vrot.slane %v353_v20, 5  ;;  %v821_v14 = vsel %vm7160_vm2, %v819_v25, %v820_v29  ;;  %v822_v19 = vrot.slane %v820_v29, 4  ;;  %v5636_v37 = vld [vmem:[#allocation2 + $0x8] sm:$0xf]  ;;  %v6569_v38 = vld [vmem:[#allocation2 + $0x28] sm:$0xf0] }
  0x5a   : > { %v351_v33 = vrot.slane %v350_v22, 4  ;;  %955 = vst [vmem:[#allocation2 + $0x98] sm:$0xf] %v821_v14  ;;  %v1337_v42 = vrot.slane %v1335_v34, 6  ;;  %v1345_v43 = vshll.u32 %v1248_v30, 16  ;;  %v1344_v48 = vrot.slane %v1342_v28, 5 }
  0x5b   : > { %v357_v53 = vshrl.u32 %v7328_v11, 16  ;;  %v1080_v5 = vrot.slane %v1078_v0, 4  ;;  %v7378_v0 = vld [vmem:[%s7027_s22 + $0x20] sm:$0xf]  ;;  %v1249_v11 = vld [vmem:[%s7027_s22 + $0x24] sm:$0xf] }
  0x5c   : > { %4605 = vmatmul.bf16.gmra.mxu1 %v5917_v32  ;;  %4630 = vmatmul.bf16.gmra.mxu2 %v6097_v35  ;;  %v6649_v32 = vld [vmem:[#allocation2 + $0x2a8] sm:$0xf0]  ;;  %v1315_v35 = vshll.u32 %v1245_v21, 16  ;;  %v341_v21 = vrot.slane %v340_v13, 4  ;;  %v356_v39 = vsel %vm7205_vm5, %v351_v33, %v7339_v18  ;;  %v1347_v52 = vrot.slane %v1345_v43, 6  ;;  %v6780_v13 = vld [vmem:[%s9522_s1 + $0x1b0] sm:$0xff] }
  0x5d   : > { %v5953_v56 = vor.u32 %v6649_v32, %v5952_v31  ;;  %v1332_v31 = vshrl.u32 %v1247_v17, 16  ;;  %698 = vst [vmem:[#allocation2 + $0xb8] sm:$0xf] %v356_v39  ;;  %v6570_v49 = vld [vmem:[#allocation2 + $0x30] sm:$0xf0]  ;;  %v359_v59 = vrot.slane %v357_v53, 4  ;;  %5152 = vmatpush.bf16.msra.mxu2 %v6780_v13 }
  0x5e   : > { %4862 = vmatmul.bf16.vlgmr.msrb.gmra.mxu3 %v5641_v46  ;;  %v1317_v46 = vrot.slane %v1315_v35, 6  ;;  %v346_v32 = vsel %vm7205_vm5, %v341_v21, %v345_v15  ;;  %v6564_v35 = vld [vmem:[#allocation2 + $0x4] sm:$0xf]  ;;  %v6583_v55 = vld [vmem:[#allocation2 + $0x9c] sm:$0xf]  ;;  %v7359_v58 = vor.u32 %v1347_v52, %v1344_v48  ;;  %v6788_v15 = vld [vmem:[%s9522_s1 + $0x1f0] sm:$0xff] }
  0x5f   : > { %4580 = vmatmul.bf16.gmra.mxu0 %v5737_v44  ;;  %v1310_v44 = vrot.slane %v7255_v2, 4  ;;  %697 = vst [vmem:[#allocation2 + $0x94] sm:$0xf] %v346_v32  ;;  %v1334_v27 = vrot.slane %v1332_v31, 5  ;;  %v5633_v63 = vor.u32 %v6564_v35, %v5630_v36  ;;  %v5710_v3 = vld [vmem:[#allocation2 + $0xbc] sm:$0xf0]  ;;  %v360_v17 = vor.u32 %v359_v59, %v7339_v18  ;;  %5251 = vmatpush.bf16.msra.mxu3 %v6788_v15 }
  0x60   : > { %v1318_v54 = vor.u32 %v1317_v46, %v1314_v40  ;;  %v1330_v40 = vrot.slane %v7307_v61, 4  ;;  %v824_v46 = vsel %vm7160_vm2, %v822_v19, %v823_v26  ;;  %v5713_v62 = vor.u32 %v6583_v55, %v5710_v3  ;;  %v6772_v16 = vld [vmem:[%s9522_s1 + $0x170] sm:$0xff]  ;;  %v736_v23 = vld [vmem:[%s7027_s22 + $0x1c] sm:$0xf]  ;;  %v7394_v25 = vld [vmem:[%s7027_s22 + $0x20] sm:$0xf] }
  0x61   : > { %956 = vst [vmem:[#allocation2 + $0xbc] sm:$0xf] %v824_v46  ;;  %v1338_v51 = vor.u32 %v1337_v42, %v1334_v27  ;;  %v373_v22 = vshll.u32 %v7378_v0, 16  ;;  %v361_v29 = vrot.slane %v360_v17, 4  ;;  %v825_v30 = vrot.slane %v823_v26, 4  ;;  %5053 = vmatpush.bf16.msra.mxu1 %v6772_v16 }
  0x62   : > { %v1319_v47 = vsel %vm7247_vm8, %v1310_v44, %v1318_v54  ;;  %v1320_v2 = vrot.slane %v1318_v54, 4  ;;  %v5644_v44 = vld [vmem:[#allocation2 + $0x10] sm:$0xf]  ;;  %v994_v54 = vld [vmem:[%s7027_s22 + $0x24] sm:$0xf]  ;;  %v826_v31 = vrot.slane %v736_v23, 5 }
  0x63   : > { %1688 = vst [vmem:[#allocation2 + $0x58] sm:$0xf] %v1319_v47  ;;  %v5645_v41 = vor.u32 %v6570_v49, %v5644_v44  ;;  %v7362_v47 = vld [vmem:[%s7027_s22 + $0x28] sm:$0xf]  ;;  %v829_v32 = vrot.slane %v7394_v25, 5  ;;  %v7399_v33 = vrot.slane %v373_v22, 5 }
  0x64   : > { %v1329_v8 = vsel %vm7247_vm8, %v1320_v2, %v7307_v61  ;;  %v1081_v61 = vrot.slane %v994_v54, 5  ;;  %v260_v2 = vld [vmem:[%s7027_s22 + $0x1c] sm:$0xf]  ;;  %v1084_v7 = vrot.slane %v7362_v47, 5  ;;  %v1250_v34 = vld [vmem:[%s7027_s22 + $0x28] sm:$0xf]  ;;  %v827_v28 = vsel %vm7160_vm2, %v825_v30, %v826_v31 }
  0x65   : > { %1689 = vst [vmem:[#allocation2 + $0x7c] sm:$0xf] %v1329_v8  ;;  %v363_v8 = vshll.u32 %v260_v2, 16  ;;  %v367_v9 = vshrl.u32 %v260_v2, 16  ;;  %v1352_v14 = vshrl.u32 %v1249_v11, 16  ;;  %v1355_v19 = vshll.u32 %v1249_v11, 16 }
  0x66   : > { %v1083_v6 = vrot.slane %v1081_v61, 4  ;;  %v1082_v10 = vsel %vm7160_vm2, %v1080_v5, %v1081_v61  ;;  %v828_v35 = vrot.slane %v826_v31, 4  ;;  %v1350_v26 = vrot.slane %v7359_v58, 4  ;;  %v5666_v39 = vld [vmem:[#allocation2 + $0x6c] sm:$0xf0] }
  0x67   : > { %1212 = vst [vmem:[#allocation2 + $0xe4] sm:$0xf] %v1082_v10  ;;  %v365_v20 = vrot.slane %v363_v8, 5  ;;  %v369_v21 = vrot.slane %v367_v9, 4  ;;  %v1354_v36 = vrot.slane %v1352_v14, 5  ;;  %v1362_v43 = vshrl.u32 %v1250_v34, 16 }
  0x68   : > { %v830_v42 = vsel %vm7160_vm2, %v828_v35, %v829_v32  ;;  %957 = vst [vmem:[#allocation2 + $0xe0] sm:$0xf] %v827_v28  ;;  %v1365_v44 = vshll.u32 %v1250_v34, 16  ;;  %v6578_v46 = vld [vmem:[#allocation2 + $0x70] sm:$0xf0]  ;;  %v377_v8 = vshrl.u32 %v7378_v0, 16 }
  0x69   : > { %v370_v18 = vor.u32 %v369_v21, %v365_v20  ;;  %v366_v27 = vsel %vm7205_vm5, %v361_v29, %v365_v20  ;;  %958 = vst [vmem:[#allocation2 + $0x104] sm:$0xf] %v830_v42  ;;  %v1364_v53 = vrot.slane %v1362_v43, 5  ;;  %v7420_v3 = vld [vmem:[%s7027_s22 + $0x30] sm:$0xf]  ;;  %v1086_v10 = vrot.slane %v1084_v7, 4 }
  0x6a   : > { %699 = vst [vmem:[#allocation2 + $0xdc] sm:$0xf] %v366_v27  ;;  %v5680_v48 = vld [vmem:[#allocation2 + $0x58] sm:$0xf]  ;;  %v1367_v54 = vrot.slane %v1365_v44, 6  ;;  %v1090_v59 = vrot.slane %v7420_v3, 5 }
  0x6b   : > { %v371_v24 = vrot.slane %v370_v18, 4  ;;  %v379_v0 = vrot.slane %v377_v8, 4  ;;  %v1251_v16 = vld [vmem:[%s7027_s22 + $0x2c] sm:$0xf]  ;;  %v738_v22 = vld [vmem:[%s7027_s22 + $0x24] sm:$0xf] }
  0x6c   : > { %4610 = vmatmul.bf16.gmra.mxu1 %v5953_v56  ;;  %4635 = vmatmul.bf16.gmra.mxu2 %v6133_v57  ;;  %v1339_v56 = vsel %vm7247_vm8, %v1330_v40, %v1338_v51  ;;  %v1340_v57 = vrot.slane %v1338_v51, 4  ;;  %v5672_v40 = vld [vmem:[#allocation2 + $0x50] sm:$0xf]  ;;  %v6579_v52 = vld [vmem:[#allocation2 + $0x78] sm:$0xf0]  ;;  %v832_v30 = vrot.slane %v738_v22, 5 }
  0x6d   : > { %1690 = vst [vmem:[#allocation2 + $0xa0] sm:$0xf] %v1339_v56  ;;  %v376_v49 = vsel %vm7205_vm5, %v371_v24, %v7399_v33  ;;  %v380_v17 = vor.u32 %v379_v0, %v7399_v33  ;;  %v7447_v29 = vld [vmem:[%s7027_s22 + $0x28] sm:$0xf]  ;;  %v831_v34 = vrot.slane %v829_v32, 4  ;;  %v1372_v28 = vshrl.u32 %v1251_v16, 16 }
  0x6e   : > { %4867 = vmatmul.bf16.gmra.mxu3 %v5677_v50  ;;  %v1349_v4 = vsel %vm7247_vm8, %v1340_v57, %v7359_v58  ;;  %v1085_v50 = vsel %vm7160_vm2, %v1083_v6, %v1084_v7  ;;  %700 = vst [vmem:[#allocation2 + $0x100] sm:$0xf] %v376_v49  ;;  %v996_v57 = vld [vmem:[%s7027_s22 + $0x2c] sm:$0xf]  ;;  %v7417_v58 = vor.u32 %v1367_v54, %v1364_v53  ;;  %v6592_v2 = vld [vmem:[#allocation2 + $0xe4] sm:$0xf] }
  0x6f   : > { %4585 = vmatmul.bf16.gmra.mxu0 %v5773_v1  ;;  %v5637_v1 = vor.u32 %v6569_v38, %v5636_v37  ;;  %1691 = vst [vmem:[#allocation2 + $0xc4] sm:$0xf] %v1349_v4  ;;  %v1357_v37 = vrot.slane %v1355_v19, 6  ;;  %v6573_v38 = vld [vmem:[#allocation2 + $0x4c] sm:$0xf]  ;;  %v1087_v61 = vrot.slane %v996_v57, 5 }
  0x70   : > { %1213 = vst [vmem:[#allocation2 + $0x108] sm:$0xf] %v1085_v50  ;;  %v262_v4 = vld [vmem:[%s7027_s22 + $0x24] sm:$0xf]  ;;  %v6796_v6 = vld [vmem:[%s9522_s1 + $0x230] sm:$0xff]  ;;  %v381_v31 = vrot.slane %v380_v17, 4 }
  0x71   : > { %v1358_v51 = vor.u32 %v1357_v37, %v1354_v36  ;;  %v1089_v50 = vrot.slane %v1087_v61, 4  ;;  %5350 = vmatpush.bf16.msra.mxu0 %v6796_v6  ;;  %v1088_v11 = vsel %vm7160_vm2, %v1086_v10, %v1087_v61  ;;  %v387_v13 = vshrl.u32 %v262_v4, 16  ;;  %v7440_v7 = vld [vmem:[%s7027_s22 + $0x28] sm:$0xf]  ;;  %v1252_v33 = vld [vmem:[%s7027_s22 + $0x30] sm:$0xf] }
  0x72   : > { %1214 = vst [vmem:[#allocation2 + $0x12c] sm:$0xf] %v1088_v11  ;;  %v393_v23 = vshll.u32 %v7440_v7, 16  ;;  %v835_v14 = vrot.slane %v7447_v29, 5  ;;  %v834_v27 = vrot.slane %v832_v30, 4  ;;  %v1375_v35 = vshll.u32 %v1251_v16, 16 }
  0x73   : > { %v1359_v55 = vsel %vm7247_vm8, %v1350_v26, %v1358_v51  ;;  %v1360_v56 = vrot.slane %v1358_v51, 4  ;;  %v1091_v47 = vsel %vm7160_vm2, %v1089_v50, %v1090_v59  ;;  %v389_v21 = vrot.slane %v387_v13, 4  ;;  %v5708_v42 = vld [vmem:[#allocation2 + $0x98] sm:$0xf]  ;;  %v998_v57 = vld [vmem:[%s7027_s22 + $0x34] sm:$0xf] }
  0x74   : > { %1692 = vst [vmem:[#allocation2 + $0xe8] sm:$0xf] %v1359_v55  ;;  %v7452_v19 = vrot.slane %v393_v23, 5  ;;  %v833_v36 = vsel %vm7160_vm2, %v831_v34, %v832_v30  ;;  %v836_v25 = vsel %vm7160_vm2, %v834_v27, %v835_v14  ;;  %v1370_v32 = vrot.slane %v7417_v58, 4  ;;  %v5716_v49 = vld [vmem:[#allocation2 + $0xa0] sm:$0xf] }
  0x75   : > { %v1369_v9 = vsel %vm7247_vm8, %v1360_v56, %v7417_v58  ;;  %1215 = vst [vmem:[#allocation2 + $0x150] sm:$0xf] %v1091_v47  ;;  %v1374_v37 = vrot.slane %v1372_v28, 5  ;;  %v1382_v44 = vshrl.u32 %v1252_v33, 16  ;;  %v1093_v61 = vrot.slane %v998_v57, 5  ;;  %v6779_v29 = vld [vmem:[%s9522_s1 + $0x1a8] sm:$0xff] }
  0x76   : > { %1693 = vst [vmem:[#allocation2 + $0x10c] sm:$0xf] %v1369_v9  ;;  %v397_v8 = vshrl.u32 %v7440_v7, 16  ;;  %v1092_v10 = vrot.slane %v1090_v59, 4  ;;  %v7490_v59 = vld [vmem:[%s7027_s22 + $0x30] sm:$0xf]  ;;  %5153 = vmatpush.bf16.msra.mxu2 %v6779_v29 }
  0x77   : > { %v5746_v5 = vld [vmem:[#allocation2 + $0x104] sm:$0xf0]  ;;  %959 = vst [vmem:[#allocation2 + $0x128] sm:$0xf] %v833_v36  ;;  %v1384_v53 = vrot.slane %v1382_v44, 5  ;;  %v1095_v50 = vrot.slane %v1093_v61, 4 }
  0x78   : > { %v5749_v15 = vor.u32 %v6592_v2, %v5746_v5  ;;  %960 = vst [vmem:[#allocation2 + $0x14c] sm:$0xf] %v836_v25  ;;  %v264_v5 = vld [vmem:[%s7027_s22 + $0x2c] sm:$0xf]  ;;  %v1094_v0 = vsel %vm7160_vm2, %v1092_v10, %v1093_v61  ;;  %v399_v13 = vrot.slane %v397_v8, 4  ;;  %v413_v22 = vshll.u32 %v7490_v59, 16 }
  0x79   : > { %v6601_v2 = vld [vmem:[#allocation2 + $0x12c] sm:$0xf]  ;;  %v403_v11 = vshll.u32 %v264_v5, 16  ;;  %1216 = vst [vmem:[#allocation2 + $0x174] sm:$0xf] %v1094_v0  ;;  %v837_v34 = vrot.slane %v835_v14, 4 }
  0x7a   : > { %v1253_v7 = vld [vmem:[%s7027_s22 + $0x34] sm:$0xf]  ;;  %v400_v16 = vor.u32 %v399_v13, %v7452_v19  ;;  %v7497_v23 = vld [vmem:[%s7027_s22 + $0x30] sm:$0xf]  ;;  %v6787_v14 = vld [vmem:[%s9522_s1 + $0x1e8] sm:$0xff] }
  0x7b   : > { %v405_v17 = vrot.slane %v403_v11, 5  ;;  %v841_v27 = vrot.slane %v7497_v23, 5  ;;  %5252 = vmatpush.bf16.msra.mxu3 %v6787_v14  ;;  %v6771_v61 = vld [vmem:[%s9522_s1 + $0x168] sm:$0xff]  ;;  %v7532_v8 = vld [vmem:[%s7027_s22 + $0x40] sm:$0xf]  ;;  %v417_v11 = vshrl.u32 %v7490_v59, 16 }
  0x7c   : > { %4664 = vmatmul.bf16.vlgmr.msrb.gmra.mxu1 %v5633_v63  ;;  %4763 = vmatmul.bf16.vlgmr.msrb.gmra.mxu2 %v5637_v1  ;;  %v5669_v63 = vor.u32 %v6573_v38, %v5666_v39  ;;  %v5673_v1 = vor.u32 %v6578_v46, %v5672_v40  ;;  %v1377_v38 = vrot.slane %v1375_v35, 6  ;;  %v6582_v39 = vld [vmem:[#allocation2 + $0x94] sm:$0xf]  ;;  %v5702_v40 = vld [vmem:[#allocation2 + $0xb4] sm:$0xf0]  ;;  %v1385_v46 = vshll.u32 %v1252_v33, 16 }
  0x7d   : > { %v5782_v6 = vld [vmem:[#allocation2 + $0x14c] sm:$0xf0]  ;;  %v7502_v33 = vrot.slane %v413_v22, 5  ;;  %v1392_v35 = vshrl.u32 %v1253_v7, 16  ;;  %5054 = vmatpush.bf16.msra.mxu1 %v6771_v61  ;;  %v6795_v22 = vld [vmem:[%s9522_s1 + $0x228] sm:$0xff] }
  0x7e   : > { %4872 = vmatmul.bf16.gmra.mxu3 %v5713_v62  ;;  %v383_v62 = vshll.u32 %v262_v4, 16  ;;  %v1378_v51 = vor.u32 %v1377_v38, %v1374_v37  ;;  %v1387_v54 = vrot.slane %v1385_v46, 6  ;;  %v7473_v4 = vld [vmem:[%s7027_s22 + $0x38] sm:$0xf]  ;;  %v5785_v47 = vor.u32 %v6601_v2, %v5782_v6  ;;  %5351 = vmatpush.bf16.msra.mxu0 %v6795_v22  ;;  %v1256_v14 = vld [vmem:[%s7027_s22 + $0x40] sm:$0xf] }
  0x7f   : > { %4961 = vmatmul.bf16.vlgmr.msrb.gmra.mxu0 %v5645_v41  ;;  %v5681_v41 = vor.u32 %v6579_v52, %v5680_v48  ;;  %v6587_v48 = vld [vmem:[#allocation2 + $0xb8] sm:$0xf0]  ;;  %v6588_v52 = vld [vmem:[#allocation2 + $0xc0] sm:$0xf0]  ;;  %v1394_v38 = vrot.slane %v1392_v35, 5 }
  0x80   : > { %v385_v20 = vrot.slane %v383_v62, 5  ;;  %v1379_v55 = vsel %vm7247_vm8, %v1370_v32, %v1378_v51  ;;  %v1380_v56 = vrot.slane %v1378_v51, 4  ;;  %v7470_v58 = vor.u32 %v1387_v54, %v1384_v53  ;;  %v5752_v51 = vld [vmem:[#allocation2 + $0xe8] sm:$0xf]  ;;  %v6597_v53 = vld [vmem:[#allocation2 + $0x108] sm:$0xf0] }
  0x81   : > { %1694 = vst [vmem:[#allocation2 + $0x130] sm:$0xf] %v1379_v55  ;;  %v1096_v62 = vrot.slane %v7473_v4, 5  ;;  %v6610_v6 = vld [vmem:[#allocation2 + $0x174] sm:$0xf] }
  0x82   : > { %v390_v18 = vor.u32 %v389_v21, %v385_v20  ;;  %v386_v24 = vsel %vm7205_vm5, %v381_v31, %v385_v20  ;;  %v1389_v9 = vsel %vm7247_vm8, %v1380_v56, %v7470_v58  ;;  %v740_v21 = vld [vmem:[%s7027_s22 + $0x2c] sm:$0xf]  ;;  %v401_v31 = vrot.slane %v400_v16, 4 }
  0x83   : > { %701 = vst [vmem:[#allocation2 + $0x124] sm:$0xf] %v386_v24  ;;  %v1097_v3 = vsel %vm7160_vm2, %v1095_v50, %v1096_v62  ;;  %v838_v30 = vrot.slane %v740_v21, 5  ;;  %v1395_v24 = vshll.u32 %v1253_v7, 16  ;;  %v1390_v32 = vrot.slane %v7470_v58, 4 }
  0x84   : > { %v391_v26 = vrot.slane %v390_v18, 4  ;;  %1695 = vst [vmem:[#allocation2 + $0x154] sm:$0xf] %v1389_v9  ;;  %v1000_v58 = vld [vmem:[%s7027_s22 + $0x3c] sm:$0xf]  ;;  %v1098_v13 = vrot.slane %v1096_v62, 4 }
  0x85   : > { %1217 = vst [vmem:[#allocation2 + $0x198] sm:$0xf] %v1097_v3  ;;  %v840_v28 = vrot.slane %v838_v30, 4  ;;  %v839_v25 = vsel %vm7160_vm2, %v837_v34, %v838_v30  ;;  %v266_v9 = vld [vmem:[%s7027_s22 + $0x34] sm:$0xf]  ;;  %v1102_v3 = vrot.slane %v7532_v8, 5 }
  0x86   : > { %v396_v43 = vsel %vm7205_vm5, %v391_v26, %v7452_v19  ;;  %v1254_v19 = vld [vmem:[%s7027_s22 + $0x38] sm:$0xf]  ;;  %v406_v26 = vsel %vm7205_vm5, %v401_v31, %v405_v17  ;;  %961 = vst [vmem:[#allocation2 + $0x170] sm:$0xf] %v839_v25  ;;  %v423_v7 = vshll.u32 %v266_v9, 16  ;;  %v427_v59 = vshrl.u32 %v266_v9, 16 }
  0x87   : > { %702 = vst [vmem:[#allocation2 + $0x148] sm:$0xf] %v396_v43  ;;  %v842_v37 = vsel %vm7160_vm2, %v840_v28, %v841_v27  ;;  %v6596_v43 = vld [vmem:[#allocation2 + $0x100] sm:$0xf0]  ;;  %v1402_v46 = vshrl.u32 %v1254_v19, 16  ;;  %v843_v25 = vrot.slane %v841_v27, 4 }
  0x88   : > { %703 = vst [vmem:[#allocation2 + $0x16c] sm:$0xf] %v406_v26  ;;  %v7554_v62 = vld [vmem:[%s7027_s22 + $0x38] sm:$0xf]  ;;  %v425_v31 = vrot.slane %v423_v7, 5  ;;  %v1104_v22 = vrot.slane %v1102_v3, 4 }
  0x89   : > { %962 = vst [vmem:[#allocation2 + $0x194] sm:$0xf] %v842_v37  ;;  %v1404_v54 = vrot.slane %v1402_v46, 5  ;;  %v433_v34 = vshll.u32 %v7554_v62, 16  ;;  %v742_v28 = vld [vmem:[%s7027_s22 + $0x34] sm:$0xf] }
  0x8a   : > { %vm2273_vm10 = vsmask.f32 5392 }
  0x8b   : > { %vm8384_vm11 = vmor %vm2272_vm9, %vm2273_vm10 }
  0x8c   : > { %4669 = vmatmul.bf16.gmra.mxu1 %v5669_v63  ;;  %4768 = vmatmul.bf16.gmra.mxu2 %v5673_v1  ;;  %v5705_v63 = vor.u32 %v6582_v39, %v5702_v40  ;;  %v5709_v1 = vor.u32 %v6587_v48, %v5708_v42  ;;  %v1397_v39 = vrot.slane %v1395_v24, 6  ;;  %v6591_v40 = vld [vmem:[#allocation2 + $0xdc] sm:$0xf]  ;;  %v5744_v42 = vld [vmem:[#allocation2 + $0xe0] sm:$0xf]  ;;  %v1405_v48 = vshll.u32 %v1254_v19, 16 }
  0x8d   : > { %v5745_v2 = vor.u32 %v6596_v43, %v5744_v42  ;;  %v5818_v50 = vld [vmem:[#allocation2 + $0x194] sm:$0xf0] }
  0x8e   : > { %4877 = vmatmul.bf16.gmra.mxu3 %v5749_v15  ;;  %v407_v15 = vshrl.u32 %v264_v5, 16  ;;  %v1407_v55 = vrot.slane %v1405_v48, 6  ;;  %v5753_v5 = vor.u32 %v6597_v53, %v5752_v51  ;;  %v5821_v21 = vor.u32 %v6610_v6, %v5818_v50  ;;  %v5774_v51 = vld [vmem:[#allocation2 + $0x144] sm:$0xf0]  ;;  %v6605_v53 = vld [vmem:[#allocation2 + $0x148] sm:$0xf0] }
  0x8f   : > { %4966 = vmatmul.bf16.gmra.mxu0 %v5681_v41  ;;  %v5717_v41 = vor.u32 %v6588_v52, %v5716_v49  ;;  %v5738_v49 = vld [vmem:[#allocation2 + $0xfc] sm:$0xf0]  ;;  %v1398_v52 = vor.u32 %v1397_v39, %v1394_v38  ;;  %v1422_v48 = vshrl.u32 %v1256_v14, 16  ;;  %v1002_v6 = vld [vmem:[%s7027_s22 + $0x44] sm:$0xf] }
  0x90   : > { %v409_v20 = vrot.slane %v407_v15, 4 }
  0x91   : > { %v1399_v56 = vsel %vm7247_vm8, %v1390_v32, %v1398_v52  ;;  %v1400_v57 = vrot.slane %v1398_v52, 4  ;;  %v844_v32 = vrot.slane %v742_v28, 5  ;;  %v5780_v52 = vld [vmem:[#allocation2 + $0x128] sm:$0xf] }
  0x92   : > { %v410_v18 = vor.u32 %v409_v20, %v405_v17  ;;  %1696 = vst [vmem:[#allocation2 + $0x178] sm:$0xf] %v1399_v56  ;;  %v419_v17 = vrot.slane %v417_v11, 4  ;;  %v1255_v20 = vld [vmem:[%s7027_s22 + $0x3c] sm:$0xf]  ;;  %v1105_v11 = vrot.slane %v1002_v6, 5 }
  0x93   : > { %v1412_v19 = vshrl.u32 %v1255_v20, 16  ;;  %v1415_v38 = vshll.u32 %v1255_v20, 16  ;;  %v845_v43 = vsel %vm7160_vm2, %v843_v25, %v844_v32  ;;  %v846_v23 = vrot.slane %v844_v32, 4  ;;  %v7622_v32 = vld [vmem:[%s7027_s22 + $0x40] sm:$0xf] }
  0x94   : > { %v411_v36 = vrot.slane %v410_v18, 4  ;;  %v420_v30 = vor.u32 %v419_v17, %v7502_v33  ;;  %v429_v18 = vrot.slane %v427_v59, 4  ;;  %963 = vst [vmem:[#allocation2 + $0x1b8] sm:$0xf] %v845_v43  ;;  %v268_v17 = vld [vmem:[%s7027_s22 + $0x3c] sm:$0xf] }
  0x95   : > { %v1414_v37 = vrot.slane %v1412_v19, 5  ;;  %v1417_v46 = vrot.slane %v1415_v38, 6  ;;  %v453_v38 = vshll.u32 %v7622_v32, 16  ;;  %v5816_v6 = vld [vmem:[#allocation2 + $0x170] sm:$0xf] }
  0x96   : > { %v416_v44 = vsel %vm7205_vm5, %v411_v36, %v7502_v33  ;;  %v421_v24 = vrot.slane %v420_v30, 4  ;;  %v430_v26 = vor.u32 %v429_v18, %v425_v31  ;;  %v7565_v36 = vld [vmem:[%s7027_s22 + $0x38] sm:$0xf]  ;;  %v7569_v33 = vrot.slane %v433_v34, 5 }
  0x97   : > { %704 = vst [vmem:[#allocation2 + $0x190] sm:$0xf] %v416_v44  ;;  %v847_v29 = vrot.slane %v7565_v36, 5  ;;  %v1418_v61 = vor.u32 %v1417_v46, %v1414_v37  ;;  %v1107_v30 = vrot.slane %v1105_v11, 4  ;;  %v443_v34 = vshll.u32 %v268_v17, 16 }
  0x98   : > { %v431_v42 = vrot.slane %v430_v26, 4  ;;  %v1257_v26 = vld [vmem:[%s7027_s22 + $0x44] sm:$0xf] }
  0x99   : > { %v848_v56 = vsel %vm7160_vm2, %v846_v23, %v847_v29 }
  0x9a   : > { %964 = vst [vmem:[#allocation2 + $0x1dc] sm:$0xf] %v848_v56 }
  0x9c   : > { %4674 = vmatmul.bf16.gmra.mxu1 %v5705_v63  ;;  %4773 = vmatmul.bf16.gmra.mxu2 %v5709_v1  ;;  %v7529_v63 = vor.u32 %v1407_v55, %v1404_v54  ;;  %v1099_v1 = vrot.slane %v1000_v58, 5  ;;  %v436_v55 = vsel %vm7205_vm5, %v431_v42, %v7569_v33  ;;  %v5788_v58 = vld [vmem:[#allocation2 + $0x130] sm:$0xf]  ;;  %v1432_v42 = vshrl.u32 %v1257_v26, 16 }
  0x9d   : > { %706 = vst [vmem:[#allocation2 + $0x1d8] sm:$0xf] %v436_v55 }
  0x9e   : > { %4882 = vmatmul.bf16.gmra.mxu3 %v5785_v47  ;;  %v1409_v0 = vsel %vm7247_vm8, %v1400_v57, %v7529_v63  ;;  %v1101_v15 = vrot.slane %v1099_v1, 4  ;;  %v1100_v16 = vsel %vm7160_vm2, %v1098_v13, %v1099_v1  ;;  %v1410_v44 = vrot.slane %v7529_v63, 4  ;;  %v6606_v1 = vld [vmem:[#allocation2 + $0x150] sm:$0xf0] }
  0x9f   : > { %4971 = vmatmul.bf16.gmra.mxu0 %v5717_v41  ;;  %v5741_v41 = vor.u32 %v6591_v40, %v5738_v49  ;;  %1697 = vst [vmem:[#allocation2 + $0x19c] sm:$0xf] %v1409_v0  ;;  %v426_v40 = vsel %vm7205_vm5, %v421_v24, %v425_v31  ;;  %v6600_v49 = vld [vmem:[#allocation2 + $0x124] sm:$0xf]  ;;  %v1425_v57 = vshll.u32 %v1256_v14, 16  ;;  %v1424_v63 = vrot.slane %v1422_v48, 5 }
  0xa0   : > { %v1103_v4 = vsel %vm7160_vm2, %v1101_v15, %v1102_v3  ;;  %1218 = vst [vmem:[#allocation2 + $0x1bc] sm:$0xf] %v1100_v16  ;;  %v5777_v0 = vor.u32 %v6600_v49, %v5774_v51  ;;  %v5781_v13 = vor.u32 %v6605_v53, %v5780_v52  ;;  %v5789_v15 = vor.u32 %v6606_v1, %v5788_v58  ;;  %v7597_v16 = vld [vmem:[%s7027_s22 + $0x48] sm:$0xf] }
  0xa1   : > { %1219 = vst [vmem:[#allocation2 + $0x1e0] sm:$0xf] %v1103_v4  ;;  %v1108_v18 = vrot.slane %v7597_v16, 5  ;;  %v447_v24 = vshrl.u32 %v268_v17, 16  ;;  %v849_v3 = vrot.slane %v847_v29, 4  ;;  %v445_v14 = vrot.slane %v443_v34, 5 }
  0xa2   : > { %705 = vst [vmem:[#allocation2 + $0x1b4] sm:$0xf] %v426_v40  ;;  %v744_v40 = vld [vmem:[%s7027_s22 + $0x3c] sm:$0xf]  ;;  %v1258_v48 = vld [vmem:[%s7027_s22 + $0x48] sm:$0xf] }
  0xa3   : > { %v1109_v36 = vsel %vm7160_vm2, %v1107_v30, %v1108_v18  ;;  %v449_v37 = vrot.slane %v447_v24, 4  ;;  %v850_v46 = vrot.slane %v744_v40, 5  ;;  %v7632_v49 = vrot.slane %v453_v38, 5  ;;  %v6778_v24 = vld [vmem:[%s9522_s1 + $0x1a0] sm:$0xff] }
  0xa4   : > { %1221 = vst [vmem:[#allocation2 + $0x228] sm:$0xf] %v1109_v36  ;;  %v1434_v51 = vrot.slane %v1432_v42, 5  ;;  %v1435_v52 = vshll.u32 %v1257_v26, 16  ;;  %5154 = vmatpush.bf16.msra.mxu2 %v6778_v24  ;;  %v6770_v16 = vld [vmem:[%s9522_s1 + $0x160] sm:$0xff] }
  0xa5   : > { %v450_v23 = vor.u32 %v449_v37, %v445_v14  ;;  %v852_v58 = vrot.slane %v850_v46, 4  ;;  %v270_v37 = vld [vmem:[%s7027_s22 + $0x44] sm:$0xf]  ;;  %5055 = vmatpush.bf16.msra.mxu1 %v6770_v16 }
  0xa6   : > { %v1437_v1 = vrot.slane %v1435_v52, 6 }
  0xa7   : > { %v6619_v7 = vld [vmem:[#allocation2 + $0x1bc] sm:$0xf]  ;;  %v451_v56 = vrot.slane %v450_v23, 4  ;;  %v457_v23 = vshrl.u32 %v7622_v32, 16 }
  0xa8   : > { %v5854_v20 = vld [vmem:[#allocation2 + $0x1dc] sm:$0xf0] }
  0xa9   : > { %v7535_v10 = vpop.f32.mrf.mxu1  ;;  %v5857_v8 = vor.u32 %v6619_v7, %v5854_v20  ;;  %v6614_v20 = vld [vmem:[#allocation2 + $0x190] sm:$0xf0] }
  0xab   : > { %v5890_v42 = vld [vmem:[#allocation2 + $0x224] sm:$0xf0] }
  0xac   : > { %v7543_v47 = vpop.f32.mrf.mxu0  ;;  %4679 = vmatmul.bf16.gmra.mxu1 %v5741_v41  ;;  %4778 = vmatmul.bf16.gmra.mxu2 %v5745_v2  ;;  %v1427_v41 = vrot.slane %v1425_v57, 6  ;;  %v1419_v2 = vsel %vm7247_vm8, %v1410_v44, %v1418_v61  ;;  %v7629_v44 = vld [vmem:[%s7027_s22 + $0x40] sm:$0xf]  ;;  %v851_v57 = vsel %vm7160_vm2, %v849_v3, %v850_v46  ;;  %v5817_v3 = vor.u32 %v6614_v20, %v5816_v6 }
  0xad   : > { %1698 = vst [vmem:[#allocation2 + $0x1c0] sm:$0xf] %v1419_v2  ;;  %v1445_v2 = vshll.u32 %v1258_v48, 16 }
  0xae   : > { %4887 = vmatmul.bf16.gmra.mxu3 %v5821_v21  ;;  %v7594_v50 = vor.u32 %v1427_v41, %v1424_v63  ;;  %v437_v21 = vshrl.u32 %v7554_v62, 16  ;;  %v1106_v62 = vsel %vm7160_vm2, %v1104_v22, %v1105_v11  ;;  %v1442_v41 = vshrl.u32 %v1258_v48, 16  ;;  %965 = vst [vmem:[#allocation2 + $0x200] sm:$0xf] %v851_v57 }
  0xaf   : > { %4976 = vmatmul.bf16.gmra.mxu0 %v5753_v5  ;;  %v7562_v35 = vpop.f32.mrf.mxu2  ;;  %v1420_v5 = vrot.slane %v1418_v61, 4  ;;  %1220 = vst [vmem:[#allocation2 + $0x204] sm:$0xf] %v1106_v62  ;;  %v1447_v17 = vrot.slane %v1445_v2, 6  ;;  %v1110_v48 = vrot.slane %v1108_v18, 4  ;;  %v459_v57 = vrot.slane %v457_v23, 4 }
  0xb0   : > { %v439_v19 = vrot.slane %v437_v21, 4  ;;  %v1430_v63 = vrot.slane %v7594_v50, 4  ;;  %v1444_v7 = vrot.slane %v1442_v41, 5  ;;  %v5824_v21 = vld [vmem:[#allocation2 + $0x178] sm:$0xf] }
  0xb1   : > { %v7573_v39 = vpop.f32.mrf.mxu1  ;;  %v7582_v54 = vpop.f32.mrf.mxu3  ;;  %v1429_v4 = vsel %vm7247_vm8, %v1420_v5, %v7594_v50  ;;  %v6609_v5 = vld [vmem:[#allocation2 + $0x16c] sm:$0xf]  ;;  %v5810_v50 = vld [vmem:[#allocation2 + $0x18c] sm:$0xf0] }
  0xb2   : > { %9566 = vst [vmem:[#allocation3_spill] sm:$0xff] %v7582_v54  ;;  %v440_v25 = vor.u32 %v439_v19, %v7569_v33  ;;  %v853_v33 = vrot.slane %v7629_v44, 5  ;;  %v7655_v34 = vor.u32 %v1447_v17, %v1444_v7  ;;  %v1004_v19 = vld [vmem:[%s7027_s22 + $0x4c] sm:$0xf] }
  0xb3   : > { %1699 = vst [vmem:[#allocation2 + $0x1e4] sm:$0xf] %v1429_v4  ;;  %v6615_v4 = vld [vmem:[#allocation2 + $0x198] sm:$0xf0]  ;;  %v1111_v26 = vrot.slane %v1004_v19, 5 }
  0xb4   : > { %v7579_v27 = vpop.f32.mrf.mxu0  ;;  %v441_v43 = vrot.slane %v440_v25, 4  ;;  %v5825_v40 = vor.u32 %v6615_v4, %v5824_v21  ;;  %v1259_v2 = vld [vmem:[%s7027_s22 + $0x4c] sm:$0xf]  ;;  %v855_v21 = vrot.slane %v853_v33, 4 }
  0xb5   : > { %v1112_v18 = vsel %vm7160_vm2, %v1110_v48, %v1111_v26  ;;  %v1455_v19 = vshll.u32 %v1259_v2, 16 }
  0xb6   : > { %v446_v55 = vsel %vm7205_vm5, %v441_v43, %v445_v14  ;;  %v6628_v36 = vld [vmem:[#allocation2 + $0x204] sm:$0xf]  ;;  %v7667_v14 = vld [vmem:[%s7027_s22 + $0x50] sm:$0xf]  ;;  %1222 = vst [vmem:[#allocation2 + $0x24c] sm:$0xf] %v1112_v18 }
  0xb7   : > { %v7592_v9 = vpop.f32.mrf.mxu2  ;;  %707 = vst [vmem:[#allocation2 + $0x1fc] sm:$0xf] %v446_v55  ;;  %v6786_v43 = vld [vmem:[%s9522_s1 + $0x1e0] sm:$0xff]  ;;  %v1114_v52 = vrot.slane %v7667_v14, 5  ;;  %v463_v55 = vshll.u32 %v270_v37, 16  ;;  %v5893_v32 = vor.u32 %v6628_v36, %v5890_v42 }
  0xb8   : > { %5253 = vmatpush.bf16.msra.mxu3 %v6786_v43  ;;  %v5846_v42 = vld [vmem:[#allocation2 + $0x1d4] sm:$0xf0] }
  0xb9   : > { %v7600_v59 = vpop.f32.mrf.mxu1  ;;  %v7611_v28 = vpop.f32.mrf.mxu3  ;;  %v465_v41 = vrot.slane %v463_v55, 5  ;;  %v5852_v43 = vld [vmem:[#allocation2 + $0x1b8] sm:$0xf] }
  0xba   : > { %9567 = vst [vmem:[#allocation4_spill] sm:$0xff] %v7611_v28  ;;  %v6624_v16 = vld [vmem:[#allocation2 + $0x1e0] sm:$0xf0]  ;;  %v7883_v28 = vld [vmem:[%s7027_s22 + $0x68] sm:$0xf] }
  0xbc   : > { %v7608_v31 = vpop.f32.mrf.mxu0  ;;  %4684 = vmatmul.bf16.gmra.mxu1 %v5777_v0  ;;  %4783 = vmatmul.bf16.gmra.mxu2 %v5781_v13  ;;  %v456_v0 = vsel %vm7205_vm5, %v451_v56, %v7632_v49  ;;  %v854_v13 = vsel %vm7160_vm2, %v852_v58, %v853_v33  ;;  %v467_v58 = vshrl.u32 %v270_v37, 16 }
  0xbd   : > { %708 = vst [vmem:[#allocation2 + $0x220] sm:$0xf] %v456_v0 }
  0xbe   : > { %4892 = vmatmul.bf16.gmra.mxu3 %v5857_v8  ;;  %966 = vst [vmem:[#allocation2 + $0x224] sm:$0xf] %v854_v13  ;;  %v5813_v8 = vor.u32 %v6609_v5, %v5810_v50  ;;  %v460_v5 = vor.u32 %v459_v57, %v7632_v49  ;;  %v469_v6 = vrot.slane %v467_v58, 4  ;;  %v746_v13 = vld [vmem:[%s7027_s22 + $0x44] sm:$0xf] }
  0xbf   : > { %4981 = vmatmul.bf16.gmra.mxu0 %v5789_v15  ;;  %v7626_v29 = vpop.f32.mrf.mxu2  ;;  %v1438_v15 = vor.u32 %v1437_v1, %v1434_v51  ;;  %v1113_v51 = vrot.slane %v1111_v26, 4  ;;  %v7693_v1 = vld [vmem:[%s7027_s22 + $0x48] sm:$0xf]  ;;  %v856_v4 = vrot.slane %v746_v13, 5  ;;  %v6794_v26 = vld [vmem:[%s9522_s1 + $0x220] sm:$0xff] }
  0xc0   : > { %v473_v0 = vshll.u32 %v7693_v1, 16  ;;  %v7700_v50 = vld [vmem:[%s7027_s22 + $0x48] sm:$0xf]  ;;  %v461_v7 = vrot.slane %v460_v5, 4  ;;  %v470_v17 = vor.u32 %v469_v6, %v465_v41  ;;  %5352 = vmatpush.bf16.msra.mxu0 %v6794_v26  ;;  %v6623_v58 = vld [vmem:[#allocation2 + $0x1d8] sm:$0xf0] }
  0xc1   : > { %v7635_v53 = vpop.f32.mrf.mxu1  ;;  %v7644_v11 = vpop.f32.mrf.mxu3  ;;  %v1439_v22 = vsel %vm7247_vm8, %v1430_v63, %v1438_v15  ;;  %v1440_v30 = vrot.slane %v1438_v15, 4  ;;  %v1115_v63 = vsel %vm7160_vm2, %v1113_v51, %v1114_v52  ;;  %v859_v49 = vrot.slane %v7700_v50, 5  ;;  %v1006_v5 = vld [vmem:[%s7027_s22 + $0x54] sm:$0xf]  ;;  %v272_v26 = vld [vmem:[%s7027_s22 + $0x4c] sm:$0xf] }
  0xc2   : > { %9568 = vst [vmem:[#allocation5_spill] sm:$0xff] %v7644_v11  ;;  %v7704_v20 = vrot.slane %v473_v0, 5  ;;  %v857_v44 = vsel %vm7160_vm2, %v855_v21, %v856_v4  ;;  %v858_v33 = vrot.slane %v856_v4, 4  ;;  %v1457_v51 = vrot.slane %v1455_v19, 6  ;;  %v6637_v0 = vld [vmem:[#allocation2 + $0x24c] sm:$0xf] }
  0xc3   : > { %1700 = vst [vmem:[#allocation2 + $0x208] sm:$0xf] %v1439_v22  ;;  %v1449_v25 = vsel %vm7247_vm8, %v1440_v30, %v7655_v34  ;;  %v1260_v22 = vld [vmem:[%s7027_s22 + $0x50] sm:$0xf]  ;;  %v1452_v30 = vshrl.u32 %v1259_v2, 16  ;;  %v1116_v2 = vrot.slane %v1114_v52, 4 }
  0xc4   : > { %v7641_v61 = vpop.f32.mrf.mxu0  ;;  %1701 = vst [vmem:[#allocation2 + $0x22c] sm:$0xf] %v1449_v25  ;;  %v1450_v25 = vrot.slane %v7655_v34, 4  ;;  %v1462_v55 = vshrl.u32 %v1260_v22, 16  ;;  %v1465_v57 = vshll.u32 %v1260_v22, 16  ;;  %v860_v34 = vsel %vm7160_vm2, %v858_v33, %v859_v49 }
  0xc5   : > { %1223 = vst [vmem:[#allocation2 + $0x270] sm:$0xf] %v1115_v63  ;;  %v1454_v37 = vrot.slane %v1452_v30, 5  ;;  %v1117_v21 = vrot.slane %v1006_v5, 5  ;;  %v5853_v22 = vor.u32 %v6623_v58, %v5852_v43  ;;  %v7741_v19 = vld [vmem:[%s7027_s22 + $0x58] sm:$0xf] }
  0xc6   : > { %967 = vst [vmem:[#allocation2 + $0x248] sm:$0xf] %v857_v44  ;;  %v1464_v63 = vrot.slane %v1462_v55, 5  ;;  %v1120_v33 = vrot.slane %v7741_v19, 5  ;;  %v7762_v55 = vld [vmem:[%s7027_s22 + $0x50] sm:$0xf] }
  0xc7   : > { %v7658_v62 = vpop.f32.mrf.mxu2  ;;  %968 = vst [vmem:[#allocation2 + $0x26c] sm:$0xf] %v860_v34  ;;  %v1458_v18 = vor.u32 %v1457_v51, %v1454_v37  ;;  %v1119_v44 = vrot.slane %v1117_v21, 4  ;;  %v483_v37 = vshll.u32 %v272_v26, 16 }
  0xc9   : > { %v7670_v38 = vpop.f32.mrf.mxu1  ;;  %v7681_v56 = vpop.f32.mrf.mxu3  ;;  %v1459_v13 = vsel %vm7247_vm8, %v1450_v25, %v1458_v18  ;;  %v1121_v43 = vsel %vm7160_vm2, %v1119_v44, %v1120_v33 }
  0xca   : > { %9569 = vst [vmem:[#allocation6_spill] sm:$0xff] %v7681_v56 }
  0xcb   : > { %1702 = vst [vmem:[#allocation2 + $0x250] sm:$0xf] %v1459_v13  ;;  %v861_v13 = vrot.slane %v859_v49, 4 }
  0xcc   : > { %v7676_v46 = vpop.f32.mrf.mxu0  ;;  %4689 = vmatmul.bf16.gmra.mxu1 %v5813_v8  ;;  %4788 = vmatmul.bf16.gmra.mxu2 %v5817_v3  ;;  %v466_v8 = vsel %vm7205_vm5, %v461_v7, %v465_v41  ;;  %v471_v3 = vrot.slane %v470_v17, 4  ;;  %v1467_v41 = vrot.slane %v1465_v57, 6  ;;  %v1460_v7 = vrot.slane %v1458_v18, 4  ;;  %v5926_v52 = vld [vmem:[#allocation2 + $0x26c] sm:$0xf0] }
  0xcd   : > { %709 = vst [vmem:[#allocation2 + $0x244] sm:$0xf] %v466_v8  ;;  %v477_v8 = vshrl.u32 %v7693_v1, 16  ;;  %v1118_v1 = vsel %vm7160_vm2, %v1116_v2, %v1117_v21  ;;  %v5929_v51 = vor.u32 %v6637_v0, %v5926_v52  ;;  %v1261_v57 = vld [vmem:[%s7027_s22 + $0x54] sm:$0xf]  ;;  %v493_v18 = vshll.u32 %v7762_v55, 16 }
  0xce   : > { %4897 = vmatmul.bf16.gmra.mxu3 %v5893_v32  ;;  %v476_v48 = vsel %vm7205_vm5, %v471_v3, %v7704_v20  ;;  %v5860_v32 = vld [vmem:[#allocation2 + $0x1c0] sm:$0xf]  ;;  %v7738_v17 = vor.u32 %v1467_v41, %v1464_v63  ;;  %1224 = vst [vmem:[#allocation2 + $0x294] sm:$0xf] %v1118_v1  ;;  %v7769_v63 = vld [vmem:[%s7027_s22 + $0x50] sm:$0xf] }
  0xcf   : > { %4986 = vmatmul.bf16.gmra.mxu0 %v5825_v40  ;;  %v7702_v15 = vpop.f32.mrf.mxu2  ;;  %v6618_v40 = vld [vmem:[#allocation2 + $0x1b4] sm:$0xf]  ;;  %710 = vst [vmem:[#allocation2 + $0x268] sm:$0xf] %v476_v48  ;;  %v5861_v30 = vor.u32 %v6624_v16, %v5860_v32  ;;  %v479_v48 = vrot.slane %v477_v8, 4  ;;  %v485_v32 = vrot.slane %v483_v37, 5 }
  0xd0   : > { %9570 = vst [vmem:[#allocation7_spill] sm:$0xff] %v7702_v15  ;;  %v5849_v4 = vor.u32 %v6618_v40, %v5846_v42  ;;  %v1469_v3 = vsel %vm7247_vm8, %v1460_v7, %v7738_v17  ;;  %v487_v40 = vshrl.u32 %v272_v26, 16  ;;  %v748_v16 = vld [vmem:[%s7027_s22 + $0x4c] sm:$0xf]  ;;  %v865_v7 = vrot.slane %v7769_v63, 5 }
  0xd1   : > { %v7710_v24 = vpop.f32.mrf.mxu1  ;;  %v7722_v23 = vpop.f32.mrf.mxu3  ;;  %1703 = vst [vmem:[#allocation2 + $0x274] sm:$0xf] %v1469_v3  ;;  %v480_v58 = vor.u32 %v479_v48, %v7704_v20  ;;  %v862_v41 = vrot.slane %v748_v16, 5  ;;  %v7776_v21 = vrot.slane %v493_v18, 5  ;;  %v1470_v44 = vrot.slane %v7738_v17, 4 }
  0xd2   : > { %9571 = vst [vmem:[#allocation8_spill] sm:$0xff] %v7722_v23  ;;  %v489_v34 = vrot.slane %v487_v40, 4  ;;  %v6627_v1 = vld [vmem:[#allocation2 + $0x1fc] sm:$0xf]  ;;  %v5888_v48 = vld [vmem:[#allocation2 + $0x200] sm:$0xf] }
  0xd3   : > { %1225 = vst [vmem:[#allocation2 + $0x2b8] sm:$0xf] %v1121_v43  ;;  %v481_v5 = vrot.slane %v480_v58, 4  ;;  %v864_v20 = vrot.slane %v862_v41, 4  ;;  %v863_v3 = vsel %vm7160_vm2, %v861_v13, %v862_v41  ;;  %v5882_v43 = vld [vmem:[#allocation2 + $0x21c] sm:$0xf0] }
  0xd4   : > { %v7717_v36 = vpop.f32.mrf.mxu0  ;;  %v490_v0 = vor.u32 %v489_v34, %v485_v32  ;;  %969 = vst [vmem:[#allocation2 + $0x290] sm:$0xf] %v863_v3  ;;  %v6632_v34 = vld [vmem:[#allocation2 + $0x220] sm:$0xf0]  ;;  %v5896_v16 = vld [vmem:[#allocation2 + $0x208] sm:$0xf] }
  0xd5   : > { %v486_v52 = vsel %vm7205_vm5, %v481_v5, %v485_v32  ;;  %v866_v49 = vsel %vm7160_vm2, %v864_v20, %v865_v7  ;;  %v6633_v17 = vld [vmem:[#allocation2 + $0x228] sm:$0xf0]  ;;  %v1008_v20 = vld [vmem:[%s7027_s22 + $0x5c] sm:$0xf] }
  0xd6   : > { %v491_v8 = vrot.slane %v490_v0, 4  ;;  %711 = vst [vmem:[#allocation2 + $0x28c] sm:$0xf] %v486_v52  ;;  %v5885_v52 = vor.u32 %v6627_v1, %v5882_v43  ;;  %v5897_v3 = vor.u32 %v6633_v17, %v5896_v16 }
  0xd7   : > { %v7734_v6 = vpop.f32.mrf.mxu2  ;;  %970 = vst [vmem:[#allocation2 + $0x2b4] sm:$0xf] %v866_v49  ;;  %v274_v49 = vld [vmem:[%s7027_s22 + $0x54] sm:$0xf] }
  0xd8   : > { %9572 = vst [vmem:[#allocation9_spill] sm:$0xff] %v7734_v6  ;;  %v6642_v23 = vld [vmem:[#allocation2 + $0x270] sm:$0xf0] }
  0xd9   : > { %v7744_v14 = vpop.f32.mrf.mxu1  ;;  %v7753_v42 = vpop.f32.mrf.mxu3 }
  0xda   : > { %9573 = vst [vmem:[#allocation10_spill] sm:$0xff] %v7753_v42 }
  0xdc   : > { %v7751_v25 = vpop.f32.mrf.mxu0  ;;  %4694 = vmatmul.bf16.gmra.mxu1 %v5849_v4  ;;  %4793 = vmatmul.bf16.gmra.mxu2 %v5853_v22  ;;  %v1262_v4 = vld [vmem:[%s7027_s22 + $0x58] sm:$0xf]  ;;  %v1472_v22 = vshrl.u32 %v1261_v57, 16 }
  0xdd   : > { %v1482_v58 = vshrl.u32 %v1262_v4, 16  ;;  %v1485_v32 = vshll.u32 %v1262_v4, 16  ;;  %v1123_v4 = vrot.slane %v1008_v20, 5  ;;  %v6785_v20 = vld [vmem:[%s9522_s1 + $0x1d8] sm:$0xff] }
  0xde   : > { %4902 = vmatmul.bf16.gmra.mxu3 %v5929_v51  ;;  %v1474_v37 = vrot.slane %v1472_v22, 5 }
  0xdf   : > { %4991 = vmatmul.bf16.gmra.mxu0 %v5861_v30  ;;  %v7771_v2 = vpop.f32.mrf.mxu2  ;;  %v1475_v30 = vshll.u32 %v1261_v57, 16  ;;  %v496_v57 = vsel %vm7205_vm5, %v491_v8, %v7776_v21  ;;  %v1484_v41 = vrot.slane %v1482_v58, 5  ;;  %v1487_v5 = vrot.slane %v1485_v32, 6  ;;  %v5962_v58 = vld [vmem:[#allocation2 + $0x2b4] sm:$0xf0]  ;;  %5254 = vmatpush.bf16.msra.mxu3 %v6785_v20 }
  0xe0   : > { %9574 = vst [vmem:[#allocation11_spill] sm:$0xff] %v7771_v2  ;;  %v5889_v8 = vor.u32 %v6632_v34, %v5888_v48  ;;  %v1125_v1 = vrot.slane %v1123_v4, 4  ;;  %v503_v34 = vshll.u32 %v274_v49, 16 }
  0xe1   : > { %v7779_v26 = vpop.f32.mrf.mxu1  ;;  %v1477_v40 = vrot.slane %v1475_v30, 6  ;;  %v7792_v51 = vpop.f32.mrf.mxu3  ;;  %712 = vst [vmem:[#allocation2 + $0x2b0] sm:$0xf] %v496_v57  ;;  %v7802_v30 = vor.u32 %v1487_v5, %v1484_v41  ;;  %v507_v41 = vshrl.u32 %v274_v49, 16  ;;  %v1263_v5 = vld [vmem:[%s7027_s22 + $0x5c] sm:$0xf] }
  0xe2   : > { %v750_v49 = vld [vmem:[%s7027_s22 + $0x54] sm:$0xf] }
  0xe3   : > { %v1478_v18 = vor.u32 %v1477_v40, %v1474_v37  ;;  %v6646_v37 = vld [vmem:[#allocation2 + $0x294] sm:$0xf]  ;;  %v7805_v40 = vld [vmem:[%s7027_s22 + $0x60] sm:$0xf] }
  0xe4   : > { %v7785_v50 = vpop.f32.mrf.mxu0  ;;  %v9524_v48 = vrot.slane %v7805_v40, 5  ;;  %v5965_v19 = vor.u32 %v6646_v37, %v5962_v58  ;;  %v1492_v58 = vshrl.u32 %v1263_v5, 16 }
  0xe5   : > { %v1479_v0 = vsel %vm7247_vm8, %v1470_v44, %v1478_v18  ;;  %v1480_v13 = vrot.slane %v1478_v18, 4  ;;  %v497_v44 = vshrl.u32 %v7762_v55, 16  ;;  %v1122_v18 = vrot.slane %v1120_v33, 4  ;;  %v6777_v33 = vld [vmem:[%s9522_s1 + $0x198] sm:$0xff] }
  0xe6   : > { %1704 = vst [vmem:[#allocation2 + $0x298] sm:$0xf] %v1479_v0  ;;  %v1127_v0 = vsel %vm7160_vm2, %v1125_v1, %v9524_v48  ;;  %5155 = vmatpush.bf16.msra.mxu2 %v6777_v33  ;;  %v867_v1 = vrot.slane %v865_v7, 4  ;;  %v1495_v33 = vshll.u32 %v1263_v5, 16  ;;  %v6793_v5 = vld [vmem:[%s9522_s1 + $0x218] sm:$0xff] }
  0xe7   : > { %v7800_v22 = vpop.f32.mrf.mxu2  ;;  %v1489_v32 = vsel %vm7247_vm8, %v1480_v13, %v7802_v30  ;;  %v1124_v55 = vsel %vm7160_vm2, %v1122_v18, %v1123_v4  ;;  %v499_v17 = vrot.slane %v497_v44, 4  ;;  %v505_v13 = vrot.slane %v503_v34, 5  ;;  %1227 = vst [vmem:[#allocation2 + $0x300] sm:$0xf] %v1127_v0  ;;  %v7835_v4 = vld [vmem:[%s7027_s22 + $0x58] sm:$0xf]  ;;  %5353 = vmatpush.bf16.msra.mxu0 %v6793_v5 }
  0xe8   : > { %9575 = vst [vmem:[#allocation12_spill] sm:$0xff] %v7800_v22  ;;  %v513_v37 = vshll.u32 %v7835_v4, 16  ;;  %v7843_v18 = vld [vmem:[%s7027_s22 + $0x58] sm:$0xf]  ;;  %v868_v34 = vrot.slane %v750_v49, 5  ;;  %v1497_v49 = vrot.slane %v1495_v33, 6 }
  0xe9   : > { %v7808_v57 = vpop.f32.mrf.mxu1  ;;  %1705 = vst [vmem:[#allocation2 + $0x2bc] sm:$0xf] %v1489_v32  ;;  %v7819_v16 = vpop.f32.mrf.mxu3  ;;  %v5932_v33 = vld [vmem:[#allocation2 + $0x250] sm:$0xf]  ;;  %v517_v54 = vshrl.u32 %v7835_v4, 16 }
  0xea   : > { %1226 = vst [vmem:[#allocation2 + $0x2dc] sm:$0xf] %v1124_v55  ;;  %v9525_v55 = vrot.slane %v7843_v18, 5  ;;  %v870_v63 = vrot.slane %v868_v34, 4 }
  0xec   : > { %v7816_v43 = vpop.f32.mrf.mxu0  ;;  %4699 = vmatmul.bf16.gmra.mxu1 %v5885_v52  ;;  %4798 = vmatmul.bf16.gmra.mxu2 %v5889_v8  ;;  %v500_v52 = vor.u32 %v499_v17, %v7776_v21  ;;  %v509_v8 = vrot.slane %v507_v41, 4  ;;  %v7847_v21 = vrot.slane %v513_v37, 5  ;;  %v1264_v17 = vld [vmem:[%s7027_s22 + $0x60] sm:$0xf]  ;;  %v1494_v41 = vrot.slane %v1492_v58, 5 }
  0xed   : > { %v1490_v37 = vrot.slane %v7802_v30, 4  ;;  %v5918_v58 = vld [vmem:[#allocation2 + $0x264] sm:$0xf0]  ;;  %v1505_v48 = vshll.u32 %v1264_v17, 16  ;;  %v6641_v30 = vld [vmem:[#allocation2 + $0x268] sm:$0xf0] }
  0xee   : > { %v510_v32 = vor.u32 %v509_v8, %v505_v13  ;;  %4907 = vmatmul.bf16.gmra.mxu3 %v5965_v19  ;;  %v869_v8 = vsel %vm7160_vm2, %v867_v1, %v868_v34  ;;  %v6769_v19 = vld [vmem:[%s9522_s1 + $0x158] sm:$0xff]  ;;  %v872_v34 = vsel %vm7160_vm2, %v870_v63, %v9525_v55  ;;  %v1498_v42 = vor.u32 %v1497_v49, %v1494_v41  ;;  %v1010_v55 = vld [vmem:[%s7027_s22 + $0x64] sm:$0xf] }
  0xef   : > { %4996 = vmatmul.bf16.gmra.mxu0 %v5897_v3  ;;  %v7840_v44 = vpop.f32.mrf.mxu2  ;;  %v501_v3 = vrot.slane %v500_v52, 4  ;;  %971 = vst [vmem:[#allocation2 + $0x2d8] sm:$0xf] %v869_v8  ;;  %5056 = vmatpush.bf16.msra.mxu1 %v6769_v19  ;;  %v1507_v56 = vrot.slane %v1505_v48, 6  ;;  %v1129_v19 = vrot.slane %v1010_v55, 5  ;;  %v5933_v41 = vor.u32 %v6642_v23, %v5932_v33 }
  0xf0   : > { %9576 = vst [vmem:[#allocation13_spill] sm:$0xff] %v7840_v44  ;;  %v511_v52 = vrot.slane %v510_v32, 4  ;;  %v1499_v11 = vsel %vm7247_vm8, %v1490_v37, %v1498_v42  ;;  %v1500_v63 = vrot.slane %v1498_v42, 4  ;;  %v5998_v48 = vld [vmem:[#allocation2 + $0x2fc] sm:$0xf0]  ;;  %v9526_v23 = vrot.slane %v7883_v28, 5 }
  0xf1   : > { %v7851_v0 = vpop.f32.mrf.mxu1  ;;  %v506_v20 = vsel %vm7205_vm5, %v501_v3, %v505_v13  ;;  %v6636_v13 = vld [vmem:[#allocation2 + $0x244] sm:$0xf]  ;;  %v5924_v3 = vld [vmem:[#allocation2 + $0x248] sm:$0xf]  ;;  %v7866_v32 = vpop.f32.mrf.mxu3  ;;  %972 = vst [vmem:[#allocation2 + $0x2fc] sm:$0xf] %v872_v34 }
  0xf2   : > { %713 = vst [vmem:[#allocation2 + $0x2d4] sm:$0xf] %v506_v20  ;;  %v516_v1 = vsel %vm7205_vm5, %v511_v52, %v7847_v21  ;;  %v1502_v20 = vshrl.u32 %v1264_v17, 16  ;;  %v5921_v5 = vor.u32 %v6636_v13, %v5918_v58  ;;  %v6655_v49 = vld [vmem:[#allocation2 + $0x2dc] sm:$0xf]  ;;  %v1131_v55 = vrot.slane %v1129_v19, 4 }
  0xf3   : > { %714 = vst [vmem:[#allocation2 + $0x2f8] sm:$0xf] %v516_v1  ;;  %v5925_v1 = vor.u32 %v6641_v30, %v5924_v3  ;;  %v276_v34 = vld [vmem:[%s7027_s22 + $0x5c] sm:$0xf]  ;;  %v519_v3 = vrot.slane %v517_v54, 4 }
  0xf4   : > { %v7857_v7 = vpop.f32.mrf.mxu0  ;;  %v1504_v52 = vrot.slane %v1502_v20, 5  ;;  %1706 = vst [vmem:[#allocation2 + $0x2e0] sm:$0xf] %v1499_v11  ;;  %v523_v13 = vshll.u32 %v276_v34, 16  ;;  %v527_v30 = vshrl.u32 %v276_v34, 16  ;;  %v1133_v33 = vsel %vm7160_vm2, %v1131_v55, %v9526_v23 }
  0xf5   : > { %1229 = vst [vmem:[#allocation2 + $0x348] sm:$0xf] %v1133_v33  ;;  %v752_v34 = vld [vmem:[%s7027_s22 + $0x5c] sm:$0xf]  ;;  %v5954_v33 = vld [vmem:[#allocation2 + $0x2ac] sm:$0xf0] }
  0xf6   : > { %v7880_v17 = vor.u32 %v1507_v56, %v1504_v52  ;;  %v9578_v56 = vrot.slane %v7805_v40, 5  ;;  %v6001_v40 = vor.u32 %v6655_v49, %v5998_v48  ;;  %v7902_v52 = vld [vmem:[%s7027_s22 + $0x60] sm:$0xf]  ;;  %v529_v54 = vrot.slane %v527_v30, 4 }
  0xf7   : > { %v7878_v8 = vpop.f32.mrf.mxu2  ;;  %v7910_v49 = vld [vmem:[%s7027_s22 + $0x60] sm:$0xf]  ;;  %v874_v48 = vrot.slane %v752_v34, 5 }
  0xf8   : > { %9577 = vst [vmem:[#allocation14_spill] sm:$0xff] %v7878_v8  ;;  %v1509_v42 = vsel %vm7247_vm8, %v1500_v63, %v7880_v17  ;;  %v1128_v11 = vrot.slane %v9578_v56, 4  ;;  %v1265_v63 = vld [vmem:[%s7027_s22 + $0x64] sm:$0xf] }
  0xf9   : > { %v4665_v20 = vpop.f32.mrf.mxu1  ;;  %1707 = vst [vmem:[#allocation2 + $0x304] sm:$0xf] %v1509_v42  ;;  %v7893_v58 = vpop.f32.mrf.mxu3  ;;  %v520_v42 = vor.u32 %v519_v3, %v7847_v21  ;;  %v876_v3 = vrot.slane %v874_v48, 4 }
  0xfa   : > { %v1130_v4 = vsel %vm7160_vm2, %v1128_v11, %v1129_v19  ;;  %v525_v19 = vrot.slane %v523_v13, 5 }
  0xfb   : > { %1228 = vst [vmem:[#allocation2 + $0x324] sm:$0xf] %v1130_v4  ;;  %v521_v11 = vrot.slane %v520_v42, 4  ;;  %v9579_v4 = vrot.slane %v7843_v18, 5 }
  0xfc   : > { %v4962_v37 = vpop.f32.mrf.mxu0  ;;  %4704 = vmatmul.bf16.gmra.mxu1 %v5921_v5  ;;  %4803 = vmatmul.bf16.gmra.mxu2 %v5925_v1  ;;  %v4666_v5 = vadd.f32 %v4665_v20, %v7543_v47  ;;  %v533_v1 = vshll.u32 %v7902_v52, 16  ;;  %v530_v55 = vor.u32 %v529_v54, %v525_v19  ;;  %v1512_v47 = vshrl.u32 %v1265_v63, 16  ;;  %v1266_v54 = vld [vmem:[%s7027_s22 + $0x68] sm:$0xf] }
  0xfd   : > { %v526_v30 = vsel %vm7205_vm5, %v521_v11, %v525_v19  ;;  %v5968_v11 = vld [vmem:[#allocation2 + $0x298] sm:$0xf] }
  0xfe   : > { %4912 = vmatmul.bf16.gmra.mxu3 %v6001_v40  ;;  %v7915_v13 = vrot.slane %v533_v1, 5  ;;  %v531_v23 = vrot.slane %v530_v55, 4  ;;  %715 = vst [vmem:[#allocation2 + $0x31c] sm:$0xf] %v526_v30  ;;  %v9580_v40 = vrot.slane %v7910_v49, 5  ;;  %v1522_v55 = vshrl.u32 %v1266_v54, 16 }
  0xff   : > { %5001 = vmatmul.bf16.gmra.mxu0 %v5933_v41  ;;  %v4764_v56 = vpop.f32.mrf.mxu2  ;;  %v873_v41 = vrot.slane %v9579_v4, 4  ;;  %v6645_v4 = vld [vmem:[#allocation2 + $0x28c] sm:$0xf]  ;;  %v5960_v1 = vld [vmem:[#allocation2 + $0x290] sm:$0xf] }
 0x100   : > { %v4765_v21 = vadd.f32 %v4764_v56, %v4666_v5  ;;  %v878_v5 = vsel %vm7160_vm2, %v876_v3, %v9580_v40  ;;  %v6650_v56 = vld [vmem:[#allocation2 + $0x2b0] sm:$0xf0]  ;;  %v536_v19 = vsel %vm7205_vm5, %v531_v23, %v7915_v13  ;;  %v6651_v30 = vld [vmem:[#allocation2 + $0x2b8] sm:$0xf0]  ;;  %v1510_v3 = vrot.slane %v7880_v17, 4 }
 0x101   : > { %v4667_v20 = vpop.f32.mrf.mxu1  ;;  %v875_v42 = vsel %vm7160_vm2, %v873_v41, %v874_v48  ;;  %v7927_v8 = vpop.f32.mrf.mxu3  ;;  %v1515_v48 = vshll.u32 %v1265_v63, 16  ;;  %716 = vst [vmem:[#allocation2 + $0x340] sm:$0xf] %v536_v19  ;;  %v1525_v41 = vshll.u32 %v1266_v54, 16  ;;  %v1524_v23 = vrot.slane %v1522_v55, 5 }
 0x102   : > { %v4864_v18 = vadd.f32 %v7792_v51, %v4765_v21  ;;  %973 = vst [vmem:[#allocation2 + $0x320] sm:$0xf] %v875_v42  ;;  %v1514_v51 = vrot.slane %v1512_v47, 5  ;;  %v4668_v44 = vadd.f32 %v4667_v20, %v7579_v27  ;;  %v1012_v42 = vld [vmem:[%s7027_s22 + $0x6c] sm:$0xf]  ;;  %v5957_v63 = vor.u32 %v6645_v4, %v5954_v33 }
 0x103   : > { %974 = vst [vmem:[#allocation2 + $0x344] sm:$0xf] %v878_v5  ;;  %v1517_v40 = vrot.slane %v1515_v48, 6  ;;  %v1527_v22 = vrot.slane %v1525_v41, 6  ;;  %v1135_v19 = vrot.slane %v1012_v42, 5  ;;  %v5961_v54 = vor.u32 %v6650_v56, %v5960_v1 }
 0x104   : > { %v4964_v34 = vpop.f32.mrf.mxu0  ;;  %v7932_v21 = vadd.f32 %v4962_v37, %v4864_v18  ;;  %v5969_v37 = vor.u32 %v6651_v30, %v5968_v11  ;;  %v6664_v18 = vld [vmem:[#allocation2 + $0x324] sm:$0xf]  ;;  %v7940_v5 = vld [vmem:[%s7027_s22 + $0x70] sm:$0xf]  ;;  %v6034_v48 = vld [vmem:[#allocation2 + $0x344] sm:$0xf0] }
 0x105   : > { %v1518_v2 = vor.u32 %v1517_v40, %v1514_v51  ;;  %v278_v17 = vld [vmem:[%s7027_s22 + $0x64] sm:$0xf]  ;;  %v537_v27 = vshrl.u32 %v7902_v52, 16  ;;  %v9582_v33 = vrot.slane %v7883_v28, 5  ;;  %v1137_v1 = vrot.slane %v1135_v19, 4 }
 0x106   : > { %9581 = vst [vmem:[#allocation15_spill] sm:$0xff] %v7932_v21  ;;  %v7937_v21 = vor.u32 %v1527_v22, %v1524_v23  ;;  %v9528_v56 = vrot.slane %v7940_v5, 5  ;;  %v543_v11 = vshll.u32 %v278_v17, 16  ;;  %v7964_v41 = vld [vmem:[%s7027_s22 + $0x68] sm:$0xf]  ;;  %v547_v42 = vshrl.u32 %v278_v17, 16 }
 0x107   : > { %v4766_v47 = vpop.f32.mrf.mxu2  ;;  %v1519_v20 = vsel %vm7247_vm8, %v1510_v3, %v1518_v2  ;;  %v1520_v55 = vrot.slane %v1518_v2, 4  ;;  %v1134_v4 = vrot.slane %v9582_v33, 4  ;;  %v539_v2 = vrot.slane %v537_v27, 4  ;;  %v1267_v30 = vld [vmem:[%s7027_s22 + $0x6c] sm:$0xf] }
 0x108   : > { %v4767_v6 = vadd.f32 %v4766_v47, %v4668_v44  ;;  %1708 = vst [vmem:[#allocation2 + $0x328] sm:$0xf] %v1519_v20  ;;  %v545_v23 = vrot.slane %v543_v11, 5  ;;  %v754_v47 = vld [vmem:[%s7027_s22 + $0x64] sm:$0xf]  ;;  %v1532_v33 = vshrl.u32 %v1267_v30, 16 }
 0x109   : > { %v4670_v15 = vpop.f32.mrf.mxu1  ;;  %v7952_v51 = vpop.f32.mrf.mxu3  ;;  %v1529_v52 = vsel %vm7247_vm8, %v1520_v55, %v7937_v21  ;;  %v1136_v28 = vsel %vm7160_vm2, %v1134_v4, %v1135_v19  ;;  %v540_v40 = vor.u32 %v539_v2, %v7915_v13  ;;  %v553_v19 = vshll.u32 %v7964_v41, 16  ;;  %v6654_v2 = vld [vmem:[#allocation2 + $0x2d4] sm:$0xf]  ;;  %v5990_v11 = vld [vmem:[#allocation2 + $0x2f4] sm:$0xf0] }
 0x10a   : > { %v4866_v44 = vadd.f32 %v7819_v16, %v4767_v6  ;;  %v6037_v6 = vor.u32 %v6664_v18, %v6034_v48  ;;  %1709 = vst [vmem:[#allocation2 + $0x34c] sm:$0xf] %v1529_v52  ;;  %v1139_v16 = vsel %vm7160_vm2, %v1137_v1, %v9528_v56  ;;  %v880_v18 = vrot.slane %v754_v47, 5  ;;  %v1268_v52 = vld [vmem:[%s7027_s22 + $0x70] sm:$0xf] }
 0x10b   : > { %1230 = vst [vmem:[#allocation2 + $0x36c] sm:$0xf] %v1136_v28  ;;  %v541_v27 = vrot.slane %v540_v40, 4  ;;  %v6768_v40 = vld [vmem:[%s9522_s1 + $0x150] sm:$0xff] }
 0x10c   : > { %v7949_v22 = vpop.f32.mrf.mxu0  ;;  %4709 = vmatmul.bf16.gmra.mxu1 %v5957_v63  ;;  %4808 = vmatmul.bf16.gmra.mxu2 %v5961_v54  ;;  %v7967_v3 = vadd.f32 %v4964_v34, %v4866_v44  ;;  %v4671_v63 = vadd.f32 %v4670_v15, %v7608_v31  ;;  %1231 = vst [vmem:[#allocation2 + $0x390] sm:$0xf] %v1139_v16  ;;  %v7974_v54 = vld [vmem:[%s7027_s22 + $0x68] sm:$0xf]  ;;  %v549_v34 = vrot.slane %v547_v42, 4  ;;  %v882_v17 = vrot.slane %v880_v18, 4 }
 0x10d   : > { %v9527_v13 = vrot.slane %v7974_v54, 5  ;;  %v546_v15 = vsel %vm7205_vm5, %v541_v27, %v545_v23  ;;  %v7981_v44 = vrot.slane %v553_v19, 5  ;;  %v6784_v16 = vld [vmem:[%s9522_s1 + $0x1d0] sm:$0xff]  ;;  %v1535_v19 = vshll.u32 %v1267_v30, 16  ;;  %5057 = vmatpush.bf16.msra.mxu1 %v6768_v40 }
 0x10e   : > { %4917 = vmatmul.bf16.gmra.mxu3 %v6037_v6  ;;  %v550_v4 = vor.u32 %v549_v34, %v545_v23  ;;  %v6776_v6 = vld [vmem:[%s9522_s1 + $0x190] sm:$0xff]  ;;  %717 = vst [vmem:[#allocation2 + $0x364] sm:$0xf] %v546_v15  ;;  %v5996_v23 = vld [vmem:[#allocation2 + $0x2d8] sm:$0xf]  ;;  %v1545_v27 = vshll.u32 %v1268_v52, 16 }
 0x10f   : > { %5006 = vmatmul.bf16.gmra.mxu0 %v5969_v37  ;;  %v4769_v48 = vpop.f32.mrf.mxu2  ;;  %v9583_v37 = vrot.slane %v7910_v49, 5  ;;  %5156 = vmatpush.bf16.msra.mxu2 %v6776_v6  ;;  %v1537_v30 = vrot.slane %v1535_v19, 6 }
 0x110   : > { %v4770_v55 = vadd.f32 %v4769_v48, %v4671_v63  ;;  %v551_v47 = vrot.slane %v550_v4, 4  ;;  %v1534_v63 = vrot.slane %v1532_v33, 5  ;;  %5255 = vmatpush.bf16.msra.mxu3 %v6784_v16  ;;  %v1542_v48 = vshrl.u32 %v1268_v52, 16 }
 0x111   : > { %v879_v20 = vrot.slane %v9583_v37, 4  ;;  %v4672_v31 = vpop.f32.mrf.mxu1  ;;  %v8002_v42 = vpop.f32.mrf.mxu3  ;;  %v6004_v37 = vld [vmem:[#allocation2 + $0x2e0] sm:$0xf]  ;;  %v1547_v4 = vrot.slane %v1545_v27, 6  ;;  %v6792_v27 = vld [vmem:[%s9522_s1 + $0x210] sm:$0xff] }
 0x112   : > { %v4869_v49 = vadd.f32 %v7866_v32, %v4770_v55  ;;  %v884_v32 = vsel %vm7160_vm2, %v882_v17, %v9527_v13  ;;  %v556_v55 = vsel %vm7205_vm5, %v551_v47, %v7981_v44  ;;  %v1530_v17 = vrot.slane %v7937_v21, 4  ;;  %v6673_v13 = vld [vmem:[#allocation2 + $0x36c] sm:$0xf]  ;;  %v8016_v21 = vld [vmem:[%s7027_s22 + $0x78] sm:$0xf]  ;;  %5354 = vmatpush.bf16.msra.mxu0 %v6792_v27 }
 0x113   : > { %v881_v1 = vsel %vm7160_vm2, %v879_v20, %v880_v18  ;;  %v6659_v18 = vld [vmem:[#allocation2 + $0x2f8] sm:$0xf0]  ;;  %976 = vst [vmem:[#allocation2 + $0x38c] sm:$0xf] %v884_v32  ;;  %v6660_v20 = vld [vmem:[#allocation2 + $0x300] sm:$0xf0]  ;;  %v4673_v33 = vadd.f32 %v4672_v31, %v7641_v61 }
 0x114   : > { %v7987_v28 = vpop.f32.mrf.mxu0  ;;  %975 = vst [vmem:[#allocation2 + $0x368] sm:$0xf] %v881_v1  ;;  %v8005_v34 = vadd.f32 %v7949_v22, %v4869_v49  ;;  %v1544_v15 = vrot.slane %v1542_v48, 5  ;;  %v1014_v1 = vld [vmem:[%s7027_s22 + $0x74] sm:$0xf]  ;;  %v5993_v22 = vor.u32 %v6654_v2, %v5990_v11  ;;  %v1538_v49 = vor.u32 %v1537_v30, %v1534_v63 }
 0x115   : > { %718 = vst [vmem:[#allocation2 + $0x388] sm:$0xf] %v556_v55  ;;  %v1141_v6 = vrot.slane %v1014_v1, 5  ;;  %v5997_v40 = vor.u32 %v6659_v18, %v5996_v23  ;;  %v6005_v32 = vor.u32 %v6660_v20, %v6004_v37  ;;  %v6070_v47 = vld [vmem:[#allocation2 + $0x38c] sm:$0xf0]  ;;  %v557_v61 = vshrl.u32 %v7964_v41, 16 }
 0x116   : > { %v8013_v56 = vor.u32 %v1547_v4, %v1544_v15  ;;  %v1539_v31 = vsel %vm7247_vm8, %v1530_v17, %v1538_v49  ;;  %v1540_v48 = vrot.slane %v1538_v49, 4  ;;  %v9584_v2 = vrot.slane %v7940_v5, 5  ;;  %v280_v63 = vld [vmem:[%s7027_s22 + $0x6c] sm:$0xf]  ;;  %v1269_v17 = vld [vmem:[%s7027_s22 + $0x74] sm:$0xf] }
 0x117   : > { %v4771_v52 = vpop.f32.mrf.mxu2  ;;  %1710 = vst [vmem:[#allocation2 + $0x370] sm:$0xf] %v1539_v31  ;;  %v1143_v37 = vrot.slane %v1141_v6, 4  ;;  %v1144_v55 = vrot.slane %v8016_v21, 5  ;;  %v6073_v30 = vor.u32 %v6673_v13, %v6070_v47  ;;  %v563_v15 = vshll.u32 %v280_v63, 16 }
 0x118   : > { %v4772_v16 = vadd.f32 %v4771_v52, %v4673_v33  ;;  %v1140_v11 = vrot.slane %v9584_v2, 4  ;;  %v1549_v20 = vsel %vm7247_vm8, %v1540_v48, %v8013_v56  ;;  %v8040_v33 = vld [vmem:[%s7027_s22 + $0x70] sm:$0xf]  ;;  %v567_v4 = vshrl.u32 %v280_v63, 16 }
 0x119   : > { %v4675_v19 = vpop.f32.mrf.mxu1  ;;  %v8030_v41 = vpop.f32.mrf.mxu3  ;;  %1711 = vst [vmem:[#allocation2 + $0x394] sm:$0xf] %v1549_v20  ;;  %v1145_v52 = vsel %vm7160_vm2, %v1143_v37, %v1144_v55  ;;  %v573_v13 = vshll.u32 %v8040_v33, 16  ;;  %v1552_v49 = vshrl.u32 %v1269_v17, 16  ;;  %v9585_v31 = vrot.slane %v7974_v54, 5 }
 0x11a   : > { %v4871_v23 = vadd.f32 %v7893_v58, %v4772_v16  ;;  %v1142_v5 = vsel %vm7160_vm2, %v1140_v11, %v1141_v6  ;;  %v559_v58 = vrot.slane %v557_v61, 4  ;;  %v4676_v6 = vadd.f32 %v4675_v19, %v7676_v46  ;;  %1233 = vst [vmem:[#allocation2 + $0x3d8] sm:$0xf] %v1145_v52  ;;  %v8054_v61 = vld [vmem:[%s7027_s22 + $0x70] sm:$0xf] }
 0x11b   : > { %1232 = vst [vmem:[#allocation2 + $0x3b4] sm:$0xf] %v1142_v5  ;;  %v565_v16 = vrot.slane %v563_v15, 5  ;;  %v885_v48 = vrot.slane %v9585_v31, 4  ;;  %v8058_v63 = vrot.slane %v573_v13, 5  ;;  %v889_v46 = vrot.slane %v8054_v61, 5 }
 0x11c   : > { %v8025_v18 = vpop.f32.mrf.mxu0  ;;  %4714 = vmatmul.bf16.gmra.mxu1 %v5993_v22  ;;  %4813 = vmatmul.bf16.gmra.mxu2 %v5997_v40  ;;  %v8043_v1 = vadd.f32 %v7987_v28, %v4871_v23  ;;  %v560_v22 = vor.u32 %v559_v58, %v7981_v44  ;;  %v569_v28 = vrot.slane %v567_v4, 4  ;;  %v756_v40 = vld [vmem:[%s7027_s22 + $0x6c] sm:$0xf]  ;;  %v1270_v19 = vld [vmem:[%s7027_s22 + $0x78] sm:$0xf]  ;;  %v1555_v4 = vshll.u32 %v1269_v17, 16 }
 0x11d   : > { %v886_v2 = vrot.slane %v756_v40, 5  ;;  %v6663_v58 = vld [vmem:[#allocation2 + $0x31c] sm:$0xf]  ;;  %v6032_v52 = vld [vmem:[#allocation2 + $0x320] sm:$0xf]  ;;  %v1550_v17 = vrot.slane %v8013_v56, 4 }
 0x11e   : > { %v561_v47 = vrot.slane %v560_v22, 4  ;;  %4922 = vmatmul.bf16.gmra.mxu3 %v6073_v30  ;;  %v570_v11 = vor.u32 %v569_v28, %v565_v16  ;;  %v1554_v30 = vrot.slane %v1552_v49, 5  ;;  %v6026_v28 = vld [vmem:[#allocation2 + $0x33c] sm:$0xf0]  ;;  %v1557_v49 = vrot.slane %v1555_v4, 6 }
 0x11f   : > { %5011 = vmatmul.bf16.gmra.mxu0 %v6005_v32  ;;  %v4774_v32 = vpop.f32.mrf.mxu2  ;;  %v887_v37 = vsel %vm7160_vm2, %v885_v48, %v886_v2  ;;  %v888_v20 = vrot.slane %v886_v2, 4  ;;  %v6040_v2 = vld [vmem:[#allocation2 + $0x328] sm:$0xf] }
 0x120   : > { %v4775_v44 = vadd.f32 %v4774_v32, %v4676_v6  ;;  %v566_v27 = vsel %vm7205_vm5, %v561_v47, %v565_v16  ;;  %v571_v15 = vrot.slane %v570_v11, 4  ;;  %977 = vst [vmem:[#allocation2 + $0x3b0] sm:$0xf] %v887_v37  ;;  %v1562_v6 = vshrl.u32 %v1270_v19, 16  ;;  %v6668_v32 = vld [vmem:[#allocation2 + $0x340] sm:$0xf0] }
 0x121   : > { %v4677_v23 = vpop.f32.mrf.mxu1  ;;  %719 = vst [vmem:[#allocation2 + $0x3ac] sm:$0xf] %v566_v27  ;;  %v8067_v22 = vpop.f32.mrf.mxu3  ;;  %v890_v13 = vsel %vm7160_vm2, %v888_v20, %v889_v46  ;;  %v1565_v16 = vshll.u32 %v1270_v19, 16  ;;  %v1558_v11 = vor.u32 %v1557_v49, %v1554_v30  ;;  %v1016_v19 = vld [vmem:[%s7027_s22 + $0x7c] sm:$0xf]  ;;  %v6029_v37 = vor.u32 %v6663_v58, %v6026_v28 }
 0x122   : > { %v4874_v54 = vadd.f32 %v7927_v8, %v4775_v44  ;;  %v576_v8 = vsel %vm7205_vm5, %v571_v15, %v8058_v63  ;;  %978 = vst [vmem:[#allocation2 + $0x3d4] sm:$0xf] %v890_v13  ;;  %v1564_v47 = vrot.slane %v1562_v6, 5  ;;  %v4678_v48 = vadd.f32 %v4677_v23, %v7717_v36  ;;  %v6669_v44 = vld [vmem:[#allocation2 + $0x348] sm:$0xf0] }
 0x123   : > { %720 = vst [vmem:[#allocation2 + $0x3d0] sm:$0xf] %v576_v8  ;;  %v1567_v31 = vrot.slane %v1565_v16, 6  ;;  %v1147_v56 = vrot.slane %v1016_v19, 5  ;;  %v1559_v4 = vsel %vm7247_vm8, %v1550_v17, %v1558_v11  ;;  %v1560_v13 = vrot.slane %v1558_v11, 4 }
 0x124   : > { %v4974_v5 = vpop.f32.mrf.mxu0  ;;  %v8078_v40 = vadd.f32 %v8025_v18, %v4874_v54  ;;  %v6033_v18 = vor.u32 %v6668_v32, %v6032_v52  ;;  %v6682_v54 = vld [vmem:[#allocation2 + $0x3b4] sm:$0xf]  ;;  %v8087_v6 = vld [vmem:[%s7027_s22 + $0x80] sm:$0xf]  ;;  %v6041_v23 = vor.u32 %v6669_v44, %v6040_v2  ;;  %v6106_v16 = vld [vmem:[#allocation2 + $0x3d4] sm:$0xf0] }
 0x125   : > { %v8082_v20 = vor.u32 %v1567_v31, %v1564_v47  ;;  %v577_v30 = vshrl.u32 %v8040_v33, 16  ;;  %1712 = vst [vmem:[#allocation2 + $0x3b8] sm:$0xf] %v1559_v4  ;;  %v1146_v58 = vrot.slane %v1144_v55, 4  ;;  %v1149_v17 = vrot.slane %v1147_v56, 4 }
 0x126   : > { %v282_v49 = vld [vmem:[%s7027_s22 + $0x74] sm:$0xf]  ;;  %v1150_v21 = vrot.slane %v8087_v6, 5  ;;  %v8105_v47 = vld [vmem:[%s7027_s22 + $0x78] sm:$0xf] }
 0x127   : > { %v4776_v27 = vpop.f32.mrf.mxu2  ;;  %v1569_v8 = vsel %vm7247_vm8, %v1560_v13, %v8082_v20  ;;  %v1148_v33 = vsel %vm7160_vm2, %v1146_v58, %v1147_v56  ;;  %v579_v55 = vrot.slane %v577_v30, 4  ;;  %v583_v44 = vshll.u32 %v282_v49, 16  ;;  %v758_v11 = vld [vmem:[%s7027_s22 + $0x74] sm:$0xf] }
 0x128   : > { %v4777_v15 = vadd.f32 %v4776_v27, %v4678_v48  ;;  %1713 = vst [vmem:[#allocation2 + $0x3dc] sm:$0xf] %v1569_v8  ;;  %v1151_v48 = vsel %vm7160_vm2, %v1149_v17, %v1150_v21  ;;  %v587_v27 = vshrl.u32 %v282_v49, 16  ;;  %v892_v4 = vrot.slane %v758_v11, 5  ;;  %v6677_v17 = vld [vmem:[#allocation2 + $0x388] sm:$0xf0] }
 0x129   : > { %v4680_v36 = vpop.f32.mrf.mxu1  ;;  %v8099_v32 = vpop.f32.mrf.mxu3  ;;  %1234 = vst [vmem:[#allocation2 + $0x3fc] sm:$0xf] %v1148_v33  ;;  %v580_v2 = vor.u32 %v579_v55, %v8058_v63  ;;  %v6775_v49 = vld [vmem:[%s9522_s1 + $0x188] sm:$0xff] }
 0x12a   : > { %v4876_v28 = vadd.f32 %v7952_v51, %v4777_v15  ;;  %v6109_v51 = vor.u32 %v6682_v54, %v6106_v16  ;;  %v4681_v19 = vadd.f32 %v4680_v36, %v7751_v25  ;;  %1235 = vst [vmem:[#allocation2 + $0x420] sm:$0xf] %v1151_v48  ;;  %v891_v54 = vrot.slane %v889_v46, 4  ;;  %v1271_v25 = vld [vmem:[%s7027_s22 + $0x7c] sm:$0xf]  ;;  %v6783_v33 = vld [vmem:[%s9522_s1 + $0x1c8] sm:$0xff]  ;;  %5157 = vmatpush.bf16.msra.mxu2 %v6775_v49 }
 0x12b   : > { %v581_v15 = vrot.slane %v580_v2, 4  ;;  %v589_v13 = vrot.slane %v587_v27, 4  ;;  %v894_v58 = vrot.slane %v892_v4, 4  ;;  %v6068_v46 = vld [vmem:[#allocation2 + $0x368] sm:$0xf]  ;;  %v1575_v27 = vshll.u32 %v1271_v25, 16  ;;  %5256 = vmatpush.bf16.msra.mxu3 %v6783_v33 }
 0x12c   : > { %v8093_v52 = vpop.f32.mrf.mxu0  ;;  %4719 = vmatmul.bf16.gmra.mxu1 %v6029_v37  ;;  %4818 = vmatmul.bf16.gmra.mxu2 %v6033_v18  ;;  %v8107_v31 = vadd.f32 %v4974_v5, %v4876_v28  ;;  %v593_v37 = vshll.u32 %v8105_v47, 16  ;;  %v8118_v5 = vld [vmem:[%s7027_s22 + $0x78] sm:$0xf]  ;;  %v585_v18 = vrot.slane %v583_v44, 5  ;;  %v893_v30 = vsel %vm7160_vm2, %v891_v54, %v892_v4  ;;  %v1272_v28 = vld [vmem:[%s7027_s22 + $0x80] sm:$0xf] }
 0x12d   : > { %v6672_v48 = vld [vmem:[#allocation2 + $0x364] sm:$0xf]  ;;  %v6062_v2 = vld [vmem:[#allocation2 + $0x384] sm:$0xf0]  ;;  %v6076_v44 = vld [vmem:[#allocation2 + $0x370] sm:$0xf] }
 0x12e   : > { %4927 = vmatmul.bf16.gmra.mxu3 %v6109_v51  ;;  %v586_v16 = vsel %vm7205_vm5, %v581_v15, %v585_v18  ;;  %v590_v55 = vor.u32 %v589_v13, %v585_v18  ;;  %v8138_v51 = vrot.slane %v593_v37, 5  ;;  %979 = vst [vmem:[#allocation2 + $0x3f8] sm:$0xf] %v893_v30  ;;  %v1582_v37 = vshrl.u32 %v1272_v28, 16  ;;  %v6678_v54 = vld [vmem:[#allocation2 + $0x390] sm:$0xf0] }
 0x12f   : > { %5016 = vmatmul.bf16.gmra.mxu0 %v6041_v23  ;;  %v4779_v56 = vpop.f32.mrf.mxu2  ;;  %v9529_v23 = vrot.slane %v8118_v5, 5  ;;  %721 = vst [vmem:[#allocation2 + $0x3f4] sm:$0xf] %v586_v16  ;;  %v1585_v15 = vshll.u32 %v1272_v28, 16  ;;  %v1570_v4 = vrot.slane %v8082_v20, 4  ;;  %v1577_v13 = vrot.slane %v1575_v27, 6 }
 0x130   : > { %v4780_v63 = vadd.f32 %v4779_v56, %v4681_v19  ;;  %v1572_v19 = vshrl.u32 %v1271_v25, 16  ;;  %v591_v56 = vrot.slane %v590_v55, 4  ;;  %v1584_v30 = vrot.slane %v1582_v37, 5  ;;  %v1018_v49 = vld [vmem:[%s7027_s22 + $0x84] sm:$0xf] }
 0x131   : > { %v4682_v36 = vpop.f32.mrf.mxu1  ;;  %v896_v11 = vsel %vm7160_vm2, %v894_v58, %v9529_v23  ;;  %v1587_v58 = vrot.slane %v1585_v15, 6  ;;  %v6069_v28 = vor.u32 %v6677_v17, %v6068_v46  ;;  %v6065_v20 = vor.u32 %v6672_v48, %v6062_v2  ;;  %v6142_v27 = vld [vmem:[#allocation2 + $0x41c] sm:$0xf0]  ;;  %v284_v15 = vld [vmem:[%s7027_s22 + $0x7c] sm:$0xf] }
 0x132   : > { %v4879_v8 = vadd.f32 %v8002_v42, %v4780_v63  ;;  %v8140_v42 = vpop.f32.mrf.mxu3  ;;  %980 = vst [vmem:[#allocation2 + $0x41c] sm:$0xf] %v896_v11  ;;  %v1574_v63 = vrot.slane %v1572_v19, 5  ;;  %v4683_v16 = vadd.f32 %v4682_v36, %v7785_v50  ;;  %v596_v25 = vsel %vm7205_vm5, %v591_v56, %v8138_v51  ;;  %v6691_v19 = vld [vmem:[#allocation2 + $0x3fc] sm:$0xf] }
 0x133   : > { %722 = vst [vmem:[#allocation2 + $0x418] sm:$0xf] %v596_v25  ;;  %v6077_v11 = vor.u32 %v6678_v54, %v6076_v44  ;;  %v8155_v50 = vor.u32 %v1587_v58, %v1584_v30  ;;  %v8158_v36 = vld [vmem:[%s7027_s22 + $0x88] sm:$0xf]  ;;  %v597_v56 = vshrl.u32 %v8105_v47, 16  ;;  %v1152_v17 = vrot.slane %v1150_v21, 4 }
 0x134   : > { %v8130_v61 = vpop.f32.mrf.mxu0  ;;  %v8147_v18 = vadd.f32 %v8093_v52, %v4879_v8  ;;  %v1578_v52 = vor.u32 %v1577_v13, %v1574_v63  ;;  %v1153_v8 = vrot.slane %v1018_v49, 5  ;;  %v6767_v44 = vld [vmem:[%s9522_s1 + $0x148] sm:$0xff]  ;;  %v9530_v21 = vrot.slane %v8158_v36, 5  ;;  %v8181_v13 = vld [vmem:[%s7027_s22 + $0x80] sm:$0xf] }
 0x135   : > { %v6145_v63 = vor.u32 %v6691_v19, %v6142_v27  ;;  %v607_v25 = vshrl.u32 %v284_v15, 16  ;;  %5058 = vmatpush.bf16.msra.mxu1 %v6767_v44  ;;  %v6791_v58 = vld [vmem:[%s9522_s1 + $0x208] sm:$0xff]  ;;  %v8199_v27 = vld [vmem:[%s7027_s22 + $0x80] sm:$0xf] }
 0x136   : > { %v1579_v37 = vsel %vm7247_vm8, %v1570_v4, %v1578_v52  ;;  %v1580_v46 = vrot.slane %v1578_v52, 4  ;;  %v1155_v54 = vrot.slane %v1153_v8, 4  ;;  %v1154_v6 = vsel %vm7160_vm2, %v1152_v17, %v1153_v8  ;;  %v760_v52 = vld [vmem:[%s7027_s22 + $0x7c] sm:$0xf]  ;;  %5355 = vmatpush.bf16.msra.mxu0 %v6791_v58  ;;  %v1274_v44 = vld [vmem:[%s7027_s22 + $0x88] sm:$0xf] }
 0x137   : > { %v4781_v33 = vpop.f32.mrf.mxu2  ;;  %1714 = vst [vmem:[#allocation2 + $0x400] sm:$0xf] %v1579_v37  ;;  %v6681_v58 = vld [vmem:[#allocation2 + $0x3ac] sm:$0xf] }
 0x138   : > { %v4782_v55 = vadd.f32 %v4781_v33, %v4683_v16  ;;  %v1589_v4 = vsel %vm7247_vm8, %v1580_v46, %v8155_v50  ;;  %v603_v16 = vshll.u32 %v284_v15, 16  ;;  %v1157_v49 = vsel %vm7160_vm2, %v1155_v54, %v9530_v21  ;;  %1236 = vst [vmem:[#allocation2 + $0x444] sm:$0xf] %v1154_v6 }
 0x139   : > { %v4685_v23 = vpop.f32.mrf.mxu1  ;;  %1715 = vst [vmem:[#allocation2 + $0x424] sm:$0xf] %v1589_v4  ;;  %v898_v15 = vrot.slane %v760_v52, 5 }
 0x13a   : > { %v4881_v48 = vadd.f32 %v8030_v41, %v4782_v55  ;;  %v8172_v47 = vpop.f32.mrf.mxu3  ;;  %v599_v41 = vrot.slane %v597_v56, 4  ;;  %1237 = vst [vmem:[#allocation2 + $0x468] sm:$0xf] %v1157_v49  ;;  %v605_v8 = vrot.slane %v603_v16, 5  ;;  %v609_v55 = vrot.slane %v607_v25, 4 }
 0x13b   : > { %v9586_v56 = vrot.slane %v8118_v5, 5  ;;  %v6104_v5 = vld [vmem:[#allocation2 + $0x3b0] sm:$0xf]  ;;  %v6686_v16 = vld [vmem:[#allocation2 + $0x3d0] sm:$0xf0] }
 0x13c   : > { %v8167_v2 = vpop.f32.mrf.mxu0  ;;  %4724 = vmatmul.bf16.gmra.mxu1 %v6065_v20  ;;  %4823 = vmatmul.bf16.gmra.mxu2 %v6069_v28  ;;  %v8184_v30 = vadd.f32 %v8130_v61, %v4881_v48  ;;  %v600_v33 = vor.u32 %v599_v41, %v8138_v51  ;;  %v613_v28 = vshll.u32 %v8181_v13, 16  ;;  %v4686_v61 = vadd.f32 %v4685_v23, %v7816_v43  ;;  %v1273_v20 = vld [vmem:[%s7027_s22 + $0x84] sm:$0xf]  ;;  %v6098_v49 = vld [vmem:[#allocation2 + $0x3cc] sm:$0xf0] }
 0x13d   : > { %v897_v37 = vrot.slane %v9586_v56, 4  ;;  %v610_v51 = vor.u32 %v609_v55, %v605_v8  ;;  %v9531_v48 = vrot.slane %v8199_v27, 5  ;;  %v1592_v54 = vshrl.u32 %v1273_v20, 16 }
 0x13e   : > { %v601_v19 = vrot.slane %v600_v33, 4  ;;  %4932 = vmatmul.bf16.gmra.mxu3 %v6145_v63  ;;  %v8203_v17 = vrot.slane %v613_v28, 5  ;;  %v1595_v4 = vshll.u32 %v1273_v20, 16  ;;  %v900_v28 = vrot.slane %v898_v15, 4 }
 0x13f   : > { %5021 = vmatmul.bf16.gmra.mxu0 %v6077_v11  ;;  %v4784_v11 = vpop.f32.mrf.mxu2  ;;  %v611_v25 = vrot.slane %v610_v51, 4  ;;  %v899_v63 = vsel %vm7160_vm2, %v897_v37, %v898_v15  ;;  %v1594_v52 = vrot.slane %v1592_v54, 5  ;;  %v1602_v20 = vshrl.u32 %v1274_v44, 16  ;;  %v1020_v15 = vld [vmem:[%s7027_s22 + $0x8c] sm:$0xf] }
 0x140   : > { %v4785_v46 = vadd.f32 %v4784_v11, %v4686_v61  ;;  %v606_v23 = vsel %vm7205_vm5, %v601_v19, %v605_v8  ;;  %981 = vst [vmem:[#allocation2 + $0x440] sm:$0xf] %v899_v63  ;;  %v6112_v61 = vld [vmem:[#allocation2 + $0x3b8] sm:$0xf]  ;;  %v1590_v8 = vrot.slane %v8155_v50, 4  ;;  %v1597_v55 = vrot.slane %v1595_v4, 6 }
 0x141   : > { %v4687_v43 = vpop.f32.mrf.mxu1  ;;  %723 = vst [vmem:[#allocation2 + $0x43c] sm:$0xf] %v606_v23  ;;  %v6687_v11 = vld [vmem:[#allocation2 + $0x3d8] sm:$0xf0]  ;;  %v902_v19 = vsel %vm7160_vm2, %v900_v28, %v9531_v48  ;;  %v1605_v56 = vshll.u32 %v1274_v44, 16  ;;  %v1604_v50 = vrot.slane %v1602_v20, 5  ;;  %v6105_v54 = vor.u32 %v6686_v16, %v6104_v5 }
 0x142   : > { %v4884_v6 = vadd.f32 %v8067_v22, %v4785_v46  ;;  %v8212_v33 = vpop.f32.mrf.mxu3  ;;  %v616_v22 = vsel %vm7205_vm5, %v611_v25, %v8203_v17  ;;  %v4688_v46 = vadd.f32 %v4687_v43, %v7857_v7  ;;  %982 = vst [vmem:[#allocation2 + $0x464] sm:$0xf] %v902_v19  ;;  %v1598_v51 = vor.u32 %v1597_v55, %v1594_v52  ;;  %v6700_v4 = vld [vmem:[#allocation2 + $0x444] sm:$0xf]  ;;  %v6178_v43 = vld [vmem:[#allocation2 + $0x464] sm:$0xf0] }
 0x143   : > { %724 = vst [vmem:[#allocation2 + $0x460] sm:$0xf] %v616_v22  ;;  %v1607_v25 = vrot.slane %v1605_v56, 6  ;;  %v1159_v63 = vrot.slane %v1020_v15, 5  ;;  %v6101_v21 = vor.u32 %v6681_v58, %v6098_v49  ;;  %v6113_v7 = vor.u32 %v6687_v11, %v6112_v61 }
 0x144   : > { %v4984_v41 = vpop.f32.mrf.mxu0  ;;  %v8223_v37 = vadd.f32 %v8167_v2, %v4884_v6  ;;  %v1599_v44 = vsel %vm7247_vm8, %v1590_v8, %v1598_v51  ;;  %v1600_v28 = vrot.slane %v1598_v51, 4  ;;  %v8230_v2 = vld [vmem:[%s7027_s22 + $0x90] sm:$0xf]  ;;  %v286_v6 = vld [vmem:[%s7027_s22 + $0x84] sm:$0xf]  ;;  %v617_v52 = vshrl.u32 %v8181_v13, 16 }
 0x145   : > { %v8234_v55 = vor.u32 %v1607_v25, %v1604_v50  ;;  %1716 = vst [vmem:[#allocation2 + $0x448] sm:$0xf] %v1599_v44  ;;  %v9587_v5 = vrot.slane %v8158_v36, 5  ;;  %v1161_v8 = vrot.slane %v1159_v63, 4  ;;  %v9533_v20 = vrot.slane %v8230_v2, 5 }
 0x146   : > { %v619_v11 = vrot.slane %v617_v52, 4  ;;  %v623_v56 = vshll.u32 %v286_v6, 16  ;;  %v1275_v36 = vld [vmem:[%s7027_s22 + $0x8c] sm:$0xf]  ;;  %v8253_v51 = vld [vmem:[%s7027_s22 + $0x88] sm:$0xf] }
 0x147   : > { %v4786_v23 = vpop.f32.mrf.mxu2  ;;  %v1158_v16 = vrot.slane %v9587_v5, 4  ;;  %v1609_v61 = vsel %vm7247_vm8, %v1600_v28, %v8234_v55  ;;  %v627_v25 = vshrl.u32 %v286_v6, 16 }
 0x148   : > { %v4787_v22 = vadd.f32 %v4786_v23, %v4688_v46  ;;  %1717 = vst [vmem:[#allocation2 + $0x46c] sm:$0xf] %v1609_v61  ;;  %v1163_v46 = vsel %vm7160_vm2, %v1161_v8, %v9533_v20  ;;  %v620_v15 = vor.u32 %v619_v11, %v8203_v17  ;;  %v625_v23 = vrot.slane %v623_v56, 5  ;;  %v1276_v61 = vld [vmem:[%s7027_s22 + $0x90] sm:$0xf] }
 0x149   : > { %v4690_v48 = vpop.f32.mrf.mxu1  ;;  %v1160_v13 = vsel %vm7160_vm2, %v1158_v16, %v1159_v63  ;;  %1239 = vst [vmem:[#allocation2 + $0x4b0] sm:$0xf] %v1163_v46  ;;  %v1612_v63 = vshrl.u32 %v1275_v36, 16  ;;  %v629_v28 = vrot.slane %v627_v25, 4  ;;  %v6140_v11 = vld [vmem:[#allocation2 + $0x3f8] sm:$0xf] }
 0x14a   : > { %v4886_v58 = vadd.f32 %v8099_v32, %v4787_v22  ;;  %v8240_v19 = vpop.f32.mrf.mxu3  ;;  %v6181_v32 = vor.u32 %v6700_v4, %v6178_v43  ;;  %1238 = vst [vmem:[#allocation2 + $0x48c] sm:$0xf] %v1160_v13  ;;  %v762_v4 = vld [vmem:[%s7027_s22 + $0x84] sm:$0xf]  ;;  %v621_v44 = vrot.slane %v620_v15, 4 }
 0x14b   : > { %v8262_v43 = vld [vmem:[%s7027_s22 + $0x88] sm:$0xf]  ;;  %v904_v52 = vrot.slane %v762_v4, 5  ;;  %v630_v16 = vor.u32 %v629_v28, %v625_v23  ;;  %v6695_v56 = vld [vmem:[#allocation2 + $0x418] sm:$0xf0]  ;;  %v1614_v25 = vrot.slane %v1612_v63, 5 }
 0x14c   : > { %v4987_v49 = vpop.f32.mrf.mxu0  ;;  %4729 = vmatmul.bf16.gmra.mxu1 %v6101_v21  ;;  %4828 = vmatmul.bf16.gmra.mxu2 %v6105_v54  ;;  %v8255_v50 = vadd.f32 %v4984_v41, %v4886_v58  ;;  %v4691_v21 = vadd.f32 %v4690_v48, %v7535_v10  ;;  %v633_v54 = vshll.u32 %v8253_v51, 16  ;;  %v9588_v41 = vrot.slane %v8199_v27, 5  ;;  %v6696_v28 = vld [vmem:[#allocation2 + $0x420] sm:$0xf0] }
 0x14d   : > { %v9532_v10 = vrot.slane %v8262_v43, 5  ;;  %v626_v5 = vsel %vm7205_vm5, %v621_v44, %v625_v23  ;;  %v906_v8 = vrot.slane %v904_v52, 4  ;;  %v631_v15 = vrot.slane %v630_v16, 4  ;;  %v6148_v44 = vld [vmem:[#allocation2 + $0x400] sm:$0xf] }
 0x14e   : > { %4937 = vmatmul.bf16.gmra.mxu3 %v6181_v32  ;;  %v8266_v6 = vrot.slane %v633_v54, 5  ;;  %725 = vst [vmem:[#allocation2 + $0x484] sm:$0xf] %v626_v5  ;;  %v6690_v32 = vld [vmem:[#allocation2 + $0x3f4] sm:$0xf]  ;;  %v1625_v4 = vshll.u32 %v1276_v61, 16 }
 0x14f   : > { %5026 = vmatmul.bf16.gmra.mxu0 %v6113_v7  ;;  %v4789_v22 = vpop.f32.mrf.mxu2  ;;  %v903_v7 = vrot.slane %v9588_v41, 4  ;;  %v908_v23 = vsel %vm7160_vm2, %v906_v8, %v9532_v10  ;;  %v6134_v54 = vld [vmem:[#allocation2 + $0x414] sm:$0xf0]  ;;  %v1022_v5 = vld [vmem:[%s7027_s22 + $0x94] sm:$0xf] }
 0x150   : > { %v4790_v17 = vadd.f32 %v4789_v22, %v4691_v21  ;;  %v1615_v21 = vshll.u32 %v1275_v36, 16  ;;  %984 = vst [vmem:[#allocation2 + $0x4ac] sm:$0xf] %v908_v23  ;;  %v636_v41 = vsel %vm7205_vm5, %v631_v15, %v8266_v6  ;;  %v1165_v8 = vrot.slane %v1022_v5, 5 }
 0x151   : > { %v4692_v48 = vpop.f32.mrf.mxu1  ;;  %v905_v58 = vsel %vm7160_vm2, %v903_v7, %v904_v52  ;;  %v1610_v7 = vrot.slane %v8234_v55, 4  ;;  %726 = vst [vmem:[#allocation2 + $0x4a8] sm:$0xf] %v636_v41  ;;  %v6149_v23 = vor.u32 %v6696_v28, %v6148_v44  ;;  %v6709_v10 = vld [vmem:[#allocation2 + $0x48c] sm:$0xf] }
 0x152   : > { %v4889_v27 = vadd.f32 %v8140_v42, %v4790_v17  ;;  %v8275_v46 = vpop.f32.mrf.mxu3  ;;  %983 = vst [vmem:[#allocation2 + $0x488] sm:$0xf] %v905_v58  ;;  %v1622_v42 = vshrl.u32 %v1276_v61, 16  ;;  %v1617_v52 = vrot.slane %v1615_v21, 6  ;;  %v4693_v63 = vadd.f32 %v4692_v48, %v7573_v39  ;;  %v1023_v55 = vld [vmem:[%s7027_s22 + $0x98] sm:$0x1] }
 0x153   : > { %v1627_v17 = vrot.slane %v1625_v4, 6  ;;  %v6141_v58 = vor.u32 %v6695_v56, %v6140_v11  ;;  %v6214_v21 = vld [vmem:[#allocation2 + $0x4ac] sm:$0xf0]  ;;  %v637_v39 = vshrl.u32 %v8253_v51, 16  ;;  %v9589_v11 = vrot.slane %v8230_v2, 5  ;;  %v6782_v51 = vld [vmem:[%s9522_s1 + $0x1c0] sm:$0xff] }
 0x154   : > { %v4989_v13 = vpop.f32.mrf.mxu0  ;;  %v8281_v22 = vadd.f32 %v4987_v49, %v4889_v27  ;;  %v1624_v36 = vrot.slane %v1622_v42, 5  ;;  %v1618_v49 = vor.u32 %v1617_v52, %v1614_v25  ;;  %v6137_v27 = vor.u32 %v6690_v32, %v6134_v54  ;;  %v6774_v54 = vld [vmem:[%s9522_s1 + $0x180] sm:$0xff]  ;;  %v288_v4 = vld [vmem:[%s7027_s22 + $0x8c] sm:$0xf]  ;;  %5257 = vmatpush.bf16.msra.mxu3 %v6782_v51 }
 0x155   : > { %v1164_v56 = vrot.slane %v9589_v11, 4  ;;  %v1167_v28 = vrot.slane %v1165_v8, 4  ;;  %v1168_v41 = vrot.slane %v1023_v55, 5  ;;  %v6217_v52 = vor.u32 %v6709_v10, %v6214_v21  ;;  %5158 = vmatpush.bf16.msra.mxu2 %v6774_v54 }
 0x156   : > { %v8289_v15 = vor.u32 %v1627_v17, %v1624_v36  ;;  %v1619_v48 = vsel %vm7247_vm8, %v1610_v7, %v1618_v49  ;;  %v1620_v42 = vrot.slane %v1618_v49, 4  ;;  %v8315_v7 = vld [vmem:[%s7027_s22 + $0x94] sm:$0xf]  ;;  %v289_v36 = vld [vmem:[%s7027_s22 + $0x90] sm:$0x1]  ;;  %v639_v17 = vrot.slane %v637_v39, 4 }
 0x157   : > { %v4791_v16 = vpop.f32.mrf.mxu2  ;;  %1718 = vst [vmem:[#allocation2 + $0x490] sm:$0xf] %v1619_v48  ;;  %v8325_v49 = vld [vmem:[#allocation2 + $0x45c] sm:$0xf0]  ;;  %v1169_v10 = vsel %vm7160_vm2, %v1167_v28, %v1168_v41  ;;  %v1632_v55 = vshrl.u32 %v8315_v7, 16  ;;  %v9590_v11 = vrot.slane %v8262_v43, 5 }
 0x158   : > { %v4792_v61 = vadd.f32 %v4791_v16, %v4693_v63  ;;  %v1629_v2 = vsel %vm7247_vm8, %v1620_v42, %v8289_v15  ;;  %v6766_v63 = vld [vmem:[%s9522_s1 + $0x140] sm:$0xff]  ;;  %v8323_v16 = vld [vmem:[#allocation2 + $0x43c] sm:$0xf]  ;;  %1241 = vst [vmem:[#allocation2 + $0x4f8] sm:$0xf] %v1169_v10  ;;  %v1630_v45 = vrot.slane %v8289_v15, 4 }
 0x159   : > { %v4695_v20 = vpop.f32.mrf.mxu1  ;;  %1719 = vst [vmem:[#allocation2 + $0x4b4] sm:$0xf] %v1629_v2  ;;  %5059 = vmatpush.bf16.msra.mxu1 %v6766_v63  ;;  %v765_v42 = vld [vmem:[%s7027_s22 + $0x90] sm:$0x1]  ;;  %v8340_v2 = vld [vmem:[#allocation2 + $0x448] sm:$0xf] }
 0x15a   : > { %v4891_v32 = vadd.f32 %v8172_v47, %v4792_v61  ;;  %v8307_v44 = vpop.f32.mrf.mxu3  ;;  %v1166_v47 = vsel %vm7160_vm2, %v1164_v56, %v1165_v8  ;;  %v647_v8 = vshrl.u32 %v288_v4, 16  ;;  %v4696_v61 = vadd.f32 %v4695_v20, %v7600_v59  ;;  %v8336_v59 = vld [vmem:[#allocation2 + $0x440] sm:$0xf]  ;;  %v8338_v20 = vld [vmem:[#allocation2 + $0x460] sm:$0xf0] }
 0x15b   : > { %1240 = vst [vmem:[#allocation2 + $0x4d4] sm:$0xf] %v1166_v47  ;;  %v909_v56 = vrot.slane %v9590_v11, 4  ;;  %v913_v51 = vrot.slane %v765_v42, 5  ;;  %v8342_v47 = vld [vmem:[#allocation2 + $0x468] sm:$0xf0] }
 0x15c   : > { %v8298_v25 = vpop.f32.mrf.mxu0  ;;  %4734 = vmatmul.bf16.gmra.mxu1 %v6137_v27  ;;  %4833 = vmatmul.bf16.gmra.mxu2 %v6141_v58  ;;  %v8321_v5 = vadd.f32 %v4989_v13, %v4891_v32  ;;  %v643_v58 = vshll.u32 %v288_v4, 16  ;;  %v640_v13 = vor.u32 %v639_v17, %v8266_v6  ;;  %v653_v27 = vshll.u32 %v289_v36, 16  ;;  %v1278_v36 = vld [vmem:[%s7027_s22 + $0x98] sm:$0x3] }
 0x15d   : > { %v649_v48 = vrot.slane %v647_v8, 4 }
 0x15e   : > { %v645_v39 = vrot.slane %v643_v58, 5  ;;  %4942 = vmatmul.bf16.gmra.mxu3 %v6217_v52  ;;  %v641_v6 = vrot.slane %v640_v13, 4  ;;  %v655_v41 = vrot.slane %v653_v27, 5  ;;  %v6173_v52 = vor.u32 %v8323_v16, %v8325_v49  ;;  %v6790_v58 = vld [vmem:[%s9522_s1 + $0x200] sm:$0xff] }
 0x15f   : > { %5031 = vmatmul.bf16.gmra.mxu0 %v6149_v23  ;;  %v764_v23 = vld [vmem:[%s7027_s22 + $0x8c] sm:$0xf]  ;;  %v4794_v21 = vpop.f32.mrf.mxu2  ;;  %v1635_v16 = vshll.u32 %v8315_v7, 16  ;;  %v6177_v49 = vor.u32 %v8338_v20, %v8336_v59  ;;  %v2237_v20 = vld [vmem:[%s7027_s22 + $0x18] sm:$0xf] }
 0x160   : > { %v910_v32 = vrot.slane %v764_v23, 5  ;;  %v4795_v54 = vadd.f32 %v4794_v21, %v4696_v61  ;;  %v650_v28 = vor.u32 %v649_v48, %v645_v39  ;;  %v646_v8 = vsel %vm7205_vm5, %v641_v6, %v645_v39  ;;  %v2235_v61 = vld [vmem:[%s7027_s22 + $0x10] sm:$0xc]  ;;  %5356 = vmatpush.bf16.msra.mxu0 %v6790_v58  ;;  %v6250_v58 = vld [vmem:[#allocation2 + $0x4f4] sm:$0xf0] }
 0x161   : > { %v4697_v4 = vpop.f32.mrf.mxu1  ;;  %727 = vst [vmem:[#allocation2 + $0x4cc] sm:$0xf] %v646_v8  ;;  %v1634_v23 = vrot.slane %v1632_v55, 5  ;;  %v1642_v21 = vshrl.u32 %v1278_v36, 16  ;;  %v1645_v39 = vshll.u32 %v1278_v36, 16  ;;  %v1637_v11 = vrot.slane %v1635_v16, 6 }
 0x162   : > { %v911_v43 = vsel %vm7160_vm2, %v909_v56, %v910_v32  ;;  %v912_v63 = vrot.slane %v910_v32, 4  ;;  %v4894_v17 = vadd.f32 %v8212_v33, %v4795_v54  ;;  %v8356_v13 = vpop.f32.mrf.mxu3  ;;  %v651_v27 = vrot.slane %v650_v28, 4  ;;  %v2236_v55 = vld [vmem:[%s7027_s22 + $0x14] sm:$0xf] }
 0x163   : > { %985 = vst [vmem:[#allocation2 + $0x4d0] sm:$0xf] %v911_v43  ;;  %v2276_v56 = vshrl.u32 %v2235_v61, 16  ;;  %v4698_v7 = vadd.f32 %v4697_v4, %v7635_v53  ;;  %v6185_v32 = vor.u32 %v8342_v47, %v8340_v2  ;;  %v1644_v54 = vrot.slane %v1642_v21, 5  ;;  %v6718_v43 = vld [vmem:[#allocation2 + $0x4d4] sm:$0xf] }
 0x164   : > { %v4994_v10 = vpop.f32.mrf.mxu0  ;;  %v914_v33 = vsel %vm7160_vm2, %v912_v63, %v913_v51  ;;  %v8364_v48 = vadd.f32 %v8298_v25, %v4894_v17  ;;  %v656_v42 = vsel %vm7205_vm5, %v651_v27, %v655_v41  ;;  %v1647_v59 = vrot.slane %v1645_v39, 6 }
 0x165   : > { %986 = vst [vmem:[#allocation2 + $0x4f4] sm:$0xf] %v914_v33  ;;  %v1638_v25 = vor.u32 %v1637_v11, %v1634_v23  ;;  %v2278_v51 = vrot.slane %v2276_v56, 6  ;;  %v2279_v28 = vshll.u32 %v2235_v61, 16  ;;  %v2285_v12 = vshrl.u32 %v2236_v55, 16 }
 0x166   : > { %728 = vst [vmem:[#allocation2 + $0x4f0] sm:$0xf] %v656_v42  ;;  %v1648_v15 = vor.u32 %v1647_v59, %v1644_v54  ;;  %v2288_v63 = vshll.u32 %v2236_v55, 16  ;;  %v2295_v36 = vshrl.u32 %v2237_v20, 16  ;;  %v6253_v21 = vor.u32 %v6718_v43, %v6250_v58  ;;  %v1981_v56 = vld [vmem:[%s7027_s22 + $0x14] sm:$0xf] }
 0x167   : > { %v4796_v6 = vpop.f32.mrf.mxu2  ;;  %v1639_v53 = vsel %vm7247_vm8, %v1630_v45, %v1638_v25  ;;  %v1640_v4 = vrot.slane %v1638_v25, 4  ;;  %v2281_v2 = vrot.slane %v2279_v28, 7  ;;  %v2287_v23 = vrot.slane %v2285_v12, 6  ;;  %v1723_v45 = vld [vmem:[%s7027_s22 + $0xc] sm:$0xf] }
 0x168   : > { %v4797_v41 = vadd.f32 %v4796_v6, %v4698_v7  ;;  %1720 = vst [vmem:[#allocation2 + $0x4d8] sm:$0xf] %v1639_v53  ;;  %v2290_v16 = vrot.slane %v2288_v63, 7  ;;  %v2297_v39 = vrot.slane %v2295_v36, 6  ;;  %v2298_v42 = vshll.u32 %v2237_v20, 16 }
 0x169   : > { %v4700_v17 = vpop.f32.mrf.mxu1  ;;  %v1649_v27 = vsel %vm7247_vm8, %v1640_v4, %v1648_v15  ;;  %v2282_v33 = vor.u32 %v2281_v2, %v2278_v51  ;;  %v1722_v54 = vld [vmem:[%s7027_s22 + $0x8] sm:$0xc]  ;;  %v8395_v59 = vld [vmem:[%s7027_s22 + $0x10] sm:$0xf]  ;;  %v2056_v6 = vrot.slane %v1981_v56, 6 }
 0x16a   : > { %v4896_v47 = vadd.f32 %v8240_v19, %v4797_v41  ;;  %v8379_v61 = vpop.f32.mrf.mxu3  ;;  %1721 = vst [vmem:[#allocation2 + $0x4fc] sm:$0xf] %v1649_v27  ;;  %v2291_v55 = vor.u32 %v2290_v16, %v2287_v23  ;;  %v2300_v7 = vrot.slane %v2298_v42, 7  ;;  %v5623_v12 = vrot.slane %v1722_v54, 10  ;;  %v8407_v43 = vld [vmem:[%s7027_s22 + $0x18] sm:$0xf] }
 0x16b   : > { %v2283_v11 = vrot.slane %v2282_v33, 4  ;;  %v1804_v63 = vrot.slane %v8395_v59, 6  ;;  %v2059_v58 = vrot.slane %v8407_v43, 6  ;;  %v6708_v2 = vld [vmem:[#allocation2 + $0x484] sm:$0xf] }
 0x16c   : > { %v8377_v8 = vpop.f32.mrf.mxu0  ;;  %4739 = vmatmul.bf16.gmra.mxu1 %v6173_v52  ;;  %4838 = vmatmul.bf16.gmra.mxu2 %v6177_v49  ;;  %v8389_v60 = vadd.f32 %v4994_v10, %v4896_v47  ;;  %v1801_v52 = vrot.slane %v1723_v45, 6  ;;  %v4701_v49 = vadd.f32 %v4700_v17, %v7670_v38  ;;  %v2293_v10 = vrot.slane %v2291_v55, 4  ;;  %v6212_v47 = vld [vmem:[#allocation2 + $0x488] sm:$0xf]  ;;  %v6713_v27 = vld [vmem:[#allocation2 + $0x4a8] sm:$0xf0] }
 0x16d   : > { %v2292_v20 = vsel %vm8384_vm11, %v2283_v11, %v2291_v55  ;;  %v8400_v28 = vor.u32 %v2300_v7, %v2297_v39  ;;  %v2058_v17 = vrot.slane %v2056_v6, 4  ;;  %v2715_v16 = vld [vmem:[%s7027_s22 + $0x10] sm:$0x8]  ;;  %v8420_v39 = vld [vmem:[%s7027_s22 + $0x18] sm:$0xf] }
 0x16e   : > { %4947 = vmatmul.bf16.gmra.mxu3 %v6253_v21  ;;  %2679 = vst [vmem:[#allocation2 + $0x1c] sm:$0xf] %v2292_v20  ;;  %v1803_v41 = vrot.slane %v1801_v52, 4  ;;  %v1802_v23 = vsel %vm8402_vm14, %v5623_v12, %v1801_v52  ;;  %v2716_v21 = vld [vmem:[%s7027_s22 + $0x14] sm:$0xf] }
 0x16f   : > { %5036 = vmatmul.bf16.gmra.mxu0 %v6185_v32  ;;  %v4799_v25 = vpop.f32.mrf.mxu2  ;;  %v1980_v32 = vld [vmem:[%s7027_s22 + $0x10] sm:$0xc]  ;;  %v2302_v33 = vsel %vm8384_vm11, %v2293_v10, %v8400_v28  ;;  %v6206_v42 = vld [vmem:[#allocation2 + $0x4a4] sm:$0xf0]  ;;  %v6714_v52 = vld [vmem:[#allocation2 + $0x4b0] sm:$0xf0]  ;;  %v2060_v56 = vsel %vm8402_vm14, %v2058_v17, %v2059_v58 }
 0x170   : > { %v4800_v51 = vadd.f32 %v4799_v25, %v4701_v49  ;;  %v5624_v36 = vrot.slane %v1980_v32, 10  ;;  %2680 = vst [vmem:[#allocation2 + $0x40] sm:$0xf] %v2302_v33  ;;  %v6220_v55 = vld [vmem:[#allocation2 + $0x490] sm:$0xf]  ;;  %v5625_v49 = vrot.slane %v2715_v16, 11  ;;  %v6209_v17 = vor.u32 %v6708_v2, %v6206_v42 }
 0x171   : > { %v4702_v15 = vpop.f32.mrf.mxu1  ;;  %1944 = vst [vmem:[#allocation2 + $0x14] sm:$0xf] %v1802_v23  ;;  %v2794_v7 = vrot.slane %v2716_v21, 7  ;;  %v2238_v25 = vld [vmem:[%s7027_s22 + $0x1c] sm:$0xf]  ;;  %v6213_v33 = vor.u32 %v6713_v27, %v6212_v47  ;;  %v2303_v2 = vrot.slane %v8400_v28, 4 }
 0x172   : > { %v4899_v53 = vadd.f32 %v8275_v46, %v4800_v51  ;;  %v8422_v45 = vpop.f32.mrf.mxu3  ;;  %v1805_v46 = vsel %vm8402_vm14, %v1803_v41, %v1804_v63  ;;  %v2057_v11 = vsel %vm8402_vm14, %v5624_v36, %v2056_v6  ;;  %v2797_v6 = vrot.slane %v8420_v39, 7  ;;  %v2239_v12 = vld [vmem:[%s7027_s22 + $0x20] sm:$0xf]  ;;  %2200 = vst [vmem:[#allocation2 + $0x3c] sm:$0xf] %v2060_v56 }
 0x173   : > { %1945 = vst [vmem:[#allocation2 + $0x38] sm:$0xf] %v1805_v46  ;;  %v4703_v10 = vadd.f32 %v4702_v15, %v7710_v24  ;;  %v2795_v32 = vsel %vm8434_vm1, %v5625_v49, %v2794_v7  ;;  %v2796_v51 = vrot.slane %v2794_v7, 4  ;;  %v2305_v41 = vshrl.u32 %v2238_v25, 16  ;;  %v6256_v39 = vld [vmem:[#allocation2 + $0x4d8] sm:$0xf] }
 0x174   : > { %v4999_v4 = vpop.f32.mrf.mxu0  ;;  %v8441_v20 = vadd.f32 %v8377_v8, %v4899_v53  ;;  %2199 = vst [vmem:[#allocation2 + $0x18] sm:$0xf] %v2057_v11  ;;  %v2308_v23 = vshll.u32 %v2238_v25, 16  ;;  %v2315_v16 = vshrl.u32 %v2239_v12, 16  ;;  %v2318_v15 = vshll.u32 %v2239_v12, 16 }
 0x175   : > { %v6567_v46 = vld [vmem:[#allocation2 + $0x1c] sm:$0xf]  ;;  %v2798_v24 = vsel %vm8434_vm1, %v2796_v51, %v2797_v6  ;;  %2937 = vst [vmem:[#allocation2 + $0x20] sm:$0xf] %v2795_v32  ;;  %v2307_v8 = vrot.slane %v2305_v41, 6  ;;  %v6221_v11 = vor.u32 %v6714_v52, %v6220_v55 }
 0x176   : > { %2938 = vst [vmem:[#allocation2 + $0x44] sm:$0xf] %v2798_v24  ;;  %v2310_v47 = vrot.slane %v2308_v23, 7  ;;  %v2317_v27 = vrot.slane %v2315_v16, 6  ;;  %v2320_v7 = vrot.slane %v2318_v15, 7  ;;  %v1806_v23 = vrot.slane %v1804_v63, 4 }
 0x177   : > { %v4801_v36 = vpop.f32.mrf.mxu2  ;;  %v5654_v49 = vld [vmem:[#allocation2 + $0x3c] sm:$0xf0]  ;;  %v1725_v52 = vld [vmem:[%s7027_s22 + $0x14] sm:$0xf]  ;;  %v2061_v24 = vrot.slane %v2059_v58, 4  ;;  %v2799_v58 = vrot.slane %v2797_v6, 4 }
 0x178   : > { %v4802_v21 = vadd.f32 %v4801_v36, %v4703_v10  ;;  %v2311_v10 = vor.u32 %v2310_v47, %v2307_v8  ;;  %v5657_v32 = vor.u32 %v6567_v46, %v5654_v49  ;;  %v8455_v55 = vor.u32 %v2320_v7, %v2317_v27  ;;  %v8464_v36 = vld [vmem:[%s7027_s22 + $0x18] sm:$0xf]  ;;  %v2718_v63 = vld [vmem:[%s7027_s22 + $0x1c] sm:$0xf]  ;;  %v6248_v27 = vld [vmem:[#allocation2 + $0x4d0] sm:$0xf] }
 0x179   : > { %v4705_v53 = vpop.f32.mrf.mxu1  ;;  %v1807_v12 = vrot.slane %v1725_v52, 6  ;;  %v2240_v49 = vld [vmem:[%s7027_s22 + $0x24] sm:$0xf]  ;;  %v6717_v7 = vld [vmem:[#allocation2 + $0x4cc] sm:$0xf] }
 0x17a   : > { %v4901_v42 = vadd.f32 %v8307_v44, %v4802_v21  ;;  %v8453_v25 = vpop.f32.mrf.mxu3  ;;  %v2312_v44 = vsel %vm8384_vm11, %v2303_v2, %v2311_v10  ;;  %v2313_v51 = vrot.slane %v2311_v10, 4  ;;  %v4706_v41 = vadd.f32 %v4705_v53, %v7744_v14  ;;  %v8473_v21 = vld [vmem:[%s7027_s22 + $0x20] sm:$0xf]  ;;  %v6242_v10 = vld [vmem:[#allocation2 + $0x4ec] sm:$0xf0] }
 0x17b   : > { %2681 = vst [vmem:[#allocation2 + $0x64] sm:$0xf] %v2312_v44  ;;  %v1809_v16 = vrot.slane %v1807_v12, 4  ;;  %v1810_v14 = vrot.slane %v8464_v36, 6  ;;  %v1808_v15 = vsel %vm8402_vm14, %v1806_v23, %v1807_v12  ;;  %v9534_v59 = vrot.slane %v8473_v21, 6 }
 0x17c   : > { %v5002_v56 = vpop.f32.mrf.mxu0  ;;  %4744 = vmatmul.bf16.gmra.mxu1 %v6209_v17  ;;  %4843 = vmatmul.bf16.gmra.mxu2 %v6213_v33  ;;  %v8458_v28 = vadd.f32 %v4999_v4, %v4901_v42  ;;  %v1983_v17 = vld [vmem:[%s7027_s22 + $0x1c] sm:$0xf]  ;;  %v2322_v4 = vsel %vm8384_vm11, %v2313_v51, %v8455_v55  ;;  %v6722_v42 = vld [vmem:[#allocation2 + $0x4f0] sm:$0xf0]  ;;  %1946 = vst [vmem:[#allocation2 + $0x5c] sm:$0xf] %v1808_v15 }
 0x17d   : > { %2682 = vst [vmem:[#allocation2 + $0x88] sm:$0xf] %v2322_v4  ;;  %v2062_v53 = vrot.slane %v1983_v17, 6  ;;  %v1811_v43 = vsel %vm8402_vm14, %v1809_v16, %v1810_v14  ;;  %v2800_v44 = vrot.slane %v2718_v63, 7  ;;  %v2241_v12 = vld [vmem:[%s7027_s22 + $0x28] sm:$0xf] }
 0x17e   : > { %5258 = vmatmul.bf16.vlgmr.msra.gmra.mxu3 %v5657_v32  ;;  %1947 = vst [vmem:[#allocation2 + $0x80] sm:$0xf] %v1811_v43  ;;  %v2328_v17 = vshll.u32 %v2240_v49, 16  ;;  %v6723_v6 = vld [vmem:[#allocation2 + $0x4f8] sm:$0xf0]  ;;  %v2338_v63 = vshll.u32 %v2241_v12, 16 }
 0x17f   : > { %5041 = vmatmul.bf16.gmra.mxu0 %v6221_v11  ;;  %v4804_v33 = vpop.f32.mrf.mxu2  ;;  %v8483_v11 = vld [vmem:[%s7027_s22 + $0x20] sm:$0xf]  ;;  %v2064_v52 = vrot.slane %v2062_v53, 4  ;;  %v2801_v23 = vsel %vm8434_vm1, %v2799_v58, %v2800_v44  ;;  %v2802_v16 = vrot.slane %v2800_v44, 4 }
 0x180   : > { %v4805_v46 = vadd.f32 %v4804_v33, %v4706_v41  ;;  %v2803_v51 = vrot.slane %v8483_v11, 7  ;;  %v2325_v41 = vshrl.u32 %v2240_v49, 16  ;;  %2939 = vst [vmem:[#allocation2 + $0x68] sm:$0xf] %v2801_v23  ;;  %v2340_v44 = vrot.slane %v2338_v63, 7 }
 0x181   : > { %v4707_v8 = vpop.f32.mrf.mxu1  ;;  %v2066_v4 = vsel %vm8402_vm14, %v2064_v52, %v9534_v59  ;;  %v6245_v52 = vor.u32 %v6717_v7, %v6242_v10 }
 0x182   : > { %v4904_v2 = vadd.f32 %v8356_v13, %v4805_v46  ;;  %v8493_v32 = vpop.f32.mrf.mxu3  ;;  %v2063_v13 = vsel %vm8402_vm14, %v2061_v24, %v2062_v53  ;;  %v2335_v46 = vshrl.u32 %v2241_v12, 16  ;;  %v4708_v24 = vadd.f32 %v4707_v8, %v7779_v26  ;;  %2202 = vst [vmem:[#allocation2 + $0x84] sm:$0xf] %v2066_v4  ;;  %v6576_v8 = vld [vmem:[#allocation2 + $0x64] sm:$0xf] }
 0x183   : > { %2201 = vst [vmem:[#allocation2 + $0x60] sm:$0xf] %v2063_v13  ;;  %v2327_v15 = vrot.slane %v2325_v41, 6  ;;  %v2330_v53 = vrot.slane %v2328_v17, 7  ;;  %v2804_v43 = vsel %vm8434_vm1, %v2802_v16, %v2803_v51  ;;  %v6257_v26 = vor.u32 %v6723_v6, %v6256_v39  ;;  %v1985_v39 = vld [vmem:[%s7027_s22 + $0x24] sm:$0xf] }
 0x184   : > { %v5004_v47 = vpop.f32.mrf.mxu0  ;;  %v8499_v33 = vadd.f32 %v5002_v56, %v4904_v2  ;;  %v6249_v2 = vor.u32 %v6722_v42, %v6248_v27  ;;  %v2337_v49 = vrot.slane %v2335_v46, 6  ;;  %2940 = vst [vmem:[#allocation2 + $0x8c] sm:$0xf] %v2804_v43  ;;  %v5690_v12 = vld [vmem:[#allocation2 + $0x84] sm:$0xf0]  ;;  %v2323_v27 = vrot.slane %v8455_v55, 4 }
 0x185   : > { %v2331_v58 = vor.u32 %v2330_v53, %v2327_v15  ;;  %v5693_v10 = vor.u32 %v6576_v8, %v5690_v12  ;;  %v2068_v46 = vrot.slane %v1985_v39, 6  ;;  %v8529_v15 = vld [vmem:[%s7027_s22 + $0x20] sm:$0xf]  ;;  %v8532_v53 = vld [vmem:[%s7027_s22 + $0x28] sm:$0xf]  ;;  %v9597_v43 = vrot.slane %v8473_v21, 6 }
 0x186   : > { %v8514_v4 = vor.u32 %v2340_v44, %v2337_v49 }
 0x187   : > { %v4806_v56 = vpop.f32.mrf.mxu2  ;;  %v2333_v17 = vrot.slane %v2331_v58, 4  ;;  %v2332_v7 = vsel %vm8384_vm11, %v2323_v27, %v2331_v58  ;;  %v2067_v49 = vrot.slane %v9597_v43, 4  ;;  %v9535_v58 = vrot.slane %v8532_v53, 6  ;;  %v6566_v27 = vld [vmem:[#allocation2 + $0x14] sm:$0xf] }
 0x188   : > { %v4807_v13 = vadd.f32 %v4806_v56, %v4708_v24  ;;  %2683 = vst [vmem:[#allocation2 + $0xac] sm:$0xf] %v2332_v7  ;;  %v1812_v56 = vrot.slane %v1810_v14, 4  ;;  %v2243_v43 = vld [vmem:[%s7027_s22 + $0x30] sm:$0xf] }
 0x189   : > { %v4710_v59 = vpop.f32.mrf.mxu1  ;;  %v2342_v55 = vsel %vm8384_vm11, %v2333_v17, %v8514_v4  ;;  %v2069_v21 = vsel %vm8402_vm14, %v2067_v49, %v2068_v46  ;;  %v5652_v17 = vld [vmem:[#allocation2 + $0x18] sm:$0xf] }
 0x18a   : > { %v4906_v42 = vadd.f32 %v8379_v61, %v4807_v13  ;;  %v8516_v23 = vpop.f32.mrf.mxu3  ;;  %v1727_v61 = vld [vmem:[%s7027_s22 + $0x1c] sm:$0xf]  ;;  %2684 = vst [vmem:[#allocation2 + $0xd0] sm:$0xf] %v2342_v55  ;;  %v4711_v24 = vadd.f32 %v4710_v59, %v7808_v57  ;;  %v2720_v57 = vld [vmem:[%s7027_s22 + $0x24] sm:$0xf] }
 0x18b   : > { %v1813_v16 = vrot.slane %v1727_v61, 6  ;;  %v8542_v59 = vld [vmem:[%s7027_s22 + $0x28] sm:$0xf]  ;;  %v2242_v55 = vld [vmem:[%s7027_s22 + $0x2c] sm:$0xf] }
 0x18c   : > { %v5007_v41 = vpop.f32.mrf.mxu0  ;;  %4749 = vmatmul.bf16.gmra.mxu1 %v6245_v52  ;;  %4848 = vmatmul.bf16.gmra.mxu2 %v6249_v2  ;;  %v8525_v6 = vadd.f32 %v5004_v47, %v4906_v42  ;;  %v1816_v47 = vrot.slane %v8529_v15, 6  ;;  %v2070_v52 = vrot.slane %v2068_v46, 4  ;;  %v5646_v42 = vld [vmem:[#allocation2 + $0x34] sm:$0xf0]  ;;  %v6571_v61 = vld [vmem:[#allocation2 + $0x38] sm:$0xf0] }
 0x18d   : > { %v1815_v2 = vrot.slane %v1813_v16, 4  ;;  %v1814_v36 = vsel %vm8402_vm14, %v1812_v56, %v1813_v16  ;;  %v2809_v11 = vrot.slane %v8542_v59, 7  ;;  %v6572_v16 = vld [vmem:[#allocation2 + $0x40] sm:$0xf0]  ;;  %2203 = vst [vmem:[#allocation2 + $0xa8] sm:$0xf] %v2069_v21  ;;  %v5649_v21 = vor.u32 %v6566_v27, %v5646_v42 }
 0x18e   : > { %5263 = vmatmul.bf16.gmra.mxu3 %v5693_v10  ;;  %1948 = vst [vmem:[#allocation2 + $0xa4] sm:$0xf] %v1814_v36  ;;  %v2072_v7 = vsel %vm8402_vm14, %v2070_v52, %v9535_v58  ;;  %v2806_v10 = vrot.slane %v2720_v57, 7  ;;  %v2355_v57 = vshrl.u32 %v2243_v43, 16  ;;  %v2358_v36 = vshll.u32 %v2243_v43, 16 }
 0x18f   : > { %5046 = vmatmul.bf16.gmra.mxu0 %v6257_v26  ;;  %v4809_v63 = vpop.f32.mrf.mxu2  ;;  %v1817_v14 = vsel %vm8402_vm14, %v1815_v2, %v1816_v47  ;;  %v2805_v26 = vrot.slane %v2803_v51, 4  ;;  %v5660_v51 = vld [vmem:[#allocation2 + $0x20] sm:$0xf]  ;;  %2204 = vst [vmem:[#allocation2 + $0xcc] sm:$0xf] %v2072_v7  ;;  %v2343_v58 = vrot.slane %v8514_v4, 4 }
 0x190   : > { %v4810_v13 = vadd.f32 %v4809_v63, %v4711_v24  ;;  %1949 = vst [vmem:[#allocation2 + $0xc8] sm:$0xf] %v1817_v14  ;;  %v2808_v24 = vrot.slane %v2806_v10, 4  ;;  %v2348_v63 = vshll.u32 %v2242_v55, 16  ;;  %v5661_v7 = vor.u32 %v6572_v16, %v5660_v51  ;;  %v8589_v43 = vld [vmem:[%s7027_s22 + $0x28] sm:$0xf] }
 0x191   : > { %v4712_v44 = vpop.f32.mrf.mxu1  ;;  %v2807_v46 = vsel %vm8434_vm1, %v2805_v26, %v2806_v10  ;;  %v5653_v26 = vor.u32 %v6571_v61, %v5652_v17  ;;  %v2357_v10 = vrot.slane %v2355_v57, 6  ;;  %v1822_v57 = vrot.slane %v8589_v43, 6 }
 0x192   : > { %v4909_v8 = vadd.f32 %v8422_v45, %v4810_v13  ;;  %v8560_v39 = vpop.f32.mrf.mxu3  ;;  %v2345_v45 = vshrl.u32 %v2242_v55, 16  ;;  %v4713_v2 = vadd.f32 %v4712_v44, %v7851_v0  ;;  %v2810_v13 = vsel %vm8434_vm1, %v2808_v24, %v2809_v11  ;;  %2941 = vst [vmem:[#allocation2 + $0xb0] sm:$0xf] %v2807_v46  ;;  %v6585_v55 = vld [vmem:[#allocation2 + $0xac] sm:$0xf] }
 0x193   : > { %v2350_v52 = vrot.slane %v2348_v63, 7  ;;  %2942 = vst [vmem:[#allocation2 + $0xd4] sm:$0xf] %v2810_v13  ;;  %v2360_v0 = vrot.slane %v2358_v36, 7  ;;  %v1818_v13 = vrot.slane %v1816_v47, 4 }
 0x194   : > { %v5009_v12 = vpop.f32.mrf.mxu0  ;;  %v8565_v56 = vadd.f32 %v5007_v41, %v4909_v8  ;;  %v2347_v49 = vrot.slane %v2345_v45, 6  ;;  %v5726_v45 = vld [vmem:[#allocation2 + $0xcc] sm:$0xf0] }
 0x195   : > { %v8575_v27 = vor.u32 %v2360_v0, %v2357_v10  ;;  %v5729_v61 = vor.u32 %v6585_v55, %v5726_v45  ;;  %v8596_v36 = vld [vmem:[%s7027_s22 + $0x30] sm:$0xf]  ;;  %v6575_v55 = vld [vmem:[#allocation2 + $0x5c] sm:$0xf]  ;;  %v5682_v45 = vld [vmem:[#allocation2 + $0x7c] sm:$0xf0] }
 0x196   : > { %v2351_v8 = vor.u32 %v2350_v52, %v2347_v49  ;;  %v8609_v10 = vld [vmem:[%s7027_s22 + $0x30] sm:$0xf] }
 0x197   : > { %v4811_v14 = vpop.f32.mrf.mxu2 }
 0x198   : > { %v4812_v41 = vadd.f32 %v4811_v14, %v4713_v2  ;;  %v2353_v63 = vrot.slane %v2351_v8, 4  ;;  %v2352_v17 = vsel %vm8384_vm11, %v2343_v58, %v2351_v8  ;;  %v1987_v58 = vld [vmem:[%s7027_s22 + $0x2c] sm:$0xf]  ;;  %v9598_v14 = vrot.slane %v8532_v53, 6 }
 0x199   : > { %v4715_v44 = vpop.f32.mrf.mxu1  ;;  %2685 = vst [vmem:[#allocation2 + $0xf4] sm:$0xf] %v2352_v17  ;;  %v2811_v53 = vrot.slane %v2809_v11, 4  ;;  %v2244_v17 = vld [vmem:[%s7027_s22 + $0x34] sm:$0xf] }
 0x19a   : > { %v4911_v46 = vadd.f32 %v8453_v25, %v4812_v41  ;;  %v8577_v42 = vpop.f32.mrf.mxu3  ;;  %v2362_v4 = vsel %vm8384_vm11, %v2353_v63, %v8575_v27  ;;  %v1729_v25 = vld [vmem:[%s7027_s22 + $0x24] sm:$0xf]  ;;  %v4716_v2 = vadd.f32 %v4715_v44, %v7562_v35  ;;  %v2077_v35 = vrot.slane %v8596_v36, 6  ;;  %v2722_v41 = vld [vmem:[%s7027_s22 + $0x2c] sm:$0xf] }
 0x19b   : > { %2686 = vst [vmem:[#allocation2 + $0x118] sm:$0xf] %v2362_v4  ;;  %v1819_v16 = vrot.slane %v1729_v25, 6  ;;  %v2812_v0 = vrot.slane %v2722_v41, 7  ;;  %v6580_v25 = vld [vmem:[#allocation2 + $0x80] sm:$0xf0] }
 0x19c   : > { %v5012_v24 = vpop.f32.mrf.mxu0  ;;  %5060 = vmatmul.bf16.vlgmr.msra.gmra.mxu1 %v5649_v21  ;;  %5159 = vmatmul.bf16.vlgmr.msra.gmra.mxu2 %v5653_v26  ;;  %v8585_v51 = vadd.f32 %v5009_v12, %v4911_v46  ;;  %v2073_v21 = vrot.slane %v9598_v14, 4  ;;  %v2074_v26 = vrot.slane %v1987_v58, 6 }
 0x19d   : > { %v1821_v52 = vrot.slane %v1819_v16, 4  ;;  %v1820_v15 = vsel %vm8402_vm14, %v1818_v13, %v1819_v16  ;;  %v2813_v59 = vsel %vm8434_vm1, %v2811_v53, %v2812_v0  ;;  %v2814_v11 = vrot.slane %v2812_v0, 4 }
 0x19e   : > { %5268 = vmatmul.bf16.gmra.mxu3 %v5729_v61  ;;  %1950 = vst [vmem:[#allocation2 + $0xec] sm:$0xf] %v1820_v15  ;;  %v2075_v46 = vsel %vm8402_vm14, %v2073_v21, %v2074_v26  ;;  %v2076_v63 = vrot.slane %v2074_v26, 4  ;;  %v5688_v61 = vld [vmem:[#allocation2 + $0x60] sm:$0xf] }
 0x19f   : > { %5357 = vmatmul.bf16.vlgmr.msra.gmra.mxu0 %v5661_v7  ;;  %v4814_v49 = vpop.f32.mrf.mxu2  ;;  %v1823_v47 = vsel %vm8402_vm14, %v1821_v52, %v1822_v57  ;;  %2205 = vst [vmem:[#allocation2 + $0xf0] sm:$0xf] %v2075_v46  ;;  %v2365_v52 = vshrl.u32 %v2244_v17, 16  ;;  %v6581_v21 = vld [vmem:[#allocation2 + $0x88] sm:$0xf0] }
 0x1a0   : > { %v4815_v12 = vadd.f32 %v4814_v49, %v4716_v2  ;;  %1951 = vst [vmem:[#allocation2 + $0x110] sm:$0xf] %v1823_v47  ;;  %v2078_v16 = vsel %vm8402_vm14, %v2076_v63, %v2077_v35  ;;  %v2245_v2 = vld [vmem:[%s7027_s22 + $0x38] sm:$0xf]  ;;  %v5696_v49 = vld [vmem:[#allocation2 + $0x68] sm:$0xf]  ;;  %v5685_v47 = vor.u32 %v6575_v55, %v5682_v45 }
 0x1a1   : > { %v4717_v8 = vpop.f32.mrf.mxu1  ;;  %2206 = vst [vmem:[#allocation2 + $0x114] sm:$0xf] %v2078_v16  ;;  %v2375_v26 = vshrl.u32 %v2245_v2, 16  ;;  %v2378_v41 = vshll.u32 %v2245_v2, 16 }
 0x1a2   : > { %v4914_v44 = vadd.f32 %v8493_v32, %v4815_v12  ;;  %v8617_v4 = vpop.f32.mrf.mxu3  ;;  %v9536_v32 = vrot.slane %v8609_v10, 7  ;;  %v2368_v12 = vshll.u32 %v2244_v17, 16  ;;  %v4718_v14 = vadd.f32 %v4717_v8, %v7592_v9  ;;  %2943 = vst [vmem:[#allocation2 + $0xf8] sm:$0xf] %v2813_v59  ;;  %v5762_v17 = vld [vmem:[#allocation2 + $0x114] sm:$0xf0] }
 0x1a3   : > { %v2377_v46 = vrot.slane %v2375_v26, 6  ;;  %v2380_v63 = vrot.slane %v2378_v41, 7  ;;  %v2363_v9 = vrot.slane %v8575_v27, 4  ;;  %v1731_v27 = vld [vmem:[%s7027_s22 + $0x2c] sm:$0xf] }
 0x1a4   : > { %v5014_v7 = vpop.f32.mrf.mxu0  ;;  %v8627_v58 = vadd.f32 %v5012_v24, %v4914_v44  ;;  %v2816_v13 = vsel %vm8434_vm1, %v2814_v11, %v9536_v32  ;;  %v2367_v24 = vrot.slane %v2365_v52, 6  ;;  %v2370_v53 = vrot.slane %v2368_v12, 7  ;;  %v6594_v32 = vld [vmem:[#allocation2 + $0xf4] sm:$0xf] }
 0x1a5   : > { %2944 = vst [vmem:[#allocation2 + $0x11c] sm:$0xf] %v2816_v13  ;;  %v5689_v44 = vor.u32 %v6580_v25, %v5688_v61  ;;  %v5697_v11 = vor.u32 %v6581_v21, %v5696_v49  ;;  %v8636_v55 = vor.u32 %v2380_v63, %v2377_v46  ;;  %v5765_v49 = vor.u32 %v6594_v32, %v5762_v17  ;;  %v1989_v12 = vld [vmem:[%s7027_s22 + $0x34] sm:$0xf]  ;;  %v8651_v21 = vld [vmem:[%s7027_s22 + $0x30] sm:$0xf] }
 0x1a6   : > { %v2371_v8 = vor.u32 %v2370_v53, %v2367_v24  ;;  %v1825_v52 = vrot.slane %v1731_v27, 6  ;;  %v1824_v32 = vrot.slane %v1822_v57, 4  ;;  %v1828_v41 = vrot.slane %v8651_v21, 6  ;;  %v8670_v46 = vld [vmem:[%s7027_s22 + $0x38] sm:$0xf] }
 0x1a7   : > { %v4816_v15 = vpop.f32.mrf.mxu2  ;;  %v2079_v24 = vrot.slane %v2077_v35, 4  ;;  %v9599_v63 = vrot.slane %v8609_v10, 7 }
 0x1a8   : > { %v4817_v0 = vadd.f32 %v4816_v15, %v4718_v14  ;;  %v2372_v61 = vsel %vm8384_vm11, %v2363_v9, %v2371_v8  ;;  %v2373_v25 = vrot.slane %v2371_v8, 4  ;;  %v8657_v15 = vld [vmem:[%s7027_s22 + $0x38] sm:$0xf]  ;;  %v1826_v43 = vsel %vm8402_vm14, %v1824_v32, %v1825_v52  ;;  %v2246_v8 = vld [vmem:[%s7027_s22 + $0x3c] sm:$0xf] }
 0x1a9   : > { %v4720_v16 = vpop.f32.mrf.mxu1  ;;  %2687 = vst [vmem:[#allocation2 + $0x13c] sm:$0xf] %v2372_v61  ;;  %v9537_v53 = vrot.slane %v8657_v15, 6  ;;  %v2817_v36 = vrot.slane %v9599_v63, 4  ;;  %v5718_v61 = vld [vmem:[#allocation2 + $0xc4] sm:$0xf0] }
 0x1aa   : > { %v4916_v59 = vadd.f32 %v8516_v23, %v4817_v0  ;;  %v8638_v45 = vpop.f32.mrf.mxu3  ;;  %v2382_v23 = vsel %vm8384_vm11, %v2373_v25, %v8636_v55  ;;  %v4721_v14 = vadd.f32 %v4720_v16, %v7626_v29  ;;  %v2080_v29 = vrot.slane %v1989_v12, 6  ;;  %v2724_v0 = vld [vmem:[%s7027_s22 + $0x34] sm:$0xf]  ;;  %1952 = vst [vmem:[#allocation2 + $0x134] sm:$0xf] %v1826_v43 }
 0x1ab   : > { %2688 = vst [vmem:[#allocation2 + $0x160] sm:$0xf] %v2382_v23  ;;  %v2818_v16 = vrot.slane %v2724_v0, 7  ;;  %v5724_v25 = vld [vmem:[#allocation2 + $0xa8] sm:$0xf] }
 0x1ac   : > { %v5017_v2 = vpop.f32.mrf.mxu0  ;;  %5065 = vmatmul.bf16.gmra.mxu1 %v5685_v47  ;;  %5164 = vmatmul.bf16.gmra.mxu2 %v5689_v44  ;;  %v8643_v13 = vadd.f32 %v5014_v7, %v4916_v59  ;;  %v1827_v7 = vrot.slane %v1825_v52, 4  ;;  %v2081_v17 = vsel %vm8402_vm14, %v2079_v24, %v2080_v29  ;;  %v2082_v9 = vrot.slane %v2080_v29, 4  ;;  %v6584_v59 = vld [vmem:[#allocation2 + $0xa4] sm:$0xf]  ;;  %v2247_v12 = vld [vmem:[%s7027_s22 + $0x40] sm:$0xf] }
 0x1ad   : > { %v2819_v10 = vsel %vm8434_vm1, %v2817_v36, %v2818_v16  ;;  %v2820_v23 = vrot.slane %v2818_v16, 4  ;;  %2207 = vst [vmem:[#allocation2 + $0x138] sm:$0xf] %v2081_v17  ;;  %v2395_v24 = vshrl.u32 %v2247_v12, 16  ;;  %v2398_v29 = vshll.u32 %v2247_v12, 16 }
 0x1ae   : > { %5273 = vmatmul.bf16.gmra.mxu3 %v5765_v49  ;;  %v1829_v57 = vsel %vm8402_vm14, %v1827_v7, %v1828_v41  ;;  %v6589_v49 = vld [vmem:[#allocation2 + $0xc8] sm:$0xf0]  ;;  %v2084_v52 = vsel %vm8402_vm14, %v2082_v9, %v9537_v53  ;;  %v5732_v7 = vld [vmem:[#allocation2 + $0xb0] sm:$0xf]  ;;  %v6590_v43 = vld [vmem:[#allocation2 + $0xd0] sm:$0xf0]  ;;  %v5721_v17 = vor.u32 %v6584_v59, %v5718_v61 }
 0x1af   : > { %5362 = vmatmul.bf16.gmra.mxu0 %v5697_v11  ;;  %v4819_v26 = vpop.f32.mrf.mxu2  ;;  %1953 = vst [vmem:[#allocation2 + $0x158] sm:$0xf] %v1829_v57  ;;  %v2397_v16 = vrot.slane %v2395_v24, 6  ;;  %v5725_v9 = vor.u32 %v6589_v49, %v5724_v25  ;;  %v5733_v53 = vor.u32 %v6590_v43, %v5732_v7  ;;  %v2383_v12 = vrot.slane %v8636_v55, 4  ;;  %v1733_v25 = vld [vmem:[%s7027_s22 + $0x34] sm:$0xf] }
 0x1b0   : > { %v4820_v47 = vadd.f32 %v4819_v26, %v4721_v14  ;;  %v2385_v14 = vshrl.u32 %v2246_v8, 16  ;;  %v2388_v26 = vshll.u32 %v2246_v8, 16  ;;  %2208 = vst [vmem:[#allocation2 + $0x15c] sm:$0xf] %v2084_v52  ;;  %v1831_v49 = vrot.slane %v1733_v25, 6  ;;  %v9601_v7 = vld [vmem:[#allocation7_spill] sm:$0xff] }
 0x1b1   : > { %v4722_v44 = vpop.f32.mrf.mxu1  ;;  %2945 = vst [vmem:[#allocation2 + $0x140] sm:$0xf] %v2819_v10  ;;  %v8711_v24 = vld [vmem:[%s7027_s22 + $0x38] sm:$0xf]  ;;  %v5760_v25 = vld [vmem:[#allocation2 + $0xf0] sm:$0xf] }
 0x1b2   : > { %v4919_v35 = vadd.f32 %v8560_v39, %v4820_v47  ;;  %v8678_v27 = vpop.f32.mrf.mxu3  ;;  %v9538_v39 = vrot.slane %v8670_v46, 7  ;;  %v4723_v0 = vadd.f32 %v4722_v44, %v7658_v62  ;;  %v2387_v57 = vrot.slane %v2385_v14, 6 }
 0x1b3   : > { %v2390_v63 = vrot.slane %v2388_v26, 7  ;;  %v1833_v43 = vrot.slane %v1831_v49, 4 }
 0x1b4   : > { %v5019_v11 = vpop.f32.mrf.mxu0  ;;  %v8688_v32 = vadd.f32 %v5017_v2, %v4919_v35  ;;  %v2822_v47 = vsel %vm8434_vm1, %v2820_v23, %v9538_v39  ;;  %v2400_v2 = vrot.slane %v2398_v29, 7  ;;  %v6603_v23 = vld [vmem:[#allocation2 + $0x13c] sm:$0xf]  ;;  %v5798_v39 = vld [vmem:[#allocation2 + $0x15c] sm:$0xf0] }
 0x1b5   : > { %2946 = vst [vmem:[#allocation2 + $0x164] sm:$0xf] %v2822_v47  ;;  %v2391_v8 = vor.u32 %v2390_v63, %v2387_v57  ;;  %v5801_v61 = vor.u32 %v6603_v23, %v5798_v39  ;;  %v1991_v29 = vld [vmem:[%s7027_s22 + $0x3c] sm:$0xf]  ;;  %v1830_v39 = vrot.slane %v1828_v41, 4  ;;  %v9540_v57 = vrot.slane %v8711_v24, 6 }
 0x1b6   : > { %v8696_v62 = vor.u32 %v2400_v2, %v2397_v16  ;;  %v8718_v63 = vld [vmem:[%s7027_s22 + $0x40] sm:$0xf]  ;;  %v2086_v16 = vrot.slane %v1991_v29, 6 }
 0x1b7   : > { %v4821_v36 = vpop.f32.mrf.mxu2  ;;  %v2393_v14 = vrot.slane %v2391_v8, 4  ;;  %v2392_v59 = vsel %vm8384_vm11, %v2383_v12, %v2391_v8  ;;  %v9539_v2 = vrot.slane %v8718_v63, 6  ;;  %v1832_v21 = vsel %vm8402_vm14, %v1830_v39, %v1831_v49 }
 0x1b8   : > { %v4822_v35 = vadd.f32 %v4821_v36, %v4723_v0  ;;  %2689 = vst [vmem:[#allocation2 + $0x184] sm:$0xf] %v2392_v59  ;;  %v1835_v41 = vsel %vm8402_vm14, %v1833_v43, %v9540_v57  ;;  %v9603_v8 = vrot.slane %v8670_v46, 7  ;;  %v5768_v43 = vld [vmem:[#allocation2 + $0xf8] sm:$0xf] }
 0x1b9   : > { %v4725_v52 = vpop.f32.mrf.mxu1  ;;  %v2402_v55 = vsel %vm8384_vm11, %v2393_v14, %v8696_v62  ;;  %v5754_v14 = vld [vmem:[#allocation2 + $0x10c] sm:$0xf0]  ;;  %1954 = vst [vmem:[#allocation2 + $0x17c] sm:$0xf] %v1832_v21  ;;  %v6599_v21 = vld [vmem:[#allocation2 + $0x118] sm:$0xf0] }
 0x1ba   : > { %v4921_v44 = vadd.f32 %v8577_v42, %v4822_v35  ;;  %v8699_v26 = vpop.f32.mrf.mxu3  ;;  %2690 = vst [vmem:[#allocation2 + $0x1a8] sm:$0xf] %v2402_v55  ;;  %v4726_v47 = vadd.f32 %v4725_v52, %v9601_v7  ;;  %v2726_v35 = vld [vmem:[%s7027_s22 + $0x3c] sm:$0xf]  ;;  %v2248_v55 = vld [vmem:[%s7027_s22 + $0x44] sm:$0xf] }
 0x1bb   : > { %v2824_v52 = vrot.slane %v2726_v35, 7  ;;  %1955 = vst [vmem:[#allocation2 + $0x1a0] sm:$0xf] %v1835_v41 }
 0x1bc   : > { %v5022_v10 = vpop.f32.mrf.mxu0  ;;  %5070 = vmatmul.bf16.gmra.mxu1 %v5721_v17  ;;  %5169 = vmatmul.bf16.gmra.mxu2 %v5725_v9  ;;  %v8707_v42 = vadd.f32 %v5019_v11, %v4921_v44  ;;  %v8731_v9 = vld [vmem:[%s7027_s22 + $0x40] sm:$0xf]  ;;  %v6593_v44 = vld [vmem:[#allocation2 + $0xec] sm:$0xf] }
 0x1bd   : > { %v2826_v7 = vrot.slane %v2824_v52, 4 }
 0x1be   : > { %9600 = vst [vmem:[#allocation16_spill] sm:$0xff] %v8707_v42  ;;  %5278 = vmatmul.bf16.gmra.mxu3 %v5801_v61  ;;  %v2088_v61 = vrot.slane %v2086_v16, 4 }
 0x1bf   : > { %5367 = vmatmul.bf16.gmra.mxu0 %v5733_v53  ;;  %v4824_v0 = vpop.f32.mrf.mxu2  ;;  %v9602_v53 = vrot.slane %v8657_v15, 6  ;;  %v2823_v15 = vrot.slane %v9603_v8, 4 }
 0x1c0   : > { %v4825_v11 = vadd.f32 %v4824_v0, %v4726_v47  ;;  %v6598_v47 = vld [vmem:[#allocation2 + $0x110] sm:$0xf0]  ;;  %v2090_v29 = vsel %vm8402_vm14, %v2088_v61, %v9539_v2  ;;  %v2249_v0 = vld [vmem:[%s7027_s22 + $0x48] sm:$0xf] }
 0x1c1   : > { %v2085_v36 = vrot.slane %v9602_v53, 4  ;;  %v4727_v17 = vpop.f32.mrf.mxu1  ;;  %v2825_v46 = vsel %vm8434_vm1, %v2823_v15, %v2824_v52  ;;  %2210 = vst [vmem:[#allocation2 + $0x1a4] sm:$0xf] %v2090_v29  ;;  %v2405_v53 = vshrl.u32 %v2248_v55, 16  ;;  %v2415_v41 = vshrl.u32 %v2249_v0, 16 }
 0x1c2   : > { %v4924_v23 = vadd.f32 %v8617_v4, %v4825_v11  ;;  %v8739_v49 = vpop.f32.mrf.mxu3  ;;  %v9541_v4 = vrot.slane %v8731_v9, 7  ;;  %2947 = vst [vmem:[#allocation2 + $0x188] sm:$0xf] %v2825_v46  ;;  %v2418_v8 = vshll.u32 %v2249_v0, 16  ;;  %v5757_v52 = vor.u32 %v6593_v44, %v5754_v14 }
 0x1c3   : > { %v2087_v59 = vsel %vm8402_vm14, %v2085_v36, %v2086_v16  ;;  %v2408_v36 = vshll.u32 %v2248_v55, 16  ;;  %v9605_v16 = vld [vmem:[#allocation9_spill] sm:$0xff]  ;;  %v5761_v61 = vor.u32 %v6598_v47, %v5760_v25  ;;  %v2417_v29 = vrot.slane %v2415_v41, 6  ;;  %v5834_v55 = vld [vmem:[#allocation2 + $0x1a4] sm:$0xf0] }
 0x1c4   : > { %v5024_v12 = vpop.f32.mrf.mxu0  ;;  %2209 = vst [vmem:[#allocation2 + $0x180] sm:$0xf] %v2087_v59  ;;  %v8749_v39 = vadd.f32 %v5022_v10, %v4924_v23  ;;  %v2828_v11 = vsel %vm8434_vm1, %v2826_v7, %v9541_v4  ;;  %v4728_v35 = vadd.f32 %v4727_v17, %v9605_v16  ;;  %v2407_v10 = vrot.slane %v2405_v53, 6  ;;  %v6612_v4 = vld [vmem:[#allocation2 + $0x184] sm:$0xf] }
 0x1c5   : > { %2948 = vst [vmem:[#allocation2 + $0x1ac] sm:$0xf] %v2828_v11  ;;  %v2410_v23 = vrot.slane %v2408_v36, 7  ;;  %v2420_v2 = vrot.slane %v2418_v8, 7  ;;  %v5769_v7 = vor.u32 %v6599_v21, %v5768_v43  ;;  %v2403_v17 = vrot.slane %v8696_v62, 4  ;;  %v9607_v36 = vld [vmem:[#allocation11_spill] sm:$0xff] }
 0x1c6   : > { %9604 = vst [vmem:[#allocation7_spill] sm:$0xff] %v8749_v39  ;;  %v5837_v43 = vor.u32 %v6612_v4, %v5834_v55  ;;  %v1735_v62 = vld [vmem:[%s7027_s22 + $0x3c] sm:$0xf]  ;;  %v1993_v53 = vld [vmem:[%s7027_s22 + $0x44] sm:$0xf]  ;;  %v9608_v4 = vrot.slane %v8711_v24, 6 }
 0x1c7   : > { %v4826_v15 = vpop.f32.mrf.mxu2  ;;  %v2411_v16 = vor.u32 %v2410_v23, %v2407_v10  ;;  %v8758_v44 = vor.u32 %v2420_v2, %v2417_v29  ;;  %v1837_v2 = vrot.slane %v1735_v62, 6  ;;  %v8773_v21 = vld [vmem:[%s7027_s22 + $0x40] sm:$0xf]  ;;  %v9609_v23 = vrot.slane %v8718_v63, 6  ;;  %v2728_v29 = vld [vmem:[%s7027_s22 + $0x44] sm:$0xf] }
 0x1c8   : > { %v4827_v59 = vadd.f32 %v4826_v15, %v4728_v35  ;;  %v1836_v8 = vrot.slane %v9608_v4, 4  ;;  %v9543_v15 = vrot.slane %v8773_v21, 6 }
 0x1c9   : > { %v4730_v57 = vpop.f32.mrf.mxu1  ;;  %v2412_v25 = vsel %vm8384_vm11, %v2403_v17, %v2411_v16  ;;  %v2413_v47 = vrot.slane %v2411_v16, 4  ;;  %v8792_v17 = vld [vmem:[%s7027_s22 + $0x48] sm:$0xf]  ;;  %v9610_v16 = vrot.slane %v8731_v9, 7 }
 0x1ca   : > { %v4926_v46 = vadd.f32 %v8638_v45, %v4827_v59  ;;  %v8760_v14 = vpop.f32.mrf.mxu3  ;;  %2691 = vst [vmem:[#allocation2 + $0x1cc] sm:$0xf] %v2412_v25  ;;  %v4731_v35 = vadd.f32 %v4730_v57, %v9607_v36  ;;  %v2091_v59 = vrot.slane %v9609_v23, 4  ;;  %v2092_v57 = vrot.slane %v1993_v53, 6  ;;  %v5790_v53 = vld [vmem:[#allocation2 + $0x154] sm:$0xf0] }
 0x1cb   : > { %v2422_v45 = vsel %vm8384_vm11, %v2413_v47, %v8758_v44  ;;  %v1838_v24 = vsel %vm8402_vm14, %v1836_v8, %v1837_v2  ;;  %v2829_v63 = vrot.slane %v9610_v16, 4  ;;  %v5796_v36 = vld [vmem:[#allocation2 + $0x138] sm:$0xf] }
 0x1cc   : > { %v5027_v0 = vpop.f32.mrf.mxu0  ;;  %5075 = vmatmul.bf16.gmra.mxu1 %v5757_v52  ;;  %5174 = vmatmul.bf16.gmra.mxu2 %v5761_v61  ;;  %v8765_v11 = vadd.f32 %v5024_v12, %v4926_v46  ;;  %2692 = vst [vmem:[#allocation2 + $0x1f0] sm:$0xf] %v2422_v45  ;;  %v1839_v12 = vrot.slane %v1837_v2, 4  ;;  %v8779_v52 = vld [vmem:[%s7027_s22 + $0x48] sm:$0xf]  ;;  %v2830_v46 = vrot.slane %v2728_v29, 7 }
 0x1cd   : > { %v9542_v61 = vrot.slane %v8779_v52, 6  ;;  %1956 = vst [vmem:[#allocation2 + $0x1c4] sm:$0xf] %v1838_v24  ;;  %v2094_v62 = vrot.slane %v2092_v57, 4  ;;  %v2250_v45 = vld [vmem:[%s7027_s22 + $0x4c] sm:$0xf] }
 0x1ce   : > { %9606 = vst [vmem:[#allocation9_spill] sm:$0xff] %v8765_v11  ;;  %5283 = vmatmul.bf16.gmra.mxu3 %v5837_v43  ;;  %v1841_v55 = vsel %vm8402_vm14, %v1839_v12, %v9543_v15  ;;  %v2093_v43 = vsel %vm8402_vm14, %v2091_v59, %v2092_v57  ;;  %v6602_v2 = vld [vmem:[#allocation2 + $0x134] sm:$0xf]  ;;  %v2831_v9 = vsel %vm8434_vm1, %v2829_v63, %v2830_v46  ;;  %v2832_v4 = vrot.slane %v2830_v46, 4  ;;  %v2251_v12 = vld [vmem:[%s7027_s22 + $0x50] sm:$0xf] }
 0x1cf   : > { %5372 = vmatmul.bf16.gmra.mxu0 %v5769_v7  ;;  %v4829_v41 = vpop.f32.mrf.mxu2  ;;  %1957 = vst [vmem:[#allocation2 + $0x1e8] sm:$0xf] %v1841_v55  ;;  %v2096_v8 = vsel %vm8402_vm14, %v2094_v62, %v9542_v61  ;;  %v2428_v23 = vshll.u32 %v2250_v45, 16  ;;  %v5804_v57 = vld [vmem:[#allocation2 + $0x140] sm:$0xf]  ;;  %v2435_v24 = vshrl.u32 %v2251_v12, 16  ;;  %v5793_v15 = vor.u32 %v6602_v2, %v5790_v53 }
 0x1d0   : > { %v4830_v10 = vadd.f32 %v4829_v41, %v4731_v35  ;;  %v6607_v35 = vld [vmem:[#allocation2 + $0x158] sm:$0xf0]  ;;  %2211 = vst [vmem:[#allocation2 + $0x1c8] sm:$0xf] %v2093_v43  ;;  %v2438_v55 = vshll.u32 %v2251_v12, 16  ;;  %v2423_v12 = vrot.slane %v8758_v44, 4 }
 0x1d1   : > { %v4732_v7 = vpop.f32.mrf.mxu1  ;;  %2212 = vst [vmem:[#allocation2 + $0x1ec] sm:$0xf] %v2096_v8  ;;  %v9612_v16 = vld [vmem:[#allocation12_spill] sm:$0xff]  ;;  %v6608_v46 = vld [vmem:[#allocation2 + $0x160] sm:$0xf0]  ;;  %v2430_v43 = vrot.slane %v2428_v23, 7  ;;  %v5797_v8 = vor.u32 %v6607_v35, %v5796_v36 }
 0x1d2   : > { %v4929_v25 = vadd.f32 %v8678_v27, %v4830_v10  ;;  %v8800_v41 = vpop.f32.mrf.mxu3  ;;  %v9544_v27 = vrot.slane %v8792_v17, 7  ;;  %v2425_v10 = vshrl.u32 %v2250_v45, 16  ;;  %v4733_v63 = vadd.f32 %v4732_v7, %v9612_v16  ;;  %2949 = vst [vmem:[#allocation2 + $0x1d0] sm:$0xf] %v2831_v9  ;;  %v1737_v53 = vld [vmem:[%s7027_s22 + $0x44] sm:$0xf] }
 0x1d3   : > { %v2437_v45 = vrot.slane %v2435_v24, 6  ;;  %v5805_v39 = vor.u32 %v6608_v46, %v5804_v57  ;;  %v1843_v36 = vrot.slane %v1737_v53, 6  ;;  %v9614_v35 = vld [vmem:[#allocation13_spill] sm:$0xff]  ;;  %v8833_v24 = vld [vmem:[%s7027_s22 + $0x48] sm:$0xf] }
 0x1d4   : > { %v5029_v47 = vpop.f32.mrf.mxu0  ;;  %v8810_v59 = vadd.f32 %v5027_v0, %v4929_v25  ;;  %v2834_v29 = vsel %vm8434_vm1, %v2832_v4, %v9544_v27  ;;  %v2427_v62 = vrot.slane %v2425_v10, 6  ;;  %v2440_v0 = vrot.slane %v2438_v55, 7  ;;  %v6621_v4 = vld [vmem:[#allocation2 + $0x1cc] sm:$0xf]  ;;  %v5870_v27 = vld [vmem:[#allocation2 + $0x1ec] sm:$0xf0] }
 0x1d5   : > { %2950 = vst [vmem:[#allocation2 + $0x1f4] sm:$0xf] %v2834_v29  ;;  %v5873_v2 = vor.u32 %v6621_v4, %v5870_v27  ;;  %v9615_v27 = vrot.slane %v8773_v21, 6  ;;  %v1845_v16 = vrot.slane %v1843_v36, 4  ;;  %v8840_v46 = vld [vmem:[%s7027_s22 + $0x50] sm:$0xf] }
 0x1d6   : > { %9611 = vst [vmem:[#allocation11_spill] sm:$0xff] %v8810_v59  ;;  %v2431_v59 = vor.u32 %v2430_v43, %v2427_v62  ;;  %v8818_v7 = vor.u32 %v2440_v0, %v2437_v45  ;;  %v2730_v45 = vld [vmem:[%s7027_s22 + $0x4c] sm:$0xf]  ;;  %v9617_v4 = vrot.slane %v8792_v17, 7 }
 0x1d7   : > { %v4831_v61 = vpop.f32.mrf.mxu2  ;;  %v1842_v55 = vrot.slane %v9615_v27, 4 }
 0x1d8   : > { %v4832_v25 = vadd.f32 %v4831_v61, %v4733_v63  ;;  %v2433_v23 = vrot.slane %v2431_v59, 4  ;;  %v2432_v61 = vsel %vm8384_vm11, %v2423_v12, %v2431_v59  ;;  %v9546_v63 = vrot.slane %v8833_v24, 6 }
 0x1d9   : > { %v4735_v11 = vpop.f32.mrf.mxu1  ;;  %2693 = vst [vmem:[#allocation2 + $0x214] sm:$0xf] %v2432_v61  ;;  %v1844_v21 = vsel %vm8402_vm14, %v1842_v55, %v1843_v36  ;;  %v2836_v12 = vrot.slane %v2730_v45, 7  ;;  %v6611_v61 = vld [vmem:[#allocation2 + $0x17c] sm:$0xf]  ;;  %v9619_v45 = vld [vmem:[#allocation14_spill] sm:$0xff] }
 0x1da   : > { %v4931_v9 = vadd.f32 %v8699_v26, %v4832_v25  ;;  %v8821_v29 = vpop.f32.mrf.mxu3  ;;  %v2442_v44 = vsel %vm8384_vm11, %v2433_v23, %v8818_v7  ;;  %v4736_v57 = vadd.f32 %v4735_v11, %v9614_v35  ;;  %v9545_v11 = vrot.slane %v8840_v46, 6  ;;  %1958 = vst [vmem:[#allocation2 + $0x20c] sm:$0xf] %v1844_v21  ;;  %v2252_v36 = vld [vmem:[%s7027_s22 + $0x54] sm:$0xf] }
 0x1db   : > { %2694 = vst [vmem:[#allocation2 + $0x238] sm:$0xf] %v2442_v44  ;;  %v1847_v25 = vsel %vm8402_vm14, %v1845_v16, %v9546_v63  ;;  %v5832_v35 = vld [vmem:[#allocation2 + $0x180] sm:$0xf]  ;;  %v2253_v55 = vld [vmem:[%s7027_s22 + $0x58] sm:$0xf] }
 0x1dc   : > { %v5032_v10 = vpop.f32.mrf.mxu0  ;;  %5080 = vmatmul.bf16.gmra.mxu1 %v5793_v15  ;;  %5179 = vmatmul.bf16.gmra.mxu2 %v5797_v8  ;;  %v8829_v26 = vadd.f32 %v5029_v47, %v4931_v9  ;;  %v1995_v15 = vld [vmem:[%s7027_s22 + $0x4c] sm:$0xf]  ;;  %v8853_v8 = vld [vmem:[%s7027_s22 + $0x50] sm:$0xf]  ;;  %1959 = vst [vmem:[#allocation2 + $0x230] sm:$0xf] %v1847_v25 }
 0x1dd   : > { %v2098_v43 = vrot.slane %v1995_v15, 6  ;;  %v2838_v15 = vrot.slane %v2836_v12, 4  ;;  %v6617_v25 = vld [vmem:[#allocation2 + $0x1a8] sm:$0xf0] }
 0x1de   : > { %9613 = vst [vmem:[#allocation12_spill] sm:$0xff] %v8829_v26  ;;  %5288 = vmatmul.bf16.gmra.mxu3 %v5873_v2  ;;  %v5826_v2 = vld [vmem:[#allocation2 + $0x19c] sm:$0xf0] }
 0x1df   : > { %5377 = vmatmul.bf16.gmra.mxu0 %v5805_v39  ;;  %v4834_v59 = vpop.f32.mrf.mxu2  ;;  %v9616_v39 = vrot.slane %v8779_v52, 6  ;;  %v2835_v52 = vrot.slane %v9617_v4, 4  ;;  %v2100_v53 = vrot.slane %v2098_v43, 4  ;;  %v2455_v4 = vshrl.u32 %v2253_v55, 16 }
 0x1e0   : > { %v4835_v47 = vadd.f32 %v4834_v59, %v4736_v57  ;;  %v6616_v59 = vld [vmem:[#allocation2 + $0x1a0] sm:$0xf0] }
 0x1e1   : > { %v2097_v62 = vrot.slane %v9616_v39, 4  ;;  %v4737_v0 = vpop.f32.mrf.mxu1  ;;  %v2837_v17 = vsel %vm8434_vm1, %v2835_v52, %v2836_v12  ;;  %v2102_v27 = vsel %vm8402_vm14, %v2100_v53, %v9545_v11  ;;  %v2458_v52 = vshll.u32 %v2253_v55, 16 }
 0x1e2   : > { %v4934_v9 = vadd.f32 %v8739_v49, %v4835_v47  ;;  %v8861_v57 = vpop.f32.mrf.mxu3  ;;  %v9547_v49 = vrot.slane %v8853_v8, 7  ;;  %v5840_v47 = vld [vmem:[#allocation2 + $0x188] sm:$0xf]  ;;  %2214 = vst [vmem:[#allocation2 + $0x234] sm:$0xf] %v2102_v27  ;;  %v4738_v21 = vadd.f32 %v4737_v0, %v9619_v45  ;;  %v5833_v27 = vor.u32 %v6616_v59, %v5832_v35 }
 0x1e3   : > { %v2099_v44 = vsel %vm8402_vm14, %v2097_v62, %v2098_v43  ;;  %v2445_v62 = vshrl.u32 %v2252_v36, 16  ;;  %v2448_v43 = vshll.u32 %v2252_v36, 16  ;;  %2951 = vst [vmem:[#allocation2 + $0x218] sm:$0xf] %v2837_v17  ;;  %v2457_v11 = vrot.slane %v2455_v4, 6 }
 0x1e4   : > { %v5034_v23 = vpop.f32.mrf.mxu0  ;;  %2213 = vst [vmem:[#allocation2 + $0x210] sm:$0xf] %v2099_v44  ;;  %v8871_v16 = vadd.f32 %v5032_v10, %v4934_v9  ;;  %v2840_v39 = vsel %vm8434_vm1, %v2838_v15, %v9547_v49  ;;  %v5829_v44 = vor.u32 %v6611_v61, %v5826_v2  ;;  %v2460_v63 = vrot.slane %v2458_v52, 7  ;;  %v6630_v49 = vld [vmem:[#allocation2 + $0x214] sm:$0xf] }
 0x1e5   : > { %2952 = vst [vmem:[#allocation2 + $0x23c] sm:$0xf] %v2840_v39  ;;  %v2447_v10 = vrot.slane %v2445_v62, 6  ;;  %v2450_v9 = vrot.slane %v2448_v43, 7  ;;  %v5841_v15 = vor.u32 %v6617_v25, %v5840_v47  ;;  %v5906_v36 = vld [vmem:[#allocation2 + $0x234] sm:$0xf0] }
 0x1e6   : > { %9618 = vst [vmem:[#allocation13_spill] sm:$0xff] %v8871_v16  ;;  %v2443_v0 = vrot.slane %v8818_v7, 4  ;;  %v8880_v61 = vor.u32 %v2460_v63, %v2457_v11  ;;  %v5909_v47 = vor.u32 %v6630_v49, %v5906_v36  ;;  %v1739_v7 = vld [vmem:[%s7027_s22 + $0x4c] sm:$0xf]  ;;  %v1997_v11 = vld [vmem:[%s7027_s22 + $0x54] sm:$0xf] }
 0x1e7   : > { %v4836_v12 = vpop.f32.mrf.mxu2  ;;  %v2451_v45 = vor.u32 %v2450_v9, %v2447_v10  ;;  %v1849_v63 = vrot.slane %v1739_v7, 6  ;;  %v9621_v62 = vld [vmem:[#allocation3_spill] sm:$0xff]  ;;  %v9622_v49 = vrot.slane %v8833_v24, 6  ;;  %v9623_v10 = vrot.slane %v8840_v46, 6 }
 0x1e8   : > { %v4837_v53 = vadd.f32 %v4836_v12, %v4738_v21  ;;  %v8895_v21 = vld [vmem:[%s7027_s22 + $0x50] sm:$0xf]  ;;  %v8901_v12 = vld [vmem:[%s7027_s22 + $0x58] sm:$0xf] }
 0x1e9   : > { %v4740_v16 = vpop.f32.mrf.mxu1  ;;  %v2452_v35 = vsel %vm8384_vm11, %v2443_v0, %v2451_v45  ;;  %v2453_v59 = vrot.slane %v2451_v45, 4  ;;  %v1848_v4 = vrot.slane %v9622_v49, 4  ;;  %v9549_v52 = vrot.slane %v8895_v21, 6  ;;  %v8914_v0 = vld [vmem:[%s7027_s22 + $0x58] sm:$0xf] }
 0x1ea   : > { %v4936_v17 = vadd.f32 %v8760_v14, %v4837_v53  ;;  %v8882_v2 = vpop.f32.mrf.mxu3  ;;  %2695 = vst [vmem:[#allocation2 + $0x25c] sm:$0xf] %v2452_v35  ;;  %v4741_v43 = vadd.f32 %v4740_v16, %v9621_v62  ;;  %v2103_v9 = vrot.slane %v9623_v10, 4  ;;  %v2104_v16 = vrot.slane %v1997_v11, 6  ;;  %v5862_v11 = vld [vmem:[#allocation2 + $0x1e4] sm:$0xf0] }
 0x1eb   : > { %v2462_v14 = vsel %vm8384_vm11, %v2453_v59, %v8880_v61  ;;  %v9548_v53 = vrot.slane %v8901_v12, 6  ;;  %v1850_v24 = vsel %vm8402_vm14, %v1848_v4, %v1849_v63  ;;  %v9624_v45 = vrot.slane %v8853_v8, 7  ;;  %v5868_v62 = vld [vmem:[#allocation2 + $0x1c8] sm:$0xf] }
 0x1ec   : > { %v5037_v55 = vpop.f32.mrf.mxu0  ;;  %5085 = vmatmul.bf16.gmra.mxu1 %v5829_v44  ;;  %5184 = vmatmul.bf16.gmra.mxu2 %v5833_v27  ;;  %v8887_v39 = vadd.f32 %v5034_v23, %v4936_v17  ;;  %2696 = vst [vmem:[#allocation2 + $0x280] sm:$0xf] %v2462_v14  ;;  %v1851_v23 = vrot.slane %v1849_v63, 4  ;;  %v2732_v27 = vld [vmem:[%s7027_s22 + $0x54] sm:$0xf]  ;;  %v2106_v7 = vrot.slane %v2104_v16, 4 }
 0x1ed   : > { %v2841_v46 = vrot.slane %v9624_v45, 4  ;;  %v2842_v17 = vrot.slane %v2732_v27, 7  ;;  %1960 = vst [vmem:[#allocation2 + $0x254] sm:$0xf] %v1850_v24  ;;  %v2254_v14 = vld [vmem:[%s7027_s22 + $0x5c] sm:$0xf] }
 0x1ee   : > { %9620 = vst [vmem:[#allocation14_spill] sm:$0xff] %v8887_v39  ;;  %5293 = vmatmul.bf16.gmra.mxu3 %v5909_v47  ;;  %v1853_v36 = vsel %vm8402_vm14, %v1851_v23, %v9549_v52  ;;  %v2105_v47 = vsel %vm8402_vm14, %v2103_v9, %v2104_v16  ;;  %v6620_v63 = vld [vmem:[#allocation2 + $0x1c4] sm:$0xf]  ;;  %v2108_v4 = vsel %vm8402_vm14, %v2106_v7, %v9548_v53  ;;  %v2255_v23 = vld [vmem:[%s7027_s22 + $0x60] sm:$0xf]  ;;  %v2468_v10 = vshll.u32 %v2254_v14, 16 }
 0x1ef   : > { %5382 = vmatmul.bf16.gmra.mxu0 %v5841_v15  ;;  %v4839_v25 = vpop.f32.mrf.mxu2  ;;  %1961 = vst [vmem:[#allocation2 + $0x278] sm:$0xf] %v1853_v36  ;;  %v2843_v8 = vsel %vm8434_vm1, %v2841_v46, %v2842_v17  ;;  %v2844_v49 = vrot.slane %v2842_v17, 4  ;;  %v5876_v16 = vld [vmem:[#allocation2 + $0x1d0] sm:$0xf]  ;;  %v2475_v24 = vshrl.u32 %v2255_v23, 16  ;;  %v5865_v52 = vor.u32 %v6620_v63, %v5862_v11 }
 0x1f0   : > { %v4840_v44 = vadd.f32 %v4839_v25, %v4741_v43  ;;  %v6625_v43 = vld [vmem:[#allocation2 + $0x1e8] sm:$0xf0]  ;;  %2215 = vst [vmem:[#allocation2 + $0x258] sm:$0xf] %v2105_v47  ;;  %v2478_v36 = vshll.u32 %v2255_v23, 16  ;;  %v9626_v45 = vld [vmem:[#allocation4_spill] sm:$0xff] }
 0x1f1   : > { %v4742_v15 = vpop.f32.mrf.mxu1  ;;  %2216 = vst [vmem:[#allocation2 + $0x27c] sm:$0xf] %v2108_v4  ;;  %v6626_v17 = vld [vmem:[#allocation2 + $0x1f0] sm:$0xf0]  ;;  %v2470_v47 = vrot.slane %v2468_v10, 7  ;;  %v5869_v4 = vor.u32 %v6625_v43, %v5868_v62  ;;  %v2463_v23 = vrot.slane %v8880_v61, 4 }
 0x1f2   : > { %v4939_v35 = vadd.f32 %v8800_v41, %v4840_v44  ;;  %v8922_v25 = vpop.f32.mrf.mxu3  ;;  %v9550_v41 = vrot.slane %v8914_v0, 7  ;;  %v2465_v44 = vshrl.u32 %v2254_v14, 16  ;;  %v4743_v46 = vadd.f32 %v4742_v15, %v9626_v45  ;;  %2953 = vst [vmem:[#allocation2 + $0x260] sm:$0xf] %v2843_v8  ;;  %v1741_v11 = vld [vmem:[%s7027_s22 + $0x54] sm:$0xf] }
 0x1f3   : > { %v2477_v14 = vrot.slane %v2475_v24, 6  ;;  %v5877_v26 = vor.u32 %v6626_v17, %v5876_v16  ;;  %v1855_v62 = vrot.slane %v1741_v11, 6  ;;  %v9628_v43 = vld [vmem:[#allocation5_spill] sm:$0xff]  ;;  %v8955_v24 = vld [vmem:[%s7027_s22 + $0x58] sm:$0xf] }
 0x1f4   : > { %v5039_v59 = vpop.f32.mrf.mxu0  ;;  %v8932_v9 = vadd.f32 %v5037_v55, %v4939_v35  ;;  %v2846_v27 = vsel %vm8434_vm1, %v2844_v49, %v9550_v41  ;;  %v2467_v7 = vrot.slane %v2465_v44, 6  ;;  %v2480_v55 = vrot.slane %v2478_v36, 7  ;;  %v6639_v49 = vld [vmem:[#allocation2 + $0x25c] sm:$0xf]  ;;  %v5942_v41 = vld [vmem:[#allocation2 + $0x27c] sm:$0xf0] }
 0x1f5   : > { %2954 = vst [vmem:[#allocation2 + $0x284] sm:$0xf] %v2846_v27  ;;  %v5945_v63 = vor.u32 %v6639_v49, %v5942_v41  ;;  %v9629_v41 = vrot.slane %v8895_v21, 6  ;;  %v1857_v45 = vrot.slane %v1855_v62, 4  ;;  %v8962_v17 = vld [vmem:[%s7027_s22 + $0x60] sm:$0xf] }
 0x1f6   : > { %9625 = vst [vmem:[#allocation3_spill] sm:$0xff] %v8932_v9  ;;  %v2471_v9 = vor.u32 %v2470_v47, %v2467_v7  ;;  %v8940_v15 = vor.u32 %v2480_v55, %v2477_v14  ;;  %v2734_v14 = vld [vmem:[%s7027_s22 + $0x5c] sm:$0xf]  ;;  %v9631_v49 = vrot.slane %v8914_v0, 7 }
 0x1f7   : > { %v4841_v53 = vpop.f32.mrf.mxu2  ;;  %v1854_v36 = vrot.slane %v9629_v41, 4 }
 0x1f8   : > { %v4842_v35 = vadd.f32 %v4841_v53, %v4743_v46  ;;  %v2473_v10 = vrot.slane %v2471_v9, 4  ;;  %v2472_v53 = vsel %vm8384_vm11, %v2463_v23, %v2471_v9  ;;  %v9552_v46 = vrot.slane %v8955_v24, 6 }
 0x1f9   : > { %v4745_v39 = vpop.f32.mrf.mxu1  ;;  %2697 = vst [vmem:[#allocation2 + $0x2a4] sm:$0xf] %v2472_v53  ;;  %v1856_v21 = vsel %vm8402_vm14, %v1854_v36, %v1855_v62  ;;  %v2848_v23 = vrot.slane %v2734_v14, 7  ;;  %v6629_v53 = vld [vmem:[#allocation2 + $0x20c] sm:$0xf] }
 0x1fa   : > { %v4941_v8 = vadd.f32 %v8821_v29, %v4842_v35  ;;  %v8943_v27 = vpop.f32.mrf.mxu3  ;;  %v2482_v61 = vsel %vm8384_vm11, %v2473_v10, %v8940_v15  ;;  %v4746_v16 = vadd.f32 %v4745_v39, %v9628_v43  ;;  %v9551_v39 = vrot.slane %v8962_v17, 6  ;;  %1962 = vst [vmem:[#allocation2 + $0x29c] sm:$0xf] %v1856_v21  ;;  %v2256_v62 = vld [vmem:[%s7027_s22 + $0x64] sm:$0xf]  ;;  %v9633_v14 = vld [vmem:[#allocation6_spill] sm:$0xff] }
 0x1fb   : > { %2698 = vst [vmem:[#allocation2 + $0x2c8] sm:$0xf] %v2482_v61  ;;  %v1859_v35 = vsel %vm8402_vm14, %v1857_v45, %v9552_v46  ;;  %v5904_v43 = vld [vmem:[#allocation2 + $0x210] sm:$0xf]  ;;  %v2257_v36 = vld [vmem:[%s7027_s22 + $0x68] sm:$0xf] }
 0x1fc   : > { %v5042_v44 = vpop.f32.mrf.mxu0  ;;  %5090 = vmatmul.bf16.gmra.mxu1 %v5865_v52  ;;  %5189 = vmatmul.bf16.gmra.mxu2 %v5869_v4  ;;  %v8951_v29 = vadd.f32 %v5039_v59, %v4941_v8  ;;  %v1999_v52 = vld [vmem:[%s7027_s22 + $0x5c] sm:$0xf]  ;;  %v8975_v4 = vld [vmem:[%s7027_s22 + $0x60] sm:$0xf]  ;;  %1963 = vst [vmem:[#allocation2 + $0x2c0] sm:$0xf] %v1859_v35 }
 0x1fd   : > { %v2110_v47 = vrot.slane %v1999_v52, 6  ;;  %v2850_v52 = vrot.slane %v2848_v23, 4  ;;  %v6635_v35 = vld [vmem:[#allocation2 + $0x238] sm:$0xf0] }
 0x1fe   : > { %9627 = vst [vmem:[#allocation4_spill] sm:$0xff] %v8951_v29  ;;  %5298 = vmatmul.bf16.gmra.mxu3 %v5945_v63  ;;  %v5898_v63 = vld [vmem:[#allocation2 + $0x22c] sm:$0xf0] }
 0x1ff   : > { %5387 = vmatmul.bf16.gmra.mxu0 %v5877_v26  ;;  %v4844_v9 = vpop.f32.mrf.mxu2  ;;  %v9630_v26 = vrot.slane %v8901_v12, 6  ;;  %v2847_v12 = vrot.slane %v9631_v49, 4  ;;  %v2112_v11 = vrot.slane %v2110_v47, 4  ;;  %v2495_v49 = vshrl.u32 %v2257_v36, 16 }
 0x200   : > { %v4845_v59 = vadd.f32 %v4844_v9, %v4746_v16  ;;  %v6634_v9 = vld [vmem:[#allocation2 + $0x230] sm:$0xf0] }
 0x201   : > { %v2109_v7 = vrot.slane %v9630_v26, 4  ;;  %v4747_v55 = vpop.f32.mrf.mxu1  ;;  %v2849_v0 = vsel %vm8434_vm1, %v2847_v12, %v2848_v23  ;;  %v2114_v41 = vsel %vm8402_vm14, %v2112_v11, %v9551_v39  ;;  %v2498_v12 = vshll.u32 %v2257_v36, 16 }
 0x202   : > { %v4944_v8 = vadd.f32 %v8861_v57, %v4845_v59  ;;  %v8983_v16 = vpop.f32.mrf.mxu3  ;;  %v9553_v57 = vrot.slane %v8975_v4, 7  ;;  %v5912_v59 = vld [vmem:[#allocation2 + $0x218] sm:$0xf]  ;;  %2218 = vst [vmem:[#allocation2 + $0x2c4] sm:$0xf] %v2114_v41  ;;  %v4748_v21 = vadd.f32 %v4747_v55, %v9633_v14  ;;  %v5905_v41 = vor.u32 %v6634_v9, %v5904_v43 }
 0x203   : > { %v2111_v61 = vsel %vm8402_vm14, %v2109_v7, %v2110_v47  ;;  %v2485_v7 = vshrl.u32 %v2256_v62, 16  ;;  %v2488_v47 = vshll.u32 %v2256_v62, 16  ;;  %2955 = vst [vmem:[#allocation2 + $0x2a8] sm:$0xf] %v2849_v0  ;;  %v2497_v39 = vrot.slane %v2495_v49, 6 }
 0x204   : > { %v5044_v10 = vpop.f32.mrf.mxu0  ;;  %2217 = vst [vmem:[#allocation2 + $0x2a0] sm:$0xf] %v2111_v61  ;;  %v8993_v45 = vadd.f32 %v5042_v44, %v4944_v8  ;;  %v2852_v26 = vsel %vm8434_vm1, %v2850_v52, %v9553_v57  ;;  %v5901_v61 = vor.u32 %v6629_v53, %v5898_v63  ;;  %v2500_v46 = vrot.slane %v2498_v12, 7  ;;  %v6648_v57 = vld [vmem:[#allocation2 + $0x2a4] sm:$0xf] }
 0x205   : > { %2956 = vst [vmem:[#allocation2 + $0x2cc] sm:$0xf] %v2852_v26  ;;  %v2487_v44 = vrot.slane %v2485_v7, 6  ;;  %v2490_v8 = vrot.slane %v2488_v47, 7  ;;  %v5913_v52 = vor.u32 %v6635_v35, %v5912_v59  ;;  %v5978_v62 = vld [vmem:[#allocation2 + $0x2c4] sm:$0xf0] }
 0x206   : > { %9632 = vst [vmem:[#allocation5_spill] sm:$0xff] %v8993_v45  ;;  %v2483_v55 = vrot.slane %v8940_v15, 4  ;;  %v9002_v53 = vor.u32 %v2500_v46, %v2497_v39  ;;  %v5981_v59 = vor.u32 %v6648_v57, %v5978_v62  ;;  %v1743_v15 = vld [vmem:[%s7027_s22 + $0x5c] sm:$0xf]  ;;  %v2001_v39 = vld [vmem:[%s7027_s22 + $0x64] sm:$0xf] }
 0x207   : > { %v4846_v23 = vpop.f32.mrf.mxu2  ;;  %v2491_v14 = vor.u32 %v2490_v8, %v2487_v44  ;;  %v1861_v46 = vrot.slane %v1743_v15, 6  ;;  %v9635_v7 = vld [vmem:[#allocation8_spill] sm:$0xff]  ;;  %v9636_v57 = vrot.slane %v8955_v24, 6  ;;  %v9637_v44 = vrot.slane %v8962_v17, 6 }
 0x208   : > { %v4847_v11 = vadd.f32 %v4846_v23, %v4748_v21  ;;  %v9017_v21 = vld [vmem:[%s7027_s22 + $0x60] sm:$0xf]  ;;  %v9023_v23 = vld [vmem:[%s7027_s22 + $0x68] sm:$0xf] }
 0x209   : > { %v4750_v45 = vpop.f32.mrf.mxu1  ;;  %v2492_v43 = vsel %vm8384_vm11, %v2483_v55, %v2491_v14  ;;  %v2493_v9 = vrot.slane %v2491_v14, 4  ;;  %v1860_v49 = vrot.slane %v9636_v57, 4  ;;  %v9554_v12 = vrot.slane %v9017_v21, 6  ;;  %v9036_v55 = vld [vmem:[%s7027_s22 + $0x68] sm:$0xf] }
 0x20a   : > { %v4946_v0 = vadd.f32 %v8882_v2, %v4847_v11  ;;  %v9004_v63 = vpop.f32.mrf.mxu3  ;;  %2699 = vst [vmem:[#allocation2 + $0x2ec] sm:$0xf] %v2492_v43  ;;  %v4751_v47 = vadd.f32 %v4750_v45, %v9635_v7  ;;  %v2115_v8 = vrot.slane %v9637_v44, 4  ;;  %v2116_v45 = vrot.slane %v2001_v39, 6  ;;  %v5934_v39 = vld [vmem:[#allocation2 + $0x274] sm:$0xf0] }
 0x20b   : > { %v2502_v2 = vsel %vm8384_vm11, %v2493_v9, %v9002_v53  ;;  %v9555_v11 = vrot.slane %v9023_v23, 6  ;;  %v1862_v24 = vsel %vm8402_vm14, %v1860_v49, %v1861_v46  ;;  %v9638_v14 = vrot.slane %v8975_v4, 7  ;;  %v5940_v7 = vld [vmem:[#allocation2 + $0x258] sm:$0xf] }
 0x20c   : > { %v5047_v36 = vpop.f32.mrf.mxu0  ;;  %5095 = vmatmul.bf16.gmra.mxu1 %v5901_v61  ;;  %5194 = vmatmul.bf16.gmra.mxu2 %v5905_v41  ;;  %v9009_v26 = vadd.f32 %v5044_v10, %v4946_v0  ;;  %2700 = vst [vmem:[#allocation2 + $0x310] sm:$0xf] %v2502_v2  ;;  %v1863_v10 = vrot.slane %v1861_v46, 4  ;;  %v2736_v41 = vld [vmem:[%s7027_s22 + $0x64] sm:$0xf]  ;;  %v2118_v15 = vrot.slane %v2116_v45, 4 }
 0x20d   : > { %v2853_v17 = vrot.slane %v9638_v14, 4  ;;  %v2854_v0 = vrot.slane %v2736_v41, 7  ;;  %1964 = vst [vmem:[#allocation2 + $0x2e4] sm:$0xf] %v1862_v24  ;;  %v2258_v2 = vld [vmem:[%s7027_s22 + $0x6c] sm:$0xf] }
 0x20e   : > { %9634 = vst [vmem:[#allocation6_spill] sm:$0xff] %v9009_v26  ;;  %5303 = vmatmul.bf16.gmra.mxu3 %v5981_v59  ;;  %v1865_v62 = vsel %vm8402_vm14, %v1863_v10, %v9554_v12  ;;  %v2117_v59 = vsel %vm8402_vm14, %v2115_v8, %v2116_v45  ;;  %v6638_v46 = vld [vmem:[#allocation2 + $0x254] sm:$0xf]  ;;  %v2120_v49 = vsel %vm8402_vm14, %v2118_v15, %v9555_v11  ;;  %v2259_v10 = vld [vmem:[%s7027_s22 + $0x70] sm:$0xf]  ;;  %v2508_v44 = vshll.u32 %v2258_v2, 16 }
 0x20f   : > { %5392 = vmatmul.bf16.gmra.mxu0 %v5913_v52  ;;  %v4849_v35 = vpop.f32.mrf.mxu2  ;;  %1965 = vst [vmem:[#allocation2 + $0x308] sm:$0xf] %v1865_v62  ;;  %v2855_v4 = vsel %vm8434_vm1, %v2853_v17, %v2854_v0  ;;  %v2856_v57 = vrot.slane %v2854_v0, 4  ;;  %v5948_v45 = vld [vmem:[#allocation2 + $0x260] sm:$0xf]  ;;  %v2515_v24 = vshrl.u32 %v2259_v10, 16 }
 0x210   : > { %v4850_v61 = vadd.f32 %v4849_v35, %v4751_v47  ;;  %v6643_v47 = vld [vmem:[#allocation2 + $0x278] sm:$0xf0]  ;;  %2219 = vst [vmem:[#allocation2 + $0x2e8] sm:$0xf] %v2117_v59  ;;  %v2518_v62 = vshll.u32 %v2259_v10, 16  ;;  %v9640_v14 = vld [vmem:[#allocation10_spill] sm:$0xff] }
 0x211   : > { %v4752_v52 = vpop.f32.mrf.mxu1  ;;  %2220 = vst [vmem:[#allocation2 + $0x30c] sm:$0xf] %v2120_v49  ;;  %v6644_v17 = vld [vmem:[#allocation2 + $0x280] sm:$0xf0]  ;;  %v2510_v12 = vrot.slane %v2508_v44, 7  ;;  %v2517_v59 = vrot.slane %v2515_v24, 6 }
 0x212   : > { %v4949_v43 = vadd.f32 %v8922_v25, %v4850_v61  ;;  %v9044_v35 = vpop.f32.mrf.mxu3  ;;  %v2857_v25 = vrot.slane %v9036_v55, 7  ;;  %v2505_v61 = vshrl.u32 %v2258_v2, 16  ;;  %v4753_v55 = vadd.f32 %v4752_v52, %v9640_v14  ;;  %2957 = vst [vmem:[#allocation2 + $0x2f0] sm:$0xf] %v2855_v4  ;;  %v9083_v14 = vld [vmem:[%s7027_s22 + $0x70] sm:$0xf] }
 0x213   : > { %v2520_v11 = vrot.slane %v2518_v62, 7  ;;  %v5949_v26 = vor.u32 %v6644_v17, %v5948_v45  ;;  %v6014_v29 = vld [vmem:[#allocation2 + $0x30c] sm:$0xf0]  ;;  %v2503_v10 = vrot.slane %v9002_v53, 4  ;;  %v9642_v45 = vrot.slane %v9017_v21, 6 }
 0x214   : > { %v5049_v9 = vpop.f32.mrf.mxu0  ;;  %v9054_v8 = vadd.f32 %v5047_v36, %v4949_v43  ;;  %v2858_v41 = vsel %vm8434_vm1, %v2856_v57, %v2857_v25  ;;  %v2507_v0 = vrot.slane %v2505_v61, 6  ;;  %v5937_v36 = vor.u32 %v6638_v46, %v5934_v39  ;;  %v6657_v57 = vld [vmem:[#allocation2 + $0x2ec] sm:$0xf] }
 0x215   : > { %2958 = vst [vmem:[#allocation2 + $0x314] sm:$0xf] %v2858_v41  ;;  %v5941_v43 = vor.u32 %v6643_v47, %v5940_v7  ;;  %v9060_v52 = vor.u32 %v2520_v11, %v2517_v59  ;;  %v6017_v46 = vor.u32 %v6657_v57, %v6014_v29  ;;  %v1745_v11 = vld [vmem:[%s7027_s22 + $0x64] sm:$0xf]  ;;  %v9076_v7 = vld [vmem:[%s7027_s22 + $0x68] sm:$0xf] }
 0x216   : > { %9639 = vst [vmem:[#allocation8_spill] sm:$0xff] %v9054_v8  ;;  %v2511_v8 = vor.u32 %v2510_v12, %v2507_v0  ;;  %v1867_v39 = vrot.slane %v1745_v11, 6  ;;  %v2003_v47 = vld [vmem:[%s7027_s22 + $0x6c] sm:$0xf]  ;;  %v1866_v29 = vrot.slane %v9642_v45, 4  ;;  %v9557_v62 = vrot.slane %v9076_v7, 6 }
 0x217   : > { %v4851_v15 = vpop.f32.mrf.mxu2  ;;  %v9556_v17 = vrot.slane %v9083_v14, 6  ;;  %v2738_v0 = vld [vmem:[%s7027_s22 + $0x6c] sm:$0xf]  ;;  %v5976_v11 = vld [vmem:[#allocation2 + $0x2a0] sm:$0xf] }
 0x218   : > { %v4852_v2 = vadd.f32 %v4851_v15, %v4753_v55  ;;  %v2513_v44 = vrot.slane %v2511_v8, 4  ;;  %v2512_v12 = vsel %vm8384_vm11, %v2503_v10, %v2511_v8  ;;  %v1869_v24 = vrot.slane %v1867_v39, 4 }
 0x219   : > { %v5061_v49 = vpop.f32.mrf.mxu1  ;;  %2701 = vst [vmem:[#allocation2 + $0x334] sm:$0xf] %v2512_v12  ;;  %v1868_v59 = vsel %vm8402_vm14, %v1866_v29, %v1867_v39  ;;  %v6652_v29 = vld [vmem:[#allocation2 + $0x2c0] sm:$0xf0] }
 0x21a   : > { %v4951_v4 = vadd.f32 %v8943_v27, %v4852_v2  ;;  %v9065_v41 = vpop.f32.mrf.mxu3  ;;  %v2522_v53 = vsel %vm8384_vm11, %v2513_v44, %v9060_v52  ;;  %v1871_v21 = vsel %vm8402_vm14, %v1869_v24, %v9557_v62  ;;  %v9096_v2 = vld [vmem:[%s7027_s22 + $0x70] sm:$0xf]  ;;  %v5970_v44 = vld [vmem:[#allocation2 + $0x2bc] sm:$0xf0]  ;;  %1966 = vst [vmem:[#allocation2 + $0x32c] sm:$0xf] %v1868_v59 }
 0x21b   : > { %2702 = vst [vmem:[#allocation2 + $0x358] sm:$0xf] %v2522_v53  ;;  %v2260_v53 = vld [vmem:[%s7027_s22 + $0x74] sm:$0xf] }
 0x21c   : > { %v9063_v61 = vpop.f32.mrf.mxu0  ;;  %5100 = vmatmul.bf16.gmra.mxu1 %v5937_v36  ;;  %5199 = vmatmul.bf16.gmra.mxu2 %v5941_v43  ;;  %v9073_v27 = vadd.f32 %v5049_v9, %v4951_v4  ;;  %v9643_v9 = vrot.slane %v9023_v23, 6  ;;  %v2859_v36 = vrot.slane %v2857_v25, 4  ;;  %v2860_v43 = vrot.slane %v2738_v0, 7  ;;  %v9644_v23 = vld [vmem:[#allocation15_spill] sm:$0xff]  ;;  %v6647_v4 = vld [vmem:[#allocation2 + $0x29c] sm:$0xf] }
 0x21d   : > { %v5062_v57 = vadd.f32 %v5061_v49, %v9644_v23  ;;  %1967 = vst [vmem:[#allocation2 + $0x350] sm:$0xf] %v1871_v21  ;;  %v9558_v49 = vrot.slane %v9096_v2, 7  ;;  %v2525_v0 = vshrl.u32 %v2260_v53, 16  ;;  %v2528_v59 = vshll.u32 %v2260_v53, 16 }
 0x21e   : > { %9641 = vst [vmem:[#allocation10_spill] sm:$0xff] %v9073_v27  ;;  %5308 = vmatmul.bf16.gmra.mxu3 %v6017_v46  ;;  %v2121_v55 = vrot.slane %v9643_v9, 4  ;;  %v2861_v25 = vsel %vm8434_vm1, %v2859_v36, %v2860_v43  ;;  %v2261_v9 = vld [vmem:[%s7027_s22 + $0x78] sm:$0xf]  ;;  %v6653_v21 = vld [vmem:[#allocation2 + $0x2c8] sm:$0xf0] }
 0x21f   : > { %5397 = vmatmul.bf16.gmra.mxu0 %v5949_v26  ;;  %v5160_v8 = vpop.f32.mrf.mxu2  ;;  %v2122_v26 = vrot.slane %v2003_v47, 6  ;;  %v2862_v47 = vrot.slane %v2860_v43, 4  ;;  %2959 = vst [vmem:[#allocation2 + $0x338] sm:$0xf] %v2861_v25  ;;  %v2535_v36 = vshrl.u32 %v2261_v9, 16  ;;  %v2538_v43 = vshll.u32 %v2261_v9, 16 }
 0x220   : > { %v5161_v45 = vadd.f32 %v5160_v8, %v5062_v57  ;;  %v5973_v57 = vor.u32 %v6647_v4, %v5970_v44  ;;  %v6666_v42 = vld [vmem:[#allocation2 + $0x334] sm:$0xf] }
 0x221   : > { %v5063_v15 = vpop.f32.mrf.mxu1  ;;  %v2123_v12 = vsel %vm8402_vm14, %v2121_v55, %v2122_v26  ;;  %v2124_v46 = vrot.slane %v2122_v26, 4  ;;  %v5984_v55 = vld [vmem:[#allocation2 + $0x2a8] sm:$0xf]  ;;  %v2864_v26 = vsel %vm8434_vm1, %v2862_v47, %v9558_v49  ;;  %v2537_v27 = vrot.slane %v2535_v36, 6 }
 0x222   : > { %v9102_v39 = vpop.f32.mrf.mxu3  ;;  %2221 = vst [vmem:[#allocation2 + $0x330] sm:$0xf] %v2123_v12  ;;  %v5064_v8 = vadd.f32 %v5063_v15, %v7967_v3  ;;  %v5977_v12 = vor.u32 %v6652_v29, %v5976_v11  ;;  %v2540_v47 = vrot.slane %v2538_v43, 7  ;;  %v5985_v49 = vor.u32 %v6653_v21, %v5984_v55  ;;  %v6050_v3 = vld [vmem:[#allocation2 + $0x354] sm:$0xf0] }
 0x223   : > { %v2126_v24 = vsel %vm8402_vm14, %v2124_v46, %v9556_v17  ;;  %2960 = vst [vmem:[#allocation2 + $0x35c] sm:$0xf] %v2864_v26  ;;  %v2527_v46 = vrot.slane %v2525_v0, 6  ;;  %v5260_v17 = vadd.f32 %v8983_v16, %v5161_v45  ;;  %v2523_v15 = vrot.slane %v9060_v52, 4  ;;  %v9141_v26 = vld [vmem:[%s7027_s22 + $0x70] sm:$0xf] }
 0x224   : > { %v5360_v10 = vpop.f32.mrf.mxu0  ;;  %2222 = vst [vmem:[#allocation2 + $0x354] sm:$0xf] %v2126_v24  ;;  %v2530_v24 = vrot.slane %v2528_v59, 7  ;;  %v9123_v11 = vor.u32 %v2540_v47, %v2537_v27  ;;  %v2005_v27 = vld [vmem:[%s7027_s22 + $0x74] sm:$0xf]  ;;  %v1876_v43 = vrot.slane %v9141_v26, 6 }
 0x225   : > { %v5359_v9 = vadd.f32 %v9063_v61, %v5260_v17  ;;  %v1747_v61 = vld [vmem:[%s7027_s22 + $0x6c] sm:$0xf]  ;;  %v9144_v0 = vld [vmem:[%s7027_s22 + $0x78] sm:$0xf]  ;;  %v2740_v59 = vld [vmem:[%s7027_s22 + $0x74] sm:$0xf] }
 0x226   : > { %v2531_v25 = vor.u32 %v2530_v24, %v2527_v46  ;;  %v1873_v17 = vrot.slane %v1747_v61, 6  ;;  %v9559_v24 = vrot.slane %v9144_v0, 6  ;;  %v9156_v47 = vld [vmem:[%s7027_s22 + $0x78] sm:$0xf] }
 0x227   : > { %v5162_v23 = vpop.f32.mrf.mxu2 }
 0x228   : > { %v5163_v62 = vadd.f32 %v5162_v23, %v5064_v8  ;;  %v2532_v45 = vsel %vm8384_vm11, %v2523_v15, %v2531_v25  ;;  %v2533_v29 = vrot.slane %v2531_v25, 4  ;;  %v9645_v8 = vrot.slane %v9076_v7, 6  ;;  %v6006_v25 = vld [vmem:[#allocation2 + $0x304] sm:$0xf0] }
 0x229   : > { %v5066_v53 = vpop.f32.mrf.mxu1  ;;  %2703 = vst [vmem:[#allocation2 + $0x37c] sm:$0xf] %v2532_v45  ;;  %v1875_v36 = vrot.slane %v1873_v17, 4  ;;  %v6661_v45 = vld [vmem:[#allocation2 + $0x308] sm:$0xf0] }
 0x22a   : > { %v5262_v4 = vadd.f32 %v9004_v63, %v5163_v62  ;;  %v9125_v16 = vpop.f32.mrf.mxu3  ;;  %v6053_v63 = vor.u32 %v6666_v42, %v6050_v3  ;;  %v2542_v52 = vsel %vm8384_vm11, %v2533_v29, %v9123_v11  ;;  %v1872_v21 = vrot.slane %v9645_v8, 4 }
 0x22b   : > { %2704 = vst [vmem:[#allocation2 + $0x3a0] sm:$0xf] %v2542_v52  ;;  %v2866_v3 = vrot.slane %v2740_v59, 7  ;;  %v2263_v59 = vld [vmem:[%s7027_s22 + $0x80] sm:$0xf] }
 0x22c   : > { %v9121_v44 = vpop.f32.mrf.mxu0  ;;  %v5361_v55 = vadd.f32 %v5360_v10, %v5262_v4  ;;  %5105 = vmatmul.bf16.gmra.mxu1 %v5973_v57  ;;  %5204 = vmatmul.bf16.gmra.mxu2 %v5977_v12  ;;  %v2128_v10 = vrot.slane %v2005_v27, 6  ;;  %v9646_v57 = vrot.slane %v9083_v14, 6  ;;  %v1874_v7 = vsel %vm8402_vm14, %v1872_v21, %v1873_v17  ;;  %v6012_v4 = vld [vmem:[#allocation2 + $0x2e8] sm:$0xf]  ;;  %v6020_v17 = vld [vmem:[#allocation2 + $0x2f0] sm:$0xf] }
 0x22d   : > { %v1877_v14 = vsel %vm8402_vm14, %v1875_v36, %v1876_v43  ;;  %1968 = vst [vmem:[#allocation2 + $0x374] sm:$0xf] %v1874_v7  ;;  %v2868_v61 = vrot.slane %v2866_v3, 4  ;;  %v2869_v27 = vrot.slane %v9156_v47, 7  ;;  %v2558_v7 = vshll.u32 %v2263_v59, 16 }
 0x22e   : > { %v6801_v62 = vpack.c.bf16 %v5361_v55, %v5359_v9  ;;  %5313 = vmatmul.bf16.gmra.mxu3 %v6053_v63  ;;  %v2127_v12 = vrot.slane %v9646_v57, 4  ;;  %v2130_v46 = vrot.slane %v2128_v10, 4  ;;  %v9647_v63 = vrot.slane %v9096_v2, 7  ;;  %1969 = vst [vmem:[#allocation2 + $0x398] sm:$0xf] %v1877_v14 }
 0x22f   : > { %5402 = vmatmul.bf16.gmra.mxu0 %v5985_v49  ;;  %v5165_v42 = vpop.f32.mrf.mxu2  ;;  %v5067_v49 = vadd.f32 %v5066_v53, %v8005_v34  ;;  %v6656_v53 = vld [vmem:[#allocation2 + $0x2e4] sm:$0xf]  ;;  %v2870_v2 = vsel %vm8434_vm1, %v2868_v61, %v2869_v27  ;;  %v6013_v14 = vor.u32 %v6661_v45, %v6012_v4  ;;  %v2560_v61 = vrot.slane %v2558_v7, 7 }
 0x230   : > { %6802 = vst [vmem:[%s9133_s25] sm:$0xff] %v6801_v62   ;;  %v2129_v9 = vsel %vm8402_vm14, %v2127_v12, %v2128_v10  ;;  %v2132_v55 = vsel %vm8402_vm14, %v2130_v46, %v9559_v24  ;;  %v2865_v52 = vrot.slane %v9647_v63, 4  ;;  %v2262_v62 = vld [vmem:[%s7027_s22 + $0x7c] sm:$0xf]  ;;  %v6009_v12 = vor.u32 %v6656_v53, %v6006_v25  ;;  %v2264_v47 = vld [vmem:[%s7027_s22 + $0x84] sm:$0xf] }
 0x231   : > { %v5068_v23 = vpop.f32.mrf.mxu1  ;;  %v5166_v15 = vadd.f32 %v5165_v42, %v5067_v49  ;;  %2223 = vst [vmem:[#allocation2 + $0x378] sm:$0xf] %v2129_v9  ;;  %v6662_v49 = vld [vmem:[#allocation2 + $0x310] sm:$0xf0]  ;;  %v2545_v8 = vshrl.u32 %v2262_v62, 16  ;;  %v2548_v21 = vshll.u32 %v2262_v62, 16 }
 0x232   : > { %v9164_v29 = vpop.f32.mrf.mxu3  ;;  %v2867_v42 = vsel %vm8434_vm1, %v2865_v52, %v2866_v3  ;;  %v5069_v10 = vadd.f32 %v5068_v23, %v8043_v1  ;;  %2224 = vst [vmem:[#allocation2 + $0x39c] sm:$0xf] %v2132_v55  ;;  %v2555_v46 = vshrl.u32 %v2263_v59, 16  ;;  %v6021_v55 = vor.u32 %v6662_v49, %v6020_v17  ;;  %v6675_v63 = vld [vmem:[#allocation2 + $0x37c] sm:$0xf] }
 0x233   : > { %v5265_v36 = vadd.f32 %v9044_v35, %v5166_v15  ;;  %2961 = vst [vmem:[#allocation2 + $0x380] sm:$0xf] %v2867_v42  ;;  %v2547_v1 = vrot.slane %v2545_v8, 6  ;;  %v2550_v23 = vrot.slane %v2548_v21, 7  ;;  %v6086_v52 = vld [vmem:[#allocation2 + $0x39c] sm:$0xf0] }
 0x234   : > { %v5365_v34 = vpop.f32.mrf.mxu0  ;;  %2962 = vst [vmem:[#allocation2 + $0x3a4] sm:$0xf] %v2870_v2  ;;  %v2557_v24 = vrot.slane %v2555_v46, 6  ;;  %v2543_v15 = vrot.slane %v9123_v11, 4  ;;  %v6089_v42 = vor.u32 %v6675_v63, %v6086_v52  ;;  %v1749_v11 = vld [vmem:[%s7027_s22 + $0x74] sm:$0xf] }
 0x235   : > { %v2551_v53 = vor.u32 %v2550_v23, %v2547_v1  ;;  %v5364_v25 = vadd.f32 %v9121_v44, %v5265_v36  ;;  %v9202_v2 = vld [vmem:[%s7027_s22 + $0x78] sm:$0xf]  ;;  %v1878_v21 = vrot.slane %v1876_v43, 4  ;;  %v9648_v7 = vrot.slane %v9144_v0, 6  ;;  %v2742_v23 = vld [vmem:[%s7027_s22 + $0x7c] sm:$0xf] }
 0x236   : > { %v9192_v45 = vor.u32 %v2560_v61, %v2557_v24  ;;  %v1879_v24 = vrot.slane %v1749_v11, 6  ;;  %v1882_v46 = vrot.slane %v9202_v2, 6  ;;  %v9219_v43 = vld [vmem:[%s7027_s22 + $0x80] sm:$0xf]  ;;  %v6665_v63 = vld [vmem:[#allocation2 + $0x32c] sm:$0xf] }
 0x237   : > { %v5167_v57 = vpop.f32.mrf.mxu2  ;;  %v2553_v59 = vrot.slane %v2551_v53, 4  ;;  %v6042_v52 = vld [vmem:[#allocation2 + $0x34c] sm:$0xf0]  ;;  %v6670_v0 = vld [vmem:[#allocation2 + $0x350] sm:$0xf0] }
 0x238   : > { %v5168_v3 = vadd.f32 %v5167_v57, %v5069_v10  ;;  %v1881_v36 = vrot.slane %v1879_v24, 4  ;;  %v9209_v57 = vld [vmem:[%s7027_s22 + $0x80] sm:$0xf]  ;;  %v1880_v26 = vsel %vm8402_vm14, %v1878_v21, %v1879_v24  ;;  %v6048_v61 = vld [vmem:[#allocation2 + $0x330] sm:$0xf]  ;;  %v2568_v24 = vshll.u32 %v2264_v47, 16 }
 0x239   : > { %v5071_v9 = vpop.f32.mrf.mxu1  ;;  %v2562_v44 = vsel %vm8384_vm11, %v2553_v59, %v9192_v45  ;;  %v2137_v1 = vrot.slane %v9209_v57, 6  ;;  %1970 = vst [vmem:[#allocation2 + $0x3bc] sm:$0xf] %v1880_v26  ;;  %v6679_v57 = vld [vmem:[#allocation2 + $0x398] sm:$0xf0] }
 0x23a   : > { %v5267_v62 = vadd.f32 %v9065_v41, %v5168_v3  ;;  %v9190_v4 = vpop.f32.mrf.mxu3  ;;  %v2552_v41 = vsel %vm8384_vm11, %v2543_v15, %v2551_v53  ;;  %2706 = vst [vmem:[#allocation2 + $0x3e8] sm:$0xf] %v2562_v44  ;;  %v5072_v8 = vadd.f32 %v5071_v9, %v8078_v40  ;;  %v2133_v3 = vrot.slane %v9648_v7, 4  ;;  %v2265_v44 = vld [vmem:[%s7027_s22 + $0x88] sm:$0xf] }
 0x23b   : > { %2705 = vst [vmem:[#allocation2 + $0x3c4] sm:$0xf] %v2552_v41  ;;  %v2871_v9 = vrot.slane %v2869_v27, 4  ;;  %v1883_v15 = vsel %vm8402_vm14, %v1881_v36, %v1882_v46  ;;  %v6056_v27 = vld [vmem:[#allocation2 + $0x338] sm:$0xf]  ;;  %v2565_v41 = vshrl.u32 %v2264_v47, 16 }
 0x23c   : > { %v9186_v35 = vpop.f32.mrf.mxu0  ;;  %v5366_v17 = vadd.f32 %v5365_v34, %v5267_v62  ;;  %5110 = vmatmul.bf16.gmra.mxu1 %v6009_v12  ;;  %5209 = vmatmul.bf16.gmra.mxu2 %v6013_v14  ;;  %v2007_v34 = vld [vmem:[%s7027_s22 + $0x7c] sm:$0xf]  ;;  %1971 = vst [vmem:[#allocation2 + $0x3e0] sm:$0xf] %v1883_v15  ;;  %v2575_v21 = vshrl.u32 %v2265_v44, 16  ;;  %v6049_v15 = vor.u32 %v6670_v0, %v6048_v61 }
 0x23d   : > { %v2134_v14 = vrot.slane %v2007_v34, 6 }
 0x23e   : > { %v6806_v10 = vpack.c.bf16 %v5366_v17, %v5364_v25  ;;  %5318 = vmatmul.bf16.gmra.mxu3 %v6089_v42  ;;  %v2872_v17 = vrot.slane %v2742_v23, 7  ;;  %v2875_v42 = vrot.slane %v9219_v43, 7  ;;  %v2578_v23 = vshll.u32 %v2265_v44, 16  ;;  %v2266_v43 = vld [vmem:[%s7027_s22 + $0x8c] sm:$0xf] }
 0x23f   : > { %5407 = vmatmul.bf16.gmra.mxu0 %v6021_v55  ;;  %v5170_v49 = vpop.f32.mrf.mxu2  ;;  %v2135_v53 = vsel %vm8402_vm14, %v2133_v3, %v2134_v14  ;;  %v2136_v25 = vrot.slane %v2134_v14, 4  ;;  %v2570_v14 = vrot.slane %v2568_v24, 7 }
 0x240   : > { %6888 = vst [vmem:[%s9133_s25 + $0x8] sm:$0xff] %v6806_v10   ;;  %v5171_v55 = vadd.f32 %v5170_v49, %v5072_v8  ;;  %v2873_v11 = vsel %vm8434_vm1, %v2871_v9, %v2872_v17  ;;  %v2874_v10 = vrot.slane %v2872_v17, 4  ;;  %v6671_v49 = vld [vmem:[#allocation2 + $0x358] sm:$0xf0]  ;;  %v2567_v8 = vrot.slane %v2565_v41, 6 }
 0x241   : > { %v5073_v12 = vpop.f32.mrf.mxu1  ;;  %v2138_v59 = vsel %vm8402_vm14, %v2136_v25, %v2137_v1  ;;  %2225 = vst [vmem:[#allocation2 + $0x3c0] sm:$0xf] %v2135_v53  ;;  %v6045_v9 = vor.u32 %v6665_v63, %v6042_v52  ;;  %v6057_v53 = vor.u32 %v6671_v49, %v6056_v27  ;;  %v6122_v17 = vld [vmem:[#allocation2 + $0x3e4] sm:$0xf0] }
 0x242   : > { %v9223_v62 = vpop.f32.mrf.mxu3  ;;  %v5074_v34 = vadd.f32 %v5073_v12, %v8107_v31  ;;  %2226 = vst [vmem:[#allocation2 + $0x3e4] sm:$0xf] %v2138_v59  ;;  %v5270_v36 = vadd.f32 %v9102_v39, %v5171_v55  ;;  %v2876_v3 = vsel %vm8434_vm1, %v2874_v10, %v2875_v42  ;;  %v2577_v31 = vrot.slane %v2575_v21, 6  ;;  %v6684_v25 = vld [vmem:[#allocation2 + $0x3c4] sm:$0xf] }
 0x243   : > { %2963 = vst [vmem:[#allocation2 + $0x3c8] sm:$0xf] %v2873_v11  ;;  %v2571_v47 = vor.u32 %v2570_v14, %v2567_v8  ;;  %v2580_v39 = vrot.slane %v2578_v23, 7  ;;  %v2563_v59 = vrot.slane %v9192_v45, 4  ;;  %v6125_v0 = vor.u32 %v6684_v25, %v6122_v17  ;;  %v1751_v45 = vld [vmem:[%s7027_s22 + $0x7c] sm:$0xf] }
 0x244   : > { %v5370_v40 = vpop.f32.mrf.mxu0  ;;  %2964 = vst [vmem:[#allocation2 + $0x3ec] sm:$0xf] %v2876_v3  ;;  %v5369_v11 = vadd.f32 %v9186_v35, %v5270_v36  ;;  %v1885_v44 = vrot.slane %v1751_v45, 6  ;;  %v1884_v8 = vrot.slane %v1882_v46, 4  ;;  %v9270_v36 = vld [vmem:[%s7027_s22 + $0x88] sm:$0xf] }
 0x245   : > { %v2573_v63 = vrot.slane %v2571_v47, 4  ;;  %v9253_v52 = vor.u32 %v2580_v39, %v2577_v31  ;;  %v2139_v14 = vrot.slane %v2137_v1, 4  ;;  %v9280_v46 = vld [vmem:[%s7027_s22 + $0x88] sm:$0xf]  ;;  %v2877_v31 = vrot.slane %v2875_v42, 4 }
 0x246   : > { %v1887_v21 = vrot.slane %v1885_v44, 4  ;;  %v1886_v2 = vsel %vm8402_vm14, %v1884_v8, %v1885_v44  ;;  %v6084_v25 = vld [vmem:[#allocation2 + $0x378] sm:$0xf]  ;;  %v6092_v42 = vld [vmem:[#allocation2 + $0x380] sm:$0xf] }
 0x247   : > { %v5172_v7 = vpop.f32.mrf.mxu2  ;;  %v2582_v35 = vsel %vm8384_vm11, %v2573_v63, %v9253_v52  ;;  %1972 = vst [vmem:[#allocation2 + $0x404] sm:$0xf] %v1886_v2  ;;  %v6680_v63 = vld [vmem:[#allocation2 + $0x3a0] sm:$0xf0]  ;;  %v2267_v44 = vld [vmem:[%s7027_s22 + $0x90] sm:$0xf]  ;;  %v6085_v2 = vor.u32 %v6679_v57, %v6084_v25 }
 0x248   : > { %v5173_v26 = vadd.f32 %v5172_v7, %v5074_v34  ;;  %2708 = vst [vmem:[#allocation2 + $0x430] sm:$0xf] %v2582_v35  ;;  %v2009_v34 = vld [vmem:[%s7027_s22 + $0x84] sm:$0xf]  ;;  %v2588_v35 = vshll.u32 %v2266_v43, 16 }
 0x249   : > { %v5076_v12 = vpop.f32.mrf.mxu1  ;;  %v2140_v23 = vrot.slane %v2009_v34, 6 }
 0x24a   : > { %v5272_v55 = vadd.f32 %v9125_v16, %v5173_v26  ;;  %v9251_v10 = vpop.f32.mrf.mxu3  ;;  %v2572_v16 = vsel %vm8384_vm11, %v2563_v59, %v2571_v47  ;;  %v5077_v49 = vadd.f32 %v5076_v12, %v8147_v18  ;;  %v2143_v26 = vrot.slane %v9270_v36, 6  ;;  %v6674_v12 = vld [vmem:[#allocation2 + $0x374] sm:$0xf]  ;;  %v6688_v36 = vld [vmem:[#allocation2 + $0x3e0] sm:$0xf0] }
 0x24b   : > { %2707 = vst [vmem:[#allocation2 + $0x40c] sm:$0xf] %v2572_v16  ;;  %v2141_v47 = vsel %vm8402_vm14, %v2139_v14, %v2140_v23  ;;  %v2142_v39 = vrot.slane %v2140_v23, 4  ;;  %v2881_v59 = vrot.slane %v9280_v46, 7  ;;  %v2590_v8 = vrot.slane %v2588_v35, 7 }
 0x24c   : > { %v9247_v41 = vpop.f32.mrf.mxu0  ;;  %v5371_v61 = vadd.f32 %v5370_v40, %v5272_v55  ;;  %5115 = vmatmul.bf16.gmra.mxu1 %v6045_v9  ;;  %5214 = vmatmul.bf16.gmra.mxu2 %v6049_v15  ;;  %v9262_v40 = vld [vmem:[%s7027_s22 + $0x80] sm:$0xf]  ;;  %v2744_v9 = vld [vmem:[%s7027_s22 + $0x84] sm:$0xf]  ;;  %2227 = vst [vmem:[#allocation2 + $0x408] sm:$0xf] %v2141_v47 }
 0x24d   : > { %v1888_v3 = vrot.slane %v9262_v40, 6  ;;  %v2878_v55 = vrot.slane %v2744_v9, 7  ;;  %v2598_v14 = vshll.u32 %v2267_v44, 16  ;;  %v2268_v46 = vld [vmem:[%s7027_s22 + $0x94] sm:$0xf] }
 0x24e   : > { %v6811_v27 = vpack.c.bf16 %v5371_v61, %v5369_v11  ;;  %5323 = vmatmul.bf16.gmra.mxu3 %v6125_v0  ;;  %v2585_v11 = vshrl.u32 %v2266_v43, 16  ;;  %v2144_v61 = vsel %vm8402_vm14, %v2142_v39, %v2143_v26  ;;  %v2583_v43 = vrot.slane %v9253_v52, 4  ;;  %v1753_v52 = vld [vmem:[%s7027_s22 + $0x84] sm:$0xf] }
 0x24f   : > { %5412 = vmatmul.bf16.gmra.mxu0 %v6057_v53  ;;  %v5175_v24 = vpop.f32.mrf.mxu2  ;;  %v6078_v53 = vld [vmem:[#allocation2 + $0x394] sm:$0xf0]  ;;  %v1889_v17 = vsel %vm8402_vm14, %v1887_v21, %v1888_v3  ;;  %v2879_v0 = vsel %vm8434_vm1, %v2877_v31, %v2878_v55  ;;  %v2880_v16 = vrot.slane %v2878_v55, 4  ;;  %2228 = vst [vmem:[#allocation2 + $0x42c] sm:$0xf] %v2144_v61  ;;  %v2595_v21 = vshrl.u32 %v2267_v44, 16 }
 0x250   : > { %6889 = vst [vmem:[%s9133_s25 + $0x10] sm:$0xff] %v6811_v27   ;;  %v5176_v15 = vadd.f32 %v5175_v24, %v5077_v49  ;;  %v2587_v24 = vrot.slane %v2585_v11, 6  ;;  %v6081_v9 = vor.u32 %v6674_v12, %v6078_v53  ;;  %v2600_v47 = vrot.slane %v2598_v14, 7  ;;  %v9331_v44 = vld [vmem:[%s7027_s22 + $0x90] sm:$0xf] }
 0x251   : > { %v5078_v7 = vpop.f32.mrf.mxu1  ;;  %1973 = vst [vmem:[#allocation2 + $0x428] sm:$0xf] %v1889_v17  ;;  %v2882_v49 = vsel %vm8434_vm1, %v2880_v16, %v2881_v59  ;;  %v2597_v17 = vrot.slane %v2595_v21, 6  ;;  %v2011_v16 = vld [vmem:[%s7027_s22 + $0x8c] sm:$0xf]  ;;  %v2149_v21 = vrot.slane %v9331_v44, 6 }
 0x252   : > { %v9284_v1 = vpop.f32.mrf.mxu3  ;;  %v5275_v45 = vadd.f32 %v9164_v29, %v5176_v15  ;;  %v5079_v27 = vadd.f32 %v5078_v7, %v8184_v30  ;;  %2965 = vst [vmem:[#allocation2 + $0x410] sm:$0xf] %v2879_v0  ;;  %v6093_v15 = vor.u32 %v6680_v63, %v6092_v42  ;;  %v6693_v30 = vld [vmem:[#allocation2 + $0x40c] sm:$0xf]  ;;  %v6158_v7 = vld [vmem:[#allocation2 + $0x42c] sm:$0xf0]  ;;  %v2591_v31 = vor.u32 %v2590_v8, %v2587_v24 }
 0x253   : > { %2966 = vst [vmem:[#allocation2 + $0x434] sm:$0xf] %v2882_v49  ;;  %v9314_v53 = vor.u32 %v2600_v47, %v2597_v17  ;;  %v6161_v57 = vor.u32 %v6693_v30, %v6158_v7  ;;  %v1891_v63 = vrot.slane %v1753_v52, 6  ;;  %v2145_v49 = vrot.slane %v2143_v26, 4  ;;  %v2746_v14 = vld [vmem:[%s7027_s22 + $0x8c] sm:$0xf] }
 0x254   : > { %v5375_v18 = vpop.f32.mrf.mxu0  ;;  %v5374_v11 = vadd.f32 %v9247_v41, %v5275_v45  ;;  %v2593_v12 = vrot.slane %v2591_v31, 4  ;;  %v1890_v45 = vrot.slane %v1888_v3, 4  ;;  %v2146_v8 = vrot.slane %v2011_v16, 6  ;;  %v9341_v3 = vld [vmem:[%s7027_s22 + $0x90] sm:$0xf] }
 0x255   : > { %v2884_v17 = vrot.slane %v2746_v14, 7  ;;  %v2887_v47 = vrot.slane %v9341_v3, 7  ;;  %v2269_v52 = vld [vmem:[%s7027_s22 + $0x98] sm:$0xf]  ;;  %v2270_v3 = vld [vmem:[%s7027_s22 + $0x9c] sm:$0xf] }
 0x256   : > { %v2602_v41 = vsel %vm8384_vm11, %v2593_v12, %v9314_v53  ;;  %v1892_v40 = vsel %vm8402_vm14, %v1890_v45, %v1891_v63  ;;  %v2147_v7 = vsel %vm8402_vm14, %v2145_v49, %v2146_v8  ;;  %v2618_v45 = vshll.u32 %v2269_v52, 16  ;;  %v6697_v44 = vld [vmem:[#allocation2 + $0x428] sm:$0xf0] }
 0x257   : > { %v5177_v34 = vpop.f32.mrf.mxu2  ;;  %2710 = vst [vmem:[#allocation2 + $0x478] sm:$0xf] %v2602_v41 }
 0x258   : > { %v5178_v23 = vadd.f32 %v5177_v34, %v5079_v27  ;;  %v1893_v27 = vrot.slane %v1891_v63, 4  ;;  %1974 = vst [vmem:[#allocation2 + $0x44c] sm:$0xf] %v1892_v40 }
 0x259   : > { %v5081_v29 = vpop.f32.mrf.mxu1  ;;  %2229 = vst [vmem:[#allocation2 + $0x450] sm:$0xf] %v2147_v7 }
 0x25a   : > { %v5277_v39 = vadd.f32 %v9190_v4, %v5178_v23  ;;  %v9312_v61 = vpop.f32.mrf.mxu3  ;;  %v2592_v4 = vsel %vm8384_vm11, %v2583_v43, %v2591_v31  ;;  %v5082_v35 = vadd.f32 %v5081_v29, %v8223_v37  ;;  %v6114_v29 = vld [vmem:[#allocation2 + $0x3dc] sm:$0xf0]  ;;  %v2148_v31 = vrot.slane %v2146_v8, 4  ;;  %v6689_v43 = vld [vmem:[#allocation2 + $0x3e8] sm:$0xf0] }
 0x25b   : > { %2709 = vst [vmem:[#allocation2 + $0x454] sm:$0xf] %v2592_v4 }
 0x25c   : > { %v9308_v55 = vpop.f32.mrf.mxu0  ;;  %v5376_v25 = vadd.f32 %v5375_v18, %v5277_v39  ;;  %5120 = vmatmul.bf16.gmra.mxu1 %v6081_v9  ;;  %5219 = vmatmul.bf16.gmra.mxu2 %v6085_v2  ;;  %v9323_v18 = vld [vmem:[%s7027_s22 + $0x88] sm:$0xf]  ;;  %v2883_v9 = vrot.slane %v2881_v59, 4  ;;  %v6683_v2 = vld [vmem:[#allocation2 + $0x3bc] sm:$0xf]  ;;  %v2605_v39 = vshrl.u32 %v2268_v46, 16 }
 0x25d   : > { %v1894_v34 = vrot.slane %v9323_v18, 6  ;;  %v6128_v59 = vld [vmem:[#allocation2 + $0x3c8] sm:$0xf]  ;;  %v6117_v49 = vor.u32 %v6683_v2, %v6114_v29 }
 0x25e   : > { %v6816_v42 = vpack.c.bf16 %v5376_v25, %v5374_v11  ;;  %5328 = vmatmul.bf16.gmra.mxu3 %v6161_v57  ;;  %v2150_v11 = vsel %vm8402_vm14, %v2148_v31, %v2149_v21  ;;  %v2885_v12 = vsel %vm8434_vm1, %v2883_v9, %v2884_v17  ;;  %v2886_v25 = vrot.slane %v2884_v17, 4 }
 0x25f   : > { %5417 = vmatmul.bf16.gmra.mxu0 %v6093_v15  ;;  %v5180_v0 = vpop.f32.mrf.mxu2  ;;  %v6120_v15 = vld [vmem:[#allocation2 + $0x3c0] sm:$0xf]  ;;  %v1895_v30 = vsel %vm8402_vm14, %v1893_v27, %v1894_v34  ;;  %v2608_v57 = vshll.u32 %v2268_v46, 16  ;;  %2230 = vst [vmem:[#allocation2 + $0x474] sm:$0xf] %v2150_v11  ;;  %v6129_v14 = vor.u32 %v6689_v43, %v6128_v59  ;;  %v2620_v9 = vrot.slane %v2618_v45, 7 }
 0x260   : > { %6890 = vst [vmem:[%s9133_s25 + $0x18] sm:$0xff] %v6816_v42   ;;  %v5181_v23 = vadd.f32 %v5180_v0, %v5082_v35  ;;  %v2607_v42 = vrot.slane %v2605_v39, 6  ;;  %v2888_v0 = vsel %vm8434_vm1, %v2886_v25, %v2887_v47  ;;  %v2615_v35 = vshrl.u32 %v2269_v52, 16  ;;  %v2013_v11 = vld [vmem:[%s7027_s22 + $0x94] sm:$0xf] }
 0x261   : > { %v5083_v24 = vpop.f32.mrf.mxu1  ;;  %1975 = vst [vmem:[#allocation2 + $0x470] sm:$0xf] %v1895_v30  ;;  %v2610_v16 = vrot.slane %v2608_v57, 7  ;;  %v6121_v8 = vor.u32 %v6688_v36, %v6120_v15  ;;  %v2603_v31 = vrot.slane %v9314_v53, 4  ;;  %v1755_v53 = vld [vmem:[%s7027_s22 + $0x8c] sm:$0xf] }
 0x262   : > { %v9345_v26 = vpop.f32.mrf.mxu3  ;;  %v5280_v4 = vadd.f32 %v9223_v62, %v5181_v23  ;;  %v5084_v41 = vadd.f32 %v5083_v24, %v8255_v50  ;;  %2967 = vst [vmem:[#allocation2 + $0x458] sm:$0xf] %v2885_v12  ;;  %v6702_v50 = vld [vmem:[#allocation2 + $0x454] sm:$0xf]  ;;  %v6194_v24 = vld [vmem:[#allocation2 + $0x474] sm:$0xf0] }
 0x263   : > { %2968 = vst [vmem:[#allocation2 + $0x47c] sm:$0xf] %v2888_v0  ;;  %v2611_v23 = vor.u32 %v2610_v16, %v2607_v42  ;;  %v2617_v40 = vrot.slane %v2615_v35, 6  ;;  %v6197_v36 = vor.u32 %v6702_v50, %v6194_v24  ;;  %v1897_v39 = vrot.slane %v1755_v53, 6  ;;  %v2748_v16 = vld [vmem:[%s7027_s22 + $0x94] sm:$0xf] }
 0x264   : > { %v5380_v37 = vpop.f32.mrf.mxu0  ;;  %v5379_v17 = vadd.f32 %v9308_v55, %v5280_v4  ;;  %v1896_v25 = vrot.slane %v1894_v34, 4  ;;  %v9392_v4 = vld [vmem:[%s7027_s22 + $0x98] sm:$0xf]  ;;  %v2151_v42 = vrot.slane %v2149_v21, 4  ;;  %v2889_v45 = vrot.slane %v2887_v47, 4 }
 0x265   : > { %v2613_v2 = vrot.slane %v2611_v23, 4  ;;  %v9375_v29 = vor.u32 %v2620_v9, %v2617_v40  ;;  %v1899_v57 = vrot.slane %v1897_v39, 4  ;;  %v2155_v0 = vrot.slane %v9392_v4, 6  ;;  %v9402_v34 = vld [vmem:[%s7027_s22 + $0x98] sm:$0xf] }
 0x266   : > { %v1898_v18 = vsel %vm8402_vm14, %v1896_v25, %v1897_v39  ;;  %v2890_v24 = vrot.slane %v2748_v16, 7  ;;  %v6164_v47 = vld [vmem:[#allocation2 + $0x410] sm:$0xf]  ;;  %v2625_v40 = vshrl.u32 %v2270_v3, 16  ;;  %v6698_v9 = vld [vmem:[#allocation2 + $0x430] sm:$0xf0] }
 0x267   : > { %v5182_v63 = vpop.f32.mrf.mxu2  ;;  %v2622_v55 = vsel %vm8384_vm11, %v2613_v2, %v9375_v29  ;;  %1976 = vst [vmem:[#allocation2 + $0x494] sm:$0xf] %v1898_v18  ;;  %v2628_v2 = vshll.u32 %v2270_v3, 16 }
 0x268   : > { %v5183_v27 = vadd.f32 %v5182_v63, %v5084_v41  ;;  %2712 = vst [vmem:[#allocation2 + $0x4c0] sm:$0xf] %v2622_v55  ;;  %v2152_v63 = vrot.slane %v2013_v11, 6  ;;  %v2627_v55 = vrot.slane %v2625_v40, 6  ;;  %v1758_v40 = vld [vmem:[%s7027_s22 + $0x98] sm:$0x3] }
 0x269   : > { %v5086_v62 = vpop.f32.mrf.mxu1  ;;  %v2630_v39 = vrot.slane %v2628_v2, 7  ;;  %v1906_v19 = vrot.slane %v1758_v40, 6  ;;  %v2157_v2 = vrot.slane %v2155_v0, 4 }
 0x26a   : > { %v5282_v30 = vadd.f32 %v9251_v10, %v5183_v27  ;;  %v9373_v46 = vpop.f32.mrf.mxu3  ;;  %v2612_v10 = vsel %vm8384_vm11, %v2603_v31, %v2611_v23  ;;  %v5087_v12 = vadd.f32 %v5086_v62, %v8281_v22  ;;  %v6692_v27 = vld [vmem:[#allocation2 + $0x404] sm:$0xf]  ;;  %v2154_v50 = vrot.slane %v2152_v63, 4 }
 0x26b   : > { %2711 = vst [vmem:[#allocation2 + $0x49c] sm:$0xf] %v2612_v10  ;;  %v2893_v23 = vrot.slane %v9402_v34, 7  ;;  %v2891_v31 = vsel %vm8434_vm1, %v2889_v45, %v2890_v24  ;;  %v2271_v10 = vld [vmem:[%s7027_s22 + $0xa0] sm:$0x7] }
 0x26c   : > { %v9369_v7 = vpop.f32.mrf.mxu0  ;;  %v5381_v15 = vadd.f32 %v5380_v37, %v5282_v30  ;;  %5125 = vmatmul.bf16.gmra.mxu1 %v6117_v49  ;;  %5224 = vmatmul.bf16.gmra.mxu2 %v6121_v8  ;;  %v9384_v37 = vld [vmem:[%s7027_s22 + $0x90] sm:$0xf]  ;;  %v6150_v49 = vld [vmem:[#allocation2 + $0x424] sm:$0xf0]  ;;  %v2156_v30 = vsel %vm8402_vm14, %v2154_v50, %v2155_v0  ;;  %2969 = vst [vmem:[#allocation2 + $0x4a0] sm:$0xf] %v2891_v31 }
 0x26d   : > { %v1900_v52 = vrot.slane %v9384_v37, 6  ;;  %v6156_v8 = vld [vmem:[#allocation2 + $0x408] sm:$0xf]  ;;  %2232 = vst [vmem:[#allocation2 + $0x4bc] sm:$0xf] %v2156_v30  ;;  %v2638_v11 = vshll.u32 %v2271_v10, 16  ;;  %v6153_v25 = vor.u32 %v6692_v27, %v6150_v49 }
 0x26e   : > { %v6821_v59 = vpack.c.bf16 %v5381_v15, %v5379_v17  ;;  %5333 = vmatmul.bf16.gmra.mxu3 %v6197_v36  ;;  %v2892_v17 = vrot.slane %v2890_v24, 4  ;;  %v2016_v31 = vld [vmem:[%s7027_s22 + $0xa0] sm:$0x3]  ;;  %v2895_v37 = vrot.slane %v2893_v23, 4 }
 0x26f   : > { %5422 = vmatmul.bf16.gmra.mxu0 %v6129_v14  ;;  %v5185_v43 = vpop.f32.mrf.mxu2  ;;  %v1901_v62 = vsel %vm8402_vm14, %v1899_v57, %v1900_v52  ;;  %v2153_v14 = vsel %vm8402_vm14, %v2151_v42, %v2152_v63  ;;  %v6157_v57 = vor.u32 %v6697_v44, %v6156_v8  ;;  %v6165_v42 = vor.u32 %v6698_v9, %v6164_v47 }
 0x270   : > { %6891 = vst [vmem:[%s9133_s25 + $0x20] sm:$0xff] %v6821_v59   ;;  %v5186_v35 = vadd.f32 %v5185_v43, %v5087_v12  ;;  %v2894_v59 = vsel %vm8434_vm1, %v2892_v17, %v2893_v23  ;;  %v2635_v43 = vshrl.u32 %v2271_v10, 16  ;;  %v2631_v63 = vor.u32 %v2630_v39, %v2627_v55  ;;  %v2750_v10 = vld [vmem:[%s7027_s22 + $0x9c] sm:$0xf]  ;;  %v2751_v39 = vld [vmem:[%s7027_s22 + $0xa0] sm:$0x7] }
 0x271   : > { %v5088_v41 = vpop.f32.mrf.mxu1  ;;  %1977 = vst [vmem:[#allocation2 + $0x4b8] sm:$0xf] %v1901_v62  ;;  %v2623_v62 = vrot.slane %v9375_v29, 4  ;;  %v1902_v9 = vrot.slane %v1900_v52, 4  ;;  %v6701_v52 = vld [vmem:[#allocation2 + $0x44c] sm:$0xf] }
 0x272   : > { %v9406_v21 = vpop.f32.mrf.mxu3  ;;  %2231 = vst [vmem:[#allocation2 + $0x498] sm:$0xf] %v2153_v14  ;;  %v5285_v15 = vadd.f32 %v9284_v1, %v5186_v35  ;;  %v5089_v36 = vadd.f32 %v5088_v41, %v8321_v5  ;;  %v6711_v5 = vld [vmem:[#allocation2 + $0x49c] sm:$0xf]  ;;  %v6230_v41 = vld [vmem:[#allocation2 + $0x4bc] sm:$0xf0] }
 0x273   : > { %2970 = vst [vmem:[#allocation2 + $0x4c4] sm:$0xf] %v2894_v59  ;;  %v2637_v16 = vrot.slane %v2635_v43, 6  ;;  %v2640_v35 = vrot.slane %v2638_v11, 7  ;;  %v2633_v27 = vrot.slane %v2631_v63, 4  ;;  %v6233_v44 = vor.u32 %v6711_v5, %v6230_v41 }
 0x274   : > { %v5385_v22 = vpop.f32.mrf.mxu0  ;;  %v5384_v14 = vadd.f32 %v9369_v7, %v5285_v15  ;;  %v1757_v7 = vld [vmem:[%s7027_s22 + $0x94] sm:$0xf]  ;;  %v6186_v43 = vld [vmem:[#allocation2 + $0x46c] sm:$0xf0] }
 0x275   : > { %v2641_v49 = vor.u32 %v2640_v35, %v2637_v16  ;;  %v1903_v3 = vrot.slane %v1757_v7, 6  ;;  %v6707_v16 = vld [vmem:[#allocation2 + $0x478] sm:$0xf0]  ;;  %v6189_v38 = vor.u32 %v6701_v52, %v6186_v43 }
 0x277   : > { %v5187_v53 = vpop.f32.mrf.mxu2  ;;  %v2642_v29 = vsel %vm8384_vm11, %v2633_v27, %v2641_v49  ;;  %v1905_v30 = vrot.slane %v1903_v3, 4  ;;  %v1904_v59 = vsel %vm8402_vm14, %v1902_v9, %v1903_v3 }
 0x278   : > { %v5188_v12 = vadd.f32 %v5187_v53, %v5089_v36  ;;  %2714 = vst [vmem:[#allocation2 + $0x508] sm:$0xf] %v2642_v29  ;;  %v2161_v36 = vrot.slane %v2016_v31, 6  ;;  %v6710_v31 = vld [vmem:[#allocation2 + $0x494] sm:$0xf] }
 0x279   : > { %v5091_v1 = vpop.f32.mrf.mxu1  ;;  %v1907_v4 = vsel %vm8402_vm14, %v1905_v30, %v1906_v19  ;;  %1978 = vst [vmem:[#allocation2 + $0x4dc] sm:$0xf] %v1904_v59  ;;  %v6228_v19 = vld [vmem:[#allocation2 + $0x498] sm:$0xf] }
 0x27a   : > { %v5287_v18 = vadd.f32 %v9312_v61, %v5188_v12  ;;  %v9434_v50 = vpop.f32.mrf.mxu3  ;;  %v2632_v61 = vsel %vm8384_vm11, %v2623_v62, %v2631_v63  ;;  %v5092_v55 = vadd.f32 %v5091_v1, %v8364_v48  ;;  %v2896_v12 = vrot.slane %v2750_v10, 7  ;;  %1979 = vst [vmem:[#allocation2 + $0x500] sm:$0xf] %v1907_v4  ;;  %v6200_v63 = vld [vmem:[#allocation2 + $0x458] sm:$0xf] }
 0x27b   : > { %2713 = vst [vmem:[#allocation2 + $0x4e4] sm:$0xf] %v2632_v61  ;;  %v2899_v1 = vrot.slane %v2751_v39, 7 }
 0x27c   : > { %v9430_v45 = vpop.f32.mrf.mxu0  ;;  %v5386_v8 = vadd.f32 %v5385_v22, %v5287_v18  ;;  %5130 = vmatmul.bf16.gmra.mxu1 %v6153_v25  ;;  %5229 = vmatmul.bf16.gmra.mxu2 %v6157_v57  ;;  %v2015_v22 = vld [vmem:[%s7027_s22 + $0x9c] sm:$0xf]  ;;  %v6192_v57 = vld [vmem:[#allocation2 + $0x450] sm:$0xf]  ;;  %v2897_v23 = vsel %vm8434_vm1, %v2895_v37, %v2896_v12  ;;  %v2898_v5 = vrot.slane %v2896_v12, 4 }
 0x27d   : > { %v2158_v15 = vrot.slane %v2015_v22, 6  ;;  %2971 = vst [vmem:[#allocation2 + $0x4e8] sm:$0xf] %v2897_v23 }
 0x27e   : > { %v6826_v24 = vpack.c.bf16 %v5386_v8, %v5384_v14  ;;  %5338 = vmatmul.bf16.gmra.mxu3 %v6233_v44  ;;  %v2900_v18 = vsel %vm8434_vm1, %v2898_v5, %v2899_v1  ;;  %v6201_v8 = vor.u32 %v6707_v16, %v6200_v63 }
 0x27f   : > { %5427 = vmatmul.bf16.gmra.mxu0 %v6165_v42  ;;  %v5190_v47 = vpop.f32.mrf.mxu2  ;;  %v2159_v0 = vsel %vm8402_vm14, %v2157_v2, %v2158_v15  ;;  %v2160_v48 = vrot.slane %v2158_v15, 4  ;;  %v6706_v42 = vld [vmem:[#allocation2 + $0x470] sm:$0xf0]  ;;  %2972 = vst [vmem:[#allocation2 + $0x50c] sm:$0xf] %v2900_v18 }
 0x280   : > { %6892 = vst [vmem:[%s9133_s25 + $0x28] sm:$0xff] %v6826_v24   ;;  %v5191_v25 = vadd.f32 %v5190_v47, %v5092_v55  ;;  %v6193_v27 = vor.u32 %v6706_v42, %v6192_v57  ;;  %v6266_v61 = vld [vmem:[#allocation2 + $0x504] sm:$0xf0]  ;;  %v6236_v15 = vld [vmem:[#allocation2 + $0x4a0] sm:$0xf] }
 0x281   : > { %v5093_v17 = vpop.f32.mrf.mxu1  ;;  %v2162_v34 = vsel %vm8402_vm14, %v2160_v48, %v2161_v36  ;;  %2233 = vst [vmem:[#allocation2 + $0x4e0] sm:$0xf] %v2159_v0  ;;  %v6716_v36 = vld [vmem:[#allocation2 + $0x4c0] sm:$0xf0]  ;;  %v6258_v23 = vld [vmem:[#allocation2 + $0x4fc] sm:$0xf0] }
 0x282   : > { %v9456_v11 = vpop.f32.mrf.mxu3  ;;  %v5094_v41 = vadd.f32 %v5093_v17, %v8389_v60  ;;  %2234 = vst [vmem:[#allocation2 + $0x504] sm:$0xf] %v2162_v34  ;;  %v5290_v62 = vadd.f32 %v9345_v26, %v5191_v25  ;;  %v6720_v44 = vld [vmem:[#allocation2 + $0x4e4] sm:$0xf]  ;;  %v6222_v17 = vld [vmem:[#allocation2 + $0x4b4] sm:$0xf0]  ;;  %v6237_v37 = vor.u32 %v6716_v36, %v6236_v15 }
 0x283   : > { %v6269_v3 = vor.u32 %v6720_v44, %v6266_v61  ;;  %v6225_v59 = vor.u32 %v6710_v31, %v6222_v17  ;;  %v6719_v34 = vld [vmem:[#allocation2 + $0x4dc] sm:$0xf] }
 0x284   : > { %v5390_v53 = vpop.f32.mrf.mxu0  ;;  %v5389_v24 = vadd.f32 %v9430_v45, %v5290_v62  ;;  %v6715_v45 = vld [vmem:[#allocation2 + $0x4b8] sm:$0xf0]  ;;  %v6272_v63 = vld [vmem:[#allocation2 + $0x4e8] sm:$0xf] }
 0x285   : > { %v6229_v39 = vor.u32 %v6715_v45, %v6228_v19 }
 0x286   : > { %v6725_v16 = vld [vmem:[#allocation2 + $0x508] sm:$0xf0] }
 0x287   : > { %v5192_v35 = vpop.f32.mrf.mxu2 }
 0x288   : > { %v5193_v14 = vadd.f32 %v5192_v35, %v5094_v41  ;;  %v6264_v5 = vld [vmem:[#allocation2 + $0x4e0] sm:$0xf] }
 0x289   : > { %v5096_v49 = vpop.f32.mrf.mxu1 }
 0x28a   : > { %v5292_v60 = vadd.f32 %v9373_v46, %v5193_v14  ;;  %v5301_v7 = vpop.f32.mrf.mxu3  ;;  %v5097_v22 = vadd.f32 %v5096_v49, %v8441_v20  ;;  %v6261_v14 = vor.u32 %v6719_v34, %v6258_v23 }
 0x28c   : > { %v5393_v29 = vpop.f32.mrf.mxu0  ;;  %v5391_v54 = vadd.f32 %v5390_v53, %v5292_v60  ;;  %5135 = vmatmul.bf16.gmra.mxu1 %v6189_v38  ;;  %5234 = vmatmul.bf16.gmra.mxu2 %v6193_v27 }
 0x28e   : > { %v6831_v26 = vpack.c.bf16 %v5391_v54, %v5389_v24  ;;  %5343 = vmatmul.bf16.gmra.mxu3 %v6269_v3 }
 0x28f   : > { %5432 = vmatmul.bf16.gmra.mxu0 %v6201_v8  ;;  %v5195_v47 = vpop.f32.mrf.mxu2 }
 0x290   : > { %6893 = vst [vmem:[%s9133_s25 + $0x30] sm:$0xff] %v6831_v26   ;;  %v5196_v46 = vadd.f32 %v5195_v47, %v5097_v22 }
 0x291   : > { %v5098_v40 = vpop.f32.mrf.mxu1 }
 0x292   : > { %v9474_v30 = vpop.f32.mrf.mxu3  ;;  %v5099_v2 = vadd.f32 %v5098_v40, %v8458_v28  ;;  %v5295_v55 = vadd.f32 %v9406_v21, %v5196_v46 }
 0x294   : > { %v5395_v9 = vpop.f32.mrf.mxu0  ;;  %v5394_v0 = vadd.f32 %v5393_v29, %v5295_v55 }
 0x297   : > { %v5197_v10 = vpop.f32.mrf.mxu2 }
 0x298   : > { %v5198_v53 = vadd.f32 %v5197_v10, %v5099_v2 }
 0x299   : > { %v5101_v20 = vpop.f32.mrf.mxu1 }
 0x29a   : > { %v5297_v52 = vadd.f32 %v9434_v50, %v5198_v53  ;;  %v5306_v4 = vpop.f32.mrf.mxu3  ;;  %v5102_v21 = vadd.f32 %v5101_v20, %v8499_v33  ;;  %v6724_v50 = vld [vmem:[#allocation2 + $0x500] sm:$0xf0]  ;;  %v6273_v33 = vor.u32 %v6725_v16, %v6272_v63 }
 0x29b   : > { %v6265_v38 = vor.u32 %v6724_v50, %v6264_v5 }
 0x29c   : > { %v5398_v43 = vpop.f32.mrf.mxu0  ;;  %v5396_v48 = vadd.f32 %v5395_v9, %v5297_v52  ;;  %5140 = vmatmul.bf16.gmra.mxu1 %v6225_v59  ;;  %5239 = vmatmul.bf16.gmra.mxu2 %v6229_v39 }
 0x29e   : > { %v6836_v28 = vpack.c.bf16 %v5396_v48, %v5394_v0 }
 0x29f   : > { %5437 = vmatmul.bf16.gmra.mxu0 %v6237_v37  ;;  %v5200_v12 = vpop.f32.mrf.mxu2 }
 0x2a0   : > { %6894 = vst [vmem:[%s9133_s25 + $0x38] sm:$0xff] %v6836_v28   ;;  %v5201_v42 = vadd.f32 %v5200_v12, %v5102_v21 }
 0x2a1   : > { %v5103_v25 = vpop.f32.mrf.mxu1 }
 0x2a2   : > { %v5309_v1 = vpop.f32.mrf.mxu3  ;;  %v5104_v41 = vadd.f32 %v5103_v25, %v8525_v6  ;;  %v5300_v18 = vadd.f32 %v9456_v11, %v5201_v42 }
 0x2a4   : > { %v5400_v57 = vpop.f32.mrf.mxu0  ;;  %v5399_v44 = vadd.f32 %v5398_v43, %v5300_v18 }
 0x2a7   : > { %v5202_v35 = vpop.f32.mrf.mxu2 }
 0x2a8   : > { %v5203_v62 = vadd.f32 %v5202_v35, %v5104_v41 }
 0x2a9   : > { %v5106_v27 = vpop.f32.mrf.mxu1 }
 0x2aa   : > { %v5302_v49 = vadd.f32 %v5301_v7, %v5203_v62  ;;  %v5311_v60 = vpop.f32.mrf.mxu3  ;;  %v5107_v11 = vadd.f32 %v5106_v27, %v8565_v56 }
 0x2ac   : > { %v5403_v8 = vpop.f32.mrf.mxu0  ;;  %v5401_v61 = vadd.f32 %v5400_v57, %v5302_v49  ;;  %5145 = vmatmul.bf16.gmra.mxu1 %v6261_v14  ;;  %5244 = vmatmul.bf16.gmra.mxu2 %v6265_v38 }
 0x2ae   : > { %v6841_v6 = vpack.c.bf16 %v5401_v61, %v5399_v44 }
 0x2af   : > { %5442 = vmatmul.bf16.gmra.mxu0 %v6273_v33  ;;  %v5205_v29 = vpop.f32.mrf.mxu2  ;;  %v9651_v33 = vld [vmem:[#allocation9_spill] sm:$0xff] }
 0x2b0   : > { %6895 = vst [vmem:[%s9133_s25 + $0x40] sm:$0xff] %v6841_v6   ;;  %v5206_v3 = vadd.f32 %v5205_v29, %v5107_v11 }
 0x2b1   : > { %v5108_v24 = vpop.f32.mrf.mxu1 }
 0x2b2   : > { %v5109_v26 = vadd.f32 %v5108_v24, %v8585_v51  ;;  %v5314_v7 = vpop.f32.mrf.mxu3  ;;  %v5305_v40 = vadd.f32 %v9474_v30, %v5206_v3 }
 0x2b4   : > { %v5405_v54 = vpop.f32.mrf.mxu0  ;;  %v5404_v17 = vadd.f32 %v5403_v8, %v5305_v40 }
 0x2b7   : > { %v5207_v47 = vpop.f32.mrf.mxu2 }
 0x2b8   : > { %v5208_v22 = vadd.f32 %v5207_v47, %v5109_v26 }
 0x2b9   : > { %v5111_v9 = vpop.f32.mrf.mxu1 }
 0x2ba   : > { %v5307_v46 = vadd.f32 %v5306_v4, %v5208_v22  ;;  %v5316_v36 = vpop.f32.mrf.mxu3  ;;  %v5112_v56 = vadd.f32 %v5111_v9, %v8627_v58 }
 0x2bc   : > { %v5408_v31 = vpop.f32.mrf.mxu0  ;;  %v5406_v19 = vadd.f32 %v5405_v54, %v5307_v46 }
 0x2be   : > { %v6846_v45 = vpack.c.bf16 %v5406_v19, %v5404_v17 }
 0x2bf   : > { %v5210_v2 = vpop.f32.mrf.mxu2 }
 0x2c0   : > { %6896 = vst [vmem:[%s9133_s25 + $0x48] sm:$0xff] %v6846_v45   ;;  %v5211_v51 = vadd.f32 %v5210_v2, %v5112_v56 }
 0x2c1   : > { %v5113_v15 = vpop.f32.mrf.mxu1 }
 0x2c2   : > { %v5114_v55 = vadd.f32 %v5113_v15, %v8643_v13  ;;  %v5310_v30 = vadd.f32 %v5309_v1, %v5211_v51  ;;  %v5319_v52 = vpop.f32.mrf.mxu3  ;;  %v9649_v13 = vld [vmem:[#allocation16_spill] sm:$0xff] }
 0x2c4   : > { %v5410_v10 = vpop.f32.mrf.mxu0  ;;  %v5409_v43 = vadd.f32 %v5408_v31, %v5310_v30  ;;  %v9653_v31 = vld [vmem:[#allocation12_spill] sm:$0xff] }
 0x2c7   : > { %v5212_v53 = vpop.f32.mrf.mxu2 }
 0x2c8   : > { %v5213_v59 = vadd.f32 %v5212_v53, %v5114_v55 }
 0x2c9   : > { %v5116_v39 = vpop.f32.mrf.mxu1 }
 0x2ca   : > { %v5312_v20 = vadd.f32 %v5311_v60, %v5213_v59  ;;  %v5117_v12 = vadd.f32 %v5116_v39, %v8688_v32  ;;  %v5321_v21 = vpop.f32.mrf.mxu3  ;;  %v9650_v32 = vld [vmem:[#allocation7_spill] sm:$0xff]  ;;  %v9654_v39 = vld [vmem:[#allocation13_spill] sm:$0xff] }
 0x2cc   : > { %v5413_v37 = vpop.f32.mrf.mxu0  ;;  %v5411_v4 = vadd.f32 %v5410_v10, %v5312_v20 }
 0x2ce   : > { %v6851_v0 = vpack.c.bf16 %v5411_v4, %v5409_v43  ;;  %v9655_v43 = vld [vmem:[#allocation14_spill] sm:$0xff] }
 0x2cf   : > { %v5215_v48 = vpop.f32.mrf.mxu2 }
 0x2d0   : > { %6897 = vst [vmem:[%s9133_s25 + $0x50] sm:$0xff] %v6851_v0   ;;  %v5216_v25 = vadd.f32 %v5215_v48, %v5117_v12 }
 0x2d1   : > { %v5118_v28 = vpop.f32.mrf.mxu1 }
 0x2d2   : > { %v5119_v57 = vadd.f32 %v5118_v28, %v9649_v13  ;;  %v5315_v42 = vadd.f32 %v5314_v7, %v5216_v25  ;;  %v5324_v18 = vpop.f32.mrf.mxu3  ;;  %v9652_v7 = vld [vmem:[#allocation11_spill] sm:$0xff] }
 0x2d4   : > { %v5415_v58 = vpop.f32.mrf.mxu0  ;;  %v5414_v41 = vadd.f32 %v5413_v37, %v5315_v42 }
 0x2d7   : > { %v5217_v1 = vpop.f32.mrf.mxu2 }
 0x2d8   : > { %v5218_v34 = vadd.f32 %v5217_v1, %v5119_v57 }
 0x2d9   : > { %v5121_v23 = vpop.f32.mrf.mxu1 }
 0x2da   : > { %v5317_v5 = vadd.f32 %v5316_v36, %v5218_v34  ;;  %v5122_v14 = vadd.f32 %v5121_v23, %v9650_v32  ;;  %v5326_v6 = vpop.f32.mrf.mxu3 }
 0x2dc   : > { %v5418_v50 = vpop.f32.mrf.mxu0  ;;  %v5416_v63 = vadd.f32 %v5415_v58, %v5317_v5  ;;  %v9656_v5 = vld [vmem:[#allocation3_spill] sm:$0xff] }
 0x2de   : > { %v6856_v16 = vpack.c.bf16 %v5416_v63, %v5414_v41 }
 0x2df   : > { %v5220_v35 = vpop.f32.mrf.mxu2 }
 0x2e0   : > { %6898 = vst [vmem:[%s9133_s25 + $0x58] sm:$0xff] %v6856_v16   ;;  %v5221_v27 = vadd.f32 %v5220_v35, %v5122_v14  ;;  %v9657_v16 = vld [vmem:[#allocation4_spill] sm:$0xff] }
 0x2e1   : > { %v5123_v62 = vpop.f32.mrf.mxu1 }
 0x2e2   : > { %v5124_v49 = vadd.f32 %v5123_v62, %v9651_v33  ;;  %v5320_v44 = vadd.f32 %v5319_v52, %v5221_v27  ;;  %v5329_v9 = vpop.f32.mrf.mxu3 }
 0x2e4   : > { %v5420_v38 = vpop.f32.mrf.mxu0  ;;  %v5419_v11 = vadd.f32 %v5418_v50, %v5320_v44 }
 0x2e7   : > { %v5222_v8 = vpop.f32.mrf.mxu2 }
 0x2e8   : > { %v5223_v61 = vadd.f32 %v5222_v8, %v5124_v49 }
 0x2e9   : > { %v5126_v60 = vpop.f32.mrf.mxu1 }
 0x2ea   : > { %v5322_v29 = vadd.f32 %v5321_v21, %v5223_v61  ;;  %v5127_v40 = vadd.f32 %v5126_v60, %v9652_v7  ;;  %v5331_v55 = vpop.f32.mrf.mxu3 }
 0x2ec   : > { %v5423_v24 = vpop.f32.mrf.mxu0  ;;  %v5421_v54 = vadd.f32 %v5420_v38, %v5322_v29 }
 0x2ee   : > { %v6861_v3 = vpack.c.bf16 %v5421_v54, %v5419_v11  ;;  %v9659_v54 = vld [vmem:[#allocation6_spill] sm:$0xff] }
 0x2ef   : > { %v5225_v26 = vpop.f32.mrf.mxu2 }
 0x2f0   : > { %6899 = vst [vmem:[%s9133_s25 + $0x60] sm:$0xff] %v6861_v3   ;;  %v5226_v46 = vadd.f32 %v5225_v26, %v5127_v40 }
 0x2f1   : > { %v5128_v47 = vpop.f32.mrf.mxu1 }
 0x2f2   : > { %v5129_v17 = vadd.f32 %v5128_v47, %v9653_v31  ;;  %v5325_v45 = vadd.f32 %v5324_v18, %v5226_v46  ;;  %v5334_v48 = vpop.f32.mrf.mxu3 }
 0x2f4   : > { %v5425_v22 = vpop.f32.mrf.mxu0  ;;  %v5424_v10 = vadd.f32 %v5423_v24, %v5325_v45 }
 0x2f7   : > { %v5227_v19 = vpop.f32.mrf.mxu2 }
 0x2f8   : > { %v5228_v2 = vadd.f32 %v5227_v19, %v5129_v17 }
 0x2f9   : > { %v5131_v15 = vpop.f32.mrf.mxu1 }
 0x2fa   : > { %v5327_v36 = vadd.f32 %v5326_v6, %v5228_v2  ;;  %v5132_v20 = vadd.f32 %v5131_v15, %v9654_v39  ;;  %v5336_v23 = vpop.f32.mrf.mxu3  ;;  %v9658_v6 = vld [vmem:[#allocation5_spill] sm:$0xff]  ;;  %v9660_v15 = vld [vmem:[#allocation8_spill] sm:$0xff] }
 0x2fc   : > { %v5428_v56 = vpop.f32.mrf.mxu0  ;;  %v5426_v51 = vadd.f32 %v5425_v22, %v5327_v36 }
 0x2fe   : > { %v6866_v53 = vpack.c.bf16 %v5426_v51, %v5424_v10  ;;  %v9661_v51 = vld [vmem:[#allocation10_spill] sm:$0xff] }
 0x2ff   : > { %v5230_v30 = vpop.f32.mrf.mxu2 }
 0x300   : > { %6900 = vst [vmem:[%s9133_s25 + $0x68] sm:$0xff] %v6866_v53   ;;  %v5231_v52 = vadd.f32 %v5230_v30, %v5132_v20 }
 0x301   : > { %v5133_v59 = vpop.f32.mrf.mxu1 }
 0x302   : > { %v5134_v4 = vadd.f32 %v5133_v59, %v9655_v43  ;;  %v5330_v28 = vadd.f32 %v5329_v9, %v5231_v52  ;;  %v5339_v27 = vpop.f32.mrf.mxu3 }
 0x304   : > { %v5430_v37 = vpop.f32.mrf.mxu0  ;;  %v5429_v13 = vadd.f32 %v5428_v56, %v5330_v28 }
 0x307   : > { %v5232_v0 = vpop.f32.mrf.mxu2 }
 0x308   : > { %v5233_v12 = vadd.f32 %v5232_v0, %v5134_v4 }
 0x309   : > { %v5136_v58 = vpop.f32.mrf.mxu1 }
 0x30a   : > { %v5332_v25 = vadd.f32 %v5331_v55, %v5233_v12  ;;  %v5137_v50 = vadd.f32 %v5136_v58, %v9656_v5  ;;  %v5341_v11 = vpop.f32.mrf.mxu3 }
 0x30c   : > { %v5433_v21 = vpop.f32.mrf.mxu0  ;;  %v5431_v57 = vadd.f32 %v5430_v37, %v5332_v25 }
 0x30e   : > { %v6871_v1 = vpack.c.bf16 %v5431_v57, %v5429_v13 }
 0x30f   : > { %v5235_v42 = vpop.f32.mrf.mxu2 }
 0x310   : > { %6901 = vst [vmem:[%s9133_s25 + $0x70] sm:$0xff] %v6871_v1   ;;  %v5236_v63 = vadd.f32 %v5235_v42, %v5137_v50 }
 0x311   : > { %v5138_v34 = vpop.f32.mrf.mxu1 }
 0x312   : > { %v5139_v35 = vadd.f32 %v5138_v34, %v9657_v16  ;;  %v5335_v62 = vadd.f32 %v5334_v48, %v5236_v63  ;;  %v5344_v19 = vpop.f32.mrf.mxu3 }
 0x314   : > { %v5435_v41 = vpop.f32.mrf.mxu0  ;;  %v5434_v33 = vadd.f32 %v5433_v21, %v5335_v62 }
 0x317   : > { %v5237_v18 = vpop.f32.mrf.mxu2 }
 0x318   : > { %v5238_v32 = vadd.f32 %v5237_v18, %v5139_v35 }
 0x319   : > { %v5141_v14 = vpop.f32.mrf.mxu1 }
 0x31a   : > { %v5337_v38 = vadd.f32 %v5336_v23, %v5238_v32  ;;  %v5142_v29 = vadd.f32 %v5141_v14, %v9658_v6  ;;  %v5346_v39 = vpop.f32.mrf.mxu3 }
 0x31c   : > { %v5436_v49 = vadd.f32 %v5435_v41, %v5337_v38  ;;  %v5438_v8 = vpop.f32.mrf.mxu0 }
 0x31e   : > { %v6876_v44 = vpack.c.bf16 %v5436_v49, %v5434_v33 }
 0x31f   : > { %v5240_v61 = vpop.f32.mrf.mxu2 }
 0x320   : > { %6902 = vst [vmem:[%s9133_s25 + $0x78] sm:$0xff] %v6876_v44   ;;  %v5241_v24 = vadd.f32 %v5240_v61, %v5142_v29 }
 0x321   : > { %v5143_v60 = vpop.f32.mrf.mxu1 }
 0x322   : > { %v5144_v3 = vadd.f32 %v5143_v60, %v9659_v54  ;;  %v5340_v7 = vadd.f32 %v5339_v27, %v5241_v24 }
 0x324   : > { %v5440_v26 = vpop.f32.mrf.mxu0  ;;  %v5439_v46 = vadd.f32 %v5438_v8, %v5340_v7 }
 0x327   : > { %v5242_v47 = vpop.f32.mrf.mxu2 }
 0x328   : > { %v5243_v40 = vadd.f32 %v5242_v47, %v5144_v3 }
 0x329   : > { %v5146_v22 = vpop.f32.mrf.mxu1 }
 0x32a   : > { %v5342_v9 = vadd.f32 %v5341_v11, %v5243_v40  ;;  %v5147_v36 = vadd.f32 %v5146_v22, %v9660_v15 }
 0x32c   : > { %v5441_v31 = vadd.f32 %v5440_v26, %v5342_v9  ;;  %v5443_v2 = vpop.f32.mrf.mxu0 }
 0x32e   : > { %v6881_v17 = vpack.c.bf16 %v5441_v31, %v5439_v46 }
 0x32f   : > { %v5245_v45 = vpop.f32.mrf.mxu2 }
 0x330   : > { %6903 = vst [vmem:[%s9133_s25 + $0x80] sm:$0xff] %v6881_v17   ;;  %v5246_v10 = vadd.f32 %v5245_v45, %v5147_v36 }
 0x331   : > { %v5148_v56 = vpop.f32.mrf.mxu1 }
 0x332   : > { %v5149_v55 = vadd.f32 %v5148_v56, %v9661_v51  ;;  %v5345_v30 = vadd.f32 %v5344_v19, %v5246_v10 }
 0x334   : > { %v5445_v37 = vpop.f32.mrf.mxu0  ;;  %v5444_v52 = vadd.f32 %v5443_v2, %v5345_v30 }
 0x337   : > { %v5247_v53 = vpop.f32.mrf.mxu2 }
 0x338   : > { %v5248_v59 = vadd.f32 %v5247_v53, %v5149_v55 }
 0x33a   : > { %v5347_v20 = vadd.f32 %v5346_v39, %v5248_v59 }
 0x33c   : > { %v5446_v43 = vadd.f32 %v5445_v37, %v5347_v20 }
 0x33e   : > { %v6886_v4 = vpack.c.bf16 %v5446_v43, %v5444_v52 }
 0x340   : > { %6904 = vst [vmem:[%s9133_s25 + $0x88] sm:$0xff] %v6886_v4  }
 0x341 PF: > { %s12_s11 = sadd.s32 1, %s6977_s11   ;;  %s9662_s9 = smov %s6973_s10 }
 0x342   : > { %p9_p5 = scmp.ge.s32.totalorder %s12_s11, 4   ;;  %s9663_s10 = smov %s9665_s12 }
 0x344   :  { %11 = sbr.rel (!%p9_p5) target bundleno = 2 (0x2), region = 61 }

</bundles_post_ra>
